<compile_context>
chip_gen: v7x
topology: tpu7x:2x2x1
jax: 0.10.0
libtpu: 0.0.40
codegen_flags: <defaults>
</compile_context>

<pallas_src>
import jax
import jax.numpy as jnp
from jax.experimental import pallas as pl
from jax.experimental.pallas import tpu as pltpu


NETWORK_SIZE_LIST = [75, 1000, 1800, 1200, 7]
# Lane-aligned (multiple-of-128) padded feature widths.
PADDED_SIZE_LIST = [128, 1024, 1920, 1280, 128]


def _round_up(n, m):
    return ((n + m - 1) // m) * m


# ---------------------------------------------------------------------------
# Fused 4-layer MLP kernel: everything stays in VMEM, one HBM output store.
# ---------------------------------------------------------------------------
def _mlp_fused_kernel(x_ref,
                      w1_ref, b1_ref,
                      w2_ref, b2_ref,
                      w3_ref, b3_ref,
                      w4_ref, b4_ref,
                      o_ref,
                      h1_ref, h2_ref, h3_ref):
    def hidden_layer(src_bf16, w_ref, b_ref):
        # bf16 x bf16 on the MXU, f32 accumulation; bias + ReLU in f32 on the
        # VPU; stored back as bf16 (halves activation VMEM + vst/vld traffic).
        y = jnp.dot(src_bf16, w_ref[...], preferred_element_type=jnp.float32)
        y = jnp.maximum(y + b_ref[...], 0.0)   # b_ref is (1, D_out), broadcasts
        return y.astype(jnp.bfloat16)

    h1_ref[...] = hidden_layer(x_ref[...], w1_ref, b1_ref)
    h2_ref[...] = hidden_layer(h1_ref[...], w2_ref, b2_ref)
    h3_ref[...] = hidden_layer(h2_ref[...], w3_ref, b3_ref)

    # Final layer: no ReLU, f32 output straight to HBM.
    y = jnp.dot(h3_ref[...], w4_ref[...], preferred_element_type=jnp.float32)
    o_ref[...] = (y + b4_ref[...]).astype(o_ref.dtype)


def mlp_forward_pallas(x, params_padded, *, batch_tile=256):
    """Fused forward pass.

    x:             [B, 75] float32 (or bf16)
    params_padded: list of (W_bf16 [Din_pad, Dout_pad], b_f32 [1, Dout_pad])
    returns:       [B, 7] float32
    """
    B, d_in = x.shape
    D0 = PADDED_SIZE_LIST[0]
    D1, D2, D3, D4 = PADDED_SIZE_LIST[1:]

    # Pad batch to a sublane/tile multiple; pad input features to 128 lanes.
    b_pad = max(_round_up(B, 8), 8)
    tb = min(batch_tile, b_pad)
    b_pad = _round_up(b_pad, tb)
    # Cast once in the wrapper; kernel reads bf16 directly (no per-layer cast).
    x_pad = jnp.zeros((b_pad, D0), jnp.bfloat16).at[:B, :d_in].set(
        x.astype(jnp.bfloat16))

    grid = (b_pad // tb,)

    def resident_spec(shape):
        # Constant index_map -> fetched once and kept resident; Buffered(1)
        # drops the useless second pipeline buffer (saves ~9 MiB of bf16 weights).
        return pl.BlockSpec(shape, lambda i: (0, 0),
                            pipeline_mode=pl.Buffered(1))

    in_specs = [pl.BlockSpec((tb, D0), lambda i: (i, 0))]
    flat_params = []
    for (w, b) in params_padded:
        in_specs.append(resident_spec(w.shape))
        in_specs.append(resident_spec(b.shape))
        flat_params.extend((w, b))

    out = pl.pallas_call(
        _mlp_fused_kernel,
        out_shape=jax.ShapeDtypeStruct((b_pad, D4), jnp.float32),
        grid=grid,
        in_specs=in_specs,
        out_specs=pl.BlockSpec((tb, D4), lambda i: (i, 0)),
        scratch_shapes=[
            pltpu.VMEM((tb, D1), jnp.bfloat16),
            pltpu.VMEM((tb, D2), jnp.bfloat16),
            pltpu.VMEM((tb, D3), jnp.bfloat16),
        ],
        compiler_params=pltpu.CompilerParams(
            dimension_semantics=("parallel",),
            vmem_limit_bytes=32 * 1024 * 1024,
        ),
    )(x_pad, *flat_params)

    # Slice back to the true batch and the true 7-wide output.
    return out[:B, :NETWORK_SIZE_LIST[-1]]


# ---------------------------------------------------------------------------
# Parameter construction (deterministic, mimics nn.Linear default init:
# U(-1/sqrt(fan_in), 1/sqrt(fan_in)) for both weight and bias).
# ---------------------------------------------------------------------------
def init_params(key):
    params = []
    sizes = NETWORK_SIZE_LIST
    for i in range(len(sizes) - 1):
        d_in, d_out = sizes[i], sizes[i + 1]
        key, kw, kb = jax.random.split(key, 3)
        bound = 1.0 / (d_in ** 0.5)
        w = jax.random.uniform(kw, (d_in, d_out), jnp.float32, -bound, bound)
        b = jax.random.uniform(kb, (d_out,), jnp.float32, -bound, bound)
        params.append((w, b))
    return params


def pad_params(params):
    """Zero-pad weights/biases to lane-aligned widths; cast weights to bf16."""
    padded = []
    for i, (w, b) in enumerate(params):
        din_p, dout_p = PADDED_SIZE_LIST[i], PADDED_SIZE_LIST[i + 1]
        w_p = jnp.zeros((din_p, dout_p), jnp.float32)
        w_p = w_p.at[:w.shape[0], :w.shape[1]].set(w)
        b_p = jnp.zeros((1, dout_p), jnp.float32)
        b_p = b_p.at[0, :b.shape[0]].set(b)
        padded.append((w_p.astype(jnp.bfloat16), b_p))
    return padded


@jax.jit
def net_forward(x, params_padded):
    return mlp_forward_pallas(x, params_padded)


def net_forward_ref(x, params):
    # Pure-JAX f32 reference (original PyTorch semantics) for sanity checking.
    h = x
    for (w, b) in params[:-1]:
        h = jnp.maximum(h @ w + b, 0.0)
    w, b = params[-1]
    return h @ w + b


if __name__ == "__main__":
    key = jax.random.PRNGKey(0)
    key, kx = jax.random.split(key)
    batch = 4
    x = jax.random.normal(kx, (batch, NETWORK_SIZE_LIST[0]), jnp.float32)
    params = init_params(key)
    params_padded = pad_params(params)

    out = net_forward(x, params_padded)
    out = jax.block_until_ready(out)
    assert out.shape == (batch, NETWORK_SIZE_LIST[-1]), out.shape

    ref = net_forward_ref(x, params)
    # bf16 weight/activation streaming -> loosened tolerance vs pure-f32 reference.
    max_err = float(jnp.max(jnp.abs(out - ref)))
    assert jnp.allclose(out, ref, atol=5e-2, rtol=5e-2), \
        f"mismatch vs reference, max_err={max_err}"

    print("KERNEL_OK")
</pallas_src>

<mosaic_0001>
module attributes {stable_mosaic.version = 11 : i64} {
  func.func @_mlp_fused_kernel(%arg0: i32, %arg1: memref<8x128xbf16, #tpu.memory_space<vmem>>, %arg2: memref<128x1024xbf16, #tpu.memory_space<vmem>>, %arg3: memref<1x1024xf32, #tpu.memory_space<vmem>>, %arg4: memref<1024x1920xbf16, #tpu.memory_space<vmem>>, %arg5: memref<1x1920xf32, #tpu.memory_space<vmem>>, %arg6: memref<1920x1280xbf16, #tpu.memory_space<vmem>>, %arg7: memref<1x1280xf32, #tpu.memory_space<vmem>>, %arg8: memref<1280x128xbf16, #tpu.memory_space<vmem>>, %arg9: memref<1x128xf32, #tpu.memory_space<vmem>>, %arg10: memref<8x128xf32, #tpu.memory_space<vmem>>, %arg11: memref<8x1024xbf16, #tpu.memory_space<vmem>>, %arg12: memref<8x1920xbf16, #tpu.memory_space<vmem>>, %arg13: memref<8x1280xbf16, #tpu.memory_space<vmem>>) attributes {dimension_semantics = [#tpu.dimension_semantics<parallel>], iteration_bounds = array<i64: 1>, scalar_prefetch = 0 : i64, scratch_operands = 3 : i64, tpu.core_type = #tpu.core_type<tc>, window_params = [{transform_indices = @transform_0, window_bounds = array<i64: 8, 128>}, {pipeline_mode = #tpu.pipeline_mode<synchronous>, transform_indices = @transform_1, window_bounds = array<i64: 128, 1024>}, {pipeline_mode = #tpu.pipeline_mode<synchronous>, transform_indices = @transform_2, window_bounds = array<i64: 1, 1024>}, {pipeline_mode = #tpu.pipeline_mode<synchronous>, transform_indices = @transform_3, window_bounds = array<i64: 1024, 1920>}, {pipeline_mode = #tpu.pipeline_mode<synchronous>, transform_indices = @transform_4, window_bounds = array<i64: 1, 1920>}, {pipeline_mode = #tpu.pipeline_mode<synchronous>, transform_indices = @transform_5, window_bounds = array<i64: 1920, 1280>}, {pipeline_mode = #tpu.pipeline_mode<synchronous>, transform_indices = @transform_6, window_bounds = array<i64: 1, 1280>}, {pipeline_mode = #tpu.pipeline_mode<synchronous>, transform_indices = @transform_7, window_bounds = array<i64: 1280, 128>}, {pipeline_mode = #tpu.pipeline_mode<synchronous>, transform_indices = @transform_8, window_bounds = array<i64: 1, 128>}, {transform_indices = @transform_9, window_bounds = array<i64: 8, 128>}]} {
    %c0 = arith.constant 0 : index
    %c0_0 = arith.constant 0 : index
    %0 = vector.load %arg1[%c0, %c0_0] : memref<8x128xbf16, #tpu.memory_space<vmem>>, vector<8x128xbf16>
    %c0_1 = arith.constant 0 : index
    %c0_2 = arith.constant 0 : index
    %1 = vector.load %arg2[%c0_1, %c0_2] : memref<128x1024xbf16, #tpu.memory_space<vmem>>, vector<128x1024xbf16>
    %cst = arith.constant dense<0.000000e+00> : vector<8x1024xf32>
    %2 = tpu.matmul %0, %1, %cst {dimension_numbers = #tpu.dot_dimension_numbers<[1], [0], [0], [1], [0, 0, 1, 1], [], []>} : vector<8x128xbf16>, vector<128x1024xbf16>, vector<8x1024xf32> -> vector<8x1024xf32>
    %c0_3 = arith.constant 0 : index
    %c0_4 = arith.constant 0 : index
    %3 = vector.load %arg3[%c0_3, %c0_4] : memref<1x1024xf32, #tpu.memory_space<vmem>>, vector<1x1024xf32>
    %4 = vector.broadcast %3 : vector<1x1024xf32> to vector<8x1024xf32>
    %5 = arith.addf %2, %4 : vector<8x1024xf32>
    %cst_5 = arith.constant 0.000000e+00 : f32
    %6 = vector.broadcast %cst_5 : f32 to vector<8x1024xf32>
    %7 = arith.maximumf %5, %6 : vector<8x1024xf32>
    %8 = arith.truncf %7 : vector<8x1024xf32> to vector<8x1024xbf16>
    %c0_6 = arith.constant 0 : index
    %c0_7 = arith.constant 0 : index
    %9 = vector.load %arg11[%c0_6, %c0_7] : memref<8x1024xbf16, #tpu.memory_space<vmem>>, vector<8x1024xbf16>
    tpu.vector_store %arg11[%c0_6, %c0_7], %8 {strides = array<i32>} : memref<8x1024xbf16, #tpu.memory_space<vmem>>, vector<8x1024xbf16>,
    %c0_8 = arith.constant 0 : index
    %c0_9 = arith.constant 0 : index
    %10 = vector.load %arg11[%c0_8, %c0_9] : memref<8x1024xbf16, #tpu.memory_space<vmem>>, vector<8x1024xbf16>
    %c0_10 = arith.constant 0 : index
    %c0_11 = arith.constant 0 : index
    %11 = vector.load %arg4[%c0_10, %c0_11] : memref<1024x1920xbf16, #tpu.memory_space<vmem>>, vector<1024x1920xbf16>
    %cst_12 = arith.constant dense<0.000000e+00> : vector<8x1920xf32>
    %12 = tpu.matmul %10, %11, %cst_12 {dimension_numbers = #tpu.dot_dimension_numbers<[1], [0], [0], [1], [0, 0, 1, 1], [], []>} : vector<8x1024xbf16>, vector<1024x1920xbf16>, vector<8x1920xf32> -> vector<8x1920xf32>
    %c0_13 = arith.constant 0 : index
    %c0_14 = arith.constant 0 : index
    %13 = vector.load %arg5[%c0_13, %c0_14] : memref<1x1920xf32, #tpu.memory_space<vmem>>, vector<1x1920xf32>
    %14 = vector.broadcast %13 : vector<1x1920xf32> to vector<8x1920xf32>
    %15 = arith.addf %12, %14 : vector<8x1920xf32>
    %cst_15 = arith.constant 0.000000e+00 : f32
    %16 = vector.broadcast %cst_15 : f32 to vector<8x1920xf32>
    %17 = arith.maximumf %15, %16 : vector<8x1920xf32>
    %18 = arith.truncf %17 : vector<8x1920xf32> to vector<8x1920xbf16>
    %c0_16 = arith.constant 0 : index
    %c0_17 = arith.constant 0 : index
    %19 = vector.load %arg12[%c0_16, %c0_17] : memref<8x1920xbf16, #tpu.memory_space<vmem>>, vector<8x1920xbf16>
    tpu.vector_store %arg12[%c0_16, %c0_17], %18 {strides = array<i32>} : memref<8x1920xbf16, #tpu.memory_space<vmem>>, vector<8x1920xbf16>,
    %c0_18 = arith.constant 0 : index
    %c0_19 = arith.constant 0 : index
    %20 = vector.load %arg12[%c0_18, %c0_19] : memref<8x1920xbf16, #tpu.memory_space<vmem>>, vector<8x1920xbf16>
    %c0_20 = arith.constant 0 : index
    %c0_21 = arith.constant 0 : index
    %21 = vector.load %arg6[%c0_20, %c0_21] : memref<1920x1280xbf16, #tpu.memory_space<vmem>>, vector<1920x1280xbf16>
    %cst_22 = arith.constant dense<0.000000e+00> : vector<8x1280xf32>
    %22 = tpu.matmul %20, %21, %cst_22 {dimension_numbers = #tpu.dot_dimension_numbers<[1], [0], [0], [1], [0, 0, 1, 1], [], []>} : vector<8x1920xbf16>, vector<1920x1280xbf16>, vector<8x1280xf32> -> vector<8x1280xf32>
    %c0_23 = arith.constant 0 : index
    %c0_24 = arith.constant 0 : index
    %23 = vector.load %arg7[%c0_23, %c0_24] : memref<1x1280xf32, #tpu.memory_space<vmem>>, vector<1x1280xf32>
    %24 = vector.broadcast %23 : vector<1x1280xf32> to vector<8x1280xf32>
    %25 = arith.addf %22, %24 : vector<8x1280xf32>
    %cst_25 = arith.constant 0.000000e+00 : f32
    %26 = vector.broadcast %cst_25 : f32 to vector<8x1280xf32>
    %27 = arith.maximumf %25, %26 : vector<8x1280xf32>
    %28 = arith.truncf %27 : vector<8x1280xf32> to vector<8x1280xbf16>
    %c0_26 = arith.constant 0 : index
    %c0_27 = arith.constant 0 : index
    %29 = vector.load %arg13[%c0_26, %c0_27] : memref<8x1280xbf16, #tpu.memory_space<vmem>>, vector<8x1280xbf16>
    tpu.vector_store %arg13[%c0_26, %c0_27], %28 {strides = array<i32>} : memref<8x1280xbf16, #tpu.memory_space<vmem>>, vector<8x1280xbf16>,
    %c0_28 = arith.constant 0 : index
    %c0_29 = arith.constant 0 : index
    %30 = vector.load %arg13[%c0_28, %c0_29] : memref<8x1280xbf16, #tpu.memory_space<vmem>>, vector<8x1280xbf16>
    %c0_30 = arith.constant 0 : index
    %c0_31 = arith.constant 0 : index
    %31 = vector.load %arg8[%c0_30, %c0_31] : memref<1280x128xbf16, #tpu.memory_space<vmem>>, vector<1280x128xbf16>
    %cst_32 = arith.constant dense<0.000000e+00> : vector<8x128xf32>
    %32 = tpu.matmul %30, %31, %cst_32 {dimension_numbers = #tpu.dot_dimension_numbers<[1], [0], [0], [1], [0, 0, 1, 1], [], []>} : vector<8x1280xbf16>, vector<1280x128xbf16>, vector<8x128xf32> -> vector<8x128xf32>
    %c0_33 = arith.constant 0 : index
    %c0_34 = arith.constant 0 : index
    %33 = vector.load %arg9[%c0_33, %c0_34] : memref<1x128xf32, #tpu.memory_space<vmem>>, vector<1x128xf32>
    %34 = vector.broadcast %33 : vector<1x128xf32> to vector<8x128xf32>
    %35 = arith.addf %32, %34 : vector<8x128xf32>
    %c0_35 = arith.constant 0 : index
    %c0_36 = arith.constant 0 : index
    %36 = vector.load %arg10[%c0_35, %c0_36] : memref<8x128xf32, #tpu.memory_space<vmem>>, vector<8x128xf32>
    tpu.vector_store %arg10[%c0_35, %c0_36], %35 {strides = array<i32>} : memref<8x128xf32, #tpu.memory_space<vmem>>, vector<8x128xf32>,
    return
  }
  func.func @transform_0(%arg0: i32) -> (i32, i32) {
    %c0_i32 = arith.constant 0 : i32
    %c0_i32_0 = arith.constant 0 : i32
    return %arg0, %c0_i32 : i32, i32
  }
  func.func @transform_1(%arg0: i32) -> (i32, i32) {
    %c0_i32 = arith.constant 0 : i32
    %c0_i32_0 = arith.constant 0 : i32
    %c0_i32_1 = arith.constant 0 : i32
    return %c0_i32, %c0_i32_0 : i32, i32
  }
  func.func @transform_2(%arg0: i32) -> (i32, i32) {
    %c0_i32 = arith.constant 0 : i32
    %c0_i32_0 = arith.constant 0 : i32
    %c0_i32_1 = arith.constant 0 : i32
    return %c0_i32, %c0_i32_0 : i32, i32
  }
  func.func @transform_3(%arg0: i32) -> (i32, i32) {
    %c0_i32 = arith.constant 0 : i32
    %c0_i32_0 = arith.constant 0 : i32
    %c0_i32_1 = arith.constant 0 : i32
    return %c0_i32, %c0_i32_0 : i32, i32
  }
  func.func @transform_4(%arg0: i32) -> (i32, i32) {
    %c0_i32 = arith.constant 0 : i32
    %c0_i32_0 = arith.constant 0 : i32
    %c0_i32_1 = arith.constant 0 : i32
    return %c0_i32, %c0_i32_0 : i32, i32
  }
  func.func @transform_5(%arg0: i32) -> (i32, i32) {
    %c0_i32 = arith.constant 0 : i32
    %c0_i32_0 = arith.constant 0 : i32
    %c0_i32_1 = arith.constant 0 : i32
    return %c0_i32, %c0_i32_0 : i32, i32
  }
  func.func @transform_6(%arg0: i32) -> (i32, i32) {
    %c0_i32 = arith.constant 0 : i32
    %c0_i32_0 = arith.constant 0 : i32
    %c0_i32_1 = arith.constant 0 : i32
    return %c0_i32, %c0_i32_0 : i32, i32
  }
  func.func @transform_7(%arg0: i32) -> (i32, i32) {
    %c0_i32 = arith.constant 0 : i32
    %c0_i32_0 = arith.constant 0 : i32
    %c0_i32_1 = arith.constant 0 : i32
    return %c0_i32, %c0_i32_0 : i32, i32
  }
  func.func @transform_8(%arg0: i32) -> (i32, i32) {
    %c0_i32 = arith.constant 0 : i32
    %c0_i32_0 = arith.constant 0 : i32
    %c0_i32_1 = arith.constant 0 : i32
    return %c0_i32, %c0_i32_0 : i32, i32
  }
  func.func @transform_9(%arg0: i32) -> (i32, i32) {
    %c0_i32 = arith.constant 0 : i32
    %c0_i32_0 = arith.constant 0 : i32
    return %arg0, %c0_i32 : i32, i32
  }
}

</mosaic_0001>

<bundles_post_ra>
// kernel: net_forward.1
= control target key start
LH: loop header
LB: loop body
LE: loop exit
PB: predicated region body
PF: predicated region fallthrough
CT: control target
= control target key end

     0   :  { %14 = vsyncpa [#allocation6], 0  ;;  %s24970_s0 = inlined_call_operand.vmem [shape: bf16[8,128], index: 0, kind: input, shape index: {}]   ;;  %s24971_s1 = inlined_call_operand.hbm [shape: bf16[128,1024], index: 1, kind: input, shape index: {}]   ;;  %s24972_s2 = inlined_call_operand.hbm [shape: f32[1,1024], index: 2, kind: input, shape index: {}]   ;;  %s24973_s3 = inlined_call_operand.hbm [shape: bf16[1024,1920], index: 3, kind: input, shape index: {}]   ;;  %s24974_s4 = inlined_call_operand.hbm [shape: f32[1,1920], index: 4, kind: input, shape index: {}]   ;;  %s24975_s5 = inlined_call_operand.hbm [shape: bf16[1920,1280], index: 5, kind: input, shape index: {}]   ;;  %s24976_s6 = inlined_call_operand.hbm [shape: f32[1,1280], index: 6, kind: input, shape index: {}]   ;;  %s24977_s7 = inlined_call_operand.hbm [shape: bf16[1280,128], index: 7, kind: input, shape index: {}]   ;;  %s24978_s8 = inlined_call_operand.hbm [shape: f32[1,128], index: 8, kind: input, shape index: {}]   ;;  %s24979_s9 = inlined_call_operand.vmem [shape: f32[8,128], index: 9, kind: output, shape index: {}]  }
   0x1   :  { %15 = vsyncpa [#allocation8], 0 }
   0x2   :  { %16 = vsyncpa [#allocation11], 0 }
   0x3   :  { %17 = vsyncpa [#allocation14], 0 }
   0x4   :  { %18 = vsyncpa [#allocation17], 0  ;;  %s24412_s30 = smov [#allocation7]   ;;  %s24413_s11 = smov [#allocation10]  }
   0x5   :  { %s39_s10 = sshll.u32 %s24412_s30, 4  ;;  %s61_s12 = sshll.u32 %s24413_s11, 4  ;;  %s40_s10 = int_to_ptr.vmem [resolvable:$true] %s39_s10  ;;  %s62_s12 = int_to_ptr.vmem [resolvable:$true] %s61_s12 }
   0x6   :  { %s24226_s15 = scalar_lea.hbm %s24972_s2, 128 }
   0x7   :  { %p24227_p0 = scmp.ne.s32.totalorder %s24972_s2, %s24226_s15  ;;  %p24230_p1 = scmp.lt.u32.totalorder %s24226_s15, %s24972_s2 }
   0x9   :  { %p24232_p2 = pnand %p24230_p1, %p24227_p0 }
   0xb   :  { %24235 = shalt.err (!%p24232_p2)
}
   0xc   :  { %s24236_s20 = scalar_lea.vmem %s40_s10, 128  ;;  %p24241_p4 = scmp.lt.s32.totalorder %s40_s10, %s40_s10 }
   0xd   :  { %p24237_p3 = scmp.ne.s32.totalorder %s40_s10, %s24236_s20  ;;  %p24242_p5 = scmp.lt.s32.totalorder %s24236_s20, %s24236_s20 }
   0xf   :  { %p24243_p6 = por %p24242_p5, %p24241_p4 }
  0x11   :  { %p24244_p7 = pnand %p24243_p6, %p24237_p3 }
  0x13   :  { %24247 = shalt.err (!%p24244_p7)
}
  0x14   :  { %42 = dma.hbm_to_vmem [thread:$0]  %s24972_s2, 128, %s40_s10, [#allocation8]  }
  0x15   :  { %s24248_s25 = scalar_lea.hbm %s24974_s4, 240 }
  0x16   :  { %p24249_p8 = scmp.ne.s32.totalorder %s24974_s4, %s24248_s25  ;;  %p24252_p9 = scmp.lt.u32.totalorder %s24248_s25, %s24974_s4 }
  0x18   :  { %p24254_p10 = pnand %p24252_p9, %p24249_p8 }
  0x1a   :  { %24257 = shalt.err (!%p24254_p10)
}
  0x1b   :  { %s24258_s30 = scalar_lea.vmem %s62_s12, 240  ;;  %s24262_s11 = scalar_lea.vmem %s62_s12, 256 }
  0x1c   :  { %p24259_p11 = scmp.ne.s32.totalorder %s62_s12, %s24258_s30  ;;  %p24263_p12 = scmp.lt.s32.totalorder %s62_s12, %s62_s12 }
  0x1d   :  { %p24264_p13 = scmp.lt.s32.totalorder %s24262_s11, %s24258_s30 }
  0x1f   :  { %p24265_p0 = por %p24264_p13, %p24263_p12 }
  0x21   :  { %p24266_p1 = pnand %p24265_p0, %p24259_p11 }
  0x23   :  { %24269 = shalt.err (!%p24266_p1)
}
  0x24   :  { %64 = dma.hbm_to_vmem [thread:$0]  %s24974_s4, 240, %s62_s12, [#allocation11]  }
  0x25   :  { %s24414_s13 = smov [#allocation13]   ;;  %s24415_s15 = smov [#allocation5]  }
  0x26   :  { %s83_s14 = sshll.u32 %s24414_s13, 4  ;;  %s26_s16 = sshll.u32 %s24415_s15, 4  ;;  %s84_s14 = int_to_ptr.vmem [resolvable:$true] %s83_s14  ;;  %s24503_s16 = int_to_ptr.vmem [resolvable:$true] %s26_s16 }
  0x27   :  { %s24270_s19 = scalar_lea.hbm %s24976_s6, 160 }
  0x28   :  { %p24271_p2 = scmp.ne.s32.totalorder %s24976_s6, %s24270_s19  ;;  %p24274_p3 = scmp.lt.u32.totalorder %s24270_s19, %s24976_s6 }
  0x2a   :  { %p24276_p4 = pnand %p24274_p3, %p24271_p2 }
  0x2c   :  { %24279 = shalt.err (!%p24276_p4)
}
  0x2d   :  { %s24280_s4 = scalar_lea.vmem %s84_s14, 160  ;;  %p24285_p6 = scmp.lt.s32.totalorder %s84_s14, %s84_s14 }
  0x2e   :  { %p24281_p5 = scmp.ne.s32.totalorder %s84_s14, %s24280_s4  ;;  %p24286_p7 = scmp.lt.s32.totalorder %s24280_s4, %s24280_s4 }
  0x30   :  { %p24287_p8 = por %p24286_p7, %p24285_p6 }
  0x32   :  { %p24288_p9 = pnand %p24287_p8, %p24281_p5 }
  0x34   :  { %24291 = shalt.err (!%p24288_p9)
}
  0x35   :  { %86 = dma.hbm_to_vmem [thread:$0]  %s24976_s6, 160, %s84_s14, [#allocation14]  }
  0x36   :  { %s24292_s27 = scalar_lea.hbm %s24971_s1, 8192 }
  0x37   :  { %p24293_p10 = scmp.ne.s32.totalorder %s24971_s1, %s24292_s27  ;;  %p24296_p11 = scmp.lt.u32.totalorder %s24292_s27, %s24971_s1 }
  0x39   :  { %p24298_p12 = pnand %p24296_p11, %p24293_p10 }
  0x3b   :  { %24301 = shalt.err (!%p24298_p12)
}
  0x3c   :  { %s24302_s2 = scalar_lea.vmem %s24503_s16, 8192  ;;  %p24307_p0 = scmp.lt.s32.totalorder %s24503_s16, %s24503_s16 }
  0x3d   :  { %p24303_p13 = scmp.ne.s32.totalorder %s24503_s16, %s24302_s2  ;;  %p24308_p1 = scmp.lt.s32.totalorder %s24302_s2, %s24302_s2 }
  0x3f   :  { %p24309_p2 = por %p24308_p1, %p24307_p0 }
  0x41   :  { %p24310_p3 = pnand %p24309_p2, %p24303_p13 }
  0x43   :  { %24313 = shalt.err (!%p24310_p3)
}
  0x44   :  { %s24416_s6 = smov 512   ;;  %s24417_s10 = smov 32  }
  0x45   :  { %32 = dma.hbm_to_vmem [thread:$0]  %s24971_s1, 8192, %s24503_s16, [#allocation6], %s24416_s6, %s24416_s6, %s24417_s10  }
  0x46   :  { %s24418_s15 = smov [#allocation9]   ;;  %s24314_s20 = scalar_lea.hbm %s24973_s3, 122880 }
  0x47   :  { %s48_s17 = sshll.u32 %s24418_s15, 4  ;;  %p24315_p4 = scmp.ne.s32.totalorder %s24973_s3, %s24314_s20  ;;  %s49_s17 = int_to_ptr.vmem [resolvable:$true] %s48_s17 }
  0x48   :  { %p24318_p5 = scmp.lt.u32.totalorder %s24314_s20, %s24973_s3 }
  0x4a   :  { %p24320_p6 = pnand %p24318_p5, %p24315_p4 }
  0x4c   :  { %24323 = shalt.err (!%p24320_p6)
}
  0x4d   :  { %s24324_s12 = scalar_lea.vmem %s49_s17, 122880  ;;  %p24329_p8 = scmp.lt.s32.totalorder %s49_s17, %s49_s17 }
  0x4e   :  { %p24325_p7 = scmp.ne.s32.totalorder %s49_s17, %s24324_s12  ;;  %p24330_p9 = scmp.lt.s32.totalorder %s24324_s12, %s24324_s12 }
  0x50   :  { %p24331_p10 = por %p24330_p9, %p24329_p8 }
  0x52   :  { %p24332_p11 = pnand %p24331_p10, %p24325_p7 }
  0x54   :  { %24335 = shalt.err (!%p24332_p11)
}
  0x55   :  { %s24419_s1 = smov 960   ;;  %s24420_s16 = smov 60  }
  0x56   :  { %54 = dma.hbm_to_vmem [thread:$0]  %s24973_s3, 122880, %s49_s17, [#allocation8], %s24419_s1, %s24419_s1, %s24420_s16  }
  0x57   :  { %s24421_s26 = smov [#allocation12]   ;;  %s24336_s30 = scalar_lea.hbm %s24975_s5, 153600 }
  0x58   :  { %s70_s27 = sshll.u32 %s24421_s26, 4  ;;  %p24337_p12 = scmp.ne.s32.totalorder %s24975_s5, %s24336_s30  ;;  %s71_s27 = int_to_ptr.vmem [resolvable:$true] %s70_s27 }
  0x59   :  { %p24340_p13 = scmp.lt.u32.totalorder %s24336_s30, %s24975_s5 }
  0x5b   :  { %p24342_p0 = pnand %p24340_p13, %p24337_p12 }
  0x5d   :  { %24345 = shalt.err (!%p24342_p0)
}
  0x5e   :  { %s24346_s13 = scalar_lea.vmem %s71_s27, 153600  ;;  %p24351_p2 = scmp.lt.s32.totalorder %s71_s27, %s71_s27 }
  0x5f   :  { %p24347_p1 = scmp.ne.s32.totalorder %s71_s27, %s24346_s13  ;;  %p24352_p3 = scmp.lt.s32.totalorder %s24346_s13, %s24346_s13 }
  0x61   :  { %p24353_p4 = por %p24352_p3, %p24351_p2 }
  0x63   :  { %p24354_p5 = pnand %p24353_p4, %p24347_p1 }
  0x65   :  { %24357 = shalt.err (!%p24354_p5)
}
  0x66   :  { %s24422_s3 = smov 640   ;;  %s24423_s14 = smov 40  }
  0x67   :  { %76 = dma.hbm_to_vmem [thread:$0]  %s24975_s5, 153600, %s71_s27, [#allocation11], %s24422_s3, %s24422_s3, %s24423_s14  }
  0x68   :  { %s24424_s18 = smov [#allocation15]   ;;  %s24358_s22 = scalar_lea.hbm %s24977_s7, 10240 }
  0x69   :  { %s92_s19 = sshll.u32 %s24424_s18, 4  ;;  %p24359_p6 = scmp.ne.s32.totalorder %s24977_s7, %s24358_s22  ;;  %s93_s19 = int_to_ptr.vmem [resolvable:$true] %s92_s19 }
  0x6a   :  { %p24362_p7 = scmp.lt.u32.totalorder %s24358_s22, %s24977_s7 }
  0x6c   :  { %p24364_p8 = pnand %p24362_p7, %p24359_p6 }
  0x6e   :  { %24367 = shalt.err (!%p24364_p8)
}
  0x6f   :  { %s24368_s16 = scalar_lea.vmem %s93_s19, 10240  ;;  %p24373_p10 = scmp.lt.s32.totalorder %s93_s19, %s93_s19 }
  0x70   :  { %p24369_p9 = scmp.ne.s32.totalorder %s93_s19, %s24368_s16  ;;  %p24374_p11 = scmp.lt.s32.totalorder %s24368_s16, %s24368_s16 }
  0x72   :  { %p24375_p12 = por %p24374_p11, %p24373_p10 }
  0x74   :  { %p24376_p13 = pnand %p24375_p12, %p24369_p9 }
  0x76   :  { %24379 = shalt.err (!%p24376_p13)
}
  0x77   :  { %s24425_s5 = smov 64   ;;  %s24426_s24 = smov 4  }
  0x78   :  { %98 = dma.hbm_to_vmem [thread:$0]  %s24977_s7, 10240, %s93_s19, [#allocation14], %s24425_s5, %s24425_s5, %s24426_s24  }
  0x79   :  { %s24427_s27 = smov [#allocation16]   ;;  %s24380_s11 = scalar_lea.hbm %s24978_s8, 16 }
  0x7a   :  { %s105_s28 = sshll.u32 %s24427_s27, 4  ;;  %p24381_p0 = scmp.ne.s32.totalorder %s24978_s8, %s24380_s11  ;;  %s106_s28 = int_to_ptr.vmem [resolvable:$true] %s105_s28 }
  0x7b   :  { %p24384_p1 = scmp.lt.u32.totalorder %s24380_s11, %s24978_s8 }
  0x7d   :  { %p24386_p2 = pnand %p24384_p1, %p24381_p0 }
  0x7f   :  { %24389 = shalt.err (!%p24386_p2)
}
  0x80   :  { %s24390_s3 = scalar_lea.vmem %s106_s28, 16  ;;  %s24394_s7 = scalar_lea.vmem %s106_s28, 32 }
  0x81   :  { %p24391_p3 = scmp.ne.s32.totalorder %s106_s28, %s24390_s3  ;;  %p24395_p4 = scmp.lt.s32.totalorder %s106_s28, %s106_s28 }
  0x82   :  { %p24396_p5 = scmp.lt.s32.totalorder %s24394_s7, %s24390_s3 }
  0x84   :  { %p24397_p6 = por %p24396_p5, %p24395_p4 }
  0x86   :  { %p24398_p7 = pnand %p24397_p6, %p24391_p3 }
  0x88   :  { %24401 = shalt.err (!%p24398_p7)
}
  0x89   :  { %108 = dma.hbm_to_vmem [thread:$0]  %s24978_s8, 16, %s106_s28, [#allocation17]  }
  0x8a   :  { %24402 = dma.done.wait [#allocation6], 8192  }
  0x8b   :  { %24403 = vsyncadd [#allocation6], 4294959104 }
  0x8c   :  { %24404 = dma.done.wait [#allocation8], 123008  }
  0x8d   :  { %24405 = vsyncadd [#allocation8], 4294844288 }
  0x8e   :  { %24406 = dma.done.wait [#allocation11], 153840  }
  0x8f   :  { %24407 = vsyncadd [#allocation11], 4294813456 }
  0x90   :  { %24408 = dma.done.wait [#allocation14], 10400  }
  0x91   :  { %24409 = vsyncadd [#allocation14], 4294956896 }
  0x92   :  { %24410 = dma.done.wait [#allocation17], 16  }
  0x93   :  { %24411 = vsyncadd [#allocation17], 4294967280  ;;  %v24428_v0 = vmov 0   ;;  %v135_v1 = vld [vmem:[#allocation5] sm:$0xff]  ;;  %v138_v23 = vld [vmem:[#allocation5 + $0x18] sm:$0xff] }
  0x94   :  { %593 = vmatprep.mubr.bf16.mxu0 %v24428_v0  ;;  %716 = vmatprep.mubr.bf16.mxu1 %v24428_v0  ;;  %v139_v2 = vld [vmem:[#allocation5 + $0x20] sm:$0xff]  ;;  %v142_v24 = vld [vmem:[#allocation5 + $0x38] sm:$0xff]  ;;  %v136_v46 = vld [vmem:[#allocation5 + $0x8] sm:$0xff] }
  0x95   :  { %v143_v3 = vld [vmem:[#allocation5 + $0x40] sm:$0xff]  ;;  %v18068_v4 = vcombine.high %v135_v1, %v139_v2  ;;  %v18067_v5 = vcombine.low %v135_v1, %v139_v2  ;;  %v18074_v27 = vcombine.high %v138_v23, %v142_v24  ;;  %v18073_v28 = vcombine.low %v138_v23, %v142_v24  ;;  %v146_v29 = vld [vmem:[#allocation5 + $0x58] sm:$0xff]  ;;  %v140_v47 = vld [vmem:[#allocation5 + $0x28] sm:$0xff] }
  0x96   :  { %v147_v6 = vld [vmem:[#allocation5 + $0x60] sm:$0xff]  ;;  %v150_v30 = vld [vmem:[#allocation5 + $0x78] sm:$0xff]  ;;  %v18070_v53 = vcombine.high %v136_v46, %v140_v47  ;;  %v144_v54 = vld [vmem:[#allocation5 + $0x48] sm:$0xff]  ;;  %v18069_v60 = vcombine.low %v136_v46, %v140_v47 }
  0x97   :  { %v18076_v7 = vcombine.high %v143_v3, %v147_v6  ;;  %v151_v8 = vld [vmem:[#allocation5 + $0x80] sm:$0xff]  ;;  %561 = vmatprep.subr.bf16.mxu0 %v18068_v4  ;;  %v18075_v10 = vcombine.low %v143_v3, %v147_v6  ;;  %v18082_v32 = vcombine.high %v146_v29, %v150_v30  ;;  %v154_v33 = vld [vmem:[#allocation5 + $0x98] sm:$0xff]  ;;  %684 = vmatprep.subr.bf16.mxu1 %v18074_v27  ;;  %v148_v56 = vld [vmem:[#allocation5 + $0x68] sm:$0xff] }
  0x98   :  { %v155_v9 = vld [vmem:[#allocation5 + $0xa0] sm:$0xff]  ;;  %562 = vmatpush1.bf16.msra.mxu0 %v18067_v5  ;;  %v158_v34 = vld [vmem:[#allocation5 + $0xb8] sm:$0xff]  ;;  %685 = vmatpush1.bf16.msra.mxu1 %v18073_v28  ;;  %v18081_v36 = vcombine.low %v146_v29, %v150_v30  ;;  %v18078_v61 = vcombine.high %v144_v54, %v148_v56  ;;  %v152_v62 = vld [vmem:[#allocation5 + $0x88] sm:$0xff]  ;;  %v18077_v5 = vcombine.low %v144_v54, %v148_v56 }
  0x99   :  { %563 = vmatprep.subr.bf16.mxu0 %v18076_v7  ;;  %v18084_v11 = vcombine.high %v151_v8, %v155_v9  ;;  %v159_v12 = vld [vmem:[#allocation5 + $0xc0] sm:$0xff]  ;;  %v18083_v14 = vcombine.low %v151_v8, %v155_v9  ;;  %686 = vmatprep.subr.bf16.mxu1 %v18082_v32  ;;  %v18090_v40 = vcombine.high %v154_v33, %v158_v34  ;;  %v162_v41 = vld [vmem:[#allocation5 + $0xd8] sm:$0xff]  ;;  %v156_v1 = vld [vmem:[#allocation5 + $0xa8] sm:$0xff] }
  0x9a   :  { %v163_v13 = vld [vmem:[#allocation5 + $0xe0] sm:$0xff]  ;;  %v166_v42 = vld [vmem:[#allocation5 + $0xf8] sm:$0xff]  ;;  %v18089_v44 = vcombine.low %v154_v33, %v158_v34  ;;  %v18086_v6 = vcombine.high %v152_v62, %v156_v1  ;;  %v160_v7 = vld [vmem:[#allocation5 + $0xc8] sm:$0xff] }
  0x9b   :  { %v18092_v15 = vcombine.high %v159_v12, %v163_v13  ;;  %v167_v16 = vld [vmem:[#allocation5 + $0x100] sm:$0xff]  ;;  %v18091_v18 = vcombine.low %v159_v12, %v163_v13  ;;  %v18098_v48 = vcombine.high %v162_v41, %v166_v42  ;;  %v170_v49 = vld [vmem:[#allocation5 + $0x118] sm:$0xff]  ;;  %v18097_v52 = vcombine.low %v162_v41, %v166_v42  ;;  %v164_v9 = vld [vmem:[#allocation5 + $0xe8] sm:$0xff] }
  0x9c   :  { %564 = vmatpush1.bf16.msra.mxu0 %v18075_v10  ;;  %v171_v17 = vld [vmem:[#allocation5 + $0x120] sm:$0xff]  ;;  %687 = vmatpush1.bf16.msra.mxu1 %v18081_v36  ;;  %v174_v50 = vld [vmem:[#allocation5 + $0x138] sm:$0xff]  ;;  %v18085_v13 = vcombine.low %v152_v62, %v156_v1  ;;  %v180_v23 = vld [vmem:[#allocation5 + $0x168] sm:$0xff] }
  0x9d   :  { %565 = vmatprep.subr.bf16.mxu0 %v18084_v11  ;;  %v18100_v19 = vcombine.high %v167_v16, %v171_v17  ;;  %v175_v20 = vld [vmem:[#allocation5 + $0x140] sm:$0xff]  ;;  %v18099_v22 = vcombine.low %v167_v16, %v171_v17  ;;  %688 = vmatprep.subr.bf16.mxu1 %v18090_v40  ;;  %v18106_v55 = vcombine.high %v170_v49, %v174_v50  ;;  %v178_v57 = vld [vmem:[#allocation5 + $0x158] sm:$0xff]  ;;  %v168_v16 = vld [vmem:[#allocation5 + $0x108] sm:$0xff] }
  0x9e   :  { %v179_v21 = vld [vmem:[#allocation5 + $0x160] sm:$0xff]  ;;  %v182_v58 = vld [vmem:[#allocation5 + $0x178] sm:$0xff]  ;;  %v18105_v63 = vcombine.low %v170_v49, %v174_v50  ;;  %v172_v17 = vld [vmem:[#allocation5 + $0x128] sm:$0xff] }
  0x9f   :  { %v18108_v25 = vcombine.high %v175_v20, %v179_v21  ;;  %v183_v26 = vld [vmem:[#allocation5 + $0x180] sm:$0xff]  ;;  %v18107_v35 = vcombine.low %v175_v20, %v179_v21  ;;  %v18114_v2 = vcombine.high %v178_v57, %v182_v58  ;;  %v186_v3 = vld [vmem:[#allocation5 + $0x198] sm:$0xff]  ;;  %v18113_v8 = vcombine.low %v178_v57, %v182_v58  ;;  %v176_v21 = vld [vmem:[#allocation5 + $0x148] sm:$0xff] }
  0xa0   :  { %566 = vmatpush1.bf16.msra.mxu0 %v18083_v14  ;;  %v187_v31 = vld [vmem:[#allocation5 + $0x1a0] sm:$0xff]  ;;  %689 = vmatpush1.bf16.msra.mxu1 %v18089_v44  ;;  %v190_v4 = vld [vmem:[#allocation5 + $0x1b8] sm:$0xff]  ;;  %v18094_v14 = vcombine.high %v160_v7, %v164_v9  ;;  %v18102_v20 = vcombine.high %v168_v16, %v172_v17  ;;  %v20947_v24 = vld [vmem:[#allocation9 + $0x78c] ss:$60 sps:$4 sm:$0xff]   ;;  %v18110_v30 = vcombine.high %v176_v21, %v180_v23 }
  0xa1   :  { %567 = vmatprep.subr.bf16.mxu0 %v18092_v15  ;;  %v18116_v37 = vcombine.high %v183_v26, %v187_v31  ;;  %v191_v38 = vld [vmem:[#allocation5 + $0x1c0] sm:$0xff]  ;;  %v18115_v43 = vcombine.low %v183_v26, %v187_v31  ;;  %690 = vmatprep.subr.bf16.mxu1 %v18098_v48  ;;  %v18122_v10 = vcombine.high %v186_v3, %v190_v4  ;;  %v194_v11 = vld [vmem:[#allocation5 + $0x1d8] sm:$0xff]  ;;  %v184_v26 = vld [vmem:[#allocation5 + $0x188] sm:$0xff] }
  0xa2   :  { %v195_v39 = vld [vmem:[#allocation5 + $0x1e0] sm:$0xff]  ;;  %v198_v12 = vld [vmem:[#allocation5 + $0x1f8] sm:$0xff]  ;;  %v18121_v15 = vcombine.low %v186_v3, %v190_v4  ;;  %v188_v27 = vld [vmem:[#allocation5 + $0x1a8] sm:$0xff]  ;;  %v18109_v32 = vcombine.low %v176_v21, %v180_v23 }
  0xa3   :  { %v18124_v45 = vcombine.high %v191_v38, %v195_v39  ;;  %v18123_v51 = vcombine.low %v191_v38, %v195_v39  ;;  %v24587_v59 = vld [vmem:[%s24970_s0] sm:$0xf]  ;;  %v20945_v28 = vld [vmem:[#allocation9 + $0x788] ss:$60 sps:$4 sm:$0xff]   ;;  %v18118_v36 = vcombine.high %v184_v26, %v188_v27  ;;  %v18117_v38 = vcombine.low %v184_v26, %v188_v27  ;;  %v20965_v41 = vld [vmem:[#allocation9 + $0x8f4] ss:$60 sps:$4 sm:$0xff]  }
  0xa4   :  { %568 = vmatpush1.bf16.msra.mxu0 %v18091_v18  ;;  %691 = vmatpush1.bf16.msra.mxu1 %v18097_v52  ;;  %v18130_v18 = vcombine.high %v194_v11, %v198_v12  ;;  %v20953_v29 = vld [vmem:[#allocation9 + $0x804] ss:$60 sps:$4 sm:$0xff]   ;;  %v137_v39 = vld [vmem:[#allocation5 + $0x10] sm:$0xff]  ;;  %v20926_v21 = vld [vmem:[#allocation9 + $0xf4] ss:$60 sps:$4 sm:$0xff]  }
  0xa5   :  { %569 = vmatprep.subr.bf16.mxu0 %v18100_v19  ;;  %692 = vmatprep.subr.bf16.mxu1 %v18106_v55  ;;  %v18093_v19 = vcombine.low %v160_v7, %v164_v9  ;;  %v20951_v31 = vld [vmem:[#allocation9 + $0x800] ss:$60 sps:$4 sm:$0xff]   ;;  %v141_v40 = vld [vmem:[#allocation5 + $0x30] sm:$0xff] }
  0xa6   :  { %v192_v33 = vld [vmem:[#allocation5 + $0x1c8] sm:$0xff]  ;;  %v149_v46 = vld [vmem:[#allocation5 + $0x70] sm:$0xff]  ;;  %v18072_v48 = vcombine.high %v137_v39, %v141_v40  ;;  %v18071_v50 = vcombine.low %v137_v39, %v141_v40  ;;  %v20935_v27 = vld [vmem:[#allocation9 + $0x25c] ss:$60 sps:$4 sm:$0xff]  }
  0xa7   :  { %v196_v34 = vld [vmem:[#allocation5 + $0x1e8] sm:$0xff]  ;;  %v20971_v47 = vld [vmem:[#allocation9 + $0x96c] ss:$60 sps:$4 sm:$0xff]   ;;  %v20950_v40 = vld [vmem:[#allocation9 + $0x43c] ss:$60 sps:$4 sm:$0xff]  }
  0xa8   :  { %570 = vmatpush1.bf16.msra.mxu0 %v18099_v22  ;;  %693 = vmatpush1.bf16.msra.mxu1 %v18105_v63  ;;  %v18129_v22 = vcombine.low %v194_v11, %v198_v12  ;;  %v18126_v42 = vcombine.high %v192_v33, %v196_v34  ;;  %v18125_v44 = vcombine.low %v192_v33, %v196_v34  ;;  %v20969_v49 = vld [vmem:[#allocation9 + $0x968] ss:$60 sps:$4 sm:$0xff]   ;;  %v20975_v55 = vld [vmem:[#allocation9 + $0x9e0] ss:$60 sps:$4 sm:$0xff]   ;;  %v20987_v34 = vld [vmem:[#allocation9 + $0xad0] ss:$60 sps:$4 sm:$0xff]  }
  0xa9   :  { %571 = vmatprep.subr.bf16.mxu0 %v18108_v25  ;;  %694 = vmatprep.subr.bf16.mxu1 %v18114_v2  ;;  %v18101_v25 = vcombine.low %v168_v16, %v172_v17  ;;  %v157_v52 = vld [vmem:[#allocation5 + $0xb0] sm:$0xff]  ;;  %v20920_v16 = vld [vmem:[#allocation9 + $0x4] ss:$60 sps:$4 sm:$0xff]  }
  0xaa   :  { %v161_v57 = vld [vmem:[#allocation5 + $0xd0] sm:$0xff]  ;;  %v20930_v26 = vld [vmem:[#allocation9 + $0x1e0] ss:$60 sps:$4 sm:$0xff]  }
  0xab   :  { %v165_v58 = vld [vmem:[#allocation5 + $0xf0] sm:$0xff]  ;;  %v20942_v39 = vld [vmem:[#allocation9 + $0x3c0] ss:$60 sps:$4 sm:$0xff]  }
  0xac   :  { %572 = vmatpush1.bf16.msra.mxu0 %v18107_v35  ;;  %695 = vmatpush1.bf16.msra.mxu1 %v18113_v8  ;;  %v20959_v35 = vld [vmem:[#allocation9 + $0x87c] ss:$60 sps:$4 sm:$0xff]   ;;  %v169_v62 = vld [vmem:[#allocation5 + $0x110] sm:$0xff]  ;;  %v18096_v1 = vcombine.high %v161_v57, %v165_v58  ;;  %v18095_v2 = vcombine.low %v161_v57, %v165_v58  ;;  %v21025_v58 = vld [vmem:[#allocation9 + $0xda4] ss:$60 sps:$4 sm:$0xff]  }
  0xad   :  { %573 = vmatprep.subr.bf16.mxu0 %v18116_v37  ;;  %696 = vmatprep.subr.bf16.mxu1 %v18122_v10  ;;  %v20957_v37 = vld [vmem:[#allocation9 + $0x878] ss:$60 sps:$4 sm:$0xff]   ;;  %v173_v63 = vld [vmem:[#allocation5 + $0x130] sm:$0xff]  ;;  %v21023_v57 = vld [vmem:[#allocation9 + $0xda0] ss:$60 sps:$4 sm:$0xff]  }
  0xae   :  { %v177_v3 = vld [vmem:[#allocation5 + $0x150] sm:$0xff] }
  0xaf   :  { %v181_v4 = vld [vmem:[#allocation5 + $0x170] sm:$0xff] }
  0xb0   :  { %574 = vmatpush1.bf16.msra.mxu0 %v18115_v43  ;;  %697 = vmatpush1.bf16.msra.mxu1 %v18121_v15  ;;  %v20963_v43 = vld [vmem:[#allocation9 + $0x8f0] ss:$60 sps:$4 sm:$0xff]   ;;  %v18112_v9 = vcombine.high %v177_v3, %v181_v4  ;;  %v18111_v10 = vcombine.low %v177_v3, %v181_v4 }
  0xb1   :  { %575 = vmatprep.subr.bf16.mxu0 %v18124_v45  ;;  %698 = vmatprep.subr.bf16.mxu1 %v18130_v18  ;;  %v145_v45 = vld [vmem:[#allocation5 + $0x50] sm:$0xff]  ;;  %v20918_v18 = vld [vmem:[#allocation9] ss:$60 sps:$4 sm:$0xff]   ;;  %v21037_v3 = vld [vmem:[#allocation9 + $0xe94] ss:$60 sps:$4 sm:$0xff]  }
  0xb2   :  { %v18080_v54 = vcombine.high %v145_v45, %v149_v46  ;;  %v18079_v56 = vcombine.low %v145_v45, %v149_v46  ;;  %v185_v7 = vld [vmem:[#allocation5 + $0x190] sm:$0xff]  ;;  %v21005_v45 = vld [vmem:[#allocation9 + $0xc38] ss:$60 sps:$4 sm:$0xff]  }
  0xb3   :  { %v189_v8 = vld [vmem:[#allocation5 + $0x1b0] sm:$0xff]  ;;  %v21007_v46 = vld [vmem:[#allocation9 + $0xc3c] ss:$60 sps:$4 sm:$0xff]  }
  0xb4   :  { %576 = vmatpush1.bf16.msra.mxu0 %v18123_v51  ;;  %699 = vmatpush1.bf16.msra.mxu1 %v18129_v22  ;;  %v153_v51 = vld [vmem:[#allocation5 + $0x90] sm:$0xff] }
  0xb5   :  { %602 = vmatprep.subr.bf16.mxu0 %v18070_v53  ;;  %6973 = vmatprep.subr.bf16.mxu1 %v20947_v24  ;;  %v20977_v53 = vld [vmem:[#allocation9 + $0x9e4] ss:$60 sps:$4 sm:$0xff]   ;;  %v193_v11 = vld [vmem:[#allocation5 + $0x1d0] sm:$0xff] }
  0xb6   :  { %v197_v12 = vld [vmem:[#allocation5 + $0x1f0] sm:$0xff] }
  0xb7   :  { %594 = vmatmul.mubr.bf16.vlgmr.msra.gmra.mrb[0].mxu0 %v24587_v59  ;;  %717 = vmatmul.mubr.bf16.vlgmr.msra.gmra.mrb[0].mxu1 %v24587_v59  ;;  %v18128_v15 = vcombine.high %v193_v11, %v197_v12  ;;  %v18127_v17 = vcombine.low %v193_v11, %v197_v12  ;;  %v20924_v22 = vld [vmem:[#allocation9 + $0xf0] ss:$60 sps:$4 sm:$0xff]   ;;  %v20927_v24 = vld [vmem:[#allocation9 + $0x168] ss:$60 sps:$4 sm:$0xff]   ;;  %v24600_v11 = vld [vmem:[#allocation7] sm:$0xff] }
  0xb8   :  { %603 = vmatpush1.bf16.msra.mxu0 %v18069_v60  ;;  %634 = vmatprep.mubr.bf16.mxu0 %v24428_v0  ;;  %v18088_v60 = vcombine.high %v153_v51, %v157_v52  ;;  %v20929_v23 = vld [vmem:[#allocation9 + $0x16c] ss:$60 sps:$4 sm:$0xff]  }
  0xb9   :  { %604 = vmatprep.subr.bf16.mxu0 %v18078_v61  ;;  %6974 = vmatpush1.bf16.msra.mxu1 %v20945_v28  ;;  %v18087_v61 = vcombine.low %v153_v51, %v157_v52  ;;  %v20933_v28 = vld [vmem:[#allocation9 + $0x258] ss:$60 sps:$4 sm:$0xff]   ;;  %v20941_v33 = vld [vmem:[#allocation9 + $0x34c] ss:$60 sps:$4 sm:$0xff]   ;;  %v20968_v52 = vld [vmem:[#allocation9 + $0x5a4] ss:$60 sps:$4 sm:$0xff]  }
  0xba   :  { %6975 = vmatprep.subr.bf16.mxu1 %v20953_v29  ;;  %v20983_v29 = vld [vmem:[#allocation9 + $0xa5c] ss:$60 sps:$4 sm:$0xff]   ;;  %v20960_v51 = vld [vmem:[#allocation9 + $0x528] ss:$60 sps:$4 sm:$0xff]   ;;  %v21035_v4 = vld [vmem:[#allocation9 + $0xe90] ss:$60 sps:$4 sm:$0xff]  }
  0xbc   :  { %605 = vmatpush1.bf16.msra.mxu0 %v18077_v5  ;;  %v18104_v5 = vcombine.high %v169_v62, %v173_v63 }
  0xbd   :  { %606 = vmatprep.subr.bf16.mxu0 %v18086_v6  ;;  %6976 = vmatpush1.bf16.msra.mxu1 %v20951_v31  ;;  %v18103_v6 = vcombine.low %v169_v62, %v173_v63  ;;  %v20936_v31 = vld [vmem:[#allocation9 + $0x2d0] ss:$60 sps:$4 sm:$0xff]   ;;  %v21031_v62 = vld [vmem:[#allocation9 + $0xe1c] ss:$60 sps:$4 sm:$0xff]  }
  0xbe   :  { %6977 = vmatprep.subr.bf16.mxu1 %v20959_v35  ;;  %v20939_v35 = vld [vmem:[#allocation9 + $0x348] ss:$60 sps:$4 sm:$0xff]   ;;  %v20978_v63 = vld [vmem:[#allocation9 + $0x690] ss:$60 sps:$4 sm:$0xff]  }
  0xc0   :  { %607 = vmatpush1.bf16.msra.mxu0 %v18085_v13  ;;  %v18120_v13 = vcombine.high %v185_v7, %v189_v8 }
  0xc1   :  { %608 = vmatprep.subr.bf16.mxu0 %v18094_v14  ;;  %6978 = vmatpush1.bf16.msra.mxu1 %v20957_v37  ;;  %v18119_v14 = vcombine.low %v185_v7, %v189_v8  ;;  %v20944_v37 = vld [vmem:[#allocation9 + $0x3c4] ss:$60 sps:$4 sm:$0xff]   ;;  %v21043_v7 = vld [vmem:[#allocation9 + $0xf0c] ss:$60 sps:$4 sm:$0xff]   ;;  %v201_v8 = vlaneseq }
  0xc2   :  { %6979 = vmatprep.subr.bf16.mxu1 %v20965_v41  ;;  %v20999_v41 = vld [vmem:[#allocation9 + $0xbc0] ss:$60 sps:$4 sm:$0xff]  }
  0xc4   :  { %609 = vmatpush1.bf16.msra.mxu0 %v18093_v19  ;;  %v20923_v19 = vld [vmem:[#allocation9 + $0x7c] ss:$60 sps:$4 sm:$0xff]  }
  0xc5   :  { %610 = vmatprep.subr.bf16.mxu0 %v18102_v20  ;;  %6980 = vmatpush1.bf16.msra.mxu1 %v20963_v43  ;;  %v20921_v20 = vld [vmem:[#allocation9 + $0x78] ss:$60 sps:$4 sm:$0xff]  }
  0xc6   :  { %6981 = vmatprep.subr.bf16.mxu1 %v20971_v47  ;;  %v20948_v43 = vld [vmem:[#allocation9 + $0x438] ss:$60 sps:$4 sm:$0xff]   ;;  %v20954_v47 = vld [vmem:[#allocation9 + $0x4b0] ss:$60 sps:$4 sm:$0xff]  }
  0xc8   :  { %611 = vmatpush1.bf16.msra.mxu0 %v18101_v25  ;;  %v20932_v25 = vld [vmem:[#allocation9 + $0x1e4] ss:$60 sps:$4 sm:$0xff]  }
  0xc9   :  { %612 = vmatprep.subr.bf16.mxu0 %v18110_v30  ;;  %6982 = vmatpush1.bf16.msra.mxu1 %v20969_v49  ;;  %v20981_v30 = vld [vmem:[#allocation9 + $0xa58] ss:$60 sps:$4 sm:$0xff]   ;;  %v21011_v49 = vld [vmem:[#allocation9 + $0xcb0] ss:$60 sps:$4 sm:$0xff]  }
  0xca   :  { %6983 = vmatprep.subr.bf16.mxu1 %v20977_v53  ;;  %v21017_v53 = vld [vmem:[#allocation9 + $0xd28] ss:$60 sps:$4 sm:$0xff]  }
  0xcc   :  { %613 = vmatpush1.bf16.msra.mxu0 %v18109_v32  ;;  %v20989_v32 = vld [vmem:[#allocation9 + $0xad4] ss:$60 sps:$4 sm:$0xff]  }
  0xcd   :  { %614 = vmatprep.subr.bf16.mxu0 %v18118_v36  ;;  %6984 = vmatpush1.bf16.msra.mxu1 %v20975_v55  ;;  %v20995_v36 = vld [vmem:[#allocation9 + $0xb4c] ss:$60 sps:$4 sm:$0xff]   ;;  %v20966_v55 = vld [vmem:[#allocation9 + $0x5a0] ss:$60 sps:$4 sm:$0xff]  }
  0xce   :  { %6985 = vmatprep.subr.bf16.mxu1 %v20983_v29  ;;  %v21002_v29 = vld [vmem:[#allocation9 + $0x870] ss:$60 sps:$4 sm:$0xff]  }
  0xd0   :  { %615 = vmatpush1.bf16.msra.mxu0 %v18117_v38  ;;  %v20993_v38 = vld [vmem:[#allocation9 + $0xb48] ss:$60 sps:$4 sm:$0xff]  }
  0xd1   :  { %616 = vmatprep.subr.bf16.mxu0 %v18126_v42  ;;  %6986 = vmatpush1.bf16.msra.mxu1 %v20981_v30  ;;  %v21001_v42 = vld [vmem:[#allocation9 + $0xbc4] ss:$60 sps:$4 sm:$0xff]  }
  0xd2   :  { %6987 = vmatprep.subr.bf16.mxu1 %v20989_v32  ;;  %v21008_v30 = vld [vmem:[#allocation9 + $0x8e8] ss:$60 sps:$4 sm:$0xff]   ;;  %v21014_v32 = vld [vmem:[#allocation9 + $0x960] ss:$60 sps:$4 sm:$0xff]  }
  0xd4   :  { %617 = vmatpush1.bf16.msra.mxu0 %v18125_v44  ;;  %v20956_v44 = vld [vmem:[#allocation9 + $0x4b4] ss:$60 sps:$4 sm:$0xff]  }
  0xd5   :  { %643 = vmatprep.subr.bf16.mxu0 %v18072_v48  ;;  %6988 = vmatpush1.bf16.msra.mxu1 %v20987_v34  ;;  %v20962_v48 = vld [vmem:[#allocation9 + $0x52c] ss:$60 sps:$4 sm:$0xff]  }
  0xd6   :  { %6989 = vmatprep.subr.bf16.mxu1 %v20995_v36 }
  0xd7   :  { %635 = vmatmul.mubr.bf16.vlgmr.msra.gmra.mrb[4].mxu0 %v24587_v59 }
  0xd8   :  { %644 = vmatpush1.bf16.msra.mxu0 %v18071_v50  ;;  %675 = vmatprep.mubr.bf16.mxu0 %v24428_v0  ;;  %v21013_v50 = vld [vmem:[#allocation9 + $0xcb4] ss:$60 sps:$4 sm:$0xff]  }
  0xd9   :  { %645 = vmatprep.subr.bf16.mxu0 %v18080_v54  ;;  %6990 = vmatpush1.bf16.msra.mxu1 %v20993_v38  ;;  %v21019_v54 = vld [vmem:[#allocation9 + $0xd2c] ss:$60 sps:$4 sm:$0xff]  }
  0xda   :  { %6991 = vmatprep.subr.bf16.mxu1 %v21001_v42  ;;  %v21034_v42 = vld [vmem:[#allocation9 + $0xacc] ss:$60 sps:$4 sm:$0xff]  }
  0xdc   :  { %646 = vmatpush1.bf16.msra.mxu0 %v18079_v56  ;;  %v20974_v56 = vld [vmem:[#allocation9 + $0x61c] ss:$60 sps:$4 sm:$0xff]  }
  0xdd   :  { %647 = vmatprep.subr.bf16.mxu0 %v18088_v60  ;;  %6992 = vmatpush1.bf16.msra.mxu1 %v20999_v41  ;;  %v20972_v60 = vld [vmem:[#allocation9 + $0x618] ss:$60 sps:$4 sm:$0xff]  }
  0xde   :  { %6993 = vmatprep.subr.bf16.mxu1 %v21007_v46 }
  0xe0   :  { %648 = vmatpush1.bf16.msra.mxu0 %v18087_v61  ;;  %v20980_v61 = vld [vmem:[#allocation9 + $0x694] ss:$60 sps:$4 sm:$0xff]  }
  0xe1   :  { %649 = vmatprep.subr.bf16.mxu0 %v18096_v1  ;;  %6994 = vmatpush1.bf16.msra.mxu1 %v21005_v45  ;;  %v21029_v1 = vld [vmem:[#allocation9 + $0xe18] ss:$60 sps:$4 sm:$0xff]  }
  0xe2   :  { %6995 = vmatprep.subr.bf16.mxu1 %v21013_v50 }
  0xe4   :  { %650 = vmatpush1.bf16.msra.mxu0 %v18095_v2  ;;  %v20986_v2 = vld [vmem:[#allocation9 + $0x70c] ss:$60 sps:$4 sm:$0xff]  }
  0xe5   :  { %651 = vmatprep.subr.bf16.mxu0 %v18104_v5  ;;  %6996 = vmatpush1.bf16.msra.mxu1 %v21011_v49  ;;  %v20984_v5 = vld [vmem:[#allocation9 + $0x708] ss:$60 sps:$4 sm:$0xff]  }
  0xe6   :  { %6997 = vmatprep.subr.bf16.mxu1 %v21019_v54  ;;  %v21040_v54 = vld [vmem:[#allocation9 + $0xb44] ss:$60 sps:$4 sm:$0xff]  }
  0xe8   :  { %652 = vmatpush1.bf16.msra.mxu0 %v18103_v6  ;;  %v20992_v6 = vld [vmem:[#allocation9 + $0x784] ss:$60 sps:$4 sm:$0xff]  }
  0xe9   :  { %653 = vmatprep.subr.bf16.mxu0 %v18112_v9  ;;  %6998 = vmatpush1.bf16.msra.mxu1 %v21017_v53  ;;  %v24595_v9 = vshrl.u32 %v201_v8, 7  ;;  %v21056_v8 = vld [vmem:[#allocation9 + $0xca8] ss:$60 sps:$4 sm:$0xff]  }
  0xea   :  { %6999 = vmatprep.subr.bf16.mxu1 %v21025_v58  ;;  %v21041_v58 = vld [vmem:[#allocation9 + $0xf08] ss:$60 sps:$4 sm:$0xff]  }
  0xeb   :  { %v24603_v12 = vsub.s32 1, %v24595_v9  ;;  %v24616_v34 = vsub.s32 2, %v24595_v9  ;;  %v24619_v36 = vsub.s32 3, %v24595_v9 }
  0xec   :  { %654 = vmatpush1.bf16.msra.mxu0 %v18111_v10  ;;  %v24598_v10 = vsub.s32 0, %v24595_v9 }
  0xed   :  { %655 = vmatprep.subr.bf16.mxu0 %v18120_v13  ;;  %7000 = vmatpush1.bf16.msra.mxu1 %v21023_v57  ;;  %v212_v38 = vrot.slane %v24600_v11, %v24616_v34 }
  0xee   :  { %7001 = vmatprep.subr.bf16.mxu1 %v21031_v62  ;;  %v204_v13 = vrot.slane %v24600_v11, %v24598_v10  ;;  %v21049_v62 = vld [vmem:[#allocation9 + $0xf84] ss:$60 sps:$4 sm:$0xff]  }
  0xf0   :  { %656 = vmatpush1.bf16.msra.mxu0 %v18119_v14  ;;  %v208_v14 = vrot.slane %v24600_v11, %v24603_v12 }
  0xf1   :  { %657 = vmatprep.subr.bf16.mxu0 %v18128_v15  ;;  %7002 = vmatpush1.bf16.msra.mxu1 %v21029_v1  ;;  %v21047_v1 = vld [vmem:[#allocation9 + $0xf80] ss:$60 sps:$4 sm:$0xff]  }
  0xf2   :  { %7003 = vmatprep.subr.bf16.mxu1 %v21037_v3  ;;  %v21055_v3 = vld [vmem:[#allocation9 + $0xffc] ss:$60 sps:$4 sm:$0xff]  }
  0xf4   :  { %658 = vmatpush1.bf16.msra.mxu0 %v18127_v17 }
  0xf5   :  { %6768 = vmatprep.subr.bf16.mxu0 %v20920_v16  ;;  %7004 = vmatpush1.bf16.msra.mxu1 %v21035_v4  ;;  %v21050_v4 = vld [vmem:[#allocation9 + $0xc30] ss:$60 sps:$4 sm:$0xff]  }
  0xf6   :  { %7014 = vmatprep.subr.bf16.mxu1 %v21043_v7  ;;  %v21061_v7 = vld [vmem:[#allocation9 + $0x1074] ss:$60 sps:$4 sm:$0xff]  }
  0xf7   :  { %676 = vmatmul.mubr.bf16.vlgmr.msra.gmra.mrb[8].mxu0 %v24587_v59  ;;  %v20938_v59 = vld [vmem:[#allocation9 + $0x2d4] ss:$60 sps:$4 sm:$0xff]  }
  0xf8   :  { %6769 = vmatpush1.bf16.msra.mxu0 %v20918_v18 }
  0xf9   :  { %6770 = vmatprep.subr.bf16.mxu0 %v20923_v19 }
  0xfc   :  { %6771 = vmatpush1.bf16.msra.mxu0 %v20921_v20 }
  0xfd   :  { %6772 = vmatprep.subr.bf16.mxu0 %v20926_v21 }
 0x100   :  { %6773 = vmatpush1.bf16.msra.mxu0 %v20924_v22 }
 0x101   :  { %6774 = vmatprep.subr.bf16.mxu0 %v20929_v23  ;;  %v20990_v23 = vld [vmem:[#allocation9 + $0x780] ss:$60 sps:$4 sm:$0xff]  }
 0x104   :  { %6775 = vmatpush1.bf16.msra.mxu0 %v20927_v24 }
 0x105   :  { %6776 = vmatprep.subr.bf16.mxu0 %v20932_v25 }
 0x108   :  { %6777 = vmatpush1.bf16.msra.mxu0 %v20930_v26  ;;  %v20998_v26 = vld [vmem:[#allocation9 + $0x7fc] ss:$60 sps:$4 sm:$0xff]  }
 0x109   :  { %6778 = vmatprep.subr.bf16.mxu0 %v20935_v27  ;;  %v20996_v27 = vld [vmem:[#allocation9 + $0x7f8] ss:$60 sps:$4 sm:$0xff]  }
 0x10c   :  { %6779 = vmatpush1.bf16.msra.mxu0 %v20933_v28  ;;  %v21004_v28 = vld [vmem:[#allocation9 + $0x874] ss:$60 sps:$4 sm:$0xff]  }
 0x10d   :  { %6780 = vmatprep.subr.bf16.mxu0 %v20938_v59  ;;  %v21010_v59 = vld [vmem:[#allocation9 + $0x8ec] ss:$60 sps:$4 sm:$0xff]  }
 0x110   :  { %6781 = vmatpush1.bf16.msra.mxu0 %v20936_v31  ;;  %v21016_v31 = vld [vmem:[#allocation9 + $0x964] ss:$60 sps:$4 sm:$0xff]  }
 0x111   :  { %6782 = vmatprep.subr.bf16.mxu0 %v20941_v33  ;;  %v21022_v33 = vld [vmem:[#allocation9 + $0x9dc] ss:$60 sps:$4 sm:$0xff]  }
 0x114   :  { %6783 = vmatpush1.bf16.msra.mxu0 %v20939_v35  ;;  %v21020_v35 = vld [vmem:[#allocation9 + $0x9d8] ss:$60 sps:$4 sm:$0xff]  }
 0x115   :  { %6784 = vmatprep.subr.bf16.mxu0 %v20944_v37  ;;  %v21028_v37 = vld [vmem:[#allocation9 + $0xa54] ss:$60 sps:$4 sm:$0xff]  }
 0x118   :  { %6785 = vmatpush1.bf16.msra.mxu0 %v20942_v39  ;;  %v21026_v39 = vld [vmem:[#allocation9 + $0xa50] ss:$60 sps:$4 sm:$0xff]  }
 0x119   :  { %6786 = vmatprep.subr.bf16.mxu0 %v20950_v40  ;;  %v216_v40 = vrot.slane %v24600_v11, %v24619_v36 }
 0x11c   :  { %6787 = vmatpush1.bf16.msra.mxu0 %v20948_v43 }
 0x11d   :  { %6788 = vmatprep.subr.bf16.mxu0 %v20956_v44 }
 0x120   :  { %6789 = vmatpush1.bf16.msra.mxu0 %v20954_v47 }
 0x121   :  { %6790 = vmatprep.subr.bf16.mxu0 %v20962_v48 }
 0x124   :  { %6791 = vmatpush1.bf16.msra.mxu0 %v20960_v51  ;;  %v21032_v51 = vld [vmem:[#allocation9 + $0xac8] ss:$60 sps:$4 sm:$0xff]  }
 0x125   :  { %6792 = vmatprep.subr.bf16.mxu0 %v20968_v52 }
 0x128   :  { %6793 = vmatpush1.bf16.msra.mxu0 %v20966_v55 }
 0x129   :  { %6794 = vmatprep.subr.bf16.mxu0 %v20974_v56  ;;  %v21038_v56 = vld [vmem:[#allocation9 + $0xb40] ss:$60 sps:$4 sm:$0xff]  }
 0x12c   :  { %6795 = vmatpush1.bf16.msra.mxu0 %v20972_v60  ;;  %v21046_v60 = vld [vmem:[#allocation9 + $0xbbc] ss:$60 sps:$4 sm:$0xff]  }
 0x12d   :  { %6796 = vmatprep.subr.bf16.mxu0 %v20980_v61 }
 0x130   :  { %6797 = vmatpush1.bf16.msra.mxu0 %v20978_v63  ;;  %v21044_v63 = vld [vmem:[#allocation9 + $0xbb8] ss:$60 sps:$4 sm:$0xff]  }
 0x131   :  { %6798 = vmatprep.subr.bf16.mxu0 %v20986_v2  ;;  %v21052_v2 = vld [vmem:[#allocation9 + $0xc34] ss:$60 sps:$4 sm:$0xff]  }
 0x134   :  { %6799 = vmatpush1.bf16.msra.mxu0 %v20984_v5  ;;  %v21053_v5 = vld [vmem:[#allocation9 + $0xff8] ss:$60 sps:$4 sm:$0xff]  }
 0x135   :  { %6809 = vmatprep.subr.bf16.mxu0 %v20992_v6  ;;  %v21058_v6 = vld [vmem:[#allocation9 + $0xcac] ss:$60 sps:$4 sm:$0xff]  }
 0x18a   :  { %v595_v15 = vpop.f32.mrb[0].mxu0  ;;  %v24625_v41 = vpop.f32.mrb[0].mxu1 }
 0x18b   :  { %v596_v16 = vadd.f32 %v595_v15, %v204_v13  ;;  %v597_v17 = vpop.f32.mrb[1].mxu0  ;;  %v24627_v43 = vpop.f32.mrb[1].mxu1  ;;  %v21059_v13 = vld [vmem:[#allocation9 + $0x1070] ss:$60 sps:$4 sm:$0xff]  }
 0x18c   :  { %v598_v18 = vadd.f32 %v597_v17, %v208_v14  ;;  %v599_v19 = vpop.f32.mrb[2].mxu0  ;;  %v722_v45 = vpop.f32.mrb[2].mxu1  ;;  %v21064_v14 = vld [vmem:[#allocation9 + $0xd24] ss:$60 sps:$4 sm:$0xff]   ;;  %v21067_v15 = vld [vmem:[#allocation9 + $0x10ec] ss:$60 sps:$4 sm:$0xff]  }
 0x18d   :  { %v725_v20 = vmax.f32 %v596_v16, 0.0  ;;  %v600_v21 = vpop.f32.mrb[3].mxu0  ;;  %v723_v48 = vpop.f32.mrb[3].mxu1  ;;  %v21062_v16 = vld [vmem:[#allocation9 + $0xd20] ss:$60 sps:$4 sm:$0xff]  }
 0x18e   :  { %v726_v22 = vmax.f32 %v598_v18, 0.0  ;;  %v21065_v17 = vld [vmem:[#allocation9 + $0x10e8] ss:$60 sps:$4 sm:$0xff]   ;;  %v21070_v18 = vld [vmem:[#allocation9 + $0xd9c] ss:$60 sps:$4 sm:$0xff]  }
 0x18f   :  { %v24609_v24 = vpack.c.bf16 %v725_v20, %v725_v20  ;;  %v21073_v19 = vld [vmem:[#allocation9 + $0x1164] ss:$60 sps:$4 sm:$0xff]   ;;  %v21068_v20 = vld [vmem:[#allocation9 + $0xd98] ss:$60 sps:$4 sm:$0xff]  }
 0x190   :  { %v24611_v25 = vpack.c.bf16 %v726_v22, %v726_v22  ;;  %v21071_v21 = vld [vmem:[#allocation9 + $0x1160] ss:$60 sps:$4 sm:$0xff]   ;;  %v24637_v22 = vsub.s32 5, %v24595_v9  ;;  %v21089_v45 = vld [vmem:[#allocation9 + $0x12c8] ss:$60 sps:$4 sm:$0xff]  }
 0x191   :  { %v21097_v48 = vld [vmem:[#allocation9 + $0x1344] ss:$60 sps:$4 sm:$0xff]  }
 0x192   :  { %6800 = vmatprep.mubr.bf16.mxu0 %v24611_v25 }
 0x193   :  { %6801 = vmatmul.mubr.bf16.vlgmr.msra.gmra.mrb[12].mxu0 %v24609_v24 }
 0x194   :  { %6810 = vmatpush1.bf16.msra.mxu0 %v20990_v23  ;;  %v21076_v23 = vld [vmem:[#allocation9 + $0xe14] ss:$60 sps:$4 sm:$0xff]  }
 0x195   :  { %6811 = vmatprep.subr.bf16.mxu0 %v20998_v26  ;;  %v21079_v26 = vld [vmem:[#allocation9 + $0x11dc] ss:$60 sps:$4 sm:$0xff]  }
 0x198   :  { %6812 = vmatpush1.bf16.msra.mxu0 %v20996_v27  ;;  %v21074_v27 = vld [vmem:[#allocation9 + $0xe10] ss:$60 sps:$4 sm:$0xff]  }
 0x199   :  { %6813 = vmatprep.subr.bf16.mxu0 %v21004_v28  ;;  %v21077_v28 = vld [vmem:[#allocation9 + $0x11d8] ss:$60 sps:$4 sm:$0xff]  }
 0x19c   :  { %6814 = vmatpush1.bf16.msra.mxu0 %v21002_v29  ;;  %v224_v29 = vrot.slane %v24600_v11, %v24637_v22 }
 0x19d   :  { %6815 = vmatprep.subr.bf16.mxu0 %v21010_v59  ;;  %v21082_v59 = vld [vmem:[#allocation9 + $0xe8c] ss:$60 sps:$4 sm:$0xff]  }
 0x1a0   :  { %6816 = vmatpush1.bf16.msra.mxu0 %v21008_v30  ;;  %v21085_v30 = vld [vmem:[#allocation9 + $0x1254] ss:$60 sps:$4 sm:$0xff]  }
 0x1a1   :  { %6817 = vmatprep.subr.bf16.mxu0 %v21016_v31 }
 0x1a4   :  { %6818 = vmatpush1.bf16.msra.mxu0 %v21014_v32 }
 0x1a5   :  { %6819 = vmatprep.subr.bf16.mxu0 %v21022_v33  ;;  %v21080_v33 = vld [vmem:[#allocation9 + $0xe88] ss:$60 sps:$4 sm:$0xff]  }
 0x1a8   :  { %6820 = vmatpush1.bf16.msra.mxu0 %v21020_v35  ;;  %v21083_v35 = vld [vmem:[#allocation9 + $0x1250] ss:$60 sps:$4 sm:$0xff]  }
 0x1a9   :  { %6821 = vmatprep.subr.bf16.mxu0 %v21028_v37 }
 0x1aa   :  { %v636_v44 = vpop.f32.mrb[4].mxu0 }
 0x1ab   :  { %v637_v46 = vadd.f32 %v636_v44, %v212_v38  ;;  %v638_v47 = vpop.f32.mrb[5].mxu0  ;;  %v21086_v44 = vld [vmem:[#allocation9 + $0xf00] ss:$60 sps:$4 sm:$0xff]  }
 0x1ac   :  { %v639_v49 = vadd.f32 %v638_v47, %v216_v40  ;;  %6822 = vmatpush1.bf16.msra.mxu0 %v21026_v39  ;;  %v640_v50 = vpop.f32.mrb[6].mxu0  ;;  %v21088_v39 = vld [vmem:[#allocation9 + $0xf04] ss:$60 sps:$4 sm:$0xff]   ;;  %v21091_v40 = vld [vmem:[#allocation9 + $0x12cc] ss:$60 sps:$4 sm:$0xff]  }
 0x1ad   :  { %v727_v52 = vmax.f32 %v637_v46, 0.0  ;;  %6823 = vmatprep.subr.bf16.mxu0 %v21034_v42  ;;  %v641_v53 = vpop.f32.mrb[7].mxu0  ;;  %v21094_v47 = vld [vmem:[#allocation9 + $0xf7c] ss:$60 sps:$4 sm:$0xff]  }
 0x1ae   :  { %v728_v55 = vmax.f32 %v639_v49, 0.0  ;;  %v21092_v50 = vld [vmem:[#allocation9 + $0xf78] ss:$60 sps:$4 sm:$0xff]  }
 0x1af   :  { %v24631_v61 = vpack.c.bf16 %v727_v52, %v727_v52  ;;  %v21100_v52 = vld [vmem:[#allocation9 + $0xff4] ss:$60 sps:$4 sm:$0xff]   ;;  %v21103_v53 = vld [vmem:[#allocation9 + $0x13bc] ss:$60 sps:$4 sm:$0xff]  }
 0x1b0   :  { %v24629_v57 = vpack.c.bf16 %v728_v55, %v728_v55  ;;  %6824 = vmatpush1.bf16.msra.mxu0 %v21032_v51  ;;  %v21095_v51 = vld [vmem:[#allocation9 + $0x1340] ss:$60 sps:$4 sm:$0xff]   ;;  %v21101_v55 = vld [vmem:[#allocation9 + $0x13b8] ss:$60 sps:$4 sm:$0xff]  }
 0x1b1   :  { %6825 = vmatprep.subr.bf16.mxu0 %v21040_v54  ;;  %v21098_v54 = vld [vmem:[#allocation9 + $0xff0] ss:$60 sps:$4 sm:$0xff]  }
 0x1b2   :  { %7005 = vmatprep.mubr.bf16.mxu1 %v24629_v57  ;;  %6841 = vmatprep.mubr.bf16.mxu0 %v24629_v57 }
 0x1b3   :  { %7006 = vmatmul.mubr.bf16.vlgmr.msra.gmra.mrb[4].mxu1 %v24631_v61 }
 0x1b4   :  { %6826 = vmatpush1.bf16.msra.mxu0 %v21038_v56  ;;  %7015 = vmatpush1.bf16.msra.mxu1 %v21041_v58  ;;  %v21106_v56 = vld [vmem:[#allocation9 + $0x106c] ss:$60 sps:$4 sm:$0xff]   ;;  %v21109_v58 = vld [vmem:[#allocation9 + $0x1434] ss:$60 sps:$4 sm:$0xff]  }
 0x1b5   :  { %6827 = vmatprep.subr.bf16.mxu0 %v21046_v60  ;;  %7016 = vmatprep.subr.bf16.mxu1 %v21049_v62  ;;  %v21104_v60 = vld [vmem:[#allocation9 + $0x1068] ss:$60 sps:$4 sm:$0xff]   ;;  %v21107_v62 = vld [vmem:[#allocation9 + $0x1430] ss:$60 sps:$4 sm:$0xff]  }
 0x1b8   :  { %6828 = vmatpush1.bf16.msra.mxu0 %v21044_v63  ;;  %7017 = vmatpush1.bf16.msra.mxu1 %v21047_v1  ;;  %v21112_v63 = vld [vmem:[#allocation9 + $0x10e4] ss:$60 sps:$4 sm:$0xff]   ;;  %v21115_v1 = vld [vmem:[#allocation9 + $0x14ac] ss:$60 sps:$4 sm:$0xff]  }
 0x1b9   :  { %6829 = vmatprep.subr.bf16.mxu0 %v21052_v2  ;;  %7018 = vmatprep.subr.bf16.mxu1 %v21055_v3  ;;  %v21110_v2 = vld [vmem:[#allocation9 + $0x10e0] ss:$60 sps:$4 sm:$0xff]   ;;  %v21113_v3 = vld [vmem:[#allocation9 + $0x14a8] ss:$60 sps:$4 sm:$0xff]  }
 0x1bc   :  { %6830 = vmatpush1.bf16.msra.mxu0 %v21050_v4  ;;  %7019 = vmatpush1.bf16.msra.mxu1 %v21053_v5  ;;  %v24649_v4 = vsub.s32 4, %v24595_v9  ;;  %v21118_v5 = vld [vmem:[#allocation9 + $0x115c] ss:$60 sps:$4 sm:$0xff]  }
 0x1bd   :  { %6831 = vmatprep.subr.bf16.mxu0 %v21058_v6  ;;  %7020 = vmatprep.subr.bf16.mxu1 %v21061_v7  ;;  %v21121_v6 = vld [vmem:[#allocation9 + $0x1524] ss:$60 sps:$4 sm:$0xff]   ;;  %v21116_v7 = vld [vmem:[#allocation9 + $0x1158] ss:$60 sps:$4 sm:$0xff]  }
 0x1c0   :  { %6832 = vmatpush1.bf16.msra.mxu0 %v21056_v8  ;;  %7021 = vmatpush1.bf16.msra.mxu1 %v21059_v13  ;;  %v21119_v8 = vld [vmem:[#allocation9 + $0x1520] ss:$60 sps:$4 sm:$0xff]   ;;  %v24652_v13 = vsub.s32 7, %v24595_v9 }
 0x1c1   :  { %6833 = vmatprep.subr.bf16.mxu0 %v21064_v14  ;;  %7022 = vmatprep.subr.bf16.mxu1 %v21067_v15  ;;  %v220_v14 = vrot.slane %v24600_v11, %v24649_v4  ;;  %v21124_v15 = vld [vmem:[#allocation9 + $0x11d4] ss:$60 sps:$4 sm:$0xff]  }
 0x1c4   :  { %6834 = vmatpush1.bf16.msra.mxu0 %v21062_v16  ;;  %7023 = vmatpush1.bf16.msra.mxu1 %v21065_v17  ;;  %v21127_v16 = vld [vmem:[#allocation9 + $0x159c] ss:$60 sps:$4 sm:$0xff]   ;;  %v21122_v17 = vld [vmem:[#allocation9 + $0x11d0] ss:$60 sps:$4 sm:$0xff]  }
 0x1c5   :  { %6835 = vmatprep.subr.bf16.mxu0 %v21070_v18  ;;  %7024 = vmatprep.subr.bf16.mxu1 %v21073_v19  ;;  %v21125_v18 = vld [vmem:[#allocation9 + $0x1598] ss:$60 sps:$4 sm:$0xff]   ;;  %v232_v19 = vrot.slane %v24600_v11, %v24652_v13  ;;  %v21134_v11 = vld [vmem:[#allocation9 + $0x12c0] ss:$60 sps:$4 sm:$0xff]  }
 0x1c8   :  { %6836 = vmatpush1.bf16.msra.mxu0 %v21068_v20  ;;  %7025 = vmatpush1.bf16.msra.mxu1 %v21071_v21  ;;  %v21130_v21 = vld [vmem:[#allocation9 + $0x124c] ss:$60 sps:$4 sm:$0xff]  }
 0x1c9   :  { %6837 = vmatprep.subr.bf16.mxu0 %v21076_v23  ;;  %7026 = vmatprep.subr.bf16.mxu1 %v21079_v26  ;;  %v21133_v23 = vld [vmem:[#allocation9 + $0x1614] ss:$60 sps:$4 sm:$0xff]   ;;  %v21128_v26 = vld [vmem:[#allocation9 + $0x1248] ss:$60 sps:$4 sm:$0xff]  }
 0x1ca   :  { %v24641_v31 = vpop.f32.mrb[8].mxu0 }
 0x1cb   :  { %v679_v32 = vpop.f32.mrb[9].mxu0  ;;  %v678_v20 = vadd.f32 %v24641_v31, %v220_v14  ;;  %v21187_v14 = vld [vmem:[#allocation9 + $0x1a4c] ss:$60 sps:$4 sm:$0xff]  }
 0x1cc   :  { %6838 = vmatpush1.bf16.msra.mxu0 %v21074_v27  ;;  %7027 = vmatpush1.bf16.msra.mxu1 %v21077_v28  ;;  %v680_v37 = vadd.f32 %v679_v32, %v224_v29  ;;  %v681_v38 = vpop.f32.mrb[10].mxu0  ;;  %v21131_v27 = vld [vmem:[#allocation9 + $0x1610] ss:$60 sps:$4 sm:$0xff]   ;;  %v721_v28 = vadd.f32 %v24627_v43, %v232_v19  ;;  %v21137_v32 = vld [vmem:[#allocation9 + $0x1688] ss:$60 sps:$4 sm:$0xff]  }
 0x1cd   :  { %6839 = vmatprep.subr.bf16.mxu0 %v21082_v59  ;;  %7028 = vmatprep.subr.bf16.mxu1 %v21085_v30  ;;  %v682_v42 = vpop.f32.mrb[11].mxu0  ;;  %v729_v29 = vmax.f32 %v678_v20, 0.0  ;;  %v21136_v59 = vld [vmem:[#allocation9 + $0x12c4] ss:$60 sps:$4 sm:$0xff]   ;;  %v21139_v30 = vld [vmem:[#allocation9 + $0x168c] ss:$60 sps:$4 sm:$0xff]  }
 0x1ce   :  { %v730_v46 = vmax.f32 %v680_v37, 0.0  ;;  %v732_v31 = vmax.f32 %v721_v28, 0.0  ;;  %v21145_v37 = vld [vmem:[#allocation9 + $0x1704] ss:$60 sps:$4 sm:$0xff]   ;;  %v21140_v38 = vld [vmem:[#allocation9 + $0x1338] ss:$60 sps:$4 sm:$0xff]  }
 0x1cf   :  { %v21151_v42 = vld [vmem:[#allocation9 + $0x177c] ss:$60 sps:$4 sm:$0xff]   ;;  %v21202_v28 = vld [vmem:[#allocation9 + $0x17ec] ss:$60 sps:$4 sm:$0xff]  }
 0x1d0   :  { %6840 = vmatpush1.bf16.msra.mxu0 %v21080_v33  ;;  %7029 = vmatpush1.bf16.msra.mxu1 %v21083_v35  ;;  %v24643_v49 = vpack.c.bf16 %v730_v46, %v730_v46  ;;  %v24660_v33 = vpack.c.bf16 %v729_v29, %v729_v29  ;;  %v21142_v35 = vld [vmem:[#allocation9 + $0x133c] ss:$60 sps:$4 sm:$0xff]   ;;  %v24662_v43 = vpack.c.bf16 %v732_v31, %v732_v31  ;;  %v21154_v46 = vld [vmem:[#allocation9 + $0x142c] ss:$60 sps:$4 sm:$0xff]   ;;  %v21205_v29 = vld [vmem:[#allocation9 + $0x1bb4] ss:$60 sps:$4 sm:$0xff]  }
 0x1d1   :  { %6850 = vmatprep.subr.bf16.mxu0 %v21088_v39  ;;  %7030 = vmatprep.subr.bf16.mxu1 %v21091_v40  ;;  %v21143_v39 = vld [vmem:[#allocation9 + $0x1700] ss:$60 sps:$4 sm:$0xff]   ;;  %v21148_v40 = vld [vmem:[#allocation9 + $0x13b4] ss:$60 sps:$4 sm:$0xff]  }
 0x1d2   :  { %7046 = vmatprep.mubr.bf16.mxu1 %v24643_v49  ;;  %v21188_v19 = vld [vmem:[#allocation9 + $0x16f8] ss:$60 sps:$4 sm:$0xff]   ;;  %v21191_v20 = vld [vmem:[#allocation9 + $0x1ac0] ss:$60 sps:$4 sm:$0xff]  }
 0x1d3   :  { %6842 = vmatmul.mubr.bf16.vlgmr.msra.gmra.mrb[12].mxu0 %v24631_v61  ;;  %v21206_v31 = vld [vmem:[#allocation9 + $0x1860] ss:$60 sps:$4 sm:$0xff]  }
 0x1d4   :  { %6851 = vmatpush1.bf16.msra.mxu0 %v21086_v44  ;;  %7031 = vmatpush1.bf16.msra.mxu1 %v21089_v45  ;;  %v21146_v44 = vld [vmem:[#allocation9 + $0x13b0] ss:$60 sps:$4 sm:$0xff]   ;;  %v21149_v45 = vld [vmem:[#allocation9 + $0x1778] ss:$60 sps:$4 sm:$0xff]  }
 0x1d5   :  { %6852 = vmatprep.subr.bf16.mxu0 %v21094_v47  ;;  %7032 = vmatprep.subr.bf16.mxu1 %v21097_v48  ;;  %v21157_v47 = vld [vmem:[#allocation9 + $0x17f4] ss:$60 sps:$4 sm:$0xff]   ;;  %v21152_v48 = vld [vmem:[#allocation9 + $0x1428] ss:$60 sps:$4 sm:$0xff]  }
 0x1d6   :  { %6882 = vmatprep.mubr.bf16.mxu0 %v24643_v49 }
 0x1d8   :  { %6853 = vmatpush1.bf16.msra.mxu0 %v21092_v50  ;;  %7033 = vmatpush1.bf16.msra.mxu1 %v21095_v51  ;;  %v21155_v50 = vld [vmem:[#allocation9 + $0x17f0] ss:$60 sps:$4 sm:$0xff]   ;;  %v21160_v51 = vld [vmem:[#allocation9 + $0x14a4] ss:$60 sps:$4 sm:$0xff]  }
 0x1d9   :  { %6854 = vmatprep.subr.bf16.mxu0 %v21100_v52  ;;  %7034 = vmatprep.subr.bf16.mxu1 %v21103_v53  ;;  %v21163_v52 = vld [vmem:[#allocation9 + $0x186c] ss:$60 sps:$4 sm:$0xff]   ;;  %v21158_v53 = vld [vmem:[#allocation9 + $0x14a0] ss:$60 sps:$4 sm:$0xff]  }
 0x1dc   :  { %6855 = vmatpush1.bf16.msra.mxu0 %v21098_v54  ;;  %7035 = vmatpush1.bf16.msra.mxu1 %v21101_v55  ;;  %v21161_v54 = vld [vmem:[#allocation9 + $0x1868] ss:$60 sps:$4 sm:$0xff]   ;;  %v21166_v55 = vld [vmem:[#allocation9 + $0x151c] ss:$60 sps:$4 sm:$0xff]  }
 0x1dd   :  { %6856 = vmatprep.subr.bf16.mxu0 %v21106_v56  ;;  %7036 = vmatprep.subr.bf16.mxu1 %v21109_v58  ;;  %v21169_v56 = vld [vmem:[#allocation9 + $0x18e4] ss:$60 sps:$4 sm:$0xff]   ;;  %v21164_v58 = vld [vmem:[#allocation9 + $0x1518] ss:$60 sps:$4 sm:$0xff]  }
 0x1e0   :  { %6857 = vmatpush1.bf16.msra.mxu0 %v21104_v60  ;;  %7037 = vmatpush1.bf16.msra.mxu1 %v21107_v62  ;;  %v21167_v60 = vld [vmem:[#allocation9 + $0x18e0] ss:$60 sps:$4 sm:$0xff]   ;;  %v21172_v62 = vld [vmem:[#allocation9 + $0x1594] ss:$60 sps:$4 sm:$0xff]  }
 0x1e1   :  { %6858 = vmatprep.subr.bf16.mxu0 %v21112_v63  ;;  %7038 = vmatprep.subr.bf16.mxu1 %v21115_v1  ;;  %v21175_v63 = vld [vmem:[#allocation9 + $0x195c] ss:$60 sps:$4 sm:$0xff]   ;;  %v21170_v1 = vld [vmem:[#allocation9 + $0x1590] ss:$60 sps:$4 sm:$0xff]  }
 0x1e4   :  { %6859 = vmatpush1.bf16.msra.mxu0 %v21110_v2  ;;  %7039 = vmatpush1.bf16.msra.mxu1 %v21113_v3  ;;  %v21173_v2 = vld [vmem:[#allocation9 + $0x1958] ss:$60 sps:$4 sm:$0xff]   ;;  %v21178_v3 = vld [vmem:[#allocation9 + $0x160c] ss:$60 sps:$4 sm:$0xff]  }
 0x1e5   :  { %6860 = vmatprep.subr.bf16.mxu0 %v21118_v5  ;;  %7040 = vmatprep.subr.bf16.mxu1 %v21121_v6  ;;  %v21181_v5 = vld [vmem:[#allocation9 + $0x19d4] ss:$60 sps:$4 sm:$0xff]   ;;  %v21176_v6 = vld [vmem:[#allocation9 + $0x1608] ss:$60 sps:$4 sm:$0xff]  }
 0x1e8   :  { %6861 = vmatpush1.bf16.msra.mxu0 %v21116_v7  ;;  %7041 = vmatpush1.bf16.msra.mxu1 %v21119_v8  ;;  %v21179_v7 = vld [vmem:[#allocation9 + $0x19d0] ss:$60 sps:$4 sm:$0xff]   ;;  %v21184_v8 = vld [vmem:[#allocation9 + $0x1684] ss:$60 sps:$4 sm:$0xff]  }
 0x1e9   :  { %6862 = vmatprep.subr.bf16.mxu0 %v21124_v15  ;;  %7042 = vmatprep.subr.bf16.mxu1 %v21127_v16  ;;  %v21182_v15 = vld [vmem:[#allocation9 + $0x1680] ss:$60 sps:$4 sm:$0xff]   ;;  %v21185_v16 = vld [vmem:[#allocation9 + $0x1a48] ss:$60 sps:$4 sm:$0xff]  }
 0x1ec   :  { %6863 = vmatpush1.bf16.msra.mxu0 %v21122_v17  ;;  %7043 = vmatpush1.bf16.msra.mxu1 %v21125_v18  ;;  %v21190_v17 = vld [vmem:[#allocation9 + $0x16fc] ss:$60 sps:$4 sm:$0xff]   ;;  %v21193_v18 = vld [vmem:[#allocation9 + $0x1ac4] ss:$60 sps:$4 sm:$0xff]  }
 0x1ed   :  { %6864 = vmatprep.subr.bf16.mxu0 %v21130_v21  ;;  %7044 = vmatprep.subr.bf16.mxu1 %v21133_v23  ;;  %v21196_v21 = vld [vmem:[#allocation9 + $0x1774] ss:$60 sps:$4 sm:$0xff]   ;;  %v21199_v23 = vld [vmem:[#allocation9 + $0x1b3c] ss:$60 sps:$4 sm:$0xff]  }
 0x1f0   :  { %6865 = vmatpush1.bf16.msra.mxu0 %v21128_v26  ;;  %7045 = vmatpush1.bf16.msra.mxu1 %v21131_v27  ;;  %v21194_v26 = vld [vmem:[#allocation9 + $0x1770] ss:$60 sps:$4 sm:$0xff]   ;;  %v21197_v27 = vld [vmem:[#allocation9 + $0x1b38] ss:$60 sps:$4 sm:$0xff]  }
 0x1f1   :  { %6866 = vmatprep.subr.bf16.mxu0 %v21136_v59  ;;  %7055 = vmatprep.subr.bf16.mxu1 %v21139_v30  ;;  %v21200_v59 = vld [vmem:[#allocation9 + $0x17e8] ss:$60 sps:$4 sm:$0xff]   ;;  %v21203_v30 = vld [vmem:[#allocation9 + $0x1bb0] ss:$60 sps:$4 sm:$0xff]  }
 0x1f3   :  { %7047 = vmatmul.mubr.bf16.vlgmr.msra.gmra.mrb[4].mxu1 %v24660_v33 }
 0x1f4   :  { %6867 = vmatpush1.bf16.msra.mxu0 %v21134_v11  ;;  %7056 = vmatpush1.bf16.msra.mxu1 %v21137_v32  ;;  %v21208_v11 = vld [vmem:[#allocation9 + $0x1864] ss:$60 sps:$4 sm:$0xff]   ;;  %v21211_v32 = vld [vmem:[#allocation9 + $0x1c2c] ss:$60 sps:$4 sm:$0xff]  }
 0x1f5   :  { %6868 = vmatprep.subr.bf16.mxu0 %v21142_v35  ;;  %7057 = vmatprep.subr.bf16.mxu1 %v21145_v37  ;;  %v21209_v35 = vld [vmem:[#allocation9 + $0x1c28] ss:$60 sps:$4 sm:$0xff]   ;;  %v24669_v37 = vsub.s32 6, %v24595_v9 }
 0x1f6   :  { %7087 = vmatprep.mubr.bf16.mxu1 %v24662_v43 }
 0x1f8   :  { %6869 = vmatpush1.bf16.msra.mxu0 %v21140_v38  ;;  %7058 = vmatpush1.bf16.msra.mxu1 %v21143_v39  ;;  %v21214_v38 = vld [vmem:[#allocation9 + $0x18dc] ss:$60 sps:$4 sm:$0xff]   ;;  %v21217_v39 = vld [vmem:[#allocation9 + $0x1ca4] ss:$60 sps:$4 sm:$0xff]  }
 0x1f9   :  { %6870 = vmatprep.subr.bf16.mxu0 %v21148_v40  ;;  %7059 = vmatprep.subr.bf16.mxu1 %v21151_v42  ;;  %v21212_v40 = vld [vmem:[#allocation9 + $0x18d8] ss:$60 sps:$4 sm:$0xff]   ;;  %v21215_v42 = vld [vmem:[#allocation9 + $0x1ca0] ss:$60 sps:$4 sm:$0xff]  }
 0x1fc   :  { %6871 = vmatpush1.bf16.msra.mxu0 %v21146_v44  ;;  %7060 = vmatpush1.bf16.msra.mxu1 %v21149_v45  ;;  %v24217_v44 = vld [vmem:[#allocation7] sm:$0xff] }
 0x1fd   :  { %6872 = vmatprep.subr.bf16.mxu0 %v21154_v46  ;;  %7061 = vmatprep.subr.bf16.mxu1 %v21157_v47  ;;  %v228_v45 = vrot.slane %v24217_v44, %v24669_v37  ;;  %v21220_v46 = vld [vmem:[#allocation9 + $0x1954] ss:$60 sps:$4 sm:$0xff]   ;;  %v21223_v47 = vld [vmem:[#allocation9 + $0x1d1c] ss:$60 sps:$4 sm:$0xff]  }
 0x1fe   :  { %v21281_v44 = vld [vmem:[#allocation9 + $0x3d8] ss:$60 sps:$4 sm:$0xff]  }
 0x1ff   :  { %v719_v9 = vadd.f32 %v24625_v41, %v228_v45  ;;  %v21286_v45 = vld [vmem:[#allocation9 + $0x84] ss:$60 sps:$4 sm:$0xff]  }
 0x200   :  { %6873 = vmatpush1.bf16.msra.mxu0 %v21152_v48  ;;  %7062 = vmatpush1.bf16.msra.mxu1 %v21155_v50  ;;  %v21218_v48 = vld [vmem:[#allocation9 + $0x1950] ss:$60 sps:$4 sm:$0xff]   ;;  %v21221_v50 = vld [vmem:[#allocation9 + $0x1d18] ss:$60 sps:$4 sm:$0xff]  }
 0x201   :  { %6874 = vmatprep.subr.bf16.mxu0 %v21160_v51  ;;  %7063 = vmatprep.subr.bf16.mxu1 %v21163_v52  ;;  %v21226_v51 = vld [vmem:[#allocation9 + $0x19cc] ss:$60 sps:$4 sm:$0xff]   ;;  %v21229_v52 = vld [vmem:[#allocation9 + $0x1d94] ss:$60 sps:$4 sm:$0xff]  }
 0x204   :  { %6875 = vmatpush1.bf16.msra.mxu0 %v21158_v53  ;;  %7064 = vmatpush1.bf16.msra.mxu1 %v21161_v54  ;;  %v731_v53 = vmax.f32 %v719_v9, 0.0  ;;  %v21224_v54 = vld [vmem:[#allocation9 + $0x19c8] ss:$60 sps:$4 sm:$0xff]   ;;  %v21287_v9 = vld [vmem:[#allocation9 + $0x450] ss:$60 sps:$4 sm:$0xff]  }
 0x205   :  { %6876 = vmatprep.subr.bf16.mxu0 %v21166_v55  ;;  %7065 = vmatprep.subr.bf16.mxu1 %v21169_v56  ;;  %v21227_v55 = vld [vmem:[#allocation9 + $0x1d90] ss:$60 sps:$4 sm:$0xff]   ;;  %v21232_v56 = vld [vmem:[#allocation9 + $0x1a44] ss:$60 sps:$4 sm:$0xff]  }
 0x206   :  { %v24673_v41 = vpack.c.bf16 %v731_v53, %v731_v53  ;;  %v21298_v53 = vld [vmem:[#allocation9 + $0x174] ss:$60 sps:$4 sm:$0xff]  }
 0x208   :  { %6877 = vmatpush1.bf16.msra.mxu0 %v21164_v58  ;;  %7066 = vmatpush1.bf16.msra.mxu1 %v21167_v60  ;;  %v21235_v58 = vld [vmem:[#allocation9 + $0x1c] ss:$60 sps:$4 sm:$0xff]  }
 0x209   :  { %6878 = vmatprep.subr.bf16.mxu0 %v21172_v62  ;;  %7067 = vmatprep.subr.bf16.mxu1 %v21175_v63  ;;  %v21230_v60 = vld [vmem:[#allocation9 + $0x1a40] ss:$60 sps:$4 sm:$0xff]   ;;  %v21233_v62 = vld [vmem:[#allocation9 + $0x18] ss:$60 sps:$4 sm:$0xff]  }
 0x20a   :  { %v21238_v63 = vld [vmem:[#allocation9 + $0x1abc] ss:$60 sps:$4 sm:$0xff]  }
 0x20c   :  { %6879 = vmatpush1.bf16.msra.mxu0 %v21170_v1  ;;  %7068 = vmatpush1.bf16.msra.mxu1 %v21173_v2  ;;  %v21236_v1 = vld [vmem:[#allocation9 + $0x1ab8] ss:$60 sps:$4 sm:$0xff]  }
 0x20d   :  { %6880 = vmatprep.subr.bf16.mxu0 %v21178_v3  ;;  %7069 = vmatprep.subr.bf16.mxu1 %v21181_v5  ;;  %v21241_v2 = vld [vmem:[#allocation9 + $0x94] ss:$60 sps:$4 sm:$0xff]  }
 0x20e   :  { %v21239_v3 = vld [vmem:[#allocation9 + $0x90] ss:$60 sps:$4 sm:$0xff]  }
 0x20f   :  { %v21244_v5 = vld [vmem:[#allocation9 + $0x1b34] ss:$60 sps:$4 sm:$0xff]  }
 0x210   :  { %6881 = vmatpush1.bf16.msra.mxu0 %v21176_v6  ;;  %7070 = vmatpush1.bf16.msra.mxu1 %v21179_v7  ;;  %v21247_v6 = vld [vmem:[#allocation9 + $0x10c] ss:$60 sps:$4 sm:$0xff]  }
 0x211   :  { %6891 = vmatprep.subr.bf16.mxu0 %v21184_v8  ;;  %7071 = vmatprep.subr.bf16.mxu1 %v21187_v14  ;;  %v21242_v7 = vld [vmem:[#allocation9 + $0x1b30] ss:$60 sps:$4 sm:$0xff]   ;;  %v21245_v8 = vld [vmem:[#allocation9 + $0x108] ss:$60 sps:$4 sm:$0xff]  }
 0x212   :  { %v21250_v14 = vld [vmem:[#allocation9 + $0x1bac] ss:$60 sps:$4 sm:$0xff]  }
 0x213   :  { %6883 = vmatmul.mubr.bf16.vlgmr.msra.gmra.mrb[12].mxu0 %v24660_v33 }
 0x214   :  { %6892 = vmatpush1.bf16.msra.mxu0 %v21182_v15  ;;  %7072 = vmatpush1.bf16.msra.mxu1 %v21185_v16  ;;  %v21253_v15 = vld [vmem:[#allocation9 + $0x184] ss:$60 sps:$4 sm:$0xff]  }
 0x215   :  { %6893 = vmatprep.subr.bf16.mxu0 %v21190_v17  ;;  %7073 = vmatprep.subr.bf16.mxu1 %v21193_v18  ;;  %v21248_v16 = vld [vmem:[#allocation9 + $0x1ba8] ss:$60 sps:$4 sm:$0xff]   ;;  %v21251_v17 = vld [vmem:[#allocation9 + $0x180] ss:$60 sps:$4 sm:$0xff]  }
 0x216   :  { %6923 = vmatprep.mubr.bf16.mxu0 %v24662_v43  ;;  %v21256_v18 = vld [vmem:[#allocation9 + $0x1c24] ss:$60 sps:$4 sm:$0xff]  }
 0x218   :  { %6894 = vmatpush1.bf16.msra.mxu0 %v21188_v19  ;;  %7074 = vmatpush1.bf16.msra.mxu1 %v21191_v20  ;;  %v21259_v19 = vld [vmem:[#allocation9 + $0x1fc] ss:$60 sps:$4 sm:$0xff]  }
 0x219   :  { %6895 = vmatprep.subr.bf16.mxu0 %v21196_v21  ;;  %7075 = vmatprep.subr.bf16.mxu1 %v21199_v23  ;;  %v21254_v20 = vld [vmem:[#allocation9 + $0x1c20] ss:$60 sps:$4 sm:$0xff]   ;;  %v21257_v21 = vld [vmem:[#allocation9 + $0x1f8] ss:$60 sps:$4 sm:$0xff]  }
 0x21a   :  { %v21262_v23 = vld [vmem:[#allocation9 + $0x1c9c] ss:$60 sps:$4 sm:$0xff]  }
 0x21c   :  { %6896 = vmatpush1.bf16.msra.mxu0 %v21194_v26  ;;  %7076 = vmatpush1.bf16.msra.mxu1 %v21197_v27  ;;  %v21265_v26 = vld [vmem:[#allocation9 + $0x274] ss:$60 sps:$4 sm:$0xff]  }
 0x21d   :  { %6897 = vmatprep.subr.bf16.mxu0 %v21202_v28  ;;  %7077 = vmatprep.subr.bf16.mxu1 %v21205_v29  ;;  %v21260_v27 = vld [vmem:[#allocation9 + $0x1c98] ss:$60 sps:$4 sm:$0xff]   ;;  %v21263_v28 = vld [vmem:[#allocation9 + $0x270] ss:$60 sps:$4 sm:$0xff]  }
 0x21e   :  { %v21268_v29 = vld [vmem:[#allocation9 + $0x1d14] ss:$60 sps:$4 sm:$0xff]  }
 0x220   :  { %6898 = vmatpush1.bf16.msra.mxu0 %v21200_v59  ;;  %7078 = vmatpush1.bf16.msra.mxu1 %v21203_v30  ;;  %v21271_v59 = vld [vmem:[#allocation9 + $0x2ec] ss:$60 sps:$4 sm:$0xff]  }
 0x221   :  { %6899 = vmatprep.subr.bf16.mxu0 %v21208_v11  ;;  %7079 = vmatprep.subr.bf16.mxu1 %v21211_v32  ;;  %v21266_v30 = vld [vmem:[#allocation9 + $0x1d10] ss:$60 sps:$4 sm:$0xff]   ;;  %v21269_v11 = vld [vmem:[#allocation9 + $0x2e8] ss:$60 sps:$4 sm:$0xff]  }
 0x222   :  { %v21274_v32 = vld [vmem:[#allocation9 + $0x1d8c] ss:$60 sps:$4 sm:$0xff]  }
 0x224   :  { %6900 = vmatpush1.bf16.msra.mxu0 %v21206_v31  ;;  %7080 = vmatpush1.bf16.msra.mxu1 %v21209_v35  ;;  %v21277_v31 = vld [vmem:[#allocation9 + $0x364] ss:$60 sps:$4 sm:$0xff]  }
 0x225   :  { %6901 = vmatprep.subr.bf16.mxu0 %v21214_v38  ;;  %7081 = vmatprep.subr.bf16.mxu1 %v21217_v39  ;;  %v21272_v35 = vld [vmem:[#allocation9 + $0x1d88] ss:$60 sps:$4 sm:$0xff]   ;;  %v21275_v38 = vld [vmem:[#allocation9 + $0x360] ss:$60 sps:$4 sm:$0xff]  }
 0x226   :  { %v21280_v39 = vld [vmem:[#allocation9 + $0xc] ss:$60 sps:$4 sm:$0xff]  }
 0x228   :  { %6902 = vmatpush1.bf16.msra.mxu0 %v21212_v40  ;;  %7082 = vmatpush1.bf16.msra.mxu1 %v21215_v42  ;;  %v21283_v40 = vld [vmem:[#allocation9 + $0x3dc] ss:$60 sps:$4 sm:$0xff]   ;;  %v21278_v42 = vld [vmem:[#allocation9 + $0x8] ss:$60 sps:$4 sm:$0xff]  }
 0x229   :  { %6903 = vmatprep.subr.bf16.mxu0 %v21220_v46  ;;  %7083 = vmatprep.subr.bf16.mxu1 %v21223_v47  ;;  %v21289_v46 = vld [vmem:[#allocation9 + $0x454] ss:$60 sps:$4 sm:$0xff]   ;;  %v21284_v47 = vld [vmem:[#allocation9 + $0x80] ss:$60 sps:$4 sm:$0xff]  }
 0x22c   :  { %6904 = vmatpush1.bf16.msra.mxu0 %v21218_v48  ;;  %7084 = vmatpush1.bf16.msra.mxu1 %v21221_v50  ;;  %v21292_v48 = vld [vmem:[#allocation9 + $0xfc] ss:$60 sps:$4 sm:$0xff]  }
 0x22d   :  { %6905 = vmatprep.subr.bf16.mxu0 %v21226_v51  ;;  %7085 = vmatprep.subr.bf16.mxu1 %v21229_v52  ;;  %v21290_v50 = vld [vmem:[#allocation9 + $0xf8] ss:$60 sps:$4 sm:$0xff]   ;;  %v21295_v51 = vld [vmem:[#allocation9 + $0x4cc] ss:$60 sps:$4 sm:$0xff]  }
 0x22e   :  { %v21293_v52 = vld [vmem:[#allocation9 + $0x4c8] ss:$60 sps:$4 sm:$0xff]  }
 0x230   :  { %6906 = vmatpush1.bf16.msra.mxu0 %v21224_v54  ;;  %7086 = vmatpush1.bf16.msra.mxu1 %v21227_v55  ;;  %v21296_v54 = vld [vmem:[#allocation9 + $0x170] ss:$60 sps:$4 sm:$0xff]   ;;  %v21301_v55 = vld [vmem:[#allocation9 + $0x544] ss:$60 sps:$4 sm:$0xff]  }
 0x231   :  { %6907 = vmatprep.subr.bf16.mxu0 %v21232_v56  ;;  %7260 = vmatprep.subr.bf16.mxu1 %v21235_v58  ;;  %v21299_v56 = vld [vmem:[#allocation9 + $0x540] ss:$60 sps:$4 sm:$0xff]   ;;  %v21304_v58 = vld [vmem:[#allocation9 + $0x1ec] ss:$60 sps:$4 sm:$0xff]  }
 0x233   :  { %7088 = vmatmul.mubr.bf16.vlgmr.msra.gmra.mrb[4].mxu1 %v24673_v41 }
 0x234   :  { %6908 = vmatpush1.bf16.msra.mxu0 %v21230_v60  ;;  %7261 = vmatpush1.bf16.msra.mxu1 %v21233_v62  ;;  %v21302_v60 = vld [vmem:[#allocation9 + $0x1e8] ss:$60 sps:$4 sm:$0xff]   ;;  %v21307_v62 = vld [vmem:[#allocation9 + $0x5bc] ss:$60 sps:$4 sm:$0xff]  }
 0x235   :  { %7292 = vmatprep.mubr.bf16.mxu1 %v24611_v25  ;;  %6909 = vmatprep.subr.bf16.mxu0 %v21238_v63  ;;  %v21305_v63 = vld [vmem:[#allocation9 + $0x5b8] ss:$60 sps:$4 sm:$0xff]  }
 0x236   :  { %7262 = vmatprep.subr.bf16.mxu1 %v21241_v2  ;;  %v21308_v2 = vld [vmem:[#allocation9 + $0x260] ss:$60 sps:$4 sm:$0xff]  }
 0x238   :  { %6910 = vmatpush1.bf16.msra.mxu0 %v21236_v1  ;;  %7263 = vmatpush1.bf16.msra.mxu1 %v21239_v3  ;;  %v21310_v1 = vld [vmem:[#allocation9 + $0x264] ss:$60 sps:$4 sm:$0xff]   ;;  %v21313_v3 = vld [vmem:[#allocation9 + $0x634] ss:$60 sps:$4 sm:$0xff]  }
 0x239   :  { %6911 = vmatprep.subr.bf16.mxu0 %v21244_v5  ;;  %7264 = vmatprep.subr.bf16.mxu1 %v21247_v6  ;;  %v21311_v5 = vld [vmem:[#allocation9 + $0x630] ss:$60 sps:$4 sm:$0xff]   ;;  %v21316_v6 = vld [vmem:[#allocation9 + $0x2dc] ss:$60 sps:$4 sm:$0xff]  }
 0x23c   :  { %6912 = vmatpush1.bf16.msra.mxu0 %v21242_v7  ;;  %7265 = vmatpush1.bf16.msra.mxu1 %v21245_v8  ;;  %v21314_v7 = vld [vmem:[#allocation9 + $0x2d8] ss:$60 sps:$4 sm:$0xff]   ;;  %v21319_v8 = vld [vmem:[#allocation9 + $0x6ac] ss:$60 sps:$4 sm:$0xff]  }
 0x23d   :  { %6913 = vmatprep.subr.bf16.mxu0 %v21250_v14  ;;  %7266 = vmatprep.subr.bf16.mxu1 %v21253_v15  ;;  %v21317_v14 = vld [vmem:[#allocation9 + $0x6a8] ss:$60 sps:$4 sm:$0xff]   ;;  %v21322_v15 = vld [vmem:[#allocation9 + $0x354] ss:$60 sps:$4 sm:$0xff]  }
 0x240   :  { %6914 = vmatpush1.bf16.msra.mxu0 %v21248_v16  ;;  %7267 = vmatpush1.bf16.msra.mxu1 %v21251_v17  ;;  %v21320_v16 = vld [vmem:[#allocation9 + $0x350] ss:$60 sps:$4 sm:$0xff]   ;;  %v21325_v17 = vld [vmem:[#allocation9 + $0x724] ss:$60 sps:$4 sm:$0xff]  }
 0x241   :  { %6915 = vmatprep.subr.bf16.mxu0 %v21256_v18  ;;  %7268 = vmatprep.subr.bf16.mxu1 %v21259_v19  ;;  %v21323_v18 = vld [vmem:[#allocation9 + $0x720] ss:$60 sps:$4 sm:$0xff]   ;;  %v21328_v19 = vld [vmem:[#allocation9 + $0x3cc] ss:$60 sps:$4 sm:$0xff]  }
 0x244   :  { %6916 = vmatpush1.bf16.msra.mxu0 %v21254_v20  ;;  %7269 = vmatpush1.bf16.msra.mxu1 %v21257_v21  ;;  %v21326_v20 = vld [vmem:[#allocation9 + $0x3c8] ss:$60 sps:$4 sm:$0xff]   ;;  %v21331_v21 = vld [vmem:[#allocation9 + $0x79c] ss:$60 sps:$4 sm:$0xff]  }
 0x245   :  { %6917 = vmatprep.subr.bf16.mxu0 %v21262_v23  ;;  %7270 = vmatprep.subr.bf16.mxu1 %v21265_v26  ;;  %v21329_v23 = vld [vmem:[#allocation9 + $0x798] ss:$60 sps:$4 sm:$0xff]   ;;  %v21334_v26 = vld [vmem:[#allocation9 + $0x444] ss:$60 sps:$4 sm:$0xff]  }
 0x248   :  { %6918 = vmatpush1.bf16.msra.mxu0 %v21260_v27  ;;  %7271 = vmatpush1.bf16.msra.mxu1 %v21263_v28  ;;  %v21337_v27 = vld [vmem:[#allocation9 + $0x814] ss:$60 sps:$4 sm:$0xff]   ;;  %v21332_v28 = vld [vmem:[#allocation9 + $0x440] ss:$60 sps:$4 sm:$0xff]  }
 0x249   :  { %6919 = vmatprep.subr.bf16.mxu0 %v21268_v29  ;;  %7272 = vmatprep.subr.bf16.mxu1 %v21271_v59  ;;  %v21335_v29 = vld [vmem:[#allocation9 + $0x810] ss:$60 sps:$4 sm:$0xff]   ;;  %v21340_v59 = vld [vmem:[#allocation9 + $0x4bc] ss:$60 sps:$4 sm:$0xff]  }
 0x24c   :  { %6920 = vmatpush1.bf16.msra.mxu0 %v21266_v30  ;;  %7273 = vmatpush1.bf16.msra.mxu1 %v21269_v11  ;;  %v21338_v30 = vld [vmem:[#allocation9 + $0x4b8] ss:$60 sps:$4 sm:$0xff]   ;;  %v21343_v11 = vld [vmem:[#allocation9 + $0x88c] ss:$60 sps:$4 sm:$0xff]  }
 0x24d   :  { %6921 = vmatprep.subr.bf16.mxu0 %v21274_v32  ;;  %7274 = vmatprep.subr.bf16.mxu1 %v21277_v31  ;;  %v21341_v32 = vld [vmem:[#allocation9 + $0x888] ss:$60 sps:$4 sm:$0xff]   ;;  %v21346_v31 = vld [vmem:[#allocation9 + $0x534] ss:$60 sps:$4 sm:$0xff]  }
 0x250   :  { %6922 = vmatpush1.bf16.msra.mxu0 %v21272_v35  ;;  %7275 = vmatpush1.bf16.msra.mxu1 %v21275_v38  ;;  %v21344_v35 = vld [vmem:[#allocation9 + $0x530] ss:$60 sps:$4 sm:$0xff]   ;;  %v21349_v38 = vld [vmem:[#allocation9 + $0x904] ss:$60 sps:$4 sm:$0xff]  }
 0x251   :  { %6932 = vmatprep.subr.bf16.mxu0 %v21280_v39  ;;  %7276 = vmatprep.subr.bf16.mxu1 %v21283_v40  ;;  %v21347_v39 = vld [vmem:[#allocation9 + $0x900] ss:$60 sps:$4 sm:$0xff]   ;;  %v21352_v40 = vld [vmem:[#allocation9 + $0x5ac] ss:$60 sps:$4 sm:$0xff]  }
 0x253   :  { %6924 = vmatmul.mubr.bf16.vlgmr.msra.gmra.mrb[12].mxu0 %v24673_v41 }
 0x254   :  { %6933 = vmatpush1.bf16.msra.mxu0 %v21278_v42  ;;  %6964 = vmatprep.mubr.bf16.mxu0 %v24611_v25  ;;  %v21350_v42 = vld [vmem:[#allocation9 + $0x5a8] ss:$60 sps:$4 sm:$0xff]  }
 0x255   :  { %7277 = vmatpush1.bf16.msra.mxu1 %v21281_v44  ;;  %6934 = vmatprep.subr.bf16.mxu0 %v21286_v45  ;;  %v21355_v44 = vld [vmem:[#allocation9 + $0x97c] ss:$60 sps:$4 sm:$0xff]  }
 0x256   :  { %7278 = vmatprep.subr.bf16.mxu1 %v21289_v46  ;;  %v21353_v45 = vld [vmem:[#allocation9 + $0x978] ss:$60 sps:$4 sm:$0xff]   ;;  %v21358_v46 = vld [vmem:[#allocation9 + $0x624] ss:$60 sps:$4 sm:$0xff]  }
 0x258   :  { %6935 = vmatpush1.bf16.msra.mxu0 %v21284_v47  ;;  %v21356_v47 = vld [vmem:[#allocation9 + $0x620] ss:$60 sps:$4 sm:$0xff]  }
 0x259   :  { %7279 = vmatpush1.bf16.msra.mxu1 %v21287_v9  ;;  %6936 = vmatprep.subr.bf16.mxu0 %v21292_v48  ;;  %v21361_v9 = vld [vmem:[#allocation9 + $0x9f4] ss:$60 sps:$4 sm:$0xff]  }
 0x25a   :  { %7280 = vmatprep.subr.bf16.mxu1 %v21295_v51  ;;  %v21359_v48 = vld [vmem:[#allocation9 + $0x9f0] ss:$60 sps:$4 sm:$0xff]  }
 0x25b   :  { %v21367_v51 = vld [vmem:[#allocation9 + $0xa6c] ss:$60 sps:$4 sm:$0xff]  }
 0x25c   :  { %6937 = vmatpush1.bf16.msra.mxu0 %v21290_v50  ;;  %v21364_v50 = vld [vmem:[#allocation9 + $0x69c] ss:$60 sps:$4 sm:$0xff]  }
 0x25d   :  { %7281 = vmatpush1.bf16.msra.mxu1 %v21293_v52  ;;  %6938 = vmatprep.subr.bf16.mxu0 %v21298_v53  ;;  %v21362_v52 = vld [vmem:[#allocation9 + $0x698] ss:$60 sps:$4 sm:$0xff]   ;;  %v21365_v53 = vld [vmem:[#allocation9 + $0xa68] ss:$60 sps:$4 sm:$0xff]  }
 0x25e   :  { %7282 = vmatprep.subr.bf16.mxu1 %v21301_v55  ;;  %v21368_v55 = vld [vmem:[#allocation9 + $0x710] ss:$60 sps:$4 sm:$0xff]  }
 0x260   :  { %6939 = vmatpush1.bf16.msra.mxu0 %v21296_v54  ;;  %v21370_v54 = vld [vmem:[#allocation9 + $0x714] ss:$60 sps:$4 sm:$0xff]  }
 0x261   :  { %7283 = vmatpush1.bf16.msra.mxu1 %v21299_v56  ;;  %6940 = vmatprep.subr.bf16.mxu0 %v21304_v58  ;;  %v21373_v56 = vld [vmem:[#allocation9 + $0xae4] ss:$60 sps:$4 sm:$0xff]  }
 0x262   :  { %7284 = vmatprep.subr.bf16.mxu1 %v21307_v62  ;;  %v21371_v58 = vld [vmem:[#allocation9 + $0xae0] ss:$60 sps:$4 sm:$0xff]  }
 0x263   :  { %v21379_v62 = vld [vmem:[#allocation9 + $0xb5c] ss:$60 sps:$4 sm:$0xff]  }
 0x264   :  { %6941 = vmatpush1.bf16.msra.mxu0 %v21302_v60  ;;  %v21376_v60 = vld [vmem:[#allocation9 + $0x14] ss:$60 sps:$4 sm:$0xff]  }
 0x265   :  { %7285 = vmatpush1.bf16.msra.mxu1 %v21305_v63  ;;  %6942 = vmatprep.subr.bf16.mxu0 %v21310_v1  ;;  %v21374_v63 = vld [vmem:[#allocation9 + $0x10] ss:$60 sps:$4 sm:$0xff]   ;;  %v21377_v1 = vld [vmem:[#allocation9 + $0xb58] ss:$60 sps:$4 sm:$0xff]  }
 0x266   :  { %7286 = vmatprep.subr.bf16.mxu1 %v21313_v3  ;;  %v21385_v3 = vld [vmem:[#allocation9 + $0xbd4] ss:$60 sps:$4 sm:$0xff]  }
 0x268   :  { %6943 = vmatpush1.bf16.msra.mxu0 %v21308_v2  ;;  %v21382_v2 = vld [vmem:[#allocation9 + $0x8c] ss:$60 sps:$4 sm:$0xff]  }
 0x269   :  { %7287 = vmatpush1.bf16.msra.mxu1 %v21311_v5  ;;  %6944 = vmatprep.subr.bf16.mxu0 %v21316_v6  ;;  %v21380_v5 = vld [vmem:[#allocation9 + $0x88] ss:$60 sps:$4 sm:$0xff]   ;;  %v21383_v6 = vld [vmem:[#allocation9 + $0xbd0] ss:$60 sps:$4 sm:$0xff]  }
 0x26a   :  { %7288 = vmatprep.subr.bf16.mxu1 %v21319_v8  ;;  %v21386_v8 = vld [vmem:[#allocation9 + $0x100] ss:$60 sps:$4 sm:$0xff]  }
 0x26c   :  { %6945 = vmatpush1.bf16.msra.mxu0 %v21314_v7  ;;  %v21388_v7 = vld [vmem:[#allocation9 + $0x104] ss:$60 sps:$4 sm:$0xff]  }
 0x26d   :  { %7289 = vmatpush1.bf16.msra.mxu1 %v21317_v14  ;;  %6946 = vmatprep.subr.bf16.mxu0 %v21322_v15  ;;  %v21391_v14 = vld [vmem:[#allocation9 + $0xc4c] ss:$60 sps:$4 sm:$0xff]  }
 0x26e   :  { %7290 = vmatprep.subr.bf16.mxu1 %v21325_v17  ;;  %v21389_v15 = vld [vmem:[#allocation9 + $0xc48] ss:$60 sps:$4 sm:$0xff]   ;;  %v21392_v17 = vld [vmem:[#allocation9 + $0x178] ss:$60 sps:$4 sm:$0xff]  }
 0x270   :  { %6947 = vmatpush1.bf16.msra.mxu0 %v21320_v16  ;;  %v21394_v16 = vld [vmem:[#allocation9 + $0x17c] ss:$60 sps:$4 sm:$0xff]  }
 0x271   :  { %7291 = vmatpush1.bf16.msra.mxu1 %v21323_v18  ;;  %6948 = vmatprep.subr.bf16.mxu0 %v21328_v19  ;;  %v21397_v18 = vld [vmem:[#allocation9 + $0xcc4] ss:$60 sps:$4 sm:$0xff]  }
 0x272   :  { %7301 = vmatprep.subr.bf16.mxu1 %v21331_v21  ;;  %v21395_v19 = vld [vmem:[#allocation9 + $0xcc0] ss:$60 sps:$4 sm:$0xff]   ;;  %v21398_v21 = vld [vmem:[#allocation9 + $0x1f0] ss:$60 sps:$4 sm:$0xff]  }
 0x274   :  { %7293 = vmatmul.mubr.bf16.vlgmr.msra.gmra.mrb[8].mxu1 %v24609_v24  ;;  %6949 = vmatpush1.bf16.msra.mxu0 %v21326_v20  ;;  %v21400_v20 = vld [vmem:[#allocation9 + $0x1f4] ss:$60 sps:$4 sm:$0xff]  }
 0x275   :  { %7302 = vmatpush1.bf16.msra.mxu1 %v21329_v23  ;;  %7333 = vmatprep.mubr.bf16.mxu1 %v24629_v57  ;;  %v21403_v23 = vld [vmem:[#allocation9 + $0xd3c] ss:$60 sps:$4 sm:$0xff]  }
 0x276   :  { %6950 = vmatprep.subr.bf16.mxu0 %v21334_v26  ;;  %7303 = vmatprep.subr.bf16.mxu1 %v21337_v27  ;;  %v21401_v26 = vld [vmem:[#allocation9 + $0xd38] ss:$60 sps:$4 sm:$0xff]   ;;  %v21406_v27 = vld [vmem:[#allocation9 + $0x26c] ss:$60 sps:$4 sm:$0xff]  }
 0x278   :  { %6951 = vmatpush1.bf16.msra.mxu0 %v21332_v28  ;;  %v21404_v28 = vld [vmem:[#allocation9 + $0x268] ss:$60 sps:$4 sm:$0xff]  }
 0x279   :  { %7304 = vmatpush1.bf16.msra.mxu1 %v21335_v29  ;;  %6952 = vmatprep.subr.bf16.mxu0 %v21340_v59  ;;  %v21409_v29 = vld [vmem:[#allocation9 + $0xdb4] ss:$60 sps:$4 sm:$0xff]  }
 0x27a   :  { %7305 = vmatprep.subr.bf16.mxu1 %v21343_v11  ;;  %v21407_v59 = vld [vmem:[#allocation9 + $0xdb0] ss:$60 sps:$4 sm:$0xff]   ;;  %v21410_v11 = vld [vmem:[#allocation9 + $0x2e0] ss:$60 sps:$4 sm:$0xff]  }
 0x27c   :  { %6953 = vmatpush1.bf16.msra.mxu0 %v21338_v30  ;;  %v21412_v30 = vld [vmem:[#allocation9 + $0x2e4] ss:$60 sps:$4 sm:$0xff]  }
 0x27d   :  { %7306 = vmatpush1.bf16.msra.mxu1 %v21341_v32  ;;  %6954 = vmatprep.subr.bf16.mxu0 %v21346_v31  ;;  %v21415_v32 = vld [vmem:[#allocation9 + $0xe2c] ss:$60 sps:$4 sm:$0xff]  }
 0x27e   :  { %7307 = vmatprep.subr.bf16.mxu1 %v21349_v38  ;;  %v21413_v31 = vld [vmem:[#allocation9 + $0xe28] ss:$60 sps:$4 sm:$0xff]   ;;  %v21416_v38 = vld [vmem:[#allocation9 + $0x358] ss:$60 sps:$4 sm:$0xff]  }
 0x280   :  { %6955 = vmatpush1.bf16.msra.mxu0 %v21344_v35  ;;  %v21418_v35 = vld [vmem:[#allocation9 + $0x35c] ss:$60 sps:$4 sm:$0xff]  }
 0x281   :  { %7308 = vmatpush1.bf16.msra.mxu1 %v21347_v39  ;;  %6956 = vmatprep.subr.bf16.mxu0 %v21352_v40  ;;  %v21421_v39 = vld [vmem:[#allocation9 + $0xea4] ss:$60 sps:$4 sm:$0xff]  }
 0x282   :  { %7309 = vmatprep.subr.bf16.mxu1 %v21355_v44  ;;  %v21419_v40 = vld [vmem:[#allocation9 + $0xea0] ss:$60 sps:$4 sm:$0xff]  }
 0x283   :  { %v21427_v44 = vld [vmem:[#allocation9 + $0xf1c] ss:$60 sps:$4 sm:$0xff]  }
 0x284   :  { %6957 = vmatpush1.bf16.msra.mxu0 %v21350_v42  ;;  %v21424_v42 = vld [vmem:[#allocation9 + $0x3d4] ss:$60 sps:$4 sm:$0xff]  }
 0x285   :  { %7310 = vmatpush1.bf16.msra.mxu1 %v21353_v45  ;;  %6958 = vmatprep.subr.bf16.mxu0 %v21358_v46  ;;  %v21422_v45 = vld [vmem:[#allocation9 + $0x3d0] ss:$60 sps:$4 sm:$0xff]   ;;  %v21425_v46 = vld [vmem:[#allocation9 + $0xf18] ss:$60 sps:$4 sm:$0xff]  }
 0x286   :  { %7311 = vmatprep.subr.bf16.mxu1 %v21361_v9  ;;  %v21433_v9 = vld [vmem:[#allocation9 + $0xf94] ss:$60 sps:$4 sm:$0xff]  }
 0x288   :  { %6959 = vmatpush1.bf16.msra.mxu0 %v21356_v47  ;;  %v21430_v47 = vld [vmem:[#allocation9 + $0x44c] ss:$60 sps:$4 sm:$0xff]  }
 0x289   :  { %7312 = vmatpush1.bf16.msra.mxu1 %v21359_v48  ;;  %6960 = vmatprep.subr.bf16.mxu0 %v21364_v50  ;;  %v21428_v48 = vld [vmem:[#allocation9 + $0x448] ss:$60 sps:$4 sm:$0xff]   ;;  %v21431_v50 = vld [vmem:[#allocation9 + $0xf90] ss:$60 sps:$4 sm:$0xff]  }
 0x28a   :  { %7313 = vmatprep.subr.bf16.mxu1 %v21367_v51  ;;  %v21436_v51 = vld [vmem:[#allocation9 + $0x4c4] ss:$60 sps:$4 sm:$0xff]  }
 0x28c   :  { %6961 = vmatpush1.bf16.msra.mxu0 %v21362_v52  ;;  %v21434_v52 = vld [vmem:[#allocation9 + $0x4c0] ss:$60 sps:$4 sm:$0xff]  }
 0x28d   :  { %7314 = vmatpush1.bf16.msra.mxu1 %v21365_v53  ;;  %6962 = vmatprep.subr.bf16.mxu0 %v21370_v54  ;;  %v21439_v53 = vld [vmem:[#allocation9 + $0x100c] ss:$60 sps:$4 sm:$0xff]  }
 0x28e   :  { %7315 = vmatprep.subr.bf16.mxu1 %v21373_v56  ;;  %v21437_v54 = vld [vmem:[#allocation9 + $0x1008] ss:$60 sps:$4 sm:$0xff]   ;;  %v21440_v56 = vld [vmem:[#allocation9 + $0x538] ss:$60 sps:$4 sm:$0xff]  }
 0x290   :  { %6963 = vmatpush1.bf16.msra.mxu0 %v21368_v55  ;;  %v21442_v55 = vld [vmem:[#allocation9 + $0x53c] ss:$60 sps:$4 sm:$0xff]  }
 0x291   :  { %7316 = vmatpush1.bf16.msra.mxu1 %v21371_v58  ;;  %7096 = vmatprep.subr.bf16.mxu0 %v21376_v60  ;;  %v21445_v58 = vld [vmem:[#allocation9 + $0x1084] ss:$60 sps:$4 sm:$0xff]  }
 0x292   :  { %7317 = vmatprep.subr.bf16.mxu1 %v21379_v62  ;;  %v21443_v60 = vld [vmem:[#allocation9 + $0x1080] ss:$60 sps:$4 sm:$0xff]   ;;  %v21448_v62 = vld [vmem:[#allocation9 + $0x5b4] ss:$60 sps:$4 sm:$0xff]  }
 0x293   :  { %6965 = vmatmul.mubr.bf16.vlgmr.msra.gmra.mrb[16].mxu0 %v24609_v24 }
 0x294   :  { %7097 = vmatpush1.bf16.msra.mxu0 %v21374_v63  ;;  %7128 = vmatprep.mubr.bf16.mxu0 %v24611_v25  ;;  %v21446_v63 = vld [vmem:[#allocation9 + $0x5b0] ss:$60 sps:$4 sm:$0xff]  }
 0x295   :  { %7318 = vmatpush1.bf16.msra.mxu1 %v21377_v1  ;;  %7098 = vmatprep.subr.bf16.mxu0 %v21382_v2  ;;  %v21451_v1 = vld [vmem:[#allocation9 + $0x10fc] ss:$60 sps:$4 sm:$0xff]  }
 0x296   :  { %7319 = vmatprep.subr.bf16.mxu1 %v21385_v3  ;;  %v21449_v2 = vld [vmem:[#allocation9 + $0x10f8] ss:$60 sps:$4 sm:$0xff]   ;;  %v21454_v3 = vld [vmem:[#allocation9 + $0x62c] ss:$60 sps:$4 sm:$0xff]  }
 0x298   :  { %7099 = vmatpush1.bf16.msra.mxu0 %v21380_v5  ;;  %v21452_v5 = vld [vmem:[#allocation9 + $0x628] ss:$60 sps:$4 sm:$0xff]  }
 0x299   :  { %7320 = vmatpush1.bf16.msra.mxu1 %v21383_v6  ;;  %7100 = vmatprep.subr.bf16.mxu0 %v21388_v7  ;;  %v21457_v6 = vld [vmem:[#allocation9 + $0x1174] ss:$60 sps:$4 sm:$0xff]  }
 0x29a   :  { %7321 = vmatprep.subr.bf16.mxu1 %v21391_v14  ;;  %v21455_v7 = vld [vmem:[#allocation9 + $0x1170] ss:$60 sps:$4 sm:$0xff]   ;;  %v21458_v14 = vld [vmem:[#allocation9 + $0x6a0] ss:$60 sps:$4 sm:$0xff]  }
 0x29c   :  { %7101 = vmatpush1.bf16.msra.mxu0 %v21386_v8  ;;  %v21460_v8 = vld [vmem:[#allocation9 + $0x6a4] ss:$60 sps:$4 sm:$0xff]  }
 0x29d   :  { %7322 = vmatpush1.bf16.msra.mxu1 %v21389_v15  ;;  %7102 = vmatprep.subr.bf16.mxu0 %v21394_v16  ;;  %v21463_v15 = vld [vmem:[#allocation9 + $0x11ec] ss:$60 sps:$4 sm:$0xff]  }
 0x29e   :  { %7323 = vmatprep.subr.bf16.mxu1 %v21397_v18  ;;  %v21461_v16 = vld [vmem:[#allocation9 + $0x11e8] ss:$60 sps:$4 sm:$0xff]   ;;  %v21464_v18 = vld [vmem:[#allocation9 + $0x718] ss:$60 sps:$4 sm:$0xff]  }
 0x2a0   :  { %7103 = vmatpush1.bf16.msra.mxu0 %v21392_v17  ;;  %v21466_v17 = vld [vmem:[#allocation9 + $0x71c] ss:$60 sps:$4 sm:$0xff]  }
 0x2a1   :  { %7324 = vmatpush1.bf16.msra.mxu1 %v21395_v19  ;;  %7104 = vmatprep.subr.bf16.mxu0 %v21400_v20  ;;  %v21469_v19 = vld [vmem:[#allocation9 + $0x1264] ss:$60 sps:$4 sm:$0xff]  }
 0x2a2   :  { %7325 = vmatprep.subr.bf16.mxu1 %v21403_v23  ;;  %v21467_v20 = vld [vmem:[#allocation9 + $0x1260] ss:$60 sps:$4 sm:$0xff]  }
 0x2a3   :  { %v21475_v23 = vld [vmem:[#allocation9 + $0x12dc] ss:$60 sps:$4 sm:$0xff]  }
 0x2a4   :  { %7105 = vmatpush1.bf16.msra.mxu0 %v21398_v21  ;;  %v21472_v21 = vld [vmem:[#allocation9 + $0x794] ss:$60 sps:$4 sm:$0xff]  }
 0x2a5   :  { %7326 = vmatpush1.bf16.msra.mxu1 %v21401_v26  ;;  %7106 = vmatprep.subr.bf16.mxu0 %v21406_v27  ;;  %v21470_v26 = vld [vmem:[#allocation9 + $0x790] ss:$60 sps:$4 sm:$0xff]   ;;  %v21473_v27 = vld [vmem:[#allocation9 + $0x12d8] ss:$60 sps:$4 sm:$0xff]  }
 0x2a6   :  { %7327 = vmatprep.subr.bf16.mxu1 %v21409_v29  ;;  %v21481_v29 = vld [vmem:[#allocation9 + $0x1354] ss:$60 sps:$4 sm:$0xff]  }
 0x2a8   :  { %7107 = vmatpush1.bf16.msra.mxu0 %v21404_v28  ;;  %v21478_v28 = vld [vmem:[#allocation9 + $0x80c] ss:$60 sps:$4 sm:$0xff]  }
 0x2a9   :  { %7328 = vmatpush1.bf16.msra.mxu1 %v21407_v59  ;;  %7108 = vmatprep.subr.bf16.mxu0 %v21412_v30  ;;  %v21476_v59 = vld [vmem:[#allocation9 + $0x808] ss:$60 sps:$4 sm:$0xff]   ;;  %v21479_v30 = vld [vmem:[#allocation9 + $0x1350] ss:$60 sps:$4 sm:$0xff]  }
 0x2aa   :  { %7329 = vmatprep.subr.bf16.mxu1 %v21415_v32  ;;  %v21482_v32 = vld [vmem:[#allocation9 + $0x880] ss:$60 sps:$4 sm:$0xff]  }
 0x2ac   :  { %7109 = vmatpush1.bf16.msra.mxu0 %v21410_v11  ;;  %v21484_v11 = vld [vmem:[#allocation9 + $0x884] ss:$60 sps:$4 sm:$0xff]  }
 0x2ad   :  { %7330 = vmatpush1.bf16.msra.mxu1 %v21413_v31  ;;  %7110 = vmatprep.subr.bf16.mxu0 %v21418_v35  ;;  %v21487_v31 = vld [vmem:[#allocation9 + $0x13cc] ss:$60 sps:$4 sm:$0xff]  }
 0x2ae   :  { %7331 = vmatprep.subr.bf16.mxu1 %v21421_v39  ;;  %v21485_v35 = vld [vmem:[#allocation9 + $0x13c8] ss:$60 sps:$4 sm:$0xff]   ;;  %v21488_v39 = vld [vmem:[#allocation9 + $0x8f8] ss:$60 sps:$4 sm:$0xff]  }
 0x2b0   :  { %7111 = vmatpush1.bf16.msra.mxu0 %v21416_v38  ;;  %v21490_v38 = vld [vmem:[#allocation9 + $0x8fc] ss:$60 sps:$4 sm:$0xff]  }
 0x2b1   :  { %7332 = vmatpush1.bf16.msra.mxu1 %v21419_v40  ;;  %7112 = vmatprep.subr.bf16.mxu0 %v21424_v42  ;;  %v21493_v40 = vld [vmem:[#allocation9 + $0x1444] ss:$60 sps:$4 sm:$0xff]  }
 0x2b2   :  { %7342 = vmatprep.subr.bf16.mxu1 %v21427_v44  ;;  %v21491_v42 = vld [vmem:[#allocation9 + $0x1440] ss:$60 sps:$4 sm:$0xff]   ;;  %v21496_v44 = vld [vmem:[#allocation9 + $0x974] ss:$60 sps:$4 sm:$0xff]  }
 0x2b4   :  { %7334 = vmatmul.mubr.bf16.vlgmr.msra.gmra.mrb[8].mxu1 %v24631_v61  ;;  %7113 = vmatpush1.bf16.msra.mxu0 %v21422_v45  ;;  %v21494_v45 = vld [vmem:[#allocation9 + $0x970] ss:$60 sps:$4 sm:$0xff]  }
 0x2b5   :  { %7343 = vmatpush1.bf16.msra.mxu1 %v21425_v46  ;;  %7374 = vmatprep.mubr.bf16.mxu1 %v24643_v49  ;;  %v21499_v46 = vld [vmem:[#allocation9 + $0x14bc] ss:$60 sps:$4 sm:$0xff]  }
 0x2b6   :  { %7114 = vmatprep.subr.bf16.mxu0 %v21430_v47  ;;  %7344 = vmatprep.subr.bf16.mxu1 %v21433_v9  ;;  %v21497_v47 = vld [vmem:[#allocation9 + $0x14b8] ss:$60 sps:$4 sm:$0xff]   ;;  %v21502_v9 = vld [vmem:[#allocation9 + $0x9ec] ss:$60 sps:$4 sm:$0xff]  }
 0x2b8   :  { %7115 = vmatpush1.bf16.msra.mxu0 %v21428_v48  ;;  %v21500_v48 = vld [vmem:[#allocation9 + $0x9e8] ss:$60 sps:$4 sm:$0xff]  }
 0x2b9   :  { %7345 = vmatpush1.bf16.msra.mxu1 %v21431_v50  ;;  %7116 = vmatprep.subr.bf16.mxu0 %v21436_v51  ;;  %v21505_v50 = vld [vmem:[#allocation9 + $0x1534] ss:$60 sps:$4 sm:$0xff]  }
 0x2ba   :  { %7346 = vmatprep.subr.bf16.mxu1 %v21439_v53  ;;  %v21503_v51 = vld [vmem:[#allocation9 + $0x1530] ss:$60 sps:$4 sm:$0xff]   ;;  %v21506_v53 = vld [vmem:[#allocation9 + $0xa60] ss:$60 sps:$4 sm:$0xff]  }
 0x2bc   :  { %7117 = vmatpush1.bf16.msra.mxu0 %v21434_v52  ;;  %v21508_v52 = vld [vmem:[#allocation9 + $0xa64] ss:$60 sps:$4 sm:$0xff]  }
 0x2bd   :  { %7347 = vmatpush1.bf16.msra.mxu1 %v21437_v54  ;;  %7118 = vmatprep.subr.bf16.mxu0 %v21442_v55  ;;  %v21511_v54 = vld [vmem:[#allocation9 + $0x15ac] ss:$60 sps:$4 sm:$0xff]  }
 0x2be   :  { %7348 = vmatprep.subr.bf16.mxu1 %v21445_v58  ;;  %v21509_v55 = vld [vmem:[#allocation9 + $0x15a8] ss:$60 sps:$4 sm:$0xff]   ;;  %v21512_v58 = vld [vmem:[#allocation9 + $0xad8] ss:$60 sps:$4 sm:$0xff]  }
 0x2c0   :  { %7119 = vmatpush1.bf16.msra.mxu0 %v21440_v56  ;;  %v21514_v56 = vld [vmem:[#allocation9 + $0xadc] ss:$60 sps:$4 sm:$0xff]  }
 0x2c1   :  { %7349 = vmatpush1.bf16.msra.mxu1 %v21443_v60  ;;  %7120 = vmatprep.subr.bf16.mxu0 %v21448_v62  ;;  %v21517_v60 = vld [vmem:[#allocation9 + $0x1624] ss:$60 sps:$4 sm:$0xff]  }
 0x2c2   :  { %7350 = vmatprep.subr.bf16.mxu1 %v21451_v1  ;;  %v21515_v62 = vld [vmem:[#allocation9 + $0x1620] ss:$60 sps:$4 sm:$0xff]  }
 0x2c3   :  { %v21523_v1 = vld [vmem:[#allocation9 + $0x169c] ss:$60 sps:$4 sm:$0xff]  }
 0x2c4   :  { %7121 = vmatpush1.bf16.msra.mxu0 %v21446_v63  ;;  %v21520_v63 = vld [vmem:[#allocation9 + $0xb54] ss:$60 sps:$4 sm:$0xff]  }
 0x2c5   :  { %7351 = vmatpush1.bf16.msra.mxu1 %v21449_v2  ;;  %7122 = vmatprep.subr.bf16.mxu0 %v21454_v3  ;;  %v21518_v2 = vld [vmem:[#allocation9 + $0xb50] ss:$60 sps:$4 sm:$0xff]   ;;  %v21521_v3 = vld [vmem:[#allocation9 + $0x1698] ss:$60 sps:$4 sm:$0xff]  }
 0x2c6   :  { %7352 = vmatprep.subr.bf16.mxu1 %v21457_v6  ;;  %v21529_v6 = vld [vmem:[#allocation9 + $0x1714] ss:$60 sps:$4 sm:$0xff]  }
 0x2c8   :  { %7123 = vmatpush1.bf16.msra.mxu0 %v21452_v5  ;;  %v21526_v5 = vld [vmem:[#allocation9 + $0xbcc] ss:$60 sps:$4 sm:$0xff]  }
 0x2c9   :  { %7353 = vmatpush1.bf16.msra.mxu1 %v21455_v7  ;;  %7124 = vmatprep.subr.bf16.mxu0 %v21460_v8  ;;  %v21524_v7 = vld [vmem:[#allocation9 + $0xbc8] ss:$60 sps:$4 sm:$0xff]   ;;  %v21527_v8 = vld [vmem:[#allocation9 + $0x1710] ss:$60 sps:$4 sm:$0xff]  }
 0x2ca   :  { %7354 = vmatprep.subr.bf16.mxu1 %v21463_v15  ;;  %v21530_v15 = vld [vmem:[#allocation9 + $0xc40] ss:$60 sps:$4 sm:$0xff]  }
 0x2cc   :  { %7125 = vmatpush1.bf16.msra.mxu0 %v21458_v14  ;;  %v21532_v14 = vld [vmem:[#allocation9 + $0xc44] ss:$60 sps:$4 sm:$0xff]  }
 0x2cd   :  { %7355 = vmatpush1.bf16.msra.mxu1 %v21461_v16  ;;  %7126 = vmatprep.subr.bf16.mxu0 %v21466_v17  ;;  %v21535_v16 = vld [vmem:[#allocation9 + $0x178c] ss:$60 sps:$4 sm:$0xff]  }
 0x2ce   :  { %7356 = vmatprep.subr.bf16.mxu1 %v21469_v19  ;;  %v21533_v17 = vld [vmem:[#allocation9 + $0x1788] ss:$60 sps:$4 sm:$0xff]   ;;  %v21536_v19 = vld [vmem:[#allocation9 + $0xcb8] ss:$60 sps:$4 sm:$0xff]  }
 0x2d0   :  { %7127 = vmatpush1.bf16.msra.mxu0 %v21464_v18  ;;  %v21538_v18 = vld [vmem:[#allocation9 + $0xcbc] ss:$60 sps:$4 sm:$0xff]  }
 0x2d1   :  { %7357 = vmatpush1.bf16.msra.mxu1 %v21467_v20  ;;  %7137 = vmatprep.subr.bf16.mxu0 %v21472_v21  ;;  %v21541_v20 = vld [vmem:[#allocation9 + $0x1804] ss:$60 sps:$4 sm:$0xff]  }
 0x2d2   :  { %7358 = vmatprep.subr.bf16.mxu1 %v21475_v23  ;;  %v21539_v21 = vld [vmem:[#allocation9 + $0x1800] ss:$60 sps:$4 sm:$0xff]   ;;  %v21544_v23 = vld [vmem:[#allocation9 + $0xd34] ss:$60 sps:$4 sm:$0xff]  }
 0x2d3   :  { %7129 = vmatmul.mubr.bf16.vlgmr.msra.gmra.mrb[20].mxu0 %v24609_v24 }
 0x2d4   :  { %7138 = vmatpush1.bf16.msra.mxu0 %v21470_v26  ;;  %7169 = vmatprep.mubr.bf16.mxu0 %v24629_v57  ;;  %v21542_v26 = vld [vmem:[#allocation9 + $0xd30] ss:$60 sps:$4 sm:$0xff]  }
 0x2d5   :  { %7359 = vmatpush1.bf16.msra.mxu1 %v21473_v27  ;;  %7139 = vmatprep.subr.bf16.mxu0 %v21478_v28  ;;  %v21547_v27 = vld [vmem:[#allocation9 + $0x187c] ss:$60 sps:$4 sm:$0xff]  }
 0x2d6   :  { %7360 = vmatprep.subr.bf16.mxu1 %v21481_v29  ;;  %v21545_v28 = vld [vmem:[#allocation9 + $0x1878] ss:$60 sps:$4 sm:$0xff]   ;;  %v21550_v29 = vld [vmem:[#allocation9 + $0xdac] ss:$60 sps:$4 sm:$0xff]  }
 0x2d8   :  { %7140 = vmatpush1.bf16.msra.mxu0 %v21476_v59  ;;  %v21553_v59 = vld [vmem:[#allocation9 + $0x18f4] ss:$60 sps:$4 sm:$0xff]  }
 0x2d9   :  { %7361 = vmatpush1.bf16.msra.mxu1 %v21479_v30  ;;  %7141 = vmatprep.subr.bf16.mxu0 %v21484_v11  ;;  %v21548_v30 = vld [vmem:[#allocation9 + $0xda8] ss:$60 sps:$4 sm:$0xff]   ;;  %v21551_v11 = vld [vmem:[#allocation9 + $0x18f0] ss:$60 sps:$4 sm:$0xff]  }
 0x2da   :  { %7362 = vmatprep.subr.bf16.mxu1 %v21487_v31 }
 0x2dc   :  { %7142 = vmatpush1.bf16.msra.mxu0 %v21482_v32  ;;  %v21556_v32 = vld [vmem:[#allocation9 + $0xe24] ss:$60 sps:$4 sm:$0xff]  }
 0x2dd   :  { %7363 = vmatpush1.bf16.msra.mxu1 %v21485_v35  ;;  %7143 = vmatprep.subr.bf16.mxu0 %v21490_v38  ;;  %v21554_v35 = vld [vmem:[#allocation9 + $0xe20] ss:$60 sps:$4 sm:$0xff]   ;;  %v21559_v38 = vld [vmem:[#allocation9 + $0x196c] ss:$60 sps:$4 sm:$0xff]  }
 0x2de   :  { %7364 = vmatprep.subr.bf16.mxu1 %v21493_v40 }
 0x2e0   :  { %7144 = vmatpush1.bf16.msra.mxu0 %v21488_v39 }
 0x2e1   :  { %7365 = vmatpush1.bf16.msra.mxu1 %v21491_v42  ;;  %7145 = vmatprep.subr.bf16.mxu0 %v21496_v44  ;;  %v21557_v44 = vld [vmem:[#allocation9 + $0x1968] ss:$60 sps:$4 sm:$0xff]  }
 0x2e2   :  { %7366 = vmatprep.subr.bf16.mxu1 %v21499_v46  ;;  %v21560_v46 = vld [vmem:[#allocation9 + $0xe98] ss:$60 sps:$4 sm:$0xff]  }
 0x2e4   :  { %7146 = vmatpush1.bf16.msra.mxu0 %v21494_v45  ;;  %v21562_v45 = vld [vmem:[#allocation9 + $0xe9c] ss:$60 sps:$4 sm:$0xff]  }
 0x2e5   :  { %7367 = vmatpush1.bf16.msra.mxu1 %v21497_v47  ;;  %7147 = vmatprep.subr.bf16.mxu0 %v21502_v9  ;;  %v21565_v47 = vld [vmem:[#allocation9 + $0x19e4] ss:$60 sps:$4 sm:$0xff]  }
 0x2e6   :  { %7368 = vmatprep.subr.bf16.mxu1 %v21505_v50  ;;  %v21563_v9 = vld [vmem:[#allocation9 + $0x19e0] ss:$60 sps:$4 sm:$0xff]  }
 0x2e7   :  { %v21571_v50 = vld [vmem:[#allocation9 + $0x1a5c] ss:$60 sps:$4 sm:$0xff]  }
 0x2e8   :  { %7148 = vmatpush1.bf16.msra.mxu0 %v21500_v48  ;;  %v21568_v48 = vld [vmem:[#allocation9 + $0xf14] ss:$60 sps:$4 sm:$0xff]  }
 0x2e9   :  { %7369 = vmatpush1.bf16.msra.mxu1 %v21503_v51  ;;  %7149 = vmatprep.subr.bf16.mxu0 %v21508_v52  ;;  %v21566_v51 = vld [vmem:[#allocation9 + $0xf10] ss:$60 sps:$4 sm:$0xff]   ;;  %v21569_v52 = vld [vmem:[#allocation9 + $0x1a58] ss:$60 sps:$4 sm:$0xff]  }
 0x2ea   :  { %7370 = vmatprep.subr.bf16.mxu1 %v21511_v54  ;;  %v21577_v54 = vld [vmem:[#allocation9 + $0x1ad4] ss:$60 sps:$4 sm:$0xff]  }
 0x2ec   :  { %7150 = vmatpush1.bf16.msra.mxu0 %v21506_v53  ;;  %v21574_v53 = vld [vmem:[#allocation9 + $0xf8c] ss:$60 sps:$4 sm:$0xff]  }
 0x2ed   :  { %7371 = vmatpush1.bf16.msra.mxu1 %v21509_v55  ;;  %7151 = vmatprep.subr.bf16.mxu0 %v21514_v56  ;;  %v21572_v55 = vld [vmem:[#allocation9 + $0xf88] ss:$60 sps:$4 sm:$0xff]   ;;  %v21575_v56 = vld [vmem:[#allocation9 + $0x1ad0] ss:$60 sps:$4 sm:$0xff]  }
 0x2ee   :  { %7372 = vmatprep.subr.bf16.mxu1 %v21517_v60  ;;  %v21578_v60 = vld [vmem:[#allocation9 + $0x1000] ss:$60 sps:$4 sm:$0xff]  }
 0x2f0   :  { %7152 = vmatpush1.bf16.msra.mxu0 %v21512_v58  ;;  %v21580_v58 = vld [vmem:[#allocation9 + $0x1004] ss:$60 sps:$4 sm:$0xff]  }
 0x2f1   :  { %7373 = vmatpush1.bf16.msra.mxu1 %v21515_v62  ;;  %7153 = vmatprep.subr.bf16.mxu0 %v21520_v63  ;;  %v21583_v62 = vld [vmem:[#allocation9 + $0x1b4c] ss:$60 sps:$4 sm:$0xff]  }
 0x2f2   :  { %7383 = vmatprep.subr.bf16.mxu1 %v21523_v1  ;;  %v21581_v63 = vld [vmem:[#allocation9 + $0x1b48] ss:$60 sps:$4 sm:$0xff]   ;;  %v21586_v1 = vld [vmem:[#allocation9 + $0x107c] ss:$60 sps:$4 sm:$0xff]  }
 0x2f4   :  { %7375 = vmatmul.mubr.bf16.vlgmr.msra.gmra.mrb[8].mxu1 %v24660_v33  ;;  %7154 = vmatpush1.bf16.msra.mxu0 %v21518_v2  ;;  %v21584_v2 = vld [vmem:[#allocation9 + $0x1078] ss:$60 sps:$4 sm:$0xff]  }
 0x2f5   :  { %7384 = vmatpush1.bf16.msra.mxu1 %v21521_v3  ;;  %7415 = vmatprep.mubr.bf16.mxu1 %v24662_v43  ;;  %v21589_v3 = vld [vmem:[#allocation9 + $0x1bc4] ss:$60 sps:$4 sm:$0xff]  }
 0x2f6   :  { %7155 = vmatprep.subr.bf16.mxu0 %v21526_v5  ;;  %7385 = vmatprep.subr.bf16.mxu1 %v21529_v6  ;;  %v21587_v5 = vld [vmem:[#allocation9 + $0x1bc0] ss:$60 sps:$4 sm:$0xff]   ;;  %v21592_v6 = vld [vmem:[#allocation9 + $0x10f4] ss:$60 sps:$4 sm:$0xff]  }
 0x2f8   :  { %7156 = vmatpush1.bf16.msra.mxu0 %v21524_v7  ;;  %v21595_v7 = vld [vmem:[#allocation9 + $0x1c3c] ss:$60 sps:$4 sm:$0xff]  }
 0x2f9   :  { %7386 = vmatpush1.bf16.msra.mxu1 %v21527_v8  ;;  %7157 = vmatprep.subr.bf16.mxu0 %v21532_v14  ;;  %v21590_v8 = vld [vmem:[#allocation9 + $0x10f0] ss:$60 sps:$4 sm:$0xff]   ;;  %v24695_v14 = vld [vmem:[#allocation10] sm:$0xff] }
 0x2fa   :  { %7387 = vmatprep.subr.bf16.mxu1 %v21535_v16  ;;  %v21598_v16 = vld [vmem:[#allocation9 + $0x116c] ss:$60 sps:$4 sm:$0xff]  }
 0x2fc   :  { %7158 = vmatpush1.bf16.msra.mxu0 %v21530_v15  ;;  %v21593_v15 = vld [vmem:[#allocation9 + $0x1c38] ss:$60 sps:$4 sm:$0xff]  }
 0x2fd   :  { %7388 = vmatpush1.bf16.msra.mxu1 %v21533_v17  ;;  %7159 = vmatprep.subr.bf16.mxu0 %v21538_v18  ;;  %v21601_v17 = vld [vmem:[#allocation9 + $0x1cb4] ss:$60 sps:$4 sm:$0xff]   ;;  %v21596_v18 = vld [vmem:[#allocation9 + $0x1168] ss:$60 sps:$4 sm:$0xff]  }
 0x2fe   :  { %7389 = vmatprep.subr.bf16.mxu1 %v21541_v20  ;;  %v1808_v20 = vrot.slane %v24695_v14, %v24603_v12 }
 0x300   :  { %7160 = vmatpush1.bf16.msra.mxu0 %v21536_v19  ;;  %v1804_v19 = vrot.slane %v24695_v14, %v24598_v10 }
 0x301   :  { %7390 = vmatpush1.bf16.msra.mxu1 %v21539_v21  ;;  %7161 = vmatprep.subr.bf16.mxu0 %v21544_v23  ;;  %v21599_v21 = vld [vmem:[#allocation9 + $0x1cb0] ss:$60 sps:$4 sm:$0xff]   ;;  %v21604_v23 = vld [vmem:[#allocation9 + $0x11e4] ss:$60 sps:$4 sm:$0xff]  }
 0x302   :  { %7391 = vmatprep.subr.bf16.mxu1 %v21547_v27 }
 0x304   :  { %7162 = vmatpush1.bf16.msra.mxu0 %v21542_v26  ;;  %v21607_v26 = vld [vmem:[#allocation9 + $0x1d2c] ss:$60 sps:$4 sm:$0xff]  }
 0x305   :  { %7392 = vmatpush1.bf16.msra.mxu1 %v21545_v28  ;;  %7163 = vmatprep.subr.bf16.mxu0 %v21550_v29  ;;  %v21602_v28 = vld [vmem:[#allocation9 + $0x11e0] ss:$60 sps:$4 sm:$0xff]  }
 0x306   :  { %v24689_v31 = vpop.f32.mrb[4].mxu1  ;;  %7393 = vmatprep.subr.bf16.mxu1 %v21553_v59 }
 0x307   :  { %v24691_v39 = vpop.f32.mrb[5].mxu1 }
 0x308   :  { %v7093_v40 = vpop.f32.mrb[6].mxu1  ;;  %7164 = vmatpush1.bf16.msra.mxu0 %v21548_v30 }
 0x309   :  { %7394 = vmatpush1.bf16.msra.mxu1 %v21551_v11  ;;  %v7094_v42 = vpop.f32.mrb[7].mxu1  ;;  %7165 = vmatprep.subr.bf16.mxu0 %v21556_v32  ;;  %v21610_v40 = vld [vmem:[#allocation9 + $0x125c] ss:$60 sps:$4 sm:$0xff]  }
 0x30a   :  { %7395 = vmatprep.subr.bf16.mxu1 %v21559_v38  ;;  %v21605_v38 = vld [vmem:[#allocation9 + $0x1d28] ss:$60 sps:$4 sm:$0xff]  }
 0x30c   :  { %7166 = vmatpush1.bf16.msra.mxu0 %v21554_v35 }
 0x30d   :  { %7396 = vmatpush1.bf16.msra.mxu1 %v21557_v44  ;;  %7167 = vmatprep.subr.bf16.mxu0 %v21562_v45  ;;  %v21608_v44 = vld [vmem:[#allocation9 + $0x1258] ss:$60 sps:$4 sm:$0xff]   ;;  %v21613_v45 = vld [vmem:[#allocation9 + $0x1da4] ss:$60 sps:$4 sm:$0xff]  }
 0x30e   :  { %7397 = vmatprep.subr.bf16.mxu1 %v21565_v47  ;;  %v21611_v47 = vld [vmem:[#allocation9 + $0x1da0] ss:$60 sps:$4 sm:$0xff]  }
 0x310   :  { %7168 = vmatpush1.bf16.msra.mxu0 %v21560_v46 }
 0x311   :  { %7398 = vmatpush1.bf16.msra.mxu1 %v21563_v9  ;;  %7178 = vmatprep.subr.bf16.mxu0 %v21568_v48  ;;  %v21616_v9 = vld [vmem:[#allocation9 + $0x12d4] ss:$60 sps:$4 sm:$0xff]  }
 0x312   :  { %7399 = vmatprep.subr.bf16.mxu1 %v21571_v50  ;;  %v21614_v48 = vld [vmem:[#allocation9 + $0x12d0] ss:$60 sps:$4 sm:$0xff]  }
 0x313   :  { %7170 = vmatmul.mubr.bf16.vlgmr.msra.gmra.mrb[20].mxu0 %v24631_v61  ;;  %v21619_v50 = vld [vmem:[#allocation9 + $0x2c] ss:$60 sps:$4 sm:$0xff]  }
 0x314   :  { %7179 = vmatpush1.bf16.msra.mxu0 %v21566_v51  ;;  %7210 = vmatprep.mubr.bf16.mxu0 %v24643_v49  ;;  %v21617_v51 = vld [vmem:[#allocation9 + $0x28] ss:$60 sps:$4 sm:$0xff]  }
 0x315   :  { %7400 = vmatpush1.bf16.msra.mxu1 %v21569_v52  ;;  %7180 = vmatprep.subr.bf16.mxu0 %v21574_v53  ;;  %v21622_v52 = vld [vmem:[#allocation9 + $0x134c] ss:$60 sps:$4 sm:$0xff]   ;;  %v21625_v53 = vld [vmem:[#allocation9 + $0xa4] ss:$60 sps:$4 sm:$0xff]  }
 0x316   :  { %7401 = vmatprep.subr.bf16.mxu1 %v21577_v54  ;;  %v21620_v54 = vld [vmem:[#allocation9 + $0x1348] ss:$60 sps:$4 sm:$0xff]  }
 0x318   :  { %7181 = vmatpush1.bf16.msra.mxu0 %v21572_v55  ;;  %v21623_v55 = vld [vmem:[#allocation9 + $0xa0] ss:$60 sps:$4 sm:$0xff]  }
 0x319   :  { %7402 = vmatpush1.bf16.msra.mxu1 %v21575_v56  ;;  %7182 = vmatprep.subr.bf16.mxu0 %v21580_v58  ;;  %v21628_v56 = vld [vmem:[#allocation9 + $0x13c4] ss:$60 sps:$4 sm:$0xff]  }
 0x31a   :  { %7403 = vmatprep.subr.bf16.mxu1 %v21583_v62  ;;  %v21626_v58 = vld [vmem:[#allocation9 + $0x13c0] ss:$60 sps:$4 sm:$0xff]   ;;  %v21629_v62 = vld [vmem:[#allocation9 + $0x118] ss:$60 sps:$4 sm:$0xff]  }
 0x31c   :  { %7183 = vmatpush1.bf16.msra.mxu0 %v21578_v60  ;;  %v21631_v60 = vld [vmem:[#allocation9 + $0x11c] ss:$60 sps:$4 sm:$0xff]  }
 0x31d   :  { %7404 = vmatpush1.bf16.msra.mxu1 %v21581_v63  ;;  %7184 = vmatprep.subr.bf16.mxu0 %v21586_v1  ;;  %v21634_v63 = vld [vmem:[#allocation9 + $0x143c] ss:$60 sps:$4 sm:$0xff]  }
 0x31e   :  { %7405 = vmatprep.subr.bf16.mxu1 %v21589_v3  ;;  %v21632_v1 = vld [vmem:[#allocation9 + $0x1438] ss:$60 sps:$4 sm:$0xff]   ;;  %v21635_v3 = vld [vmem:[#allocation9 + $0x190] ss:$60 sps:$4 sm:$0xff]  }
 0x320   :  { %7185 = vmatpush1.bf16.msra.mxu0 %v21584_v2  ;;  %v21637_v2 = vld [vmem:[#allocation9 + $0x194] ss:$60 sps:$4 sm:$0xff]  }
 0x321   :  { %7406 = vmatpush1.bf16.msra.mxu1 %v21587_v5  ;;  %7186 = vmatprep.subr.bf16.mxu0 %v21592_v6  ;;  %v21640_v5 = vld [vmem:[#allocation9 + $0x14b4] ss:$60 sps:$4 sm:$0xff]  }
 0x322   :  { %7407 = vmatprep.subr.bf16.mxu1 %v21595_v7  ;;  %v21638_v6 = vld [vmem:[#allocation9 + $0x14b0] ss:$60 sps:$4 sm:$0xff]  }
 0x323   :  { %v21643_v7 = vld [vmem:[#allocation9 + $0x20c] ss:$60 sps:$4 sm:$0xff]  }
 0x324   :  { %7187 = vmatpush1.bf16.msra.mxu0 %v21590_v8  ;;  %v21641_v8 = vld [vmem:[#allocation9 + $0x208] ss:$60 sps:$4 sm:$0xff]  }
 0x325   :  { %7408 = vmatpush1.bf16.msra.mxu1 %v21593_v15  ;;  %7188 = vmatprep.subr.bf16.mxu0 %v21598_v16  ;;  %v21646_v15 = vld [vmem:[#allocation9 + $0x152c] ss:$60 sps:$4 sm:$0xff]  }
 0x326   :  { %v6925_v27 = vpop.f32.mrb[12].mxu0  ;;  %7409 = vmatprep.subr.bf16.mxu1 %v21601_v17  ;;  %v21644_v16 = vld [vmem:[#allocation9 + $0x1528] ss:$60 sps:$4 sm:$0xff]  }
 0x327   :  { %v20655_v29 = vadd.f32 %v6925_v27, %v1804_v19  ;;  %v6927_v59 = vpop.f32.mrb[13].mxu0  ;;  %v21649_v17 = vld [vmem:[#allocation9 + $0x284] ss:$60 sps:$4 sm:$0xff]   ;;  %v21656_v27 = vld [vmem:[#allocation9 + $0x1618] ss:$60 sps:$4 sm:$0xff]  }
 0x328   :  { %v20656_v30 = vadd.f32 %v6927_v59, %v1808_v20  ;;  %v6929_v11 = vpop.f32.mrb[14].mxu0  ;;  %7189 = vmatpush1.bf16.msra.mxu0 %v21596_v18  ;;  %v21647_v18 = vld [vmem:[#allocation9 + $0x280] ss:$60 sps:$4 sm:$0xff]   ;;  %v21664_v59 = vld [vmem:[#allocation9 + $0x1694] ss:$60 sps:$4 sm:$0xff]  }
 0x329   :  { %v8076_v32 = vmax.f32 %v20655_v29, 0.0  ;;  %7410 = vmatpush1.bf16.msra.mxu1 %v21599_v21  ;;  %v6930_v35 = vpop.f32.mrb[15].mxu0  ;;  %7190 = vmatprep.subr.bf16.mxu0 %v21604_v23  ;;  %v21652_v19 = vld [vmem:[#allocation9 + $0x15a4] ss:$60 sps:$4 sm:$0xff]   ;;  %v21655_v21 = vld [vmem:[#allocation9 + $0x2fc] ss:$60 sps:$4 sm:$0xff]  }
 0x32a   :  { %v8077_v42 = vmax.f32 %v20656_v30, 0.0  ;;  %7411 = vmatprep.subr.bf16.mxu1 %v21607_v26  ;;  %v21650_v20 = vld [vmem:[#allocation9 + $0x15a0] ss:$60 sps:$4 sm:$0xff]   ;;  %v21653_v23 = vld [vmem:[#allocation9 + $0x2f8] ss:$60 sps:$4 sm:$0xff]  }
 0x32b   :  { %v21658_v26 = vld [vmem:[#allocation9 + $0x161c] ss:$60 sps:$4 sm:$0xff]   ;;  %v21659_v29 = vld [vmem:[#allocation9 + $0x370] ss:$60 sps:$4 sm:$0xff]  }
 0x32c   :  { %v20426_v46 = vpack.c.bf16 %v8077_v42, %v8076_v32  ;;  %7191 = vmatpush1.bf16.msra.mxu0 %v21602_v28  ;;  %v21661_v28 = vld [vmem:[#allocation9 + $0x374] ss:$60 sps:$4 sm:$0xff]   ;;  %v21667_v30 = vld [vmem:[#allocation9 + $0x3ec] ss:$60 sps:$4 sm:$0xff]   ;;  %v21671_v42 = vld [vmem:[#allocation9 + $0x460] ss:$60 sps:$4 sm:$0xff]  }
 0x32d   :  { %7412 = vmatpush1.bf16.msra.mxu1 %v21605_v38  ;;  %7192 = vmatprep.subr.bf16.mxu0 %v21610_v40  ;;  %v21662_v11 = vld [vmem:[#allocation9 + $0x1690] ss:$60 sps:$4 sm:$0xff]   ;;  %v21665_v32 = vld [vmem:[#allocation9 + $0x3e8] ss:$60 sps:$4 sm:$0xff]  }
 0x32e   :  { %8152 = vst [vmem:[#allocation3] sm:$0xff] %v20426_v46  ;;  %7413 = vmatprep.subr.bf16.mxu1 %v21613_v45  ;;  %v21670_v35 = vld [vmem:[#allocation9 + $0x170c] ss:$60 sps:$4 sm:$0xff]   ;;  %v21673_v38 = vld [vmem:[#allocation9 + $0x464] ss:$60 sps:$4 sm:$0xff]  }
 0x32f   :  { %v21668_v40 = vld [vmem:[#allocation9 + $0x1708] ss:$60 sps:$4 sm:$0xff]   ;;  %v21674_v45 = vld [vmem:[#allocation9 + $0x1780] ss:$60 sps:$4 sm:$0xff]  }
 0x330   :  { %7193 = vmatpush1.bf16.msra.mxu0 %v21608_v44  ;;  %v21676_v44 = vld [vmem:[#allocation9 + $0x1784] ss:$60 sps:$4 sm:$0xff]   ;;  %v21679_v46 = vld [vmem:[#allocation9 + $0x4dc] ss:$60 sps:$4 sm:$0xff]  }
 0x331   :  { %7414 = vmatpush1.bf16.msra.mxu1 %v21611_v47  ;;  %7194 = vmatprep.subr.bf16.mxu0 %v21616_v9  ;;  %v21677_v47 = vld [vmem:[#allocation9 + $0x4d8] ss:$60 sps:$4 sm:$0xff]  }
 0x332   :  { %7588 = vmatprep.subr.bf16.mxu1 %v21619_v50  ;;  %v21682_v9 = vld [vmem:[#allocation9 + $0x17fc] ss:$60 sps:$4 sm:$0xff]   ;;  %v21685_v50 = vld [vmem:[#allocation9 + $0x554] ss:$60 sps:$4 sm:$0xff]  }
 0x334   :  { %7416 = vmatmul.mubr.bf16.vlgmr.msra.gmra.mrb[8].mxu1 %v24673_v41  ;;  %7195 = vmatpush1.bf16.msra.mxu0 %v21614_v48  ;;  %v21680_v48 = vld [vmem:[#allocation9 + $0x17f8] ss:$60 sps:$4 sm:$0xff]  }
 0x335   :  { %7589 = vmatpush1.bf16.msra.mxu1 %v21617_v51  ;;  %7620 = vmatprep.mubr.bf16.mxu1 %v24611_v25  ;;  %v21683_v51 = vld [vmem:[#allocation9 + $0x550] ss:$60 sps:$4 sm:$0xff]  }
 0x336   :  { %7196 = vmatprep.subr.bf16.mxu0 %v21622_v52  ;;  %7590 = vmatprep.subr.bf16.mxu1 %v21625_v53  ;;  %v21688_v52 = vld [vmem:[#allocation9 + $0x1874] ss:$60 sps:$4 sm:$0xff]  }
 0x337   :  { %v21686_v53 = vld [vmem:[#allocation9 + $0x1870] ss:$60 sps:$4 sm:$0xff]  }
 0x338   :  { %7197 = vmatpush1.bf16.msra.mxu0 %v21620_v54  ;;  %v21691_v54 = vld [vmem:[#allocation9 + $0x5cc] ss:$60 sps:$4 sm:$0xff]  }
 0x339   :  { %7591 = vmatpush1.bf16.msra.mxu1 %v21623_v55  ;;  %7198 = vmatprep.subr.bf16.mxu0 %v21628_v56  ;;  %v21689_v55 = vld [vmem:[#allocation9 + $0x5c8] ss:$60 sps:$4 sm:$0xff]  }
 0x33a   :  { %7592 = vmatprep.subr.bf16.mxu1 %v21631_v60  ;;  %v21694_v56 = vld [vmem:[#allocation9 + $0x18ec] ss:$60 sps:$4 sm:$0xff]  }
 0x33b   :  { %v21692_v60 = vld [vmem:[#allocation9 + $0x18e8] ss:$60 sps:$4 sm:$0xff]  }
 0x33c   :  { %7199 = vmatpush1.bf16.msra.mxu0 %v21626_v58  ;;  %v21697_v58 = vld [vmem:[#allocation9 + $0x644] ss:$60 sps:$4 sm:$0xff]  }
 0x33d   :  { %7593 = vmatpush1.bf16.msra.mxu1 %v21629_v62  ;;  %7200 = vmatprep.subr.bf16.mxu0 %v21634_v63  ;;  %v1812_v62 = vrot.slane %v24695_v14, %v24616_v34  ;;  %v1816_v63 = vrot.slane %v24695_v14, %v24619_v36  ;;  %v21706_v14 = vld [vmem:[#allocation9 + $0x19dc] ss:$60 sps:$4 sm:$0xff]  }
 0x33e   :  { %7594 = vmatprep.subr.bf16.mxu1 %v21637_v2  ;;  %v21700_v2 = vld [vmem:[#allocation9 + $0x1964] ss:$60 sps:$4 sm:$0xff]  }
 0x340   :  { %7201 = vmatpush1.bf16.msra.mxu0 %v21632_v1  ;;  %v21695_v1 = vld [vmem:[#allocation9 + $0x640] ss:$60 sps:$4 sm:$0xff]  }
 0x341   :  { %7595 = vmatpush1.bf16.msra.mxu1 %v21635_v3  ;;  %7202 = vmatprep.subr.bf16.mxu0 %v21640_v5  ;;  %v21703_v3 = vld [vmem:[#allocation9 + $0x6bc] ss:$60 sps:$4 sm:$0xff]  }
 0x342   :  { %7596 = vmatprep.subr.bf16.mxu1 %v21643_v7 }
 0x344   :  { %7203 = vmatpush1.bf16.msra.mxu0 %v21638_v6  ;;  %v21698_v6 = vld [vmem:[#allocation9 + $0x1960] ss:$60 sps:$4 sm:$0xff]  }
 0x345   :  { %7597 = vmatpush1.bf16.msra.mxu1 %v21641_v8  ;;  %7204 = vmatprep.subr.bf16.mxu0 %v21646_v15 }
 0x346   :  { %7598 = vmatprep.subr.bf16.mxu1 %v21649_v17 }
 0x348   :  { %7205 = vmatpush1.bf16.msra.mxu0 %v21644_v16 }
 0x349   :  { %7599 = vmatpush1.bf16.msra.mxu1 %v21647_v18  ;;  %7206 = vmatprep.subr.bf16.mxu0 %v21652_v19  ;;  %v21701_v19 = vld [vmem:[#allocation9 + $0x6b8] ss:$60 sps:$4 sm:$0xff]  }
 0x34a   :  { %7600 = vmatprep.subr.bf16.mxu1 %v21655_v21  ;;  %v21704_v21 = vld [vmem:[#allocation9 + $0x19d8] ss:$60 sps:$4 sm:$0xff]  }
 0x34c   :  { %7207 = vmatpush1.bf16.msra.mxu0 %v21650_v20 }
 0x34d   :  { %7601 = vmatpush1.bf16.msra.mxu1 %v21653_v23  ;;  %7208 = vmatprep.subr.bf16.mxu0 %v21658_v26  ;;  %v21709_v23 = vld [vmem:[#allocation9 + $0x734] ss:$60 sps:$4 sm:$0xff]  }
 0x34e   :  { %7602 = vmatprep.subr.bf16.mxu1 %v21661_v28  ;;  %v21707_v28 = vld [vmem:[#allocation9 + $0x730] ss:$60 sps:$4 sm:$0xff]  }
 0x350   :  { %7209 = vmatpush1.bf16.msra.mxu0 %v21656_v27 }
 0x351   :  { %7603 = vmatpush1.bf16.msra.mxu1 %v21659_v29  ;;  %7219 = vmatprep.subr.bf16.mxu0 %v21664_v59  ;;  %v21712_v29 = vld [vmem:[#allocation9 + $0x1a54] ss:$60 sps:$4 sm:$0xff]  }
 0x352   :  { %7604 = vmatprep.subr.bf16.mxu1 %v21667_v30  ;;  %v21715_v30 = vld [vmem:[#allocation9 + $0x7ac] ss:$60 sps:$4 sm:$0xff]  }
 0x353   :  { %7211 = vmatmul.mubr.bf16.vlgmr.msra.gmra.mrb[20].mxu0 %v24660_v33 }
 0x354   :  { %7220 = vmatpush1.bf16.msra.mxu0 %v21662_v11  ;;  %7251 = vmatprep.mubr.bf16.mxu0 %v24662_v43  ;;  %v21713_v11 = vld [vmem:[#allocation9 + $0x7a8] ss:$60 sps:$4 sm:$0xff]  }
 0x355   :  { %7605 = vmatpush1.bf16.msra.mxu1 %v21665_v32  ;;  %7221 = vmatprep.subr.bf16.mxu0 %v21670_v35  ;;  %v21721_v32 = vld [vmem:[#allocation9 + $0x824] ss:$60 sps:$4 sm:$0xff]  }
 0x356   :  { %7606 = vmatprep.subr.bf16.mxu1 %v21673_v38  ;;  %v21716_v35 = vld [vmem:[#allocation9 + $0x1ac8] ss:$60 sps:$4 sm:$0xff]   ;;  %v21719_v38 = vld [vmem:[#allocation9 + $0x820] ss:$60 sps:$4 sm:$0xff]  }
 0x358   :  { %7222 = vmatpush1.bf16.msra.mxu0 %v21668_v40  ;;  %v21724_v40 = vld [vmem:[#allocation9 + $0x1b44] ss:$60 sps:$4 sm:$0xff]  }
 0x359   :  { %7607 = vmatpush1.bf16.msra.mxu1 %v21671_v42  ;;  %7223 = vmatprep.subr.bf16.mxu0 %v21676_v44  ;;  %v21727_v42 = vld [vmem:[#allocation9 + $0x89c] ss:$60 sps:$4 sm:$0xff]  }
 0x35a   :  { %7608 = vmatprep.subr.bf16.mxu1 %v21679_v46  ;;  %v21722_v44 = vld [vmem:[#allocation9 + $0x1b40] ss:$60 sps:$4 sm:$0xff]  }
 0x35b   :  { %v21730_v46 = vld [vmem:[#allocation9 + $0x1bbc] ss:$60 sps:$4 sm:$0xff]  }
 0x35c   :  { %7224 = vmatpush1.bf16.msra.mxu0 %v21674_v45  ;;  %v21725_v45 = vld [vmem:[#allocation9 + $0x898] ss:$60 sps:$4 sm:$0xff]  }
 0x35d   :  { %7609 = vmatpush1.bf16.msra.mxu1 %v21677_v47  ;;  %7225 = vmatprep.subr.bf16.mxu0 %v21682_v9  ;;  %v21728_v47 = vld [vmem:[#allocation9 + $0x1bb8] ss:$60 sps:$4 sm:$0xff]  }
 0x35e   :  { %7610 = vmatprep.subr.bf16.mxu1 %v21685_v50  ;;  %v21733_v9 = vld [vmem:[#allocation9 + $0x914] ss:$60 sps:$4 sm:$0xff]  }
 0x35f   :  { %v21736_v50 = vld [vmem:[#allocation9 + $0x1c34] ss:$60 sps:$4 sm:$0xff]  }
 0x360   :  { %7226 = vmatpush1.bf16.msra.mxu0 %v21680_v48  ;;  %v21731_v48 = vld [vmem:[#allocation9 + $0x910] ss:$60 sps:$4 sm:$0xff]  }
 0x361   :  { %7611 = vmatpush1.bf16.msra.mxu1 %v21683_v51  ;;  %7227 = vmatprep.subr.bf16.mxu0 %v21688_v52  ;;  %v21734_v51 = vld [vmem:[#allocation9 + $0x1c30] ss:$60 sps:$4 sm:$0xff]  }
 0x362   :  { %7612 = vmatprep.subr.bf16.mxu1 %v21691_v54  ;;  %v21739_v52 = vld [vmem:[#allocation9 + $0x98c] ss:$60 sps:$4 sm:$0xff]  }
 0x363   :  { %v21742_v54 = vld [vmem:[#allocation9 + $0x1cac] ss:$60 sps:$4 sm:$0xff]  }
 0x364   :  { %7228 = vmatpush1.bf16.msra.mxu0 %v21686_v53  ;;  %v21737_v53 = vld [vmem:[#allocation9 + $0x988] ss:$60 sps:$4 sm:$0xff]  }
 0x365   :  { %7613 = vmatpush1.bf16.msra.mxu1 %v21689_v55  ;;  %7229 = vmatprep.subr.bf16.mxu0 %v21694_v56  ;;  %v21740_v55 = vld [vmem:[#allocation9 + $0x1ca8] ss:$60 sps:$4 sm:$0xff]  }
 0x366   :  { %v6966_v5 = vpop.f32.mrb[16].mxu0  ;;  %7614 = vmatprep.subr.bf16.mxu1 %v21697_v58  ;;  %v21745_v56 = vld [vmem:[#allocation9 + $0xa04] ss:$60 sps:$4 sm:$0xff]  }
 0x367   :  { %v6967_v7 = vadd.f32 %v6966_v5, %v1812_v62  ;;  %v6968_v8 = vpop.f32.mrb[17].mxu0  ;;  %v21743_v58 = vld [vmem:[#allocation9 + $0xa00] ss:$60 sps:$4 sm:$0xff]   ;;  %v21757_v5 = vld [vmem:[#allocation9 + $0xaf4] ss:$60 sps:$4 sm:$0xff]  }
 0x368   :  { %v6969_v15 = vadd.f32 %v6968_v8, %v1816_v63  ;;  %v6970_v16 = vpop.f32.mrb[18].mxu0  ;;  %7230 = vmatpush1.bf16.msra.mxu0 %v21692_v60  ;;  %v21748_v60 = vld [vmem:[#allocation9 + $0x1d24] ss:$60 sps:$4 sm:$0xff]   ;;  %v21751_v63 = vld [vmem:[#allocation9 + $0xa7c] ss:$60 sps:$4 sm:$0xff]  }
 0x369   :  { %v20658_v17 = vadd.f32 %v24689_v31, %v6967_v7  ;;  %7615 = vmatpush1.bf16.msra.mxu1 %v21695_v1  ;;  %v6971_v18 = vpop.f32.mrb[19].mxu0  ;;  %7231 = vmatprep.subr.bf16.mxu0 %v21700_v2  ;;  %v21710_v31 = vld [vmem:[#allocation9 + $0x1a50] ss:$60 sps:$4 sm:$0xff]   ;;  %v21746_v62 = vld [vmem:[#allocation9 + $0x1d20] ss:$60 sps:$4 sm:$0xff]  }
 0x36a   :  { %v20660_v20 = vadd.f32 %v24691_v39, %v6969_v15  ;;  %7616 = vmatprep.subr.bf16.mxu1 %v21703_v3  ;;  %v21718_v39 = vld [vmem:[#allocation9 + $0x1acc] ss:$60 sps:$4 sm:$0xff]   ;;  %v21749_v1 = vld [vmem:[#allocation9 + $0xa78] ss:$60 sps:$4 sm:$0xff]   ;;  %v21760_v7 = vld [vmem:[#allocation9 + $0x24] ss:$60 sps:$4 sm:$0xff]  }
 0x36b   :  { %v8078_v26 = vmax.f32 %v20658_v17, 0.0  ;;  %v21754_v2 = vld [vmem:[#allocation9 + $0x1d9c] ss:$60 sps:$4 sm:$0xff]   ;;  %v21763_v15 = vld [vmem:[#allocation9 + $0xb6c] ss:$60 sps:$4 sm:$0xff]  }
 0x36c   :  { %v8079_v27 = vmax.f32 %v20660_v20, 0.0  ;;  %7232 = vmatpush1.bf16.msra.mxu0 %v21698_v6  ;;  %v21752_v3 = vld [vmem:[#allocation9 + $0x1d98] ss:$60 sps:$4 sm:$0xff]   ;;  %v21755_v6 = vld [vmem:[#allocation9 + $0xaf0] ss:$60 sps:$4 sm:$0xff]  }
 0x36d   :  { %7617 = vmatpush1.bf16.msra.mxu1 %v21701_v19  ;;  %7233 = vmatprep.subr.bf16.mxu0 %v21706_v14  ;;  %v21758_v8 = vld [vmem:[#allocation9 + $0x20] ss:$60 sps:$4 sm:$0xff]   ;;  %v21761_v16 = vld [vmem:[#allocation9 + $0xb68] ss:$60 sps:$4 sm:$0xff]   ;;  %v21764_v19 = vld [vmem:[#allocation9 + $0x98] ss:$60 sps:$4 sm:$0xff]  }
 0x36e   :  { %v20427_v59 = vpack.c.bf16 %v8079_v27, %v8078_v26  ;;  %7618 = vmatprep.subr.bf16.mxu1 %v21709_v23  ;;  %v21766_v17 = vld [vmem:[#allocation9 + $0x9c] ss:$60 sps:$4 sm:$0xff]   ;;  %v21769_v18 = vld [vmem:[#allocation9 + $0xbe4] ss:$60 sps:$4 sm:$0xff]   ;;  %v21772_v20 = vld [vmem:[#allocation9 + $0x114] ss:$60 sps:$4 sm:$0xff]  }
 0x36f   :  { %v21767_v14 = vld [vmem:[#allocation9 + $0xbe0] ss:$60 sps:$4 sm:$0xff]   ;;  %v21773_v26 = vld [vmem:[#allocation9 + $0xc58] ss:$60 sps:$4 sm:$0xff]   ;;  %v21778_v27 = vld [vmem:[#allocation9 + $0x18c] ss:$60 sps:$4 sm:$0xff]  }
 0x370   :  { %8153 = vst [vmem:[#allocation3 + $0x8] sm:$0xff] %v20427_v59  ;;  %7234 = vmatpush1.bf16.msra.mxu0 %v21704_v21  ;;  %v21770_v21 = vld [vmem:[#allocation9 + $0x110] ss:$60 sps:$4 sm:$0xff]   ;;  %v21775_v23 = vld [vmem:[#allocation9 + $0xc5c] ss:$60 sps:$4 sm:$0xff]  }
 0x371   :  { %7619 = vmatpush1.bf16.msra.mxu1 %v21707_v28  ;;  %7235 = vmatprep.subr.bf16.mxu0 %v21712_v29  ;;  %v21776_v28 = vld [vmem:[#allocation9 + $0x188] ss:$60 sps:$4 sm:$0xff]   ;;  %v21781_v29 = vld [vmem:[#allocation9 + $0xcd4] ss:$60 sps:$4 sm:$0xff]  }
 0x372   :  { %7629 = vmatprep.subr.bf16.mxu1 %v21715_v30  ;;  %v21779_v59 = vld [vmem:[#allocation9 + $0xcd0] ss:$60 sps:$4 sm:$0xff]   ;;  %v21782_v30 = vld [vmem:[#allocation9 + $0x200] ss:$60 sps:$4 sm:$0xff]  }
 0x374   :  { %7621 = vmatmul.mubr.bf16.vlgmr.msra.gmra.mrb[12].mxu1 %v24609_v24  ;;  %7236 = vmatpush1.bf16.msra.mxu0 %v21710_v31  ;;  %v21784_v31 = vld [vmem:[#allocation9 + $0x204] ss:$60 sps:$4 sm:$0xff]  }
 0x375   :  { %7630 = vmatpush1.bf16.msra.mxu1 %v21713_v11  ;;  %7661 = vmatprep.mubr.bf16.mxu1 %v24629_v57  ;;  %v21787_v11 = vld [vmem:[#allocation9 + $0xd4c] ss:$60 sps:$4 sm:$0xff]  }
 0x376   :  { %7237 = vmatprep.subr.bf16.mxu0 %v21718_v39  ;;  %7631 = vmatprep.subr.bf16.mxu1 %v21721_v32  ;;  %v21785_v39 = vld [vmem:[#allocation9 + $0xd48] ss:$60 sps:$4 sm:$0xff]   ;;  %v21790_v32 = vld [vmem:[#allocation9 + $0x27c] ss:$60 sps:$4 sm:$0xff]  }
 0x378   :  { %7238 = vmatpush1.bf16.msra.mxu0 %v21716_v35  ;;  %v21788_v35 = vld [vmem:[#allocation9 + $0x278] ss:$60 sps:$4 sm:$0xff]  }
 0x379   :  { %7632 = vmatpush1.bf16.msra.mxu1 %v21719_v38  ;;  %7239 = vmatprep.subr.bf16.mxu0 %v21724_v40  ;;  %v21793_v38 = vld [vmem:[#allocation9 + $0xdc4] ss:$60 sps:$4 sm:$0xff]  }
 0x37a   :  { %7633 = vmatprep.subr.bf16.mxu1 %v21727_v42  ;;  %v21791_v40 = vld [vmem:[#allocation9 + $0xdc0] ss:$60 sps:$4 sm:$0xff]   ;;  %v21796_v42 = vld [vmem:[#allocation9 + $0x2f4] ss:$60 sps:$4 sm:$0xff]  }
 0x37c   :  { %7240 = vmatpush1.bf16.msra.mxu0 %v21722_v44  ;;  %v21794_v44 = vld [vmem:[#allocation9 + $0x2f0] ss:$60 sps:$4 sm:$0xff]  }
 0x37d   :  { %7634 = vmatpush1.bf16.msra.mxu1 %v21725_v45  ;;  %7241 = vmatprep.subr.bf16.mxu0 %v21730_v46  ;;  %v21799_v45 = vld [vmem:[#allocation9 + $0xe3c] ss:$60 sps:$4 sm:$0xff]  }
 0x37e   :  { %7635 = vmatprep.subr.bf16.mxu1 %v21733_v9  ;;  %v21797_v46 = vld [vmem:[#allocation9 + $0xe38] ss:$60 sps:$4 sm:$0xff]   ;;  %v21800_v9 = vld [vmem:[#allocation9 + $0x368] ss:$60 sps:$4 sm:$0xff]  }
 0x380   :  { %7242 = vmatpush1.bf16.msra.mxu0 %v21728_v47  ;;  %v21802_v47 = vld [vmem:[#allocation9 + $0x36c] ss:$60 sps:$4 sm:$0xff]  }
 0x381   :  { %7636 = vmatpush1.bf16.msra.mxu1 %v21731_v48  ;;  %7243 = vmatprep.subr.bf16.mxu0 %v21736_v50  ;;  %v21805_v48 = vld [vmem:[#allocation9 + $0xeb4] ss:$60 sps:$4 sm:$0xff]  }
 0x382   :  { %7637 = vmatprep.subr.bf16.mxu1 %v21739_v52  ;;  %v21803_v50 = vld [vmem:[#allocation9 + $0xeb0] ss:$60 sps:$4 sm:$0xff]   ;;  %v21806_v52 = vld [vmem:[#allocation9 + $0x3e0] ss:$60 sps:$4 sm:$0xff]  }
 0x384   :  { %7244 = vmatpush1.bf16.msra.mxu0 %v21734_v51  ;;  %v21808_v51 = vld [vmem:[#allocation9 + $0x3e4] ss:$60 sps:$4 sm:$0xff]  }
 0x385   :  { %7638 = vmatpush1.bf16.msra.mxu1 %v21737_v53  ;;  %7245 = vmatprep.subr.bf16.mxu0 %v21742_v54  ;;  %v21811_v53 = vld [vmem:[#allocation9 + $0xf2c] ss:$60 sps:$4 sm:$0xff]  }
 0x386   :  { %7639 = vmatprep.subr.bf16.mxu1 %v21745_v56  ;;  %v21809_v54 = vld [vmem:[#allocation9 + $0xf28] ss:$60 sps:$4 sm:$0xff]  }
 0x387   :  { %v21817_v56 = vld [vmem:[#allocation9 + $0xfa4] ss:$60 sps:$4 sm:$0xff]  }
 0x388   :  { %7246 = vmatpush1.bf16.msra.mxu0 %v21740_v55  ;;  %v21814_v55 = vld [vmem:[#allocation9 + $0x45c] ss:$60 sps:$4 sm:$0xff]  }
 0x389   :  { %7640 = vmatpush1.bf16.msra.mxu1 %v21743_v58  ;;  %7247 = vmatprep.subr.bf16.mxu0 %v21748_v60  ;;  %v21812_v58 = vld [vmem:[#allocation9 + $0x458] ss:$60 sps:$4 sm:$0xff]   ;;  %v21815_v60 = vld [vmem:[#allocation9 + $0xfa0] ss:$60 sps:$4 sm:$0xff]  }
 0x38a   :  { %7641 = vmatprep.subr.bf16.mxu1 %v21751_v63  ;;  %v21823_v63 = vld [vmem:[#allocation9 + $0x101c] ss:$60 sps:$4 sm:$0xff]  }
 0x38c   :  { %7248 = vmatpush1.bf16.msra.mxu0 %v21746_v62  ;;  %v21820_v62 = vld [vmem:[#allocation9 + $0x4d4] ss:$60 sps:$4 sm:$0xff]  }
 0x38d   :  { %7642 = vmatpush1.bf16.msra.mxu1 %v21749_v1  ;;  %7249 = vmatprep.subr.bf16.mxu0 %v21754_v2  ;;  %v21818_v1 = vld [vmem:[#allocation9 + $0x4d0] ss:$60 sps:$4 sm:$0xff]   ;;  %v21821_v2 = vld [vmem:[#allocation9 + $0x1018] ss:$60 sps:$4 sm:$0xff]  }
 0x38e   :  { %7643 = vmatprep.subr.bf16.mxu1 %v21757_v5  ;;  %v21829_v5 = vld [vmem:[#allocation9 + $0x1094] ss:$60 sps:$4 sm:$0xff]  }
 0x390   :  { %7250 = vmatpush1.bf16.msra.mxu0 %v21752_v3  ;;  %v21826_v3 = vld [vmem:[#allocation9 + $0x54c] ss:$60 sps:$4 sm:$0xff]  }
 0x391   :  { %7644 = vmatpush1.bf16.msra.mxu1 %v21755_v6  ;;  %7424 = vmatprep.subr.bf16.mxu0 %v21760_v7  ;;  %v21824_v6 = vld [vmem:[#allocation9 + $0x548] ss:$60 sps:$4 sm:$0xff]   ;;  %v21827_v7 = vld [vmem:[#allocation9 + $0x1090] ss:$60 sps:$4 sm:$0xff]  }
 0x392   :  { %7645 = vmatprep.subr.bf16.mxu1 %v21763_v15  ;;  %v21835_v15 = vld [vmem:[#allocation9 + $0x110c] ss:$60 sps:$4 sm:$0xff]  }
 0x393   :  { %7252 = vmatmul.mubr.bf16.vlgmr.msra.gmra.mrb[20].mxu0 %v24673_v41 }
 0x394   :  { %7425 = vmatpush1.bf16.msra.mxu0 %v21758_v8  ;;  %7456 = vmatprep.mubr.bf16.mxu0 %v24611_v25  ;;  %v21832_v8 = vld [vmem:[#allocation9 + $0x5c4] ss:$60 sps:$4 sm:$0xff]  }
 0x395   :  { %7646 = vmatpush1.bf16.msra.mxu1 %v21761_v16  ;;  %7426 = vmatprep.subr.bf16.mxu0 %v21766_v17  ;;  %v21830_v16 = vld [vmem:[#allocation9 + $0x5c0] ss:$60 sps:$4 sm:$0xff]   ;;  %v21833_v17 = vld [vmem:[#allocation9 + $0x1108] ss:$60 sps:$4 sm:$0xff]  }
 0x396   :  { %7647 = vmatprep.subr.bf16.mxu1 %v21769_v18  ;;  %v21838_v18 = vld [vmem:[#allocation9 + $0x63c] ss:$60 sps:$4 sm:$0xff]  }
 0x398   :  { %7427 = vmatpush1.bf16.msra.mxu0 %v21764_v19  ;;  %v21841_v19 = vld [vmem:[#allocation9 + $0x1184] ss:$60 sps:$4 sm:$0xff]  }
 0x399   :  { %7648 = vmatpush1.bf16.msra.mxu1 %v21767_v14  ;;  %7428 = vmatprep.subr.bf16.mxu0 %v21772_v20  ;;  %v21836_v14 = vld [vmem:[#allocation9 + $0x638] ss:$60 sps:$4 sm:$0xff]   ;;  %v21839_v20 = vld [vmem:[#allocation9 + $0x1180] ss:$60 sps:$4 sm:$0xff]  }
 0x39a   :  { %7649 = vmatprep.subr.bf16.mxu1 %v21775_v23  ;;  %v21847_v23 = vld [vmem:[#allocation9 + $0x11fc] ss:$60 sps:$4 sm:$0xff]  }
 0x39c   :  { %7429 = vmatpush1.bf16.msra.mxu0 %v21770_v21  ;;  %v21844_v21 = vld [vmem:[#allocation9 + $0x6b4] ss:$60 sps:$4 sm:$0xff]  }
 0x39d   :  { %7650 = vmatpush1.bf16.msra.mxu1 %v21773_v26  ;;  %7430 = vmatprep.subr.bf16.mxu0 %v21778_v27  ;;  %v21842_v26 = vld [vmem:[#allocation9 + $0x6b0] ss:$60 sps:$4 sm:$0xff]   ;;  %v21845_v27 = vld [vmem:[#allocation9 + $0x11f8] ss:$60 sps:$4 sm:$0xff]  }
 0x39e   :  { %7651 = vmatprep.subr.bf16.mxu1 %v21781_v29  ;;  %v21853_v29 = vld [vmem:[#allocation9 + $0x1274] ss:$60 sps:$4 sm:$0xff]  }
 0x3a0   :  { %7431 = vmatpush1.bf16.msra.mxu0 %v21776_v28  ;;  %v21850_v28 = vld [vmem:[#allocation9 + $0x72c] ss:$60 sps:$4 sm:$0xff]  }
 0x3a1   :  { %7652 = vmatpush1.bf16.msra.mxu1 %v21779_v59  ;;  %7432 = vmatprep.subr.bf16.mxu0 %v21784_v31  ;;  %v21848_v59 = vld [vmem:[#allocation9 + $0x728] ss:$60 sps:$4 sm:$0xff]   ;;  %v21851_v31 = vld [vmem:[#allocation9 + $0x1270] ss:$60 sps:$4 sm:$0xff]  }
 0x3a2   :  { %7653 = vmatprep.subr.bf16.mxu1 %v21787_v11  ;;  %v21859_v11 = vld [vmem:[#allocation9 + $0x12ec] ss:$60 sps:$4 sm:$0xff]  }
 0x3a4   :  { %7433 = vmatpush1.bf16.msra.mxu0 %v21782_v30  ;;  %v21856_v30 = vld [vmem:[#allocation9 + $0x7a4] ss:$60 sps:$4 sm:$0xff]  }
 0x3a5   :  { %7654 = vmatpush1.bf16.msra.mxu1 %v21785_v39  ;;  %7434 = vmatprep.subr.bf16.mxu0 %v21790_v32  ;;  %v21854_v39 = vld [vmem:[#allocation9 + $0x7a0] ss:$60 sps:$4 sm:$0xff]   ;;  %v21857_v32 = vld [vmem:[#allocation9 + $0x12e8] ss:$60 sps:$4 sm:$0xff]  }
 0x3a6   :  { %7655 = vmatprep.subr.bf16.mxu1 %v21793_v38  ;;  %v21860_v38 = vld [vmem:[#allocation9 + $0x818] ss:$60 sps:$4 sm:$0xff]  }
 0x3a8   :  { %7435 = vmatpush1.bf16.msra.mxu0 %v21788_v35  ;;  %v21862_v35 = vld [vmem:[#allocation9 + $0x81c] ss:$60 sps:$4 sm:$0xff]  }
 0x3a9   :  { %7656 = vmatpush1.bf16.msra.mxu1 %v21791_v40  ;;  %7436 = vmatprep.subr.bf16.mxu0 %v21796_v42  ;;  %v21865_v40 = vld [vmem:[#allocation9 + $0x1364] ss:$60 sps:$4 sm:$0xff]  }
 0x3aa   :  { %7657 = vmatprep.subr.bf16.mxu1 %v21799_v45  ;;  %v21863_v42 = vld [vmem:[#allocation9 + $0x1360] ss:$60 sps:$4 sm:$0xff]  }
 0x3ab   :  { %v21871_v45 = vld [vmem:[#allocation9 + $0x13dc] ss:$60 sps:$4 sm:$0xff]  }
 0x3ac   :  { %7437 = vmatpush1.bf16.msra.mxu0 %v21794_v44  ;;  %v21868_v44 = vld [vmem:[#allocation9 + $0x894] ss:$60 sps:$4 sm:$0xff]  }
 0x3ad   :  { %7658 = vmatpush1.bf16.msra.mxu1 %v21797_v46  ;;  %7438 = vmatprep.subr.bf16.mxu0 %v21802_v47  ;;  %v21866_v46 = vld [vmem:[#allocation9 + $0x890] ss:$60 sps:$4 sm:$0xff]   ;;  %v21869_v47 = vld [vmem:[#allocation9 + $0x13d8] ss:$60 sps:$4 sm:$0xff]  }
 0x3ae   :  { %7659 = vmatprep.subr.bf16.mxu1 %v21805_v48  ;;  %v21877_v48 = vld [vmem:[#allocation9 + $0x1454] ss:$60 sps:$4 sm:$0xff]  }
 0x3b0   :  { %7439 = vmatpush1.bf16.msra.mxu0 %v21800_v9  ;;  %v21874_v9 = vld [vmem:[#allocation9 + $0x90c] ss:$60 sps:$4 sm:$0xff]  }
 0x3b1   :  { %7660 = vmatpush1.bf16.msra.mxu1 %v21803_v50  ;;  %7440 = vmatprep.subr.bf16.mxu0 %v21808_v51  ;;  %v21872_v50 = vld [vmem:[#allocation9 + $0x908] ss:$60 sps:$4 sm:$0xff]   ;;  %v21875_v51 = vld [vmem:[#allocation9 + $0x1450] ss:$60 sps:$4 sm:$0xff]  }
 0x3b2   :  { %7670 = vmatprep.subr.bf16.mxu1 %v21811_v53  ;;  %v21883_v53 = vld [vmem:[#allocation9 + $0x14cc] ss:$60 sps:$4 sm:$0xff]  }
 0x3b4   :  { %7662 = vmatmul.mubr.bf16.vlgmr.msra.gmra.mrb[12].mxu1 %v24631_v61  ;;  %7441 = vmatpush1.bf16.msra.mxu0 %v21806_v52  ;;  %v21880_v52 = vld [vmem:[#allocation9 + $0x984] ss:$60 sps:$4 sm:$0xff]  }
 0x3b5   :  { %7671 = vmatpush1.bf16.msra.mxu1 %v21809_v54  ;;  %7702 = vmatprep.mubr.bf16.mxu1 %v24643_v49  ;;  %v21878_v54 = vld [vmem:[#allocation9 + $0x980] ss:$60 sps:$4 sm:$0xff]  }
 0x3b6   :  { %7442 = vmatprep.subr.bf16.mxu0 %v21814_v55  ;;  %7672 = vmatprep.subr.bf16.mxu1 %v21817_v56  ;;  %v21881_v55 = vld [vmem:[#allocation9 + $0x14c8] ss:$60 sps:$4 sm:$0xff]   ;;  %v21886_v56 = vld [vmem:[#allocation9 + $0x9fc] ss:$60 sps:$4 sm:$0xff]  }
 0x3b8   :  { %7443 = vmatpush1.bf16.msra.mxu0 %v21812_v58  ;;  %v21889_v58 = vld [vmem:[#allocation9 + $0x1544] ss:$60 sps:$4 sm:$0xff]  }
 0x3b9   :  { %7673 = vmatpush1.bf16.msra.mxu1 %v21815_v60  ;;  %7444 = vmatprep.subr.bf16.mxu0 %v21820_v62  ;;  %v21884_v60 = vld [vmem:[#allocation9 + $0x9f8] ss:$60 sps:$4 sm:$0xff]   ;;  %v21887_v62 = vld [vmem:[#allocation9 + $0x1540] ss:$60 sps:$4 sm:$0xff]  }
 0x3ba   :  { %7674 = vmatprep.subr.bf16.mxu1 %v21823_v63  ;;  %v21892_v63 = vld [vmem:[#allocation9 + $0xa74] ss:$60 sps:$4 sm:$0xff]  }
 0x3bc   :  { %7445 = vmatpush1.bf16.msra.mxu0 %v21818_v1  ;;  %v21895_v1 = vld [vmem:[#allocation9 + $0x15bc] ss:$60 sps:$4 sm:$0xff]  }
 0x3bd   :  { %7675 = vmatpush1.bf16.msra.mxu1 %v21821_v2  ;;  %7446 = vmatprep.subr.bf16.mxu0 %v21826_v3  ;;  %v21890_v2 = vld [vmem:[#allocation9 + $0xa70] ss:$60 sps:$4 sm:$0xff]   ;;  %v21893_v3 = vld [vmem:[#allocation9 + $0x15b8] ss:$60 sps:$4 sm:$0xff]  }
 0x3be   :  { %7676 = vmatprep.subr.bf16.mxu1 %v21829_v5  ;;  %v21898_v5 = vld [vmem:[#allocation9 + $0xaec] ss:$60 sps:$4 sm:$0xff]  }
 0x3c0   :  { %7447 = vmatpush1.bf16.msra.mxu0 %v21824_v6  ;;  %v21901_v6 = vld [vmem:[#allocation9 + $0x1634] ss:$60 sps:$4 sm:$0xff]  }
 0x3c1   :  { %7677 = vmatpush1.bf16.msra.mxu1 %v21827_v7  ;;  %7448 = vmatprep.subr.bf16.mxu0 %v21832_v8  ;;  %v21896_v7 = vld [vmem:[#allocation9 + $0xae8] ss:$60 sps:$4 sm:$0xff]   ;;  %v21899_v8 = vld [vmem:[#allocation9 + $0x1630] ss:$60 sps:$4 sm:$0xff]  }
 0x3c2   :  { %7678 = vmatprep.subr.bf16.mxu1 %v21835_v15  ;;  %v21904_v15 = vld [vmem:[#allocation9 + $0xb64] ss:$60 sps:$4 sm:$0xff]  }
 0x3c4   :  { %7449 = vmatpush1.bf16.msra.mxu0 %v21830_v16  ;;  %v21902_v16 = vld [vmem:[#allocation9 + $0xb60] ss:$60 sps:$4 sm:$0xff]  }
 0x3c5   :  { %7679 = vmatpush1.bf16.msra.mxu1 %v21833_v17  ;;  %7450 = vmatprep.subr.bf16.mxu0 %v21838_v18  ;;  %v21907_v17 = vld [vmem:[#allocation9 + $0x16ac] ss:$60 sps:$4 sm:$0xff]  }
 0x3c6   :  { %7680 = vmatprep.subr.bf16.mxu1 %v21841_v19  ;;  %v21905_v18 = vld [vmem:[#allocation9 + $0x16a8] ss:$60 sps:$4 sm:$0xff]   ;;  %v21910_v19 = vld [vmem:[#allocation9 + $0xbdc] ss:$60 sps:$4 sm:$0xff]  }
 0x3c8   :  { %7451 = vmatpush1.bf16.msra.mxu0 %v21836_v14  ;;  %v21913_v14 = vld [vmem:[#allocation9 + $0x1724] ss:$60 sps:$4 sm:$0xff]  }
 0x3c9   :  { %7681 = vmatpush1.bf16.msra.mxu1 %v21839_v20  ;;  %7452 = vmatprep.subr.bf16.mxu0 %v21844_v21  ;;  %v21908_v20 = vld [vmem:[#allocation9 + $0xbd8] ss:$60 sps:$4 sm:$0xff]   ;;  %v21911_v21 = vld [vmem:[#allocation9 + $0x1720] ss:$60 sps:$4 sm:$0xff]  }
 0x3ca   :  { %7682 = vmatprep.subr.bf16.mxu1 %v21847_v23  ;;  %v21916_v23 = vld [vmem:[#allocation9 + $0xc54] ss:$60 sps:$4 sm:$0xff]  }
 0x3cc   :  { %7453 = vmatpush1.bf16.msra.mxu0 %v21842_v26  ;;  %v21919_v26 = vld [vmem:[#allocation9 + $0x179c] ss:$60 sps:$4 sm:$0xff]  }
 0x3cd   :  { %7683 = vmatpush1.bf16.msra.mxu1 %v21845_v27  ;;  %7454 = vmatprep.subr.bf16.mxu0 %v21850_v28  ;;  %v21914_v27 = vld [vmem:[#allocation9 + $0xc50] ss:$60 sps:$4 sm:$0xff]   ;;  %v21917_v28 = vld [vmem:[#allocation9 + $0x1798] ss:$60 sps:$4 sm:$0xff]  }
 0x3ce   :  { %7684 = vmatprep.subr.bf16.mxu1 %v21853_v29  ;;  %v21922_v29 = vld [vmem:[#allocation9 + $0xccc] ss:$60 sps:$4 sm:$0xff]  }
 0x3d0   :  { %7455 = vmatpush1.bf16.msra.mxu0 %v21848_v59  ;;  %v21925_v59 = vld [vmem:[#allocation9 + $0x1814] ss:$60 sps:$4 sm:$0xff]  }
 0x3d1   :  { %7685 = vmatpush1.bf16.msra.mxu1 %v21851_v31  ;;  %7465 = vmatprep.subr.bf16.mxu0 %v21856_v30  ;;  %v21920_v31 = vld [vmem:[#allocation9 + $0xcc8] ss:$60 sps:$4 sm:$0xff]   ;;  %v21923_v30 = vld [vmem:[#allocation9 + $0x1810] ss:$60 sps:$4 sm:$0xff]  }
 0x3d2   :  { %7686 = vmatprep.subr.bf16.mxu1 %v21859_v11  ;;  %v21928_v11 = vld [vmem:[#allocation9 + $0xd44] ss:$60 sps:$4 sm:$0xff]  }
 0x3d3   :  { %7457 = vmatmul.mubr.bf16.vlgmr.msra.gmra.mrb[24].mxu0 %v24609_v24 }
 0x3d4   :  { %7466 = vmatpush1.bf16.msra.mxu0 %v21854_v39  ;;  %7497 = vmatprep.mubr.bf16.mxu0 %v24629_v57  ;;  %v21931_v39 = vld [vmem:[#allocation9 + $0x188c] ss:$60 sps:$4 sm:$0xff]  }
 0x3d5   :  { %7687 = vmatpush1.bf16.msra.mxu1 %v21857_v32  ;;  %7467 = vmatprep.subr.bf16.mxu0 %v21862_v35  ;;  %v21926_v32 = vld [vmem:[#allocation9 + $0xd40] ss:$60 sps:$4 sm:$0xff]   ;;  %v21929_v35 = vld [vmem:[#allocation9 + $0x1888] ss:$60 sps:$4 sm:$0xff]  }
 0x3d6   :  { %7688 = vmatprep.subr.bf16.mxu1 %v21865_v40  ;;  %v21937_v40 = vld [vmem:[#allocation9 + $0x1904] ss:$60 sps:$4 sm:$0xff]  }
 0x3d8   :  { %7468 = vmatpush1.bf16.msra.mxu0 %v21860_v38  ;;  %v21934_v38 = vld [vmem:[#allocation9 + $0xdbc] ss:$60 sps:$4 sm:$0xff]  }
 0x3d9   :  { %7689 = vmatpush1.bf16.msra.mxu1 %v21863_v42  ;;  %7469 = vmatprep.subr.bf16.mxu0 %v21868_v44  ;;  %v24721_v42 = vld [vmem:[#allocation10] sm:$0xff] }
 0x3da   :  { %7690 = vmatprep.subr.bf16.mxu1 %v21871_v45  ;;  %v1828_v44 = vrot.slane %v24721_v42, %v24669_v37  ;;  %v21932_v45 = vld [vmem:[#allocation9 + $0xdb8] ss:$60 sps:$4 sm:$0xff]  }
 0x3dc   :  { %7470 = vmatpush1.bf16.msra.mxu0 %v21866_v46  ;;  %v1832_v46 = vrot.slane %v24721_v42, %v24652_v13 }
 0x3dd   :  { %7691 = vmatpush1.bf16.msra.mxu1 %v21869_v47  ;;  %7471 = vmatprep.subr.bf16.mxu0 %v21874_v9  ;;  %v21935_v47 = vld [vmem:[#allocation9 + $0x1900] ss:$60 sps:$4 sm:$0xff]   ;;  %v21940_v9 = vld [vmem:[#allocation9 + $0xe34] ss:$60 sps:$4 sm:$0xff]  }
 0x3de   :  { %7692 = vmatprep.subr.bf16.mxu1 %v21877_v48  ;;  %v21943_v48 = vld [vmem:[#allocation9 + $0x197c] ss:$60 sps:$4 sm:$0xff]  }
 0x3e0   :  { %7472 = vmatpush1.bf16.msra.mxu0 %v21872_v50 }
 0x3e1   :  { %7693 = vmatpush1.bf16.msra.mxu1 %v21875_v51  ;;  %7473 = vmatprep.subr.bf16.mxu0 %v21880_v52 }
 0x3e2   :  { %7694 = vmatprep.subr.bf16.mxu1 %v21883_v53  ;;  %v21938_v53 = vld [vmem:[#allocation9 + $0xe30] ss:$60 sps:$4 sm:$0xff]  }
 0x3e4   :  { %7474 = vmatpush1.bf16.msra.mxu0 %v21878_v54 }
 0x3e5   :  { %7695 = vmatpush1.bf16.msra.mxu1 %v21881_v55  ;;  %7475 = vmatprep.subr.bf16.mxu0 %v21886_v56  ;;  %v21941_v56 = vld [vmem:[#allocation9 + $0x1978] ss:$60 sps:$4 sm:$0xff]  }
 0x3e6   :  { %7696 = vmatprep.subr.bf16.mxu1 %v21889_v58  ;;  %v21946_v58 = vld [vmem:[#allocation9 + $0xeac] ss:$60 sps:$4 sm:$0xff]  }
 0x3e8   :  { %7476 = vmatpush1.bf16.msra.mxu0 %v21884_v60 }
 0x3e9   :  { %7697 = vmatpush1.bf16.msra.mxu1 %v21887_v62  ;;  %7477 = vmatprep.subr.bf16.mxu0 %v21892_v63  ;;  %v21949_v63 = vld [vmem:[#allocation9 + $0x19f4] ss:$60 sps:$4 sm:$0xff]  }
 0x3ea   :  { %7698 = vmatprep.subr.bf16.mxu1 %v21895_v1 }
 0x3ec   :  { %7478 = vmatpush1.bf16.msra.mxu0 %v21890_v2  ;;  %v21944_v2 = vld [vmem:[#allocation9 + $0xea8] ss:$60 sps:$4 sm:$0xff]  }
 0x3ed   :  { %7699 = vmatpush1.bf16.msra.mxu1 %v21893_v3  ;;  %7479 = vmatprep.subr.bf16.mxu0 %v21898_v5  ;;  %v21947_v5 = vld [vmem:[#allocation9 + $0x19f0] ss:$60 sps:$4 sm:$0xff]  }
 0x3ee   :  { %7700 = vmatprep.subr.bf16.mxu1 %v21901_v6  ;;  %v21952_v6 = vld [vmem:[#allocation9 + $0xf24] ss:$60 sps:$4 sm:$0xff]  }
 0x3f0   :  { %7480 = vmatpush1.bf16.msra.mxu0 %v21896_v7  ;;  %v21955_v7 = vld [vmem:[#allocation9 + $0x1a6c] ss:$60 sps:$4 sm:$0xff]  }
 0x3f1   :  { %7701 = vmatpush1.bf16.msra.mxu1 %v21899_v8  ;;  %7481 = vmatprep.subr.bf16.mxu0 %v21904_v15  ;;  %v21950_v8 = vld [vmem:[#allocation9 + $0xf20] ss:$60 sps:$4 sm:$0xff]   ;;  %v21953_v15 = vld [vmem:[#allocation9 + $0x1a68] ss:$60 sps:$4 sm:$0xff]  }
 0x3f2   :  { %7711 = vmatprep.subr.bf16.mxu1 %v21907_v17  ;;  %v21961_v17 = vld [vmem:[#allocation9 + $0x1ae4] ss:$60 sps:$4 sm:$0xff]  }
 0x3f4   :  { %7703 = vmatmul.mubr.bf16.vlgmr.msra.gmra.mrb[12].mxu1 %v24660_v33  ;;  %7482 = vmatpush1.bf16.msra.mxu0 %v21902_v16  ;;  %v21958_v16 = vld [vmem:[#allocation9 + $0xf9c] ss:$60 sps:$4 sm:$0xff]  }
 0x3f5   :  { %7712 = vmatpush1.bf16.msra.mxu1 %v21905_v18  ;;  %7743 = vmatprep.mubr.bf16.mxu1 %v24662_v43  ;;  %v21956_v18 = vld [vmem:[#allocation9 + $0xf98] ss:$60 sps:$4 sm:$0xff]  }
 0x3f6   :  { %7483 = vmatprep.subr.bf16.mxu0 %v21910_v19  ;;  %7713 = vmatprep.subr.bf16.mxu1 %v21913_v14  ;;  %v21959_v19 = vld [vmem:[#allocation9 + $0x1ae0] ss:$60 sps:$4 sm:$0xff]   ;;  %v21964_v14 = vld [vmem:[#allocation9 + $0x1014] ss:$60 sps:$4 sm:$0xff]  }
 0x3f8   :  { %7484 = vmatpush1.bf16.msra.mxu0 %v21908_v20  ;;  %v21967_v20 = vld [vmem:[#allocation9 + $0x1b5c] ss:$60 sps:$4 sm:$0xff]  }
 0x3f9   :  { %7714 = vmatpush1.bf16.msra.mxu1 %v21911_v21  ;;  %7485 = vmatprep.subr.bf16.mxu0 %v21916_v23  ;;  %v21962_v21 = vld [vmem:[#allocation9 + $0x1010] ss:$60 sps:$4 sm:$0xff]   ;;  %v21965_v23 = vld [vmem:[#allocation9 + $0x1b58] ss:$60 sps:$4 sm:$0xff]  }
 0x3fa   :  { %7715 = vmatprep.subr.bf16.mxu1 %v21919_v26  ;;  %v21970_v26 = vld [vmem:[#allocation9 + $0x108c] ss:$60 sps:$4 sm:$0xff]  }
 0x3fc   :  { %7486 = vmatpush1.bf16.msra.mxu0 %v21914_v27  ;;  %v21973_v27 = vld [vmem:[#allocation9 + $0x1bd4] ss:$60 sps:$4 sm:$0xff]  }
 0x3fd   :  { %7716 = vmatpush1.bf16.msra.mxu1 %v21917_v28  ;;  %7487 = vmatprep.subr.bf16.mxu0 %v21922_v29  ;;  %v21968_v28 = vld [vmem:[#allocation9 + $0x1088] ss:$60 sps:$4 sm:$0xff]   ;;  %v21971_v29 = vld [vmem:[#allocation9 + $0x1bd0] ss:$60 sps:$4 sm:$0xff]  }
 0x3fe   :  { %7717 = vmatprep.subr.bf16.mxu1 %v21925_v59  ;;  %v21976_v59 = vld [vmem:[#allocation9 + $0x1104] ss:$60 sps:$4 sm:$0xff]  }
 0x400   :  { %7488 = vmatpush1.bf16.msra.mxu0 %v21920_v31  ;;  %v21979_v31 = vld [vmem:[#allocation9 + $0x1c4c] ss:$60 sps:$4 sm:$0xff]  }
 0x401   :  { %7718 = vmatpush1.bf16.msra.mxu1 %v21923_v30  ;;  %7489 = vmatprep.subr.bf16.mxu0 %v21928_v11  ;;  %v21974_v30 = vld [vmem:[#allocation9 + $0x1100] ss:$60 sps:$4 sm:$0xff]   ;;  %v21977_v11 = vld [vmem:[#allocation9 + $0x1c48] ss:$60 sps:$4 sm:$0xff]  }
 0x402   :  { %7719 = vmatprep.subr.bf16.mxu1 %v21931_v39  ;;  %v21982_v39 = vld [vmem:[#allocation9 + $0x117c] ss:$60 sps:$4 sm:$0xff]  }
 0x404   :  { %7490 = vmatpush1.bf16.msra.mxu0 %v21926_v32  ;;  %v21985_v32 = vld [vmem:[#allocation9 + $0x1cc4] ss:$60 sps:$4 sm:$0xff]  }
 0x405   :  { %7720 = vmatpush1.bf16.msra.mxu1 %v21929_v35  ;;  %7491 = vmatprep.subr.bf16.mxu0 %v21934_v38  ;;  %v21980_v35 = vld [vmem:[#allocation9 + $0x1178] ss:$60 sps:$4 sm:$0xff]   ;;  %v21983_v38 = vld [vmem:[#allocation9 + $0x1cc0] ss:$60 sps:$4 sm:$0xff]  }
 0x406   :  { %7721 = vmatprep.subr.bf16.mxu1 %v21937_v40  ;;  %v21988_v40 = vld [vmem:[#allocation9 + $0x11f4] ss:$60 sps:$4 sm:$0xff]  }
 0x407   :  { %v7417_v50 = vpop.f32.mrb[8].mxu1 }
 0x408   :  { %v20663_v51 = vadd.f32 %v7417_v50, %v1828_v44  ;;  %v7419_v52 = vpop.f32.mrb[9].mxu1  ;;  %7492 = vmatpush1.bf16.msra.mxu0 %v21932_v45  ;;  %v21991_v44 = vld [vmem:[#allocation9 + $0x1d3c] ss:$60 sps:$4 sm:$0xff]   ;;  %v21986_v45 = vld [vmem:[#allocation9 + $0x11f0] ss:$60 sps:$4 sm:$0xff]  }
 0x409   :  { %v20664_v54 = vadd.f32 %v7419_v52, %v1832_v46  ;;  %v7421_v55 = vpop.f32.mrb[10].mxu1  ;;  %7722 = vmatpush1.bf16.msra.mxu1 %v21935_v47  ;;  %7493 = vmatprep.subr.bf16.mxu0 %v21940_v9  ;;  %v21989_v46 = vld [vmem:[#allocation9 + $0x1d38] ss:$60 sps:$4 sm:$0xff]   ;;  %v21994_v47 = vld [vmem:[#allocation9 + $0x126c] ss:$60 sps:$4 sm:$0xff]  }
 0x40a   :  { %v8082_v60 = vmax.f32 %v20663_v51, 0.0  ;;  %v7422_v62 = vpop.f32.mrb[11].mxu1  ;;  %7723 = vmatprep.subr.bf16.mxu1 %v21943_v48  ;;  %v21997_v9 = vld [vmem:[#allocation9 + $0x1db4] ss:$60 sps:$4 sm:$0xff]   ;;  %v21992_v48 = vld [vmem:[#allocation9 + $0x1268] ss:$60 sps:$4 sm:$0xff]  }
 0x40b   :  { %v8083_v1 = vmax.f32 %v20664_v54, 0.0  ;;  %v21995_v50 = vld [vmem:[#allocation9 + $0x1db0] ss:$60 sps:$4 sm:$0xff]   ;;  %v22000_v51 = vld [vmem:[#allocation9 + $0x12e4] ss:$60 sps:$4 sm:$0xff]  }
 0x40c   :  { %7494 = vmatpush1.bf16.msra.mxu0 %v21938_v53  ;;  %v22001_v52 = vld [vmem:[#allocation9 + $0x3f8] ss:$60 sps:$4 sm:$0xff]   ;;  %v21998_v53 = vld [vmem:[#allocation9 + $0x12e0] ss:$60 sps:$4 sm:$0xff]  }
 0x40d   :  { %v20429_v3 = vpack.c.bf16 %v8083_v1, %v8082_v60  ;;  %7724 = vmatpush1.bf16.msra.mxu1 %v21941_v56  ;;  %7495 = vmatprep.subr.bf16.mxu0 %v21946_v58  ;;  %v22002_v54 = vld [vmem:[#allocation9 + $0x38] ss:$60 sps:$4 sm:$0xff]   ;;  %v22006_v56 = vld [vmem:[#allocation9 + $0x470] ss:$60 sps:$4 sm:$0xff]   ;;  %v22011_v1 = vld [vmem:[#allocation9 + $0x4e8] ss:$60 sps:$4 sm:$0xff]  }
 0x40e   :  { %7725 = vmatprep.subr.bf16.mxu1 %v21949_v63  ;;  %v22005_v55 = vld [vmem:[#allocation9 + $0x135c] ss:$60 sps:$4 sm:$0xff]   ;;  %v22007_v60 = vld [vmem:[#allocation9 + $0xb0] ss:$60 sps:$4 sm:$0xff]  }
 0x40f   :  { %8155 = vst [vmem:[#allocation3 + $0x18] sm:$0xff] %v20429_v3  ;;  %v22003_v58 = vld [vmem:[#allocation9 + $0x1358] ss:$60 sps:$4 sm:$0xff]   ;;  %v22008_v63 = vld [vmem:[#allocation9 + $0x13d0] ss:$60 sps:$4 sm:$0xff]  }
 0x410   :  { %7496 = vmatpush1.bf16.msra.mxu0 %v21944_v2  ;;  %v22010_v62 = vld [vmem:[#allocation9 + $0x13d4] ss:$60 sps:$4 sm:$0xff]   ;;  %v22012_v2 = vld [vmem:[#allocation9 + $0x128] ss:$60 sps:$4 sm:$0xff]  }
 0x411   :  { %7726 = vmatpush1.bf16.msra.mxu1 %v21947_v5  ;;  %7506 = vmatprep.subr.bf16.mxu0 %v21952_v6  ;;  %v22015_v3 = vld [vmem:[#allocation9 + $0x144c] ss:$60 sps:$4 sm:$0xff]   ;;  %v22016_v6 = vld [vmem:[#allocation9 + $0x560] ss:$60 sps:$4 sm:$0xff]  }
 0x412   :  { %7727 = vmatprep.subr.bf16.mxu1 %v21955_v7  ;;  %v22013_v5 = vld [vmem:[#allocation9 + $0x1448] ss:$60 sps:$4 sm:$0xff]   ;;  %v22017_v7 = vld [vmem:[#allocation9 + $0x1a0] ss:$60 sps:$4 sm:$0xff]  }
 0x413   :  { %7498 = vmatmul.mubr.bf16.vlgmr.msra.gmra.mrb[24].mxu0 %v24631_v61 }
 0x414   :  { %7507 = vmatpush1.bf16.msra.mxu0 %v21950_v8  ;;  %7538 = vmatprep.mubr.bf16.mxu0 %v24643_v49  ;;  %v22020_v8 = vld [vmem:[#allocation9 + $0x14c4] ss:$60 sps:$4 sm:$0xff]  }
 0x415   :  { %7728 = vmatpush1.bf16.msra.mxu1 %v21953_v15  ;;  %7508 = vmatprep.subr.bf16.mxu0 %v21958_v16  ;;  %v22018_v15 = vld [vmem:[#allocation9 + $0x14c0] ss:$60 sps:$4 sm:$0xff]   ;;  %v22021_v16 = vld [vmem:[#allocation9 + $0x5d8] ss:$60 sps:$4 sm:$0xff]  }
 0x416   :  { %7729 = vmatprep.subr.bf16.mxu1 %v21961_v17  ;;  %v22022_v17 = vld [vmem:[#allocation9 + $0x218] ss:$60 sps:$4 sm:$0xff]  }
 0x418   :  { %7509 = vmatpush1.bf16.msra.mxu0 %v21956_v18  ;;  %v22025_v18 = vld [vmem:[#allocation9 + $0x153c] ss:$60 sps:$4 sm:$0xff]  }
 0x419   :  { %7730 = vmatpush1.bf16.msra.mxu1 %v21959_v19  ;;  %7510 = vmatprep.subr.bf16.mxu0 %v21964_v14  ;;  %v22023_v19 = vld [vmem:[#allocation9 + $0x1538] ss:$60 sps:$4 sm:$0xff]   ;;  %v22026_v14 = vld [vmem:[#allocation9 + $0x650] ss:$60 sps:$4 sm:$0xff]  }
 0x41a   :  { %7731 = vmatprep.subr.bf16.mxu1 %v21967_v20  ;;  %v22027_v20 = vld [vmem:[#allocation9 + $0x290] ss:$60 sps:$4 sm:$0xff]  }
 0x41c   :  { %7511 = vmatpush1.bf16.msra.mxu0 %v21962_v21  ;;  %v22030_v21 = vld [vmem:[#allocation9 + $0x15b4] ss:$60 sps:$4 sm:$0xff]  }
 0x41d   :  { %7732 = vmatpush1.bf16.msra.mxu1 %v21965_v23  ;;  %7512 = vmatprep.subr.bf16.mxu0 %v21970_v26  ;;  %v22028_v23 = vld [vmem:[#allocation9 + $0x15b0] ss:$60 sps:$4 sm:$0xff]   ;;  %v22031_v26 = vld [vmem:[#allocation9 + $0x6c8] ss:$60 sps:$4 sm:$0xff]  }
 0x41e   :  { %7733 = vmatprep.subr.bf16.mxu1 %v21973_v27  ;;  %v22032_v27 = vld [vmem:[#allocation9 + $0x308] ss:$60 sps:$4 sm:$0xff]  }
 0x420   :  { %7513 = vmatpush1.bf16.msra.mxu0 %v21968_v28  ;;  %v22035_v28 = vld [vmem:[#allocation9 + $0x162c] ss:$60 sps:$4 sm:$0xff]  }
 0x421   :  { %7734 = vmatpush1.bf16.msra.mxu1 %v21971_v29  ;;  %7514 = vmatprep.subr.bf16.mxu0 %v21976_v59  ;;  %v22033_v29 = vld [vmem:[#allocation9 + $0x1628] ss:$60 sps:$4 sm:$0xff]   ;;  %v22036_v59 = vld [vmem:[#allocation9 + $0x740] ss:$60 sps:$4 sm:$0xff]  }
 0x422   :  { %7735 = vmatprep.subr.bf16.mxu1 %v21979_v31  ;;  %v22037_v31 = vld [vmem:[#allocation9 + $0x380] ss:$60 sps:$4 sm:$0xff]  }
 0x424   :  { %7515 = vmatpush1.bf16.msra.mxu0 %v21974_v30  ;;  %v22040_v30 = vld [vmem:[#allocation9 + $0x16a4] ss:$60 sps:$4 sm:$0xff]  }
 0x425   :  { %7736 = vmatpush1.bf16.msra.mxu1 %v21977_v11  ;;  %7516 = vmatprep.subr.bf16.mxu0 %v21982_v39  ;;  %v22041_v11 = vld [vmem:[#allocation9 + $0xb78] ss:$60 sps:$4 sm:$0xff]   ;;  %v22038_v39 = vld [vmem:[#allocation9 + $0x16a0] ss:$60 sps:$4 sm:$0xff]  }
 0x426   :  { %7737 = vmatprep.subr.bf16.mxu1 %v21985_v32  ;;  %v22042_v32 = vld [vmem:[#allocation9 + $0x7b8] ss:$60 sps:$4 sm:$0xff]  }
 0x428   :  { %7517 = vmatpush1.bf16.msra.mxu0 %v21980_v35  ;;  %v22045_v35 = vld [vmem:[#allocation9 + $0x171c] ss:$60 sps:$4 sm:$0xff]  }
 0x429   :  { %7738 = vmatpush1.bf16.msra.mxu1 %v21983_v38  ;;  %7518 = vmatprep.subr.bf16.mxu0 %v21988_v40  ;;  %v22046_v38 = vld [vmem:[#allocation9 + $0xbf0] ss:$60 sps:$4 sm:$0xff]   ;;  %v22043_v40 = vld [vmem:[#allocation9 + $0x1718] ss:$60 sps:$4 sm:$0xff]  }
 0x42a   :  { %7739 = vmatprep.subr.bf16.mxu1 %v21991_v44  ;;  %v22047_v44 = vld [vmem:[#allocation9 + $0x830] ss:$60 sps:$4 sm:$0xff]  }
 0x42c   :  { %7519 = vmatpush1.bf16.msra.mxu0 %v21986_v45  ;;  %v22050_v45 = vld [vmem:[#allocation9 + $0x1794] ss:$60 sps:$4 sm:$0xff]  }
 0x42d   :  { %7740 = vmatpush1.bf16.msra.mxu1 %v21989_v46  ;;  %7520 = vmatprep.subr.bf16.mxu0 %v21994_v47  ;;  %v22048_v46 = vld [vmem:[#allocation9 + $0x1790] ss:$60 sps:$4 sm:$0xff]   ;;  %v22051_v47 = vld [vmem:[#allocation9 + $0xc68] ss:$60 sps:$4 sm:$0xff]  }
 0x42e   :  { %7741 = vmatprep.subr.bf16.mxu1 %v21997_v9  ;;  %v22052_v9 = vld [vmem:[#allocation9 + $0x8a8] ss:$60 sps:$4 sm:$0xff]  }
 0x430   :  { %7521 = vmatpush1.bf16.msra.mxu0 %v21992_v48  ;;  %v22055_v48 = vld [vmem:[#allocation9 + $0x180c] ss:$60 sps:$4 sm:$0xff]  }
 0x431   :  { %7742 = vmatpush1.bf16.msra.mxu1 %v21995_v50  ;;  %7522 = vmatprep.subr.bf16.mxu0 %v22000_v51  ;;  %v22053_v50 = vld [vmem:[#allocation9 + $0x1808] ss:$60 sps:$4 sm:$0xff]   ;;  %v22056_v51 = vld [vmem:[#allocation9 + $0xce0] ss:$60 sps:$4 sm:$0xff]  }
 0x432   :  { %20457 = vmatprep.subr.bf16.mxu1 %v22001_v52  ;;  %v22057_v52 = vld [vmem:[#allocation9 + $0x920] ss:$60 sps:$4 sm:$0xff]  }
 0x434   :  { %7744 = vmatmul.mubr.bf16.vlgmr.msra.gmra.mrb[12].mxu1 %v24673_v41  ;;  %7523 = vmatpush1.bf16.msra.mxu0 %v21998_v53  ;;  %v22060_v53 = vld [vmem:[#allocation9 + $0x1884] ss:$60 sps:$4 sm:$0xff]  }
 0x435   :  { %20458 = vmatpush3.bf16.msra.mxu1 %v22002_v54  ;;  %7948 = vmatprep.mubr.bf16.mxu1 %v24611_v25  ;;  %v22058_v54 = vld [vmem:[#allocation9 + $0x1880] ss:$60 sps:$4 sm:$0xff]  }
 0x436   :  { %7524 = vmatprep.subr.bf16.mxu0 %v22005_v55  ;;  %20459 = vmatprep.subr.bf16.mxu1 %v22006_v56  ;;  %v22061_v55 = vld [vmem:[#allocation9 + $0xd58] ss:$60 sps:$4 sm:$0xff]  }
 0x437   :  { %v22062_v56 = vld [vmem:[#allocation9 + $0x998] ss:$60 sps:$4 sm:$0xff]  }
 0x438   :  { %7525 = vmatpush1.bf16.msra.mxu0 %v22003_v58  ;;  %v22065_v58 = vld [vmem:[#allocation9 + $0x18fc] ss:$60 sps:$4 sm:$0xff]  }
 0x439   :  { %20460 = vmatpush3.bf16.msra.mxu1 %v22007_v60  ;;  %7526 = vmatprep.subr.bf16.mxu0 %v22010_v62  ;;  %v22066_v60 = vld [vmem:[#allocation9 + $0xdd0] ss:$60 sps:$4 sm:$0xff]   ;;  %v22063_v62 = vld [vmem:[#allocation9 + $0x18f8] ss:$60 sps:$4 sm:$0xff]  }
 0x43a   :  { %20461 = vmatprep.subr.bf16.mxu1 %v22011_v1  ;;  %v1824_v1 = vrot.slane %v24721_v42, %v24637_v22 }
 0x43c   :  { %7527 = vmatpush1.bf16.msra.mxu0 %v22008_v63  ;;  %v1820_v63 = vrot.slane %v24721_v42, %v24649_v4 }
 0x43d   :  { %20462 = vmatpush3.bf16.msra.mxu1 %v22012_v2  ;;  %7528 = vmatprep.subr.bf16.mxu0 %v22015_v3  ;;  %v22067_v2 = vld [vmem:[#allocation9 + $0xa10] ss:$60 sps:$4 sm:$0xff]  }
 0x43e   :  { %20463 = vmatprep.subr.bf16.mxu1 %v22016_v6  ;;  %v22070_v3 = vld [vmem:[#allocation9 + $0x1974] ss:$60 sps:$4 sm:$0xff]  }
 0x440   :  { %7529 = vmatpush1.bf16.msra.mxu0 %v22013_v5  ;;  %v22071_v5 = vld [vmem:[#allocation9 + $0xe48] ss:$60 sps:$4 sm:$0xff]  }
 0x441   :  { %20464 = vmatpush3.bf16.msra.mxu1 %v22017_v7  ;;  %7530 = vmatprep.subr.bf16.mxu0 %v22020_v8  ;;  %v22068_v7 = vld [vmem:[#allocation9 + $0x1970] ss:$60 sps:$4 sm:$0xff]  }
 0x442   :  { %20465 = vmatprep.subr.bf16.mxu1 %v22021_v16 }
 0x444   :  { %7531 = vmatpush1.bf16.msra.mxu0 %v22018_v15 }
 0x445   :  { %20466 = vmatpush3.bf16.msra.mxu1 %v22022_v17  ;;  %7532 = vmatprep.subr.bf16.mxu0 %v22025_v18 }
 0x446   :  { %20467 = vmatprep.subr.bf16.mxu1 %v22026_v14  ;;  %v22072_v14 = vld [vmem:[#allocation9 + $0xa88] ss:$60 sps:$4 sm:$0xff]  }
 0x448   :  { %7533 = vmatpush1.bf16.msra.mxu0 %v22023_v19 }
 0x449   :  { %20468 = vmatpush3.bf16.msra.mxu1 %v22027_v20  ;;  %7534 = vmatprep.subr.bf16.mxu0 %v22030_v21  ;;  %v22075_v20 = vld [vmem:[#allocation9 + $0x19ec] ss:$60 sps:$4 sm:$0xff]  }
 0x44a   :  { %20469 = vmatprep.subr.bf16.mxu1 %v22031_v26  ;;  %v22073_v21 = vld [vmem:[#allocation9 + $0x19e8] ss:$60 sps:$4 sm:$0xff]  }
 0x44c   :  { %7535 = vmatpush1.bf16.msra.mxu0 %v22028_v23  ;;  %v22076_v23 = vld [vmem:[#allocation9 + $0xec0] ss:$60 sps:$4 sm:$0xff]  }
 0x44d   :  { %20470 = vmatpush3.bf16.msra.mxu1 %v22032_v27  ;;  %7536 = vmatprep.subr.bf16.mxu0 %v22035_v28  ;;  %v22077_v27 = vld [vmem:[#allocation9 + $0xb00] ss:$60 sps:$4 sm:$0xff]  }
 0x44e   :  { %20471 = vmatprep.subr.bf16.mxu1 %v22036_v59  ;;  %v22080_v28 = vld [vmem:[#allocation9 + $0x1a64] ss:$60 sps:$4 sm:$0xff]   ;;  %v22081_v59 = vld [vmem:[#allocation9 + $0x12f8] ss:$60 sps:$4 sm:$0xff]  }
 0x450   :  { %7537 = vmatpush1.bf16.msra.mxu0 %v22033_v29  ;;  %v22078_v29 = vld [vmem:[#allocation9 + $0x1a60] ss:$60 sps:$4 sm:$0xff]  }
 0x451   :  { %20472 = vmatpush3.bf16.msra.mxu1 %v22037_v31  ;;  %7547 = vmatprep.subr.bf16.mxu0 %v22040_v30  ;;  %v22082_v31 = vld [vmem:[#allocation9 + $0xf38] ss:$60 sps:$4 sm:$0xff]  }
 0x452   :  { %20479 = vmatprep.subr.bf16.mxu1 %v22041_v11  ;;  %v22085_v30 = vld [vmem:[#allocation9 + $0x1adc] ss:$60 sps:$4 sm:$0xff]   ;;  %v22086_v11 = vld [vmem:[#allocation9 + $0x1370] ss:$60 sps:$4 sm:$0xff]  }
 0x453   :  { %7539 = vmatmul.mubr.bf16.vlgmr.msra.gmra.mrb[24].mxu0 %v24660_v33 }
 0x454   :  { %7949 = vmatmul.mubr.bf16.vlgmr.msra.gmra.mrb[16].mxu1 %v24609_v24  ;;  %7548 = vmatpush1.bf16.msra.mxu0 %v22038_v39  ;;  %v22083_v39 = vld [vmem:[#allocation9 + $0x1ad8] ss:$60 sps:$4 sm:$0xff]  }
 0x455   :  { %7579 = vmatprep.mubr.bf16.mxu0 %v24662_v43  ;;  %20480 = vmatpush3.bf16.msra.mxu1 %v22042_v32  ;;  %v22087_v32 = vld [vmem:[#allocation9 + $0xfb0] ss:$60 sps:$4 sm:$0xff]  }
 0x456   :  { %7988 = vmatprep.mubr.bf16.mxu1 %v24629_v57  ;;  %7549 = vmatprep.subr.bf16.mxu0 %v22045_v35  ;;  %v22090_v35 = vld [vmem:[#allocation9 + $0x1b54] ss:$60 sps:$4 sm:$0xff]  }
 0x457   :  { %20481 = vmatprep.subr.bf16.mxu1 %v22046_v38  ;;  %v22088_v38 = vld [vmem:[#allocation9 + $0x1b50] ss:$60 sps:$4 sm:$0xff]  }
 0x458   :  { %7550 = vmatpush1.bf16.msra.mxu0 %v22043_v40  ;;  %v22091_v40 = vld [vmem:[#allocation9 + $0x13e8] ss:$60 sps:$4 sm:$0xff]  }
 0x459   :  { %20482 = vmatpush3.bf16.msra.mxu1 %v22047_v44  ;;  %7551 = vmatprep.subr.bf16.mxu0 %v22050_v45  ;;  %v22092_v44 = vld [vmem:[#allocation9 + $0x1028] ss:$60 sps:$4 sm:$0xff]  }
 0x45a   :  { %20483 = vmatprep.subr.bf16.mxu1 %v22051_v47  ;;  %v22095_v45 = vld [vmem:[#allocation9 + $0x1bcc] ss:$60 sps:$4 sm:$0xff]   ;;  %v22096_v47 = vld [vmem:[#allocation9 + $0x1460] ss:$60 sps:$4 sm:$0xff]  }
 0x45c   :  { %7552 = vmatpush1.bf16.msra.mxu0 %v22048_v46  ;;  %v22093_v46 = vld [vmem:[#allocation9 + $0x1bc8] ss:$60 sps:$4 sm:$0xff]  }
 0x45d   :  { %20484 = vmatpush3.bf16.msra.mxu1 %v22052_v9  ;;  %7553 = vmatprep.subr.bf16.mxu0 %v22055_v48  ;;  %v22097_v9 = vld [vmem:[#allocation9 + $0x10a0] ss:$60 sps:$4 sm:$0xff]  }
 0x45e   :  { %20485 = vmatprep.subr.bf16.mxu1 %v22056_v51  ;;  %v22100_v48 = vld [vmem:[#allocation9 + $0x1c44] ss:$60 sps:$4 sm:$0xff]   ;;  %v22101_v51 = vld [vmem:[#allocation9 + $0x14d8] ss:$60 sps:$4 sm:$0xff]  }
 0x460   :  { %7554 = vmatpush1.bf16.msra.mxu0 %v22053_v50  ;;  %v22098_v50 = vld [vmem:[#allocation9 + $0x1c40] ss:$60 sps:$4 sm:$0xff]  }
 0x461   :  { %20486 = vmatpush3.bf16.msra.mxu1 %v22057_v52  ;;  %7555 = vmatprep.subr.bf16.mxu0 %v22060_v53  ;;  %v22102_v52 = vld [vmem:[#allocation9 + $0x1118] ss:$60 sps:$4 sm:$0xff]  }
 0x462   :  { %20487 = vmatprep.subr.bf16.mxu1 %v22061_v55  ;;  %v22105_v53 = vld [vmem:[#allocation9 + $0x1cbc] ss:$60 sps:$4 sm:$0xff]   ;;  %v22106_v55 = vld [vmem:[#allocation9 + $0x1550] ss:$60 sps:$4 sm:$0xff]  }
 0x464   :  { %7556 = vmatpush1.bf16.msra.mxu0 %v22058_v54  ;;  %v22103_v54 = vld [vmem:[#allocation9 + $0x1cb8] ss:$60 sps:$4 sm:$0xff]  }
 0x465   :  { %20488 = vmatpush3.bf16.msra.mxu1 %v22062_v56  ;;  %7557 = vmatprep.subr.bf16.mxu0 %v22065_v58  ;;  %v22107_v56 = vld [vmem:[#allocation9 + $0x1190] ss:$60 sps:$4 sm:$0xff]  }
 0x466   :  { %v7253_v6 = vpop.f32.mrb[20].mxu0  ;;  %20489 = vmatprep.subr.bf16.mxu1 %v22066_v60  ;;  %v22110_v58 = vld [vmem:[#allocation9 + $0x1d34] ss:$60 sps:$4 sm:$0xff]   ;;  %v22111_v60 = vld [vmem:[#allocation9 + $0x15c8] ss:$60 sps:$4 sm:$0xff]  }
 0x467   :  { %v20661_v8 = vadd.f32 %v7253_v6, %v1820_v63  ;;  %v7255_v15 = vpop.f32.mrb[21].mxu0  ;;  %v22112_v63 = vld [vmem:[#allocation9 + $0x1208] ss:$60 sps:$4 sm:$0xff]   ;;  %v22120_v6 = vld [vmem:[#allocation9 + $0x34] ss:$60 sps:$4 sm:$0xff]  }
 0x468   :  { %v20662_v16 = vadd.f32 %v7255_v15, %v1824_v1  ;;  %v7257_v17 = vpop.f32.mrb[22].mxu0  ;;  %7558 = vmatpush1.bf16.msra.mxu0 %v22063_v62  ;;  %v22108_v62 = vld [vmem:[#allocation9 + $0x1d30] ss:$60 sps:$4 sm:$0xff]   ;;  %v22122_v15 = vld [vmem:[#allocation9 + $0x16b8] ss:$60 sps:$4 sm:$0xff]  }
 0x469   :  { %v8080_v18 = vmax.f32 %v20661_v8, 0.0  ;;  %20490 = vmatpush3.bf16.msra.mxu1 %v22067_v2  ;;  %v7258_v19 = vpop.f32.mrb[23].mxu0  ;;  %7559 = vmatprep.subr.bf16.mxu0 %v22070_v3  ;;  %v22115_v1 = vld [vmem:[#allocation9 + $0x1dac] ss:$60 sps:$4 sm:$0xff]   ;;  %v22116_v2 = vld [vmem:[#allocation9 + $0x1640] ss:$60 sps:$4 sm:$0xff]  }
 0x46a   :  { %v8081_v42 = vmax.f32 %v20662_v16, 0.0  ;;  %20491 = vmatprep.subr.bf16.mxu1 %v22071_v5  ;;  %v22113_v3 = vld [vmem:[#allocation9 + $0x1da8] ss:$60 sps:$4 sm:$0xff]   ;;  %v22117_v5 = vld [vmem:[#allocation9 + $0x1280] ss:$60 sps:$4 sm:$0xff]  }
 0x46b   :  { %v22118_v8 = vld [vmem:[#allocation9 + $0x30] ss:$60 sps:$4 sm:$0xff]  }
 0x46c   :  { %v20428_v26 = vpack.c.bf16 %v8081_v42, %v8080_v18  ;;  %7560 = vmatpush1.bf16.msra.mxu0 %v22068_v7  ;;  %v22121_v7 = vld [vmem:[#allocation9 + $0x1a78] ss:$60 sps:$4 sm:$0xff]   ;;  %v22125_v16 = vld [vmem:[#allocation9 + $0xac] ss:$60 sps:$4 sm:$0xff]  }
 0x46d   :  { %20492 = vmatpush3.bf16.msra.mxu1 %v22072_v14  ;;  %7561 = vmatprep.subr.bf16.mxu0 %v22075_v20  ;;  %v22126_v17 = vld [vmem:[#allocation9 + $0x1af0] ss:$60 sps:$4 sm:$0xff]   ;;  %v22123_v18 = vld [vmem:[#allocation9 + $0xa8] ss:$60 sps:$4 sm:$0xff]   ;;  %v22128_v20 = vld [vmem:[#allocation9 + $0x120] ss:$60 sps:$4 sm:$0xff]  }
 0x46e   :  { %8154 = vst [vmem:[#allocation3 + $0x10] sm:$0xff] %v20428_v26  ;;  %20493 = vmatprep.subr.bf16.mxu1 %v22076_v23  ;;  %v22127_v19 = vld [vmem:[#allocation9 + $0x1730] ss:$60 sps:$4 sm:$0xff]   ;;  %v22130_v14 = vld [vmem:[#allocation9 + $0x124] ss:$60 sps:$4 sm:$0xff]  }
 0x46f   :  { %v22131_v42 = vld [vmem:[#allocation9 + $0x1b68] ss:$60 sps:$4 sm:$0xff]   ;;  %v22135_v23 = vld [vmem:[#allocation9 + $0x19c] ss:$60 sps:$4 sm:$0xff]  }
 0x470   :  { %7562 = vmatpush1.bf16.msra.mxu0 %v22073_v21  ;;  %v22132_v21 = vld [vmem:[#allocation9 + $0x17a8] ss:$60 sps:$4 sm:$0xff]   ;;  %v22133_v26 = vld [vmem:[#allocation9 + $0x198] ss:$60 sps:$4 sm:$0xff]  }
 0x471   :  { %20494 = vmatpush3.bf16.msra.mxu1 %v22077_v27  ;;  %7563 = vmatprep.subr.bf16.mxu0 %v22080_v28  ;;  %v22136_v27 = vld [vmem:[#allocation9 + $0x1be0] ss:$60 sps:$4 sm:$0xff]   ;;  %v22140_v28 = vld [vmem:[#allocation9 + $0x214] ss:$60 sps:$4 sm:$0xff]  }
 0x472   :  { %20501 = vmatprep.subr.bf16.mxu1 %v22081_v59  ;;  %v22141_v59 = vld [vmem:[#allocation9 + $0x1c58] ss:$60 sps:$4 sm:$0xff]  }
 0x474   :  { %7989 = vmatmul.mubr.bf16.vlgmr.msra.gmra.mrb[20].mxu1 %v24631_v61  ;;  %7564 = vmatpush1.bf16.msra.mxu0 %v22078_v29  ;;  %v22138_v29 = vld [vmem:[#allocation9 + $0x210] ss:$60 sps:$4 sm:$0xff]  }
 0x475   :  { %20502 = vmatpush3.bf16.msra.mxu1 %v22082_v31  ;;  %8028 = vmatprep.mubr.bf16.mxu1 %v24643_v49  ;;  %v22142_v31 = vld [vmem:[#allocation9 + $0x1898] ss:$60 sps:$4 sm:$0xff]  }
 0x476   :  { %7565 = vmatprep.subr.bf16.mxu0 %v22085_v30  ;;  %20503 = vmatprep.subr.bf16.mxu1 %v22086_v11  ;;  %v22145_v30 = vld [vmem:[#allocation9 + $0x28c] ss:$60 sps:$4 sm:$0xff]  }
 0x477   :  { %v22143_v11 = vld [vmem:[#allocation9 + $0x288] ss:$60 sps:$4 sm:$0xff]  }
 0x478   :  { %7566 = vmatpush1.bf16.msra.mxu0 %v22083_v39  ;;  %v22146_v39 = vld [vmem:[#allocation9 + $0x1cd0] ss:$60 sps:$4 sm:$0xff]  }
 0x479   :  { %20504 = vmatpush3.bf16.msra.mxu1 %v22087_v32  ;;  %7567 = vmatprep.subr.bf16.mxu0 %v22090_v35  ;;  %v22147_v32 = vld [vmem:[#allocation9 + $0x1910] ss:$60 sps:$4 sm:$0xff]   ;;  %v22150_v35 = vld [vmem:[#allocation9 + $0x304] ss:$60 sps:$4 sm:$0xff]  }
 0x47a   :  { %20505 = vmatprep.subr.bf16.mxu1 %v22091_v40  ;;  %v22148_v40 = vld [vmem:[#allocation9 + $0x300] ss:$60 sps:$4 sm:$0xff]  }
 0x47c   :  { %7568 = vmatpush1.bf16.msra.mxu0 %v22088_v38  ;;  %v22151_v38 = vld [vmem:[#allocation9 + $0x1d48] ss:$60 sps:$4 sm:$0xff]  }
 0x47d   :  { %20506 = vmatpush3.bf16.msra.mxu1 %v22092_v44  ;;  %7569 = vmatprep.subr.bf16.mxu0 %v22095_v45  ;;  %v22152_v44 = vld [vmem:[#allocation9 + $0x1988] ss:$60 sps:$4 sm:$0xff]   ;;  %v22155_v45 = vld [vmem:[#allocation9 + $0x37c] ss:$60 sps:$4 sm:$0xff]  }
 0x47e   :  { %20507 = vmatprep.subr.bf16.mxu1 %v22096_v47  ;;  %v22153_v47 = vld [vmem:[#allocation9 + $0x378] ss:$60 sps:$4 sm:$0xff]  }
 0x480   :  { %7570 = vmatpush1.bf16.msra.mxu0 %v22093_v46  ;;  %v22156_v46 = vld [vmem:[#allocation9 + $0x1dc0] ss:$60 sps:$4 sm:$0xff]  }
 0x481   :  { %20508 = vmatpush3.bf16.msra.mxu1 %v22097_v9  ;;  %7571 = vmatprep.subr.bf16.mxu0 %v22100_v48  ;;  %v22157_v9 = vld [vmem:[#allocation9 + $0x1a00] ss:$60 sps:$4 sm:$0xff]   ;;  %v22160_v48 = vld [vmem:[#allocation9 + $0x3f4] ss:$60 sps:$4 sm:$0xff]  }
 0x482   :  { %20509 = vmatprep.subr.bf16.mxu1 %v22101_v51  ;;  %v22163_v51 = vld [vmem:[#allocation12 + $0x4] ss:$40 sps:$4 sm:$0xff]  }
 0x484   :  { %7572 = vmatpush1.bf16.msra.mxu0 %v22098_v50  ;;  %v22158_v50 = vld [vmem:[#allocation9 + $0x3f0] ss:$60 sps:$4 sm:$0xff]  }
 0x485   :  { %20510 = vmatpush3.bf16.msra.mxu1 %v22102_v52  ;;  %7573 = vmatprep.subr.bf16.mxu0 %v22105_v53  ;;  %v24745_v52 = vld [vmem:[#allocation3] sm:$0xff]  ;;  %v22161_v53 = vld [vmem:[#allocation12] ss:$40 sps:$4 sm:$0xff]  }
 0x486   :  { %20511 = vmatprep.subr.bf16.mxu1 %v22106_v55  ;;  %v22170_v55 = vld [vmem:[#allocation12 + $0x54] ss:$40 sps:$4 sm:$0xff]  }
 0x488   :  { %7574 = vmatpush1.bf16.msra.mxu0 %v22103_v54  ;;  %v22167_v54 = vld [vmem:[#allocation9 + $0x46c] ss:$60 sps:$4 sm:$0xff]  }
 0x489   :  { %20512 = vmatpush3.bf16.msra.mxu1 %v22107_v56  ;;  %7575 = vmatprep.subr.bf16.mxu0 %v22110_v58  ;;  %v24749_v56 = vcombine.high %v24745_v52, %v24745_v52  ;;  %v22165_v58 = vld [vmem:[#allocation9 + $0x468] ss:$60 sps:$4 sm:$0xff]  }
 0x48a   :  { %20513 = vmatprep.subr.bf16.mxu1 %v22111_v60  ;;  %v22168_v60 = vld [vmem:[#allocation12 + $0x50] ss:$40 sps:$4 sm:$0xff]  }
 0x48c   :  { %7576 = vmatpush1.bf16.msra.mxu0 %v22108_v62  ;;  %v22173_v62 = vld [vmem:[#allocation9 + $0x4e4] ss:$60 sps:$4 sm:$0xff]  }
 0x48d   :  { %20514 = vmatpush3.bf16.msra.mxu1 %v22112_v63  ;;  %7577 = vmatprep.subr.bf16.mxu0 %v22115_v1  ;;  %v22171_v63 = vld [vmem:[#allocation9 + $0x4e0] ss:$60 sps:$4 sm:$0xff]  }
 0x48e   :  { %20515 = vmatprep.subr.bf16.mxu1 %v22116_v2  ;;  %v22176_v1 = vld [vmem:[#allocation12 + $0xa4] ss:$40 sps:$4 sm:$0xff]   ;;  %v22174_v2 = vld [vmem:[#allocation12 + $0xa0] ss:$40 sps:$4 sm:$0xff]  }
 0x490   :  { %7578 = vmatpush1.bf16.msra.mxu0 %v22113_v3  ;;  %v22179_v3 = vld [vmem:[#allocation9 + $0x55c] ss:$60 sps:$4 sm:$0xff]  }
 0x491   :  { %20516 = vmatpush3.bf16.msra.mxu1 %v22117_v5  ;;  %7752 = vmatprep.subr.bf16.mxu0 %v22120_v6  ;;  %v22177_v5 = vld [vmem:[#allocation9 + $0x558] ss:$60 sps:$4 sm:$0xff]   ;;  %v22182_v6 = vld [vmem:[#allocation12 + $0xf4] ss:$40 sps:$4 sm:$0xff]  }
 0x492   :  { %20523 = vmatprep.subr.bf16.mxu1 %v22121_v7  ;;  %v22180_v7 = vld [vmem:[#allocation12 + $0xf0] ss:$40 sps:$4 sm:$0xff]  }
 0x493   :  { %7580 = vmatmul.mubr.bf16.vlgmr.msra.gmra.mrb[24].mxu0 %v24673_v41 }
 0x494   :  { %8029 = vmatmul.mubr.bf16.vlgmr.msra.gmra.mrb[24].mxu1 %v24660_v33  ;;  %7753 = vmatpush1.bf16.msra.mxu0 %v22118_v8  ;;  %v22185_v8 = vld [vmem:[#allocation9 + $0x5d4] ss:$60 sps:$4 sm:$0xff]  }
 0x495   :  { %7784 = vmatprep.mubr.bf16.mxu0 %v24611_v25  ;;  %20524 = vmatpush3.bf16.msra.mxu1 %v22122_v15  ;;  %v22137_v25 = vld [vmem:[#allocation9 + $0x1820] ss:$60 sps:$4 sm:$0xff]   ;;  %v22183_v15 = vld [vmem:[#allocation9 + $0x5d0] ss:$60 sps:$4 sm:$0xff]  }
 0x496   :  { %8068 = vmatprep.mubr.bf16.mxu1 %v24662_v43  ;;  %7754 = vmatprep.subr.bf16.mxu0 %v22125_v16  ;;  %v22188_v16 = vld [vmem:[#allocation12 + $0x144] ss:$40 sps:$4 sm:$0xff]  }
 0x497   :  { %20525 = vmatprep.subr.bf16.mxu1 %v22126_v17  ;;  %v22186_v17 = vld [vmem:[#allocation12 + $0x140] ss:$40 sps:$4 sm:$0xff]  }
 0x498   :  { %7755 = vmatpush1.bf16.msra.mxu0 %v22123_v18  ;;  %v22191_v18 = vld [vmem:[#allocation9 + $0x64c] ss:$60 sps:$4 sm:$0xff]  }
 0x499   :  { %20526 = vmatpush3.bf16.msra.mxu1 %v22127_v19  ;;  %7756 = vmatprep.subr.bf16.mxu0 %v22130_v14  ;;  %v22189_v19 = vld [vmem:[#allocation9 + $0x648] ss:$60 sps:$4 sm:$0xff]  }
 0x49a   :  { %20527 = vmatprep.subr.bf16.mxu1 %v22131_v42  ;;  %v22194_v14 = vld [vmem:[#allocation12 + $0x194] ss:$40 sps:$4 sm:$0xff]  }
 0x49b   :  { %v22197_v42 = vld [vmem:[#allocation9 + $0x6c4] ss:$60 sps:$4 sm:$0xff]  }
 0x49c   :  { %7757 = vmatpush1.bf16.msra.mxu0 %v22128_v20  ;;  %v22192_v20 = vld [vmem:[#allocation12 + $0x190] ss:$40 sps:$4 sm:$0xff]  }
 0x49d   :  { %20528 = vmatpush3.bf16.msra.mxu1 %v22132_v21  ;;  %7758 = vmatprep.subr.bf16.mxu0 %v22135_v23  ;;  %v22200_v21 = vld [vmem:[#allocation12 + $0x1e4] ss:$40 sps:$4 sm:$0xff]  }
 0x49e   :  { %20529 = vmatprep.subr.bf16.mxu1 %v22136_v27  ;;  %v22195_v23 = vld [vmem:[#allocation9 + $0x6c0] ss:$60 sps:$4 sm:$0xff]  }
 0x49f   :  { %v22203_v27 = vld [vmem:[#allocation9 + $0x73c] ss:$60 sps:$4 sm:$0xff]  }
 0x4a0   :  { %7759 = vmatpush1.bf16.msra.mxu0 %v22133_v26  ;;  %v22198_v26 = vld [vmem:[#allocation12 + $0x1e0] ss:$40 sps:$4 sm:$0xff]  }
 0x4a1   :  { %20530 = vmatpush3.bf16.msra.mxu1 %v22137_v25  ;;  %7760 = vmatprep.subr.bf16.mxu0 %v22140_v28  ;;  %v22206_v25 = vld [vmem:[#allocation12 + $0x234] ss:$40 sps:$4 sm:$0xff]   ;;  %v22201_v28 = vld [vmem:[#allocation9 + $0x738] ss:$60 sps:$4 sm:$0xff]  }
 0x4a2   :  { %20531 = vmatprep.subr.bf16.mxu1 %v22141_v59  ;;  %v22209_v59 = vld [vmem:[#allocation9 + $0x7b4] ss:$60 sps:$4 sm:$0xff]  }
 0x4a4   :  { %7761 = vmatpush1.bf16.msra.mxu0 %v22138_v29  ;;  %v22204_v29 = vld [vmem:[#allocation12 + $0x230] ss:$40 sps:$4 sm:$0xff]  }
 0x4a5   :  { %20532 = vmatpush3.bf16.msra.mxu1 %v22142_v31  ;;  %7762 = vmatprep.subr.bf16.mxu0 %v22145_v30  ;;  %v22207_v31 = vld [vmem:[#allocation9 + $0x7b0] ss:$60 sps:$4 sm:$0xff]   ;;  %v22212_v30 = vld [vmem:[#allocation12 + $0x284] ss:$40 sps:$4 sm:$0xff]  }
 0x4a6   :  { %20533 = vmatprep.subr.bf16.mxu1 %v22146_v39  ;;  %v22215_v39 = vld [vmem:[#allocation9 + $0x82c] ss:$60 sps:$4 sm:$0xff]  }
 0x4a8   :  { %7763 = vmatpush1.bf16.msra.mxu0 %v22143_v11  ;;  %v22210_v11 = vld [vmem:[#allocation12 + $0x280] ss:$40 sps:$4 sm:$0xff]  }
 0x4a9   :  { %20534 = vmatpush3.bf16.msra.mxu1 %v22147_v32  ;;  %7764 = vmatprep.subr.bf16.mxu0 %v22150_v35  ;;  %v22218_v32 = vld [vmem:[#allocation12 + $0x2d4] ss:$40 sps:$4 sm:$0xff]  }
 0x4aa   :  { %20535 = vmatprep.subr.bf16.mxu1 %v22151_v38  ;;  %v22213_v35 = vld [vmem:[#allocation9 + $0x828] ss:$60 sps:$4 sm:$0xff]  }
 0x4ab   :  { %v22216_v38 = vld [vmem:[#allocation12 + $0x2d0] ss:$40 sps:$4 sm:$0xff]  }
 0x4ac   :  { %7765 = vmatpush1.bf16.msra.mxu0 %v22148_v40  ;;  %v22221_v40 = vld [vmem:[#allocation9 + $0x8a4] ss:$60 sps:$4 sm:$0xff]  }
 0x4ad   :  { %20536 = vmatpush3.bf16.msra.mxu1 %v22152_v44  ;;  %7766 = vmatprep.subr.bf16.mxu0 %v22155_v45  ;;  %v22219_v44 = vld [vmem:[#allocation9 + $0x8a0] ss:$60 sps:$4 sm:$0xff]  }
 0x4ae   :  { %20537 = vmatprep.subr.bf16.mxu1 %v22156_v46  ;;  %v22224_v45 = vld [vmem:[#allocation12 + $0x324] ss:$40 sps:$4 sm:$0xff]   ;;  %v22222_v46 = vld [vmem:[#allocation12 + $0x320] ss:$40 sps:$4 sm:$0xff]  }
 0x4b0   :  { %7767 = vmatpush1.bf16.msra.mxu0 %v22153_v47  ;;  %v22227_v47 = vld [vmem:[#allocation9 + $0x91c] ss:$60 sps:$4 sm:$0xff]  }
 0x4b1   :  { %20538 = vmatpush3.bf16.msra.mxu1 %v22157_v9  ;;  %7768 = vmatprep.subr.bf16.mxu0 %v22160_v48  ;;  %v22225_v9 = vld [vmem:[#allocation9 + $0x918] ss:$60 sps:$4 sm:$0xff]   ;;  %v22230_v48 = vld [vmem:[#allocation12 + $0x374] ss:$40 sps:$4 sm:$0xff]  }
 0x4b2   :  { %15475 = vmatprep.subr.bf16.mxu1 %v22163_v51  ;;  %v22236_v51 = vld [vmem:[#allocation12 + $0x3c4] ss:$40 sps:$4 sm:$0xff]  }
 0x4b4   :  { %8069 = vmatmul.mubr.bf16.vlgmr.msra.gmra.mrb[28].mxu1 %v24673_v41  ;;  %7769 = vmatpush1.bf16.msra.mxu0 %v22158_v50  ;;  %v22231_v50 = vld [vmem:[#allocation9 + $0x990] ss:$60 sps:$4 sm:$0xff]  }
 0x4b5   :  { %15476 = vmatpush1.bf16.msra.mxu1 %v22161_v53  ;;  %15507 = vmatprep.mubr.bf16.mxu1 %v24749_v56  ;;  %v22234_v53 = vld [vmem:[#allocation12 + $0x3c0] ss:$40 sps:$4 sm:$0xff]  }
 0x4b6   :  { %7770 = vmatprep.subr.bf16.mxu0 %v22167_v54  ;;  %15477 = vmatprep.subr.bf16.mxu1 %v22170_v55  ;;  %v22239_v54 = vld [vmem:[#allocation9 + $0xa0c] ss:$60 sps:$4 sm:$0xff]  }
 0x4b7   :  { %v22237_v55 = vld [vmem:[#allocation9 + $0xa08] ss:$60 sps:$4 sm:$0xff]  }
 0x4b8   :  { %7771 = vmatpush1.bf16.msra.mxu0 %v22165_v58  ;;  %v22242_v58 = vld [vmem:[#allocation12 + $0x414] ss:$40 sps:$4 sm:$0xff]  }
 0x4b9   :  { %15478 = vmatpush1.bf16.msra.mxu1 %v22168_v60  ;;  %7772 = vmatprep.subr.bf16.mxu0 %v22173_v62  ;;  %v22240_v60 = vld [vmem:[#allocation12 + $0x410] ss:$40 sps:$4 sm:$0xff]  }
 0x4ba   :  { %15479 = vmatprep.subr.bf16.mxu1 %v22176_v1  ;;  %v22245_v62 = vld [vmem:[#allocation9 + $0xa84] ss:$60 sps:$4 sm:$0xff]  }
 0x4bb   :  { %v22243_v1 = vld [vmem:[#allocation9 + $0xa80] ss:$60 sps:$4 sm:$0xff]  }
 0x4bc   :  { %7773 = vmatpush1.bf16.msra.mxu0 %v22171_v63  ;;  %v22248_v63 = vld [vmem:[#allocation12 + $0x464] ss:$40 sps:$4 sm:$0xff]  }
 0x4bd   :  { %15480 = vmatpush1.bf16.msra.mxu1 %v22174_v2  ;;  %7774 = vmatprep.subr.bf16.mxu0 %v22179_v3  ;;  %v22246_v2 = vld [vmem:[#allocation12 + $0x460] ss:$40 sps:$4 sm:$0xff]  }
 0x4be   :  { %15481 = vmatprep.subr.bf16.mxu1 %v22182_v6  ;;  %v22251_v3 = vld [vmem:[#allocation9 + $0xafc] ss:$60 sps:$4 sm:$0xff]  }
 0x4bf   :  { %v22249_v6 = vld [vmem:[#allocation9 + $0xaf8] ss:$60 sps:$4 sm:$0xff]  }
 0x4c0   :  { %7775 = vmatpush1.bf16.msra.mxu0 %v22177_v5  ;;  %v22254_v5 = vld [vmem:[#allocation12 + $0x4b4] ss:$40 sps:$4 sm:$0xff]  }
 0x4c1   :  { %15482 = vmatpush1.bf16.msra.mxu1 %v22180_v7  ;;  %7776 = vmatprep.subr.bf16.mxu0 %v22185_v8  ;;  %v22252_v7 = vld [vmem:[#allocation12 + $0x4b0] ss:$40 sps:$4 sm:$0xff]   ;;  %v22257_v8 = vld [vmem:[#allocation9 + $0xb74] ss:$60 sps:$4 sm:$0xff]  }
 0x4c2   :  { %15483 = vmatprep.subr.bf16.mxu1 %v22188_v16  ;;  %v22261_v16 = vld [vmem:[#allocation12 + $0x504] ss:$40 sps:$4 sm:$0xff]  }
 0x4c4   :  { %7777 = vmatpush1.bf16.msra.mxu0 %v22183_v15  ;;  %v22255_v15 = vld [vmem:[#allocation9 + $0xb70] ss:$60 sps:$4 sm:$0xff]  }
 0x4c5   :  { %15484 = vmatpush1.bf16.msra.mxu1 %v22186_v17  ;;  %7778 = vmatprep.subr.bf16.mxu0 %v22191_v18  ;;  %v24755_v17 = vld [vmem:[#allocation3 + $0x8] sm:$0xff]  ;;  %v22259_v18 = vld [vmem:[#allocation12 + $0x500] ss:$40 sps:$4 sm:$0xff]  }
 0x4c6   :  { %15485 = vmatprep.subr.bf16.mxu1 %v22194_v14  ;;  %v22268_v14 = vld [vmem:[#allocation12 + $0x554] ss:$40 sps:$4 sm:$0xff]  }
 0x4c8   :  { %7779 = vmatpush1.bf16.msra.mxu0 %v22189_v19  ;;  %v22265_v19 = vld [vmem:[#allocation9 + $0xbec] ss:$60 sps:$4 sm:$0xff]  }
 0x4c9   :  { %15486 = vmatpush1.bf16.msra.mxu1 %v22192_v20  ;;  %7780 = vmatprep.subr.bf16.mxu0 %v22197_v42  ;;  %v24759_v20 = vcombine.low %v24745_v52, %v24745_v52  ;;  %v24763_v42 = vcombine.high %v24755_v17, %v24755_v17  ;;  %v22272_v52 = vld [vmem:[#allocation12 + $0x5a0] ss:$40 sps:$4 sm:$0xff]  }
 0x4ca   :  { %15487 = vmatprep.subr.bf16.mxu1 %v22200_v21  ;;  %v22263_v21 = vld [vmem:[#allocation9 + $0xbe8] ss:$60 sps:$4 sm:$0xff]  }
 0x4cc   :  { %7781 = vmatpush1.bf16.msra.mxu0 %v22195_v23  ;;  %v22266_v23 = vld [vmem:[#allocation12 + $0x550] ss:$40 sps:$4 sm:$0xff]  }
 0x4cd   :  { %15488 = vmatpush1.bf16.msra.mxu1 %v22198_v26  ;;  %7782 = vmatprep.subr.bf16.mxu0 %v22203_v27  ;;  %v22271_v26 = vld [vmem:[#allocation9 + $0xc64] ss:$60 sps:$4 sm:$0xff]  }
 0x4ce   :  { %15489 = vmatprep.subr.bf16.mxu1 %v22206_v25  ;;  %v22269_v27 = vld [vmem:[#allocation9 + $0xc60] ss:$60 sps:$4 sm:$0xff]  }
 0x4cf   :  { %v22274_v25 = vld [vmem:[#allocation12 + $0x5a4] ss:$40 sps:$4 sm:$0xff]  }
 0x4d0   :  { %7783 = vmatpush1.bf16.msra.mxu0 %v22201_v28  ;;  %v22277_v28 = vld [vmem:[#allocation9 + $0xcdc] ss:$60 sps:$4 sm:$0xff]  }
 0x4d1   :  { %15490 = vmatpush1.bf16.msra.mxu1 %v22204_v29  ;;  %7793 = vmatprep.subr.bf16.mxu0 %v22209_v59  ;;  %v22275_v29 = vld [vmem:[#allocation9 + $0xcd8] ss:$60 sps:$4 sm:$0xff]   ;;  %v22280_v59 = vld [vmem:[#allocation12 + $0x5f4] ss:$40 sps:$4 sm:$0xff]  }
 0x4d2   :  { %15491 = vmatprep.subr.bf16.mxu1 %v22212_v30  ;;  %v22283_v30 = vld [vmem:[#allocation9 + $0xd54] ss:$60 sps:$4 sm:$0xff]  }
 0x4d3   :  { %7785 = vmatmul.mubr.bf16.vlgmr.msra.gmra.mrb[28].mxu0 %v24609_v24  ;;  %v22228_v24 = vld [vmem:[#allocation12 + $0x370] ss:$40 sps:$4 sm:$0xff]  }
 0x4d4   :  { %7794 = vmatpush1.bf16.msra.mxu0 %v22207_v31  ;;  %7825 = vmatprep.mubr.bf16.mxu0 %v24629_v57  ;;  %v22233_v57 = vld [vmem:[#allocation9 + $0x994] ss:$60 sps:$4 sm:$0xff]   ;;  %v22278_v31 = vld [vmem:[#allocation12 + $0x5f0] ss:$40 sps:$4 sm:$0xff]  }
 0x4d5   :  { %15492 = vmatpush1.bf16.msra.mxu1 %v22210_v11  ;;  %7795 = vmatprep.subr.bf16.mxu0 %v22215_v39  ;;  %v22281_v11 = vld [vmem:[#allocation9 + $0xd50] ss:$60 sps:$4 sm:$0xff]   ;;  %v22286_v39 = vld [vmem:[#allocation12 + $0x644] ss:$40 sps:$4 sm:$0xff]  }
 0x4d6   :  { %15493 = vmatprep.subr.bf16.mxu1 %v22218_v32  ;;  %v22284_v32 = vld [vmem:[#allocation12 + $0x640] ss:$40 sps:$4 sm:$0xff]  }
 0x4d8   :  { %7796 = vmatpush1.bf16.msra.mxu0 %v22213_v35  ;;  %v24767_v35 = vld [vmem:[#allocation10 + $0x8] sm:$0xff] }
 0x4d9   :  { %15494 = vmatpush1.bf16.msra.mxu1 %v22216_v38  ;;  %7797 = vmatprep.subr.bf16.mxu0 %v22221_v40  ;;  %v22289_v38 = vld [vmem:[#allocation9 + $0xdcc] ss:$60 sps:$4 sm:$0xff]  }
 0x4da   :  { %15495 = vmatprep.subr.bf16.mxu1 %v22224_v45  ;;  %v22292_v40 = vld [vmem:[#allocation12 + $0x694] ss:$40 sps:$4 sm:$0xff]   ;;  %v22290_v45 = vld [vmem:[#allocation12 + $0x690] ss:$40 sps:$4 sm:$0xff]  }
 0x4dc   :  { %7798 = vmatpush1.bf16.msra.mxu0 %v22219_v44  ;;  %v22287_v44 = vld [vmem:[#allocation9 + $0xdc8] ss:$60 sps:$4 sm:$0xff]  }
 0x4dd   :  { %15496 = vmatpush1.bf16.msra.mxu1 %v22222_v46  ;;  %7799 = vmatprep.subr.bf16.mxu0 %v22227_v47  ;;  %v22295_v46 = vld [vmem:[#allocation9 + $0xe44] ss:$60 sps:$4 sm:$0xff]   ;;  %v1844_v47 = vrot.slane %v24767_v35, %v24616_v34 }
 0x4de   :  { %15497 = vmatprep.subr.bf16.mxu1 %v22230_v48  ;;  %v1848_v48 = vrot.slane %v24767_v35, %v24619_v36 }
 0x4e0   :  { %7800 = vmatpush1.bf16.msra.mxu0 %v22225_v9  ;;  %v22298_v9 = vld [vmem:[#allocation12 + $0x6e4] ss:$40 sps:$4 sm:$0xff]  }
 0x4e1   :  { %15498 = vmatpush1.bf16.msra.mxu1 %v22228_v24  ;;  %7801 = vmatprep.subr.bf16.mxu0 %v22233_v57  ;;  %v22293_v57 = vld [vmem:[#allocation9 + $0xe40] ss:$60 sps:$4 sm:$0xff]  }
 0x4e2   :  { %15499 = vmatprep.subr.bf16.mxu1 %v22236_v51 }
 0x4e4   :  { %7802 = vmatpush1.bf16.msra.mxu0 %v22231_v50  ;;  %v22296_v50 = vld [vmem:[#allocation12 + $0x6e0] ss:$40 sps:$4 sm:$0xff]  }
 0x4e5   :  { %15500 = vmatpush1.bf16.msra.mxu1 %v22234_v53  ;;  %7803 = vmatprep.subr.bf16.mxu0 %v22239_v54  ;;  %v22301_v54 = vld [vmem:[#allocation9 + $0xebc] ss:$60 sps:$4 sm:$0xff]  }
 0x4e6   :  { %15501 = vmatprep.subr.bf16.mxu1 %v22242_v58 }
 0x4e8   :  { %7804 = vmatpush1.bf16.msra.mxu0 %v22237_v55  ;;  %v22304_v55 = vld [vmem:[#allocation12 + $0x734] ss:$40 sps:$4 sm:$0xff]  }
 0x4e9   :  { %15502 = vmatpush1.bf16.msra.mxu1 %v22240_v60  ;;  %7805 = vmatprep.subr.bf16.mxu0 %v22245_v62 }
 0x4ea   :  { %15503 = vmatprep.subr.bf16.mxu1 %v22248_v63 }
 0x4ec   :  { %7806 = vmatpush1.bf16.msra.mxu0 %v22243_v1 }
 0x4ed   :  { %15504 = vmatpush1.bf16.msra.mxu1 %v22246_v2  ;;  %7807 = vmatprep.subr.bf16.mxu0 %v22251_v3  ;;  %v22299_v2 = vld [vmem:[#allocation9 + $0xeb8] ss:$60 sps:$4 sm:$0xff]   ;;  %v22302_v3 = vld [vmem:[#allocation12 + $0x730] ss:$40 sps:$4 sm:$0xff]  }
 0x4ee   :  { %15505 = vmatprep.subr.bf16.mxu1 %v22254_v5  ;;  %v22307_v5 = vld [vmem:[#allocation9 + $0xf34] ss:$60 sps:$4 sm:$0xff]  }
 0x4f0   :  { %7808 = vmatpush1.bf16.msra.mxu0 %v22249_v6  ;;  %v22310_v6 = vld [vmem:[#allocation12 + $0x784] ss:$40 sps:$4 sm:$0xff]  }
 0x4f1   :  { %15506 = vmatpush1.bf16.msra.mxu1 %v22252_v7  ;;  %7809 = vmatprep.subr.bf16.mxu0 %v22257_v8  ;;  %v22305_v8 = vld [vmem:[#allocation9 + $0xf30] ss:$60 sps:$4 sm:$0xff]  }
 0x4f2   :  { %15516 = vmatprep.subr.bf16.mxu1 %v22261_v16  ;;  %v22313_v16 = vld [vmem:[#allocation9 + $0xfac] ss:$60 sps:$4 sm:$0xff]  }
 0x4f4   :  { %15508 = vmatmul.mubr.bf16.vlgmr.msra.gmra.mrb[32].mxu1 %v24759_v20  ;;  %7810 = vmatpush1.bf16.msra.mxu0 %v22255_v15  ;;  %v22308_v15 = vld [vmem:[#allocation12 + $0x780] ss:$40 sps:$4 sm:$0xff]  }
 0x4f5   :  { %15517 = vmatpush1.bf16.msra.mxu1 %v22259_v18  ;;  %15548 = vmatprep.mubr.bf16.mxu1 %v24763_v42  ;;  %v22316_v18 = vld [vmem:[#allocation12 + $0x7d4] ss:$40 sps:$4 sm:$0xff]  }
 0x4f6   :  { %7811 = vmatprep.subr.bf16.mxu0 %v22265_v19  ;;  %15518 = vmatprep.subr.bf16.mxu1 %v22268_v14  ;;  %v22311_v19 = vld [vmem:[#allocation9 + $0xfa8] ss:$60 sps:$4 sm:$0xff]  }
 0x4f7   :  { %v22314_v14 = vld [vmem:[#allocation12 + $0x7d0] ss:$40 sps:$4 sm:$0xff]  }
 0x4f8   :  { %7812 = vmatpush1.bf16.msra.mxu0 %v22263_v21  ;;  %v22319_v21 = vld [vmem:[#allocation9 + $0x1024] ss:$60 sps:$4 sm:$0xff]  }
 0x4f9   :  { %15519 = vmatpush1.bf16.msra.mxu1 %v22266_v23  ;;  %7813 = vmatprep.subr.bf16.mxu0 %v22271_v26  ;;  %v22317_v23 = vld [vmem:[#allocation9 + $0x1020] ss:$60 sps:$4 sm:$0xff]  }
 0x4fa   :  { %15520 = vmatprep.subr.bf16.mxu1 %v22274_v25  ;;  %v22322_v26 = vld [vmem:[#allocation12 + $0x824] ss:$40 sps:$4 sm:$0xff]  }
 0x4fb   :  { %v22325_v25 = vld [vmem:[#allocation9 + $0x109c] ss:$60 sps:$4 sm:$0xff]  }
 0x4fc   :  { %7814 = vmatpush1.bf16.msra.mxu0 %v22269_v27  ;;  %v22320_v27 = vld [vmem:[#allocation12 + $0x820] ss:$40 sps:$4 sm:$0xff]  }
 0x4fd   :  { %15521 = vmatpush1.bf16.msra.mxu1 %v22272_v52  ;;  %7815 = vmatprep.subr.bf16.mxu0 %v22277_v28  ;;  %v22323_v52 = vld [vmem:[#allocation9 + $0x1098] ss:$60 sps:$4 sm:$0xff]   ;;  %v22328_v28 = vld [vmem:[#allocation12 + $0x874] ss:$40 sps:$4 sm:$0xff]  }
 0x4fe   :  { %15522 = vmatprep.subr.bf16.mxu1 %v22280_v59  ;;  %v22334_v59 = vld [vmem:[#allocation12 + $0x8c4] ss:$40 sps:$4 sm:$0xff]  }
 0x500   :  { %7816 = vmatpush1.bf16.msra.mxu0 %v22275_v29  ;;  %v22329_v29 = vld [vmem:[#allocation9 + $0x1110] ss:$60 sps:$4 sm:$0xff]  }
 0x501   :  { %15523 = vmatpush1.bf16.msra.mxu1 %v22278_v31  ;;  %7817 = vmatprep.subr.bf16.mxu0 %v22283_v30  ;;  %v22332_v31 = vld [vmem:[#allocation12 + $0x8c0] ss:$40 sps:$4 sm:$0xff]   ;;  %v22337_v30 = vld [vmem:[#allocation9 + $0x118c] ss:$60 sps:$4 sm:$0xff]  }
 0x502   :  { %15524 = vmatprep.subr.bf16.mxu1 %v22286_v39  ;;  %v22340_v39 = vld [vmem:[#allocation12 + $0x914] ss:$40 sps:$4 sm:$0xff]  }
 0x504   :  { %7818 = vmatpush1.bf16.msra.mxu0 %v22281_v11  ;;  %v22335_v11 = vld [vmem:[#allocation9 + $0x1188] ss:$60 sps:$4 sm:$0xff]  }
 0x505   :  { %15525 = vmatpush1.bf16.msra.mxu1 %v22284_v32  ;;  %7819 = vmatprep.subr.bf16.mxu0 %v22289_v38  ;;  %v22338_v32 = vld [vmem:[#allocation12 + $0x910] ss:$40 sps:$4 sm:$0xff]  }
 0x506   :  { %15526 = vmatprep.subr.bf16.mxu1 %v22292_v40  ;;  %v22343_v38 = vld [vmem:[#allocation9 + $0x1204] ss:$60 sps:$4 sm:$0xff]  }
 0x507   :  { %v7745_v24 = vpop.f32.mrb[12].mxu1  ;;  %v22341_v40 = vld [vmem:[#allocation9 + $0x1200] ss:$60 sps:$4 sm:$0xff]  }
 0x508   :  { %v20667_v51 = vadd.f32 %v7745_v24, %v1844_v47  ;;  %v7747_v53 = vpop.f32.mrb[13].mxu1  ;;  %7820 = vmatpush1.bf16.msra.mxu0 %v22287_v44  ;;  %v22346_v44 = vld [vmem:[#allocation12 + $0x964] ss:$40 sps:$4 sm:$0xff]  }
 0x509   :  { %v20668_v58 = vadd.f32 %v7747_v53, %v1848_v48  ;;  %v7749_v60 = vpop.f32.mrb[14].mxu1  ;;  %15527 = vmatpush1.bf16.msra.mxu1 %v22290_v45  ;;  %7821 = vmatprep.subr.bf16.mxu0 %v22295_v46  ;;  %v22344_v48 = vld [vmem:[#allocation12 + $0x960] ss:$40 sps:$4 sm:$0xff]   ;;  %v22350_v53 = vld [vmem:[#allocation12 + $0x9b0] ss:$40 sps:$4 sm:$0xff]  }
 0x50a   :  { %v8086_v62 = vmax.f32 %v20667_v51, 0.0  ;;  %v7750_v63 = vpop.f32.mrb[15].mxu1  ;;  %15528 = vmatprep.subr.bf16.mxu1 %v22298_v9  ;;  %v22349_v24 = vld [vmem:[#allocation9 + $0x127c] ss:$60 sps:$4 sm:$0xff]   ;;  %v22352_v51 = vld [vmem:[#allocation12 + $0x9b4] ss:$40 sps:$4 sm:$0xff]  }
 0x50b   :  { %v8087_v1 = vmax.f32 %v20668_v58, 0.0  ;;  %v22359_v58 = vld [vmem:[#allocation12 + $0xa04] ss:$40 sps:$4 sm:$0xff]   ;;  %v24777_v60 = vld [vmem:[#allocation3 + $0x10] sm:$0xff] }
 0x50c   :  { %7822 = vmatpush1.bf16.msra.mxu0 %v22293_v57  ;;  %v22363_v63 = vld [vmem:[#allocation9 + $0x136c] ss:$60 sps:$4 sm:$0xff]  }
 0x50d   :  { %v20431_v7 = vpack.c.bf16 %v8087_v1, %v8086_v62  ;;  %15529 = vmatpush1.bf16.msra.mxu1 %v22296_v50  ;;  %7823 = vmatprep.subr.bf16.mxu0 %v22301_v54  ;;  %v22347_v50 = vld [vmem:[#allocation9 + $0x1278] ss:$60 sps:$4 sm:$0xff]   ;;  %v22366_v1 = vld [vmem:[#allocation12 + $0xa54] ss:$40 sps:$4 sm:$0xff]  }
 0x50e   :  { %15530 = vmatprep.subr.bf16.mxu1 %v22304_v55  ;;  %v22355_v54 = vld [vmem:[#allocation9 + $0x12f4] ss:$60 sps:$4 sm:$0xff]  }
 0x50f   :  { %8157 = vst [vmem:[#allocation3 + $0x28] sm:$0xff] %v20431_v7  ;;  %v22353_v55 = vld [vmem:[#allocation9 + $0x12f0] ss:$60 sps:$4 sm:$0xff]   ;;  %v22369_v7 = vld [vmem:[#allocation9 + $0x13e4] ss:$60 sps:$4 sm:$0xff]  }
 0x510   :  { %7824 = vmatpush1.bf16.msra.mxu0 %v22299_v2  ;;  %v22357_v62 = vld [vmem:[#allocation12 + $0xa00] ss:$40 sps:$4 sm:$0xff]   ;;  %v24781_v2 = vcombine.low %v24755_v17, %v24755_v17 }
 0x511   :  { %15531 = vmatpush1.bf16.msra.mxu1 %v22302_v3  ;;  %7834 = vmatprep.subr.bf16.mxu0 %v22307_v5  ;;  %v24785_v3 = vcombine.high %v24777_v60, %v24777_v60  ;;  %v22361_v5 = vld [vmem:[#allocation9 + $0x1368] ss:$60 sps:$4 sm:$0xff]   ;;  %v22370_v17 = vld [vmem:[#allocation12 + $0xaa0] ss:$40 sps:$4 sm:$0xff]  }
 0x512   :  { %15532 = vmatprep.subr.bf16.mxu1 %v22310_v6  ;;  %v22364_v6 = vld [vmem:[#allocation12 + $0xa50] ss:$40 sps:$4 sm:$0xff]  }
 0x513   :  { %7826 = vmatmul.mubr.bf16.vlgmr.msra.gmra.mrb[28].mxu0 %v24631_v61  ;;  %v22326_v61 = vld [vmem:[#allocation12 + $0x870] ss:$40 sps:$4 sm:$0xff]  }
 0x514   :  { %7835 = vmatpush1.bf16.msra.mxu0 %v22305_v8  ;;  %7866 = vmatprep.mubr.bf16.mxu0 %v24643_v49  ;;  %v22331_v49 = vld [vmem:[#allocation9 + $0x1114] ss:$60 sps:$4 sm:$0xff]   ;;  %v22367_v8 = vld [vmem:[#allocation9 + $0x13e0] ss:$60 sps:$4 sm:$0xff]  }
 0x515   :  { %15533 = vmatpush1.bf16.msra.mxu1 %v22308_v15  ;;  %7836 = vmatprep.subr.bf16.mxu0 %v22313_v16  ;;  %v22372_v15 = vld [vmem:[#allocation12 + $0xaa4] ss:$40 sps:$4 sm:$0xff]  }
 0x516   :  { %15534 = vmatprep.subr.bf16.mxu1 %v22316_v18  ;;  %v22375_v16 = vld [vmem:[#allocation9 + $0x145c] ss:$60 sps:$4 sm:$0xff]  }
 0x517   :  { %v22373_v18 = vld [vmem:[#allocation9 + $0x1458] ss:$60 sps:$4 sm:$0xff]  }
 0x518   :  { %7837 = vmatpush1.bf16.msra.mxu0 %v22311_v19  ;;  %v22378_v19 = vld [vmem:[#allocation12 + $0xaf4] ss:$40 sps:$4 sm:$0xff]  }
 0x519   :  { %15535 = vmatpush1.bf16.msra.mxu1 %v22314_v14  ;;  %7838 = vmatprep.subr.bf16.mxu0 %v22319_v21  ;;  %v22376_v14 = vld [vmem:[#allocation12 + $0xaf0] ss:$40 sps:$4 sm:$0xff]   ;;  %v22381_v21 = vld [vmem:[#allocation9 + $0x14d4] ss:$60 sps:$4 sm:$0xff]  }
 0x51a   :  { %15536 = vmatprep.subr.bf16.mxu1 %v22322_v26  ;;  %v22379_v26 = vld [vmem:[#allocation9 + $0x14d0] ss:$60 sps:$4 sm:$0xff]  }
 0x51c   :  { %7839 = vmatpush1.bf16.msra.mxu0 %v22317_v23  ;;  %v22384_v23 = vld [vmem:[#allocation12 + $0xb44] ss:$40 sps:$4 sm:$0xff]  }
 0x51d   :  { %15537 = vmatpush1.bf16.msra.mxu1 %v22320_v27  ;;  %7840 = vmatprep.subr.bf16.mxu0 %v22325_v25  ;;  %v22382_v27 = vld [vmem:[#allocation12 + $0xb40] ss:$40 sps:$4 sm:$0xff]   ;;  %v22387_v25 = vld [vmem:[#allocation9 + $0x154c] ss:$60 sps:$4 sm:$0xff]  }
 0x51e   :  { %15538 = vmatprep.subr.bf16.mxu1 %v22328_v28  ;;  %v22385_v28 = vld [vmem:[#allocation9 + $0x1548] ss:$60 sps:$4 sm:$0xff]  }
 0x520   :  { %7841 = vmatpush1.bf16.msra.mxu0 %v22323_v52  ;;  %v22390_v52 = vld [vmem:[#allocation12 + $0xb94] ss:$40 sps:$4 sm:$0xff]  }
 0x521   :  { %15539 = vmatpush1.bf16.msra.mxu1 %v22326_v61  ;;  %7842 = vmatprep.subr.bf16.mxu0 %v22331_v49  ;;  %v1860_v61 = vrot.slane %v24767_v35, %v24669_v37  ;;  %v22388_v49 = vld [vmem:[#allocation12 + $0xb90] ss:$40 sps:$4 sm:$0xff]  }
 0x522   :  { %15540 = vmatprep.subr.bf16.mxu1 %v22334_v59  ;;  %v22396_v59 = vld [vmem:[#allocation12 + $0xbe4] ss:$40 sps:$4 sm:$0xff]  }
 0x524   :  { %7843 = vmatpush1.bf16.msra.mxu0 %v22329_v29  ;;  %v22393_v29 = vld [vmem:[#allocation9 + $0x15c4] ss:$60 sps:$4 sm:$0xff]  }
 0x525   :  { %15541 = vmatpush1.bf16.msra.mxu1 %v22332_v31  ;;  %7844 = vmatprep.subr.bf16.mxu0 %v22337_v30 }
 0x526   :  { %15542 = vmatprep.subr.bf16.mxu1 %v22340_v39 }
 0x527   :  { %v20473_v45 = vpop.f32.mrb[16].mxu1 }
 0x528   :  { %v20474_v46 = vpop.f32.mrb[17].mxu1  ;;  %7845 = vmatpush1.bf16.msra.mxu0 %v22335_v11  ;;  %v22391_v11 = vld [vmem:[#allocation9 + $0x15c0] ss:$60 sps:$4 sm:$0xff]  }
 0x529   :  { %v24775_v47 = vadd.f32 %v20474_v46, %v20473_v45  ;;  %v20476_v9 = vpop.f32.mrb[18].mxu1  ;;  %15543 = vmatpush1.bf16.msra.mxu1 %v22338_v32  ;;  %7846 = vmatprep.subr.bf16.mxu0 %v22343_v38  ;;  %v22402_v46 = vld [vmem:[#allocation12 + $0xc34] ss:$40 sps:$4 sm:$0xff]  }
 0x52a   :  { %v20477_v57 = vpop.f32.mrb[19].mxu1  ;;  %15544 = vmatprep.subr.bf16.mxu1 %v22346_v44  ;;  %v22399_v44 = vld [vmem:[#allocation9 + $0x163c] ss:$60 sps:$4 sm:$0xff]  }
 0x52b   :  { %v7951_v39 = vadd.f32 %v24775_v47, %v1860_v61  ;;  %v22405_v57 = vld [vmem:[#allocation9 + $0x16b4] ss:$60 sps:$4 sm:$0xff]  }
 0x52c   :  { %7847 = vmatpush1.bf16.msra.mxu0 %v22341_v40  ;;  %v22394_v40 = vld [vmem:[#allocation12 + $0xbe0] ss:$40 sps:$4 sm:$0xff]  }
 0x52d   :  { %15545 = vmatpush1.bf16.msra.mxu1 %v22344_v48  ;;  %7848 = vmatprep.subr.bf16.mxu0 %v22349_v24  ;;  %v22397_v48 = vld [vmem:[#allocation9 + $0x1638] ss:$60 sps:$4 sm:$0xff]   ;;  %v22400_v24 = vld [vmem:[#allocation12 + $0xc30] ss:$40 sps:$4 sm:$0xff]   ;;  %v22403_v47 = vld [vmem:[#allocation9 + $0x16b0] ss:$60 sps:$4 sm:$0xff]  }
 0x52e   :  { %15546 = vmatprep.subr.bf16.mxu1 %v22352_v51  ;;  %v22406_v51 = vld [vmem:[#allocation12 + $0xc80] ss:$40 sps:$4 sm:$0xff]  }
 0x530   :  { %7849 = vmatpush1.bf16.msra.mxu0 %v22347_v50  ;;  %v22408_v50 = vld [vmem:[#allocation12 + $0xc84] ss:$40 sps:$4 sm:$0xff]  }
 0x531   :  { %15547 = vmatpush1.bf16.msra.mxu1 %v22350_v53  ;;  %7850 = vmatprep.subr.bf16.mxu0 %v22355_v54  ;;  %v22411_v53 = vld [vmem:[#allocation9 + $0x172c] ss:$60 sps:$4 sm:$0xff]  }
 0x532   :  { %15557 = vmatprep.subr.bf16.mxu1 %v22359_v58  ;;  %v22414_v54 = vld [vmem:[#allocation12 + $0xcd4] ss:$40 sps:$4 sm:$0xff]   ;;  %v22412_v58 = vld [vmem:[#allocation12 + $0xcd0] ss:$40 sps:$4 sm:$0xff]  }
 0x534   :  { %15549 = vmatmul.mubr.bf16.vlgmr.msra.gmra.mrb[32].mxu1 %v24781_v2  ;;  %7851 = vmatpush1.bf16.msra.mxu0 %v22353_v55  ;;  %v22409_v55 = vld [vmem:[#allocation9 + $0x1728] ss:$60 sps:$4 sm:$0xff]  }
 0x535   :  { %15558 = vmatpush1.bf16.msra.mxu1 %v22357_v62  ;;  %15589 = vmatprep.mubr.bf16.mxu1 %v24785_v3  ;;  %v22417_v62 = vld [vmem:[#allocation9 + $0x17a4] ss:$60 sps:$4 sm:$0xff]  }
 0x536   :  { %7852 = vmatprep.subr.bf16.mxu0 %v22363_v63  ;;  %15559 = vmatprep.subr.bf16.mxu1 %v22366_v1  ;;  %v22420_v63 = vld [vmem:[#allocation12 + $0xd24] ss:$40 sps:$4 sm:$0xff]  }
 0x537   :  { %v22415_v1 = vld [vmem:[#allocation9 + $0x17a0] ss:$60 sps:$4 sm:$0xff]  }
 0x538   :  { %7853 = vmatpush1.bf16.msra.mxu0 %v22361_v5  ;;  %v22418_v5 = vld [vmem:[#allocation12 + $0xd20] ss:$40 sps:$4 sm:$0xff]  }
 0x539   :  { %15560 = vmatpush1.bf16.msra.mxu1 %v22364_v6  ;;  %7854 = vmatprep.subr.bf16.mxu0 %v22369_v7  ;;  %v22423_v6 = vld [vmem:[#allocation9 + $0x181c] ss:$60 sps:$4 sm:$0xff]   ;;  %v22426_v7 = vld [vmem:[#allocation12 + $0xd74] ss:$40 sps:$4 sm:$0xff]  }
 0x53a   :  { %15561 = vmatprep.subr.bf16.mxu1 %v22372_v15  ;;  %v22432_v15 = vld [vmem:[#allocation12 + $0xdc4] ss:$40 sps:$4 sm:$0xff]  }
 0x53c   :  { %7855 = vmatpush1.bf16.msra.mxu0 %v22367_v8  ;;  %v22429_v8 = vld [vmem:[#allocation9 + $0x1894] ss:$60 sps:$4 sm:$0xff]  }
 0x53d   :  { %15562 = vmatpush1.bf16.msra.mxu1 %v22370_v17  ;;  %7856 = vmatprep.subr.bf16.mxu0 %v22375_v16  ;;  %v22427_v17 = vld [vmem:[#allocation9 + $0x1890] ss:$60 sps:$4 sm:$0xff]  }
 0x53e   :  { %15563 = vmatprep.subr.bf16.mxu1 %v22378_v19  ;;  %v22430_v16 = vld [vmem:[#allocation12 + $0xdc0] ss:$40 sps:$4 sm:$0xff]   ;;  %v22438_v19 = vld [vmem:[#allocation12 + $0xe14] ss:$40 sps:$4 sm:$0xff]  }
 0x540   :  { %7857 = vmatpush1.bf16.msra.mxu0 %v22373_v18  ;;  %v22435_v18 = vld [vmem:[#allocation9 + $0x190c] ss:$60 sps:$4 sm:$0xff]  }
 0x541   :  { %15564 = vmatpush1.bf16.msra.mxu1 %v22376_v14  ;;  %7858 = vmatprep.subr.bf16.mxu0 %v22381_v21  ;;  %v1836_v14 = vrot.slane %v24767_v35, %v24598_v10  ;;  %v1840_v21 = vrot.slane %v24767_v35, %v24603_v12 }
 0x542   :  { %15565 = vmatprep.subr.bf16.mxu1 %v22384_v23  ;;  %v22433_v23 = vld [vmem:[#allocation9 + $0x1908] ss:$60 sps:$4 sm:$0xff]  }
 0x544   :  { %7859 = vmatpush1.bf16.msra.mxu0 %v22379_v26  ;;  %v22436_v26 = vld [vmem:[#allocation12 + $0xe10] ss:$40 sps:$4 sm:$0xff]  }
 0x545   :  { %15566 = vmatpush1.bf16.msra.mxu1 %v22382_v27  ;;  %7860 = vmatprep.subr.bf16.mxu0 %v22387_v25  ;;  %v22441_v27 = vld [vmem:[#allocation9 + $0x1984] ss:$60 sps:$4 sm:$0xff]  }
 0x546   :  { %15567 = vmatprep.subr.bf16.mxu1 %v22390_v52  ;;  %v22444_v52 = vld [vmem:[#allocation12 + $0xe64] ss:$40 sps:$4 sm:$0xff]  }
 0x547   :  { %v20495_v31 = vpop.f32.mrb[20].mxu1 }
 0x548   :  { %v20496_v30 = vpop.f32.mrb[21].mxu1  ;;  %7861 = vmatpush1.bf16.msra.mxu0 %v22385_v28 }
 0x549   :  { %v20497_v32 = vadd.f32 %v20496_v30, %v20495_v31  ;;  %v20498_v38 = vpop.f32.mrb[22].mxu1  ;;  %15568 = vmatpush1.bf16.msra.mxu1 %v22388_v49  ;;  %7862 = vmatprep.subr.bf16.mxu0 %v22393_v29  ;;  %v22439_v30 = vld [vmem:[#allocation9 + $0x1980] ss:$60 sps:$4 sm:$0xff]  }
 0x54a   :  { %v20499_v45 = vpop.f32.mrb[23].mxu1  ;;  %15569 = vmatprep.subr.bf16.mxu1 %v22396_v59 }
 0x54b   :  { %v24792_v9 = vadd.f32 %v20497_v32, %v7951_v39 }
 0x54c   :  { %7863 = vmatpush1.bf16.msra.mxu0 %v22391_v11  ;;  %v22442_v11 = vld [vmem:[#allocation12 + $0xe60] ss:$40 sps:$4 sm:$0xff]  }
 0x54d   :  { %15570 = vmatpush1.bf16.msra.mxu1 %v22394_v40  ;;  %7864 = vmatprep.subr.bf16.mxu0 %v22399_v44  ;;  %v22447_v40 = vld [vmem:[#allocation9 + $0x19fc] ss:$60 sps:$4 sm:$0xff]  }
 0x54e   :  { %15571 = vmatprep.subr.bf16.mxu1 %v22402_v46  ;;  %v22450_v46 = vld [vmem:[#allocation12 + $0xeb4] ss:$40 sps:$4 sm:$0xff]  }
 0x550   :  { %7865 = vmatpush1.bf16.msra.mxu0 %v22397_v48 }
 0x551   :  { %15572 = vmatpush1.bf16.msra.mxu1 %v22400_v24  ;;  %7875 = vmatprep.subr.bf16.mxu0 %v22405_v57  ;;  %v22445_v24 = vld [vmem:[#allocation9 + $0x19f8] ss:$60 sps:$4 sm:$0xff]   ;;  %v22448_v57 = vld [vmem:[#allocation12 + $0xeb0] ss:$40 sps:$4 sm:$0xff]  }
 0x552   :  { %15573 = vmatprep.subr.bf16.mxu1 %v22408_v50  ;;  %v22453_v50 = vld [vmem:[#allocation9 + $0x1a74] ss:$60 sps:$4 sm:$0xff]  }
 0x553   :  { %7867 = vmatmul.mubr.bf16.vlgmr.msra.gmra.mrb[28].mxu0 %v24660_v33  ;;  %v22421_v33 = vld [vmem:[#allocation9 + $0x1818] ss:$60 sps:$4 sm:$0xff]  }
 0x554   :  { %7876 = vmatpush1.bf16.msra.mxu0 %v22403_v47  ;;  %7907 = vmatprep.mubr.bf16.mxu0 %v24662_v43  ;;  %v22424_v43 = vld [vmem:[#allocation12 + $0xd70] ss:$40 sps:$4 sm:$0xff]   ;;  %v22457_v47 = vld [vmem:[#allocation12 + $0xf04] ss:$40 sps:$4 sm:$0xff]  }
 0x555   :  { %15574 = vmatpush1.bf16.msra.mxu1 %v22406_v51  ;;  %7877 = vmatprep.subr.bf16.mxu0 %v22411_v53  ;;  %v22451_v51 = vld [vmem:[#allocation9 + $0x1a70] ss:$60 sps:$4 sm:$0xff]   ;;  %v24809_v53 = vld [vmem:[#allocation3 + $0x18] sm:$0xff] }
 0x556   :  { %15575 = vmatprep.subr.bf16.mxu1 %v22414_v54  ;;  %v22455_v54 = vld [vmem:[#allocation12 + $0xf00] ss:$40 sps:$4 sm:$0xff]  }
 0x558   :  { %7878 = vmatpush1.bf16.msra.mxu0 %v22409_v55  ;;  %v24813_v55 = vcombine.low %v24777_v60, %v24777_v60  ;;  %v22470_v60 = vld [vmem:[#allocation12 + $0xfa4] ss:$40 sps:$4 sm:$0xff]  }
 0x559   :  { %15576 = vmatpush1.bf16.msra.mxu1 %v22412_v58  ;;  %7879 = vmatprep.subr.bf16.mxu0 %v22417_v62  ;;  %v22464_v58 = vld [vmem:[#allocation12 + $0xf54] ss:$40 sps:$4 sm:$0xff]   ;;  %v24817_v62 = vcombine.high %v24809_v53, %v24809_v53 }
 0x55a   :  { %15577 = vmatprep.subr.bf16.mxu1 %v22420_v63  ;;  %v22459_v63 = vld [vmem:[#allocation9 + $0x1ae8] ss:$60 sps:$4 sm:$0xff]  }
 0x55c   :  { %7880 = vmatpush1.bf16.msra.mxu0 %v22415_v1  ;;  %v22462_v1 = vld [vmem:[#allocation12 + $0xf50] ss:$40 sps:$4 sm:$0xff]  }
 0x55d   :  { %15578 = vmatpush1.bf16.msra.mxu1 %v22418_v5  ;;  %7881 = vmatprep.subr.bf16.mxu0 %v22423_v6  ;;  %v22467_v5 = vld [vmem:[#allocation9 + $0x1b64] ss:$60 sps:$4 sm:$0xff]  }
 0x55e   :  { %15579 = vmatprep.subr.bf16.mxu1 %v22426_v7  ;;  %v22465_v6 = vld [vmem:[#allocation9 + $0x1b60] ss:$60 sps:$4 sm:$0xff]   ;;  %v22468_v7 = vld [vmem:[#allocation12 + $0xfa0] ss:$40 sps:$4 sm:$0xff]  }
 0x560   :  { %7882 = vmatpush1.bf16.msra.mxu0 %v22421_v33  ;;  %v22473_v33 = vld [vmem:[#allocation9 + $0x1bdc] ss:$60 sps:$4 sm:$0xff]  }
 0x561   :  { %15580 = vmatpush1.bf16.msra.mxu1 %v22424_v43  ;;  %7883 = vmatprep.subr.bf16.mxu0 %v22429_v8  ;;  %v22476_v43 = vld [vmem:[#allocation12 + $0xff4] ss:$40 sps:$4 sm:$0xff]   ;;  %v22471_v8 = vld [vmem:[#allocation9 + $0x1bd8] ss:$60 sps:$4 sm:$0xff]  }
 0x562   :  { %15581 = vmatprep.subr.bf16.mxu1 %v22432_v15  ;;  %v22474_v15 = vld [vmem:[#allocation12 + $0xff0] ss:$40 sps:$4 sm:$0xff]  }
 0x564   :  { %7884 = vmatpush1.bf16.msra.mxu0 %v22427_v17  ;;  %v22479_v17 = vld [vmem:[#allocation9 + $0x1c54] ss:$60 sps:$4 sm:$0xff]  }
 0x565   :  { %15582 = vmatpush1.bf16.msra.mxu1 %v22430_v16  ;;  %7885 = vmatprep.subr.bf16.mxu0 %v22435_v18  ;;  %v22482_v16 = vld [vmem:[#allocation12 + $0x1044] ss:$40 sps:$4 sm:$0xff]   ;;  %v22477_v18 = vld [vmem:[#allocation9 + $0x1c50] ss:$60 sps:$4 sm:$0xff]  }
 0x566   :  { %v7581_v25 = vpop.f32.mrb[24].mxu0  ;;  %15583 = vmatprep.subr.bf16.mxu1 %v22438_v19  ;;  %v22480_v19 = vld [vmem:[#allocation12 + $0x1040] ss:$40 sps:$4 sm:$0xff]  }
 0x567   :  { %v24800_v28 = vadd.f32 %v7581_v25, %v1836_v14  ;;  %v20517_v61 = vpop.f32.mrb[24].mxu1  ;;  %v7583_v49 = vpop.f32.mrb[25].mxu0  ;;  %v22485_v14 = vld [vmem:[#allocation9 + $0x1ccc] ss:$60 sps:$4 sm:$0xff]   ;;  %v22494_v25 = vld [vmem:[#allocation12 + $0x10e4] ss:$40 sps:$4 sm:$0xff]  }
 0x568   :  { %v24802_v29 = vadd.f32 %v7583_v49, %v1840_v21  ;;  %v20518_v59 = vpop.f32.mrb[25].mxu1  ;;  %v7585_v31 = vpop.f32.mrb[26].mxu0  ;;  %7886 = vmatpush1.bf16.msra.mxu0 %v22433_v23  ;;  %v22488_v21 = vld [vmem:[#allocation12 + $0x1094] ss:$40 sps:$4 sm:$0xff]   ;;  %v22489_v49 = vld [vmem:[#allocation9 + $0x1d40] ss:$60 sps:$4 sm:$0xff]  }
 0x569   :  { %v8084_v35 = vmax.f32 %v24800_v28, 0.0  ;;  %v20519_v39 = vadd.f32 %v20518_v59, %v20517_v61  ;;  %v20520_v32 = vpop.f32.mrb[26].mxu1  ;;  %15584 = vmatpush1.bf16.msra.mxu1 %v22436_v26  ;;  %v7586_v38 = vpop.f32.mrb[27].mxu0  ;;  %7887 = vmatprep.subr.bf16.mxu0 %v22441_v27  ;;  %v22483_v23 = vld [vmem:[#allocation9 + $0x1cc8] ss:$60 sps:$4 sm:$0xff]  }
 0x56a   :  { %v8085_v44 = vmax.f32 %v24802_v29, 0.0  ;;  %v20521_v45 = vpop.f32.mrb[27].mxu1  ;;  %15585 = vmatprep.subr.bf16.mxu1 %v22444_v52  ;;  %v22486_v26 = vld [vmem:[#allocation12 + $0x1090] ss:$40 sps:$4 sm:$0xff]   ;;  %v22500_v32 = vld [vmem:[#allocation12 + $0x1134] ss:$40 sps:$4 sm:$0xff]  }
 0x56b   :  { %v24807_v48 = vadd.f32 %v20519_v39, %v24792_v9  ;;  %v22461_v9 = vld [vmem:[#allocation9 + $0x1aec] ss:$60 sps:$4 sm:$0xff]   ;;  %v22491_v27 = vld [vmem:[#allocation9 + $0x1d44] ss:$60 sps:$4 sm:$0xff]   ;;  %v22661_v28 = vld [vmem:[#allocation12 + $0x19a4] ss:$40 sps:$4 sm:$0xff]  }
 0x56c   :  { %7888 = vmatpush1.bf16.msra.mxu0 %v22439_v30  ;;  %v22492_v30 = vld [vmem:[#allocation12 + $0x10e0] ss:$40 sps:$4 sm:$0xff]   ;;  %v22573_v29 = vld [vmem:[#allocation12 + $0x37c] ss:$40 sps:$4 sm:$0xff]  }
 0x56d   :  { %15586 = vmatpush1.bf16.msra.mxu1 %v22442_v11  ;;  %7889 = vmatprep.subr.bf16.mxu0 %v22447_v40  ;;  %v22497_v11 = vld [vmem:[#allocation9 + $0x1dbc] ss:$60 sps:$4 sm:$0xff]  }
 0x56e   :  { %15587 = vmatprep.subr.bf16.mxu1 %v22450_v46  ;;  %v22495_v40 = vld [vmem:[#allocation9 + $0x1db8] ss:$60 sps:$4 sm:$0xff]   ;;  %v22498_v46 = vld [vmem:[#allocation12 + $0x1130] ss:$40 sps:$4 sm:$0xff]  }
 0x570   :  { %7890 = vmatpush1.bf16.msra.mxu0 %v22445_v24  ;;  %v22506_v24 = vld [vmem:[#allocation12 + $0xc] ss:$40 sps:$4 sm:$0xff]  }
 0x571   :  { %15588 = vmatpush1.bf16.msra.mxu1 %v22448_v57  ;;  %7891 = vmatprep.subr.bf16.mxu0 %v22453_v50  ;;  %v22503_v57 = vld [vmem:[#allocation12 + $0x1184] ss:$40 sps:$4 sm:$0xff]  }
 0x572   :  { %15598 = vmatprep.subr.bf16.mxu1 %v22457_v47  ;;  %v22504_v47 = vld [vmem:[#allocation12 + $0x8] ss:$40 sps:$4 sm:$0xff]  }
 0x574   :  { %15590 = vmatmul.mubr.bf16.vlgmr.msra.gmra.mrb[32].mxu1 %v24813_v55  ;;  %7892 = vmatpush1.bf16.msra.mxu0 %v22451_v51  ;;  %v22501_v51 = vld [vmem:[#allocation12 + $0x1180] ss:$40 sps:$4 sm:$0xff]  }
 0x575   :  { %15599 = vmatpush1.bf16.msra.mxu1 %v22455_v54  ;;  %15630 = vmatprep.mubr.bf16.mxu1 %v24817_v62  ;;  %v22512_v54 = vld [vmem:[#allocation12 + $0x5c] ss:$40 sps:$4 sm:$0xff]  }
 0x576   :  { %7893 = vmatprep.subr.bf16.mxu0 %v22461_v9  ;;  %15600 = vmatprep.subr.bf16.mxu1 %v22464_v58  ;;  %v22509_v9 = vld [vmem:[#allocation12 + $0x11d4] ss:$40 sps:$4 sm:$0xff]   ;;  %v22507_v58 = vld [vmem:[#allocation12 + $0x11d0] ss:$40 sps:$4 sm:$0xff]  }
 0x578   :  { %7894 = vmatpush1.bf16.msra.mxu0 %v22459_v63  ;;  %v22518_v63 = vld [vmem:[#allocation12 + $0xac] ss:$40 sps:$4 sm:$0xff]  }
 0x579   :  { %15601 = vmatpush1.bf16.msra.mxu1 %v22462_v1  ;;  %7895 = vmatprep.subr.bf16.mxu0 %v22467_v5  ;;  %v22515_v1 = vld [vmem:[#allocation12 + $0x1224] ss:$40 sps:$4 sm:$0xff]   ;;  %v22516_v5 = vld [vmem:[#allocation12 + $0xa8] ss:$40 sps:$4 sm:$0xff]  }
 0x57a   :  { %15602 = vmatprep.subr.bf16.mxu1 %v22470_v60  ;;  %v22513_v60 = vld [vmem:[#allocation12 + $0x1220] ss:$40 sps:$4 sm:$0xff]  }
 0x57c   :  { %7896 = vmatpush1.bf16.msra.mxu0 %v22465_v6  ;;  %v22524_v6 = vld [vmem:[#allocation12 + $0xfc] ss:$40 sps:$4 sm:$0xff]  }
 0x57d   :  { %15603 = vmatpush1.bf16.msra.mxu1 %v22468_v7  ;;  %7897 = vmatprep.subr.bf16.mxu0 %v22473_v33  ;;  %v22521_v7 = vld [vmem:[#allocation12 + $0x1274] ss:$40 sps:$4 sm:$0xff]   ;;  %v22519_v33 = vld [vmem:[#allocation12 + $0x1270] ss:$40 sps:$4 sm:$0xff]  }
 0x57e   :  { %15604 = vmatprep.subr.bf16.mxu1 %v22476_v43  ;;  %v22530_v43 = vld [vmem:[#allocation12 + $0x14c] ss:$40 sps:$4 sm:$0xff]  }
 0x580   :  { %7898 = vmatpush1.bf16.msra.mxu0 %v22471_v8  ;;  %v22527_v8 = vld [vmem:[#allocation12 + $0x12c4] ss:$40 sps:$4 sm:$0xff]  }
 0x581   :  { %15605 = vmatpush1.bf16.msra.mxu1 %v22474_v15  ;;  %7899 = vmatprep.subr.bf16.mxu0 %v22479_v17  ;;  %v22528_v15 = vld [vmem:[#allocation12 + $0x148] ss:$40 sps:$4 sm:$0xff]  }
 0x582   :  { %15606 = vmatprep.subr.bf16.mxu1 %v22482_v16  ;;  %v22525_v17 = vld [vmem:[#allocation12 + $0x12c0] ss:$40 sps:$4 sm:$0xff]   ;;  %v22536_v16 = vld [vmem:[#allocation12 + $0x19c] ss:$40 sps:$4 sm:$0xff]  }
 0x584   :  { %7900 = vmatpush1.bf16.msra.mxu0 %v22477_v18  ;;  %v22533_v18 = vld [vmem:[#allocation12 + $0x1314] ss:$40 sps:$4 sm:$0xff]  }
 0x585   :  { %15607 = vmatpush1.bf16.msra.mxu1 %v22480_v19  ;;  %7901 = vmatprep.subr.bf16.mxu0 %v22485_v14  ;;  %v22534_v19 = vld [vmem:[#allocation12 + $0x198] ss:$40 sps:$4 sm:$0xff]  }
 0x586   :  { %15608 = vmatprep.subr.bf16.mxu1 %v22488_v21  ;;  %v22531_v14 = vld [vmem:[#allocation12 + $0x1310] ss:$40 sps:$4 sm:$0xff]   ;;  %v22542_v21 = vld [vmem:[#allocation12 + $0x1ec] ss:$40 sps:$4 sm:$0xff]  }
 0x587   :  { %v20539_v52 = vpop.f32.mrb[28].mxu1 }
 0x588   :  { %v20540_v61 = vpop.f32.mrb[29].mxu1  ;;  %7902 = vmatpush1.bf16.msra.mxu0 %v22483_v23  ;;  %v22539_v23 = vld [vmem:[#allocation12 + $0x1364] ss:$40 sps:$4 sm:$0xff]  }
 0x589   :  { %v20541_v59 = vadd.f32 %v20540_v61, %v20539_v52  ;;  %v20542_v31 = vpop.f32.mrb[30].mxu1  ;;  %15609 = vmatpush1.bf16.msra.mxu1 %v22486_v26  ;;  %7903 = vmatprep.subr.bf16.mxu0 %v22491_v27  ;;  %v22540_v26 = vld [vmem:[#allocation12 + $0x1e8] ss:$40 sps:$4 sm:$0xff]   ;;  %v22545_v52 = vld [vmem:[#allocation12 + $0x13b4] ss:$40 sps:$4 sm:$0xff]  }
 0x58a   :  { %v20543_v39 = vpop.f32.mrb[31].mxu1  ;;  %15610 = vmatprep.subr.bf16.mxu1 %v22494_v25  ;;  %v22537_v27 = vld [vmem:[#allocation12 + $0x1360] ss:$40 sps:$4 sm:$0xff]   ;;  %v22548_v25 = vld [vmem:[#allocation12 + $0x23c] ss:$40 sps:$4 sm:$0xff]  }
 0x58b   :  { %v8071_v38 = vadd.f32 %v20541_v59, %v24807_v48  ;;  %v22510_v48 = vld [vmem:[#allocation12 + $0x58] ss:$40 sps:$4 sm:$0xff]   ;;  %v22555_v59 = vld [vmem:[#allocation12 + $0x28c] ss:$40 sps:$4 sm:$0xff]   ;;  %v24826_v39 = vcombine.low %v24809_v53, %v24809_v53 }
 0x58c   :  { %7904 = vmatpush1.bf16.msra.mxu0 %v22489_v49  ;;  %v22546_v61 = vld [vmem:[#allocation12 + $0x238] ss:$40 sps:$4 sm:$0xff]   ;;  %v22552_v31 = vld [vmem:[#allocation12 + $0x1404] ss:$40 sps:$4 sm:$0xff]  }
 0x58d   :  { %v8090_v45 = vmax.f32 %v8071_v38, 0.0  ;;  %15611 = vmatpush1.bf16.msra.mxu1 %v22492_v30  ;;  %7905 = vmatprep.subr.bf16.mxu0 %v22497_v11  ;;  %v22543_v49 = vld [vmem:[#allocation12 + $0x13b0] ss:$40 sps:$4 sm:$0xff]   ;;  %v22550_v11 = vld [vmem:[#allocation12 + $0x1400] ss:$40 sps:$4 sm:$0xff]  }
 0x58e   :  { %15612 = vmatprep.subr.bf16.mxu1 %v22500_v32  ;;  %v22553_v30 = vld [vmem:[#allocation12 + $0x288] ss:$40 sps:$4 sm:$0xff]   ;;  %v22558_v32 = vld [vmem:[#allocation12 + $0x1454] ss:$40 sps:$4 sm:$0xff]   ;;  %v22564_v53 = vld [vmem:[#allocation12 + $0x14a4] ss:$40 sps:$4 sm:$0xff]  }
 0x58f   :  { %v20433_v50 = vpack.c.bf16 %v8090_v45, %v8090_v45  ;;  %v22561_v38 = vld [vmem:[#allocation12 + $0x2dc] ss:$40 sps:$4 sm:$0xff]   ;;  %v22559_v45 = vld [vmem:[#allocation12 + $0x2d8] ss:$40 sps:$4 sm:$0xff]  }
 0x590   :  { %7906 = vmatpush1.bf16.msra.mxu0 %v22495_v40  ;;  %v24831_v40 = vpack.c.bf16 %v8085_v44, %v8085_v44  ;;  %v22570_v44 = vld [vmem:[#allocation12 + $0x14f4] ss:$40 sps:$4 sm:$0xff]  }
 0x591   :  { %8159 = vst [vmem:[#allocation3 + $0x38] sm:$0xf] %v20433_v50  ;;  %15613 = vmatpush1.bf16.msra.mxu1 %v22498_v46  ;;  %15803 = vmatprep.subr.bf16.mxu0 %v22506_v24  ;;  %v22556_v46 = vld [vmem:[#allocation12 + $0x1450] ss:$40 sps:$4 sm:$0xff]   ;;  %v22567_v24 = vld [vmem:[#allocation12 + $0x32c] ss:$40 sps:$4 sm:$0xff]  }
 0x592   :  { %15614 = vmatprep.subr.bf16.mxu1 %v22503_v57  ;;  %v22565_v57 = vld [vmem:[#allocation12 + $0x328] ss:$40 sps:$4 sm:$0xff]  }
 0x593   :  { %7908 = vmatmul.mubr.bf16.vlgmr.msra.gmra.mrb[28].mxu0 %v24673_v41  ;;  %v22522_v41 = vld [vmem:[#allocation12 + $0xf8] ss:$40 sps:$4 sm:$0xff]  }
 0x594   :  { %15804 = vmatpush1.bf16.msra.mxu0 %v22504_v47  ;;  %15835 = vmatprep.mubr.bf16.mxu0 %v24749_v56  ;;  %v22562_v50 = vld [vmem:[#allocation12 + $0x14a0] ss:$40 sps:$4 sm:$0xff]  }
 0x595   :  { %15615 = vmatpush1.bf16.msra.mxu1 %v22501_v51  ;;  %15805 = vmatprep.subr.bf16.mxu0 %v22512_v54  ;;  %v22571_v47 = vld [vmem:[#allocation12 + $0x378] ss:$40 sps:$4 sm:$0xff]   ;;  %v22579_v54 = vld [vmem:[#allocation12 + $0x3cc] ss:$40 sps:$4 sm:$0xff]  }
 0x596   :  { %15616 = vmatprep.subr.bf16.mxu1 %v22509_v9  ;;  %v22568_v51 = vld [vmem:[#allocation12 + $0x14f0] ss:$40 sps:$4 sm:$0xff]   ;;  %v22576_v9 = vld [vmem:[#allocation12 + $0x1544] ss:$40 sps:$4 sm:$0xff]  }
 0x598   :  { %15806 = vmatpush1.bf16.msra.mxu0 %v22510_v48  ;;  %v22577_v48 = vld [vmem:[#allocation12 + $0x3c8] ss:$40 sps:$4 sm:$0xff]  }
 0x599   :  { %15617 = vmatpush1.bf16.msra.mxu1 %v22507_v58  ;;  %15807 = vmatprep.subr.bf16.mxu0 %v22518_v63  ;;  %v22574_v58 = vld [vmem:[#allocation12 + $0x1540] ss:$40 sps:$4 sm:$0xff]   ;;  %v22585_v63 = vld [vmem:[#allocation12 + $0x41c] ss:$40 sps:$4 sm:$0xff]  }
 0x59a   :  { %15618 = vmatprep.subr.bf16.mxu1 %v22515_v1  ;;  %v22582_v1 = vld [vmem:[#allocation12 + $0x1594] ss:$40 sps:$4 sm:$0xff]  }
 0x59c   :  { %15808 = vmatpush1.bf16.msra.mxu0 %v22516_v5  ;;  %v22583_v5 = vld [vmem:[#allocation12 + $0x418] ss:$40 sps:$4 sm:$0xff]  }
 0x59d   :  { %15619 = vmatpush1.bf16.msra.mxu1 %v22513_v60  ;;  %15809 = vmatprep.subr.bf16.mxu0 %v22524_v6  ;;  %v22580_v60 = vld [vmem:[#allocation12 + $0x1590] ss:$40 sps:$4 sm:$0xff]   ;;  %v22591_v6 = vld [vmem:[#allocation12 + $0x46c] ss:$40 sps:$4 sm:$0xff]  }
 0x59e   :  { %15620 = vmatprep.subr.bf16.mxu1 %v22521_v7  ;;  %v22588_v7 = vld [vmem:[#allocation12 + $0x15e4] ss:$40 sps:$4 sm:$0xff]  }
 0x5a0   :  { %15810 = vmatpush1.bf16.msra.mxu0 %v22522_v41  ;;  %v22589_v41 = vld [vmem:[#allocation12 + $0x468] ss:$40 sps:$4 sm:$0xff]  }
 0x5a1   :  { %15621 = vmatpush1.bf16.msra.mxu1 %v22519_v33  ;;  %15811 = vmatprep.subr.bf16.mxu0 %v22530_v43  ;;  %v22586_v33 = vld [vmem:[#allocation12 + $0x15e0] ss:$40 sps:$4 sm:$0xff]   ;;  %v22597_v43 = vld [vmem:[#allocation12 + $0x4bc] ss:$40 sps:$4 sm:$0xff]  }
 0x5a2   :  { %15622 = vmatprep.subr.bf16.mxu1 %v22527_v8  ;;  %v22594_v8 = vld [vmem:[#allocation12 + $0x1634] ss:$40 sps:$4 sm:$0xff]  }
 0x5a4   :  { %15812 = vmatpush1.bf16.msra.mxu0 %v22528_v15  ;;  %v22595_v15 = vld [vmem:[#allocation12 + $0x4b8] ss:$40 sps:$4 sm:$0xff]  }
 0x5a5   :  { %15623 = vmatpush1.bf16.msra.mxu1 %v22525_v17  ;;  %15813 = vmatprep.subr.bf16.mxu0 %v22536_v16  ;;  %v22592_v17 = vld [vmem:[#allocation12 + $0x1630] ss:$40 sps:$4 sm:$0xff]   ;;  %v22603_v16 = vld [vmem:[#allocation12 + $0x50c] ss:$40 sps:$4 sm:$0xff]  }
 0x5a6   :  { %15624 = vmatprep.subr.bf16.mxu1 %v22533_v18  ;;  %v22600_v18 = vld [vmem:[#allocation12 + $0x1684] ss:$40 sps:$4 sm:$0xff]  }
 0x5a8   :  { %15814 = vmatpush1.bf16.msra.mxu0 %v22534_v19  ;;  %v22601_v19 = vld [vmem:[#allocation12 + $0x508] ss:$40 sps:$4 sm:$0xff]  }
 0x5a9   :  { %15625 = vmatpush1.bf16.msra.mxu1 %v22531_v14  ;;  %15815 = vmatprep.subr.bf16.mxu0 %v22542_v21  ;;  %v22598_v14 = vld [vmem:[#allocation12 + $0x1680] ss:$40 sps:$4 sm:$0xff]   ;;  %v22609_v21 = vld [vmem:[#allocation12 + $0x55c] ss:$40 sps:$4 sm:$0xff]  }
 0x5aa   :  { %15626 = vmatprep.subr.bf16.mxu1 %v22539_v23  ;;  %v22606_v23 = vld [vmem:[#allocation12 + $0x16d4] ss:$40 sps:$4 sm:$0xff]  }
 0x5ac   :  { %15816 = vmatpush1.bf16.msra.mxu0 %v22540_v26  ;;  %v22607_v26 = vld [vmem:[#allocation12 + $0x558] ss:$40 sps:$4 sm:$0xff]  }
 0x5ad   :  { %15627 = vmatpush1.bf16.msra.mxu1 %v22537_v27  ;;  %15817 = vmatprep.subr.bf16.mxu0 %v22548_v25  ;;  %v22604_v27 = vld [vmem:[#allocation12 + $0x16d0] ss:$40 sps:$4 sm:$0xff]   ;;  %v22615_v25 = vld [vmem:[#allocation12 + $0x5ac] ss:$40 sps:$4 sm:$0xff]  }
 0x5ae   :  { %15628 = vmatprep.subr.bf16.mxu1 %v22545_v52  ;;  %v22612_v52 = vld [vmem:[#allocation12 + $0x1724] ss:$40 sps:$4 sm:$0xff]  }
 0x5b0   :  { %15818 = vmatpush1.bf16.msra.mxu0 %v22546_v61  ;;  %v22613_v61 = vld [vmem:[#allocation12 + $0x5a8] ss:$40 sps:$4 sm:$0xff]  }
 0x5b1   :  { %15629 = vmatpush1.bf16.msra.mxu1 %v22543_v49  ;;  %15819 = vmatprep.subr.bf16.mxu0 %v22555_v59  ;;  %v22610_v49 = vld [vmem:[#allocation12 + $0x1720] ss:$40 sps:$4 sm:$0xff]   ;;  %v22621_v59 = vld [vmem:[#allocation12 + $0x5fc] ss:$40 sps:$4 sm:$0xff]  }
 0x5b2   :  { %15639 = vmatprep.subr.bf16.mxu1 %v22552_v31  ;;  %v22618_v31 = vld [vmem:[#allocation12 + $0x1774] ss:$40 sps:$4 sm:$0xff]  }
 0x5b4   :  { %15631 = vmatmul.mubr.bf16.vlgmr.msra.gmra.mrb[32].mxu1 %v24826_v39  ;;  %15820 = vmatpush1.bf16.msra.mxu0 %v22553_v30  ;;  %v22619_v30 = vld [vmem:[#allocation12 + $0x5f8] ss:$40 sps:$4 sm:$0xff]  }
 0x5b5   :  { %15640 = vmatpush1.bf16.msra.mxu1 %v22550_v11  ;;  %15671 = vmatprep.mubr.bf16.mxu1 %v24831_v40  ;;  %v22616_v11 = vld [vmem:[#allocation12 + $0x1770] ss:$40 sps:$4 sm:$0xff]  }
 0x5b6   :  { %15641 = vmatprep.subr.bf16.mxu1 %v22558_v32  ;;  %15821 = vmatprep.subr.bf16.mxu0 %v22561_v38  ;;  %v22627_v32 = vld [vmem:[#allocation12 + $0x64c] ss:$40 sps:$4 sm:$0xff]  }
 0x5b7   :  { %v22624_v38 = vld [vmem:[#allocation12 + $0x17c4] ss:$40 sps:$4 sm:$0xff]  }
 0x5b8   :  { %15822 = vmatpush1.bf16.msra.mxu0 %v22559_v45  ;;  %v22625_v45 = vld [vmem:[#allocation12 + $0x648] ss:$40 sps:$4 sm:$0xff]  }
 0x5b9   :  { %15642 = vmatpush1.bf16.msra.mxu1 %v22556_v46  ;;  %15823 = vmatprep.subr.bf16.mxu0 %v22567_v24  ;;  %v22622_v46 = vld [vmem:[#allocation12 + $0x17c0] ss:$40 sps:$4 sm:$0xff]   ;;  %v22633_v24 = vld [vmem:[#allocation12 + $0x69c] ss:$40 sps:$4 sm:$0xff]  }
 0x5ba   :  { %15643 = vmatprep.subr.bf16.mxu1 %v22564_v53  ;;  %v22630_v53 = vld [vmem:[#allocation12 + $0x1814] ss:$40 sps:$4 sm:$0xff]  }
 0x5bc   :  { %15824 = vmatpush1.bf16.msra.mxu0 %v22565_v57  ;;  %v22631_v57 = vld [vmem:[#allocation12 + $0x698] ss:$40 sps:$4 sm:$0xff]  }
 0x5bd   :  { %15644 = vmatpush1.bf16.msra.mxu1 %v22562_v50  ;;  %15825 = vmatprep.subr.bf16.mxu0 %v22573_v29  ;;  %v22628_v50 = vld [vmem:[#allocation12 + $0x1810] ss:$40 sps:$4 sm:$0xff]   ;;  %v22639_v29 = vld [vmem:[#allocation12 + $0x6ec] ss:$40 sps:$4 sm:$0xff]  }
 0x5be   :  { %15645 = vmatprep.subr.bf16.mxu1 %v22570_v44  ;;  %v22636_v44 = vld [vmem:[#allocation12 + $0x1864] ss:$40 sps:$4 sm:$0xff]  }
 0x5c0   :  { %15826 = vmatpush1.bf16.msra.mxu0 %v22571_v47  ;;  %v22637_v47 = vld [vmem:[#allocation12 + $0x6e8] ss:$40 sps:$4 sm:$0xff]  }
 0x5c1   :  { %15646 = vmatpush1.bf16.msra.mxu1 %v22568_v51  ;;  %15827 = vmatprep.subr.bf16.mxu0 %v22579_v54  ;;  %v22634_v51 = vld [vmem:[#allocation12 + $0x1860] ss:$40 sps:$4 sm:$0xff]   ;;  %v22645_v54 = vld [vmem:[#allocation12 + $0x73c] ss:$40 sps:$4 sm:$0xff]  }
 0x5c2   :  { %15647 = vmatprep.subr.bf16.mxu1 %v22576_v9  ;;  %v22642_v9 = vld [vmem:[#allocation12 + $0x18b4] ss:$40 sps:$4 sm:$0xff]  }
 0x5c4   :  { %15828 = vmatpush1.bf16.msra.mxu0 %v22577_v48  ;;  %v22643_v48 = vld [vmem:[#allocation12 + $0x738] ss:$40 sps:$4 sm:$0xff]  }
 0x5c5   :  { %15648 = vmatpush1.bf16.msra.mxu1 %v22574_v58  ;;  %15829 = vmatprep.subr.bf16.mxu0 %v22585_v63  ;;  %v22640_v58 = vld [vmem:[#allocation12 + $0x18b0] ss:$40 sps:$4 sm:$0xff]   ;;  %v22651_v63 = vld [vmem:[#allocation12 + $0x78c] ss:$40 sps:$4 sm:$0xff]  }
 0x5c6   :  { %15649 = vmatprep.subr.bf16.mxu1 %v22582_v1  ;;  %v22648_v1 = vld [vmem:[#allocation12 + $0x1904] ss:$40 sps:$4 sm:$0xff]  }
 0x5c8   :  { %15830 = vmatpush1.bf16.msra.mxu0 %v22583_v5  ;;  %v22649_v5 = vld [vmem:[#allocation12 + $0x788] ss:$40 sps:$4 sm:$0xff]  }
 0x5c9   :  { %15650 = vmatpush1.bf16.msra.mxu1 %v22580_v60  ;;  %15831 = vmatprep.subr.bf16.mxu0 %v22591_v6  ;;  %v24837_v60 = vld [vmem:[#allocation3 + $0x28] sm:$0xff]  ;;  %v22646_v6 = vld [vmem:[#allocation12 + $0x1900] ss:$40 sps:$4 sm:$0xff]  }
 0x5ca   :  { %15651 = vmatprep.subr.bf16.mxu1 %v22588_v7  ;;  %v24842_v7 = vpack.c.bf16 %v8084_v35, %v8084_v35  ;;  %v22662_v35 = vld [vmem:[#allocation12 + $0x828] ss:$40 sps:$4 sm:$0xff]  }
 0x5cc   :  { %15832 = vmatpush1.bf16.msra.mxu0 %v22589_v41  ;;  %v22655_v41 = vld [vmem:[#allocation12 + $0x1954] ss:$40 sps:$4 sm:$0xff]  }
 0x5cd   :  { %15652 = vmatpush1.bf16.msra.mxu1 %v22586_v33  ;;  %15833 = vmatprep.subr.bf16.mxu0 %v22597_v43  ;;  %v22658_v33 = vld [vmem:[#allocation12 + $0x7dc] ss:$40 sps:$4 sm:$0xff]   ;;  %v24846_v43 = vcombine.high %v24837_v60, %v24837_v60 }
 0x5ce   :  { %15653 = vmatprep.subr.bf16.mxu1 %v22594_v8  ;;  %v22656_v8 = vld [vmem:[#allocation12 + $0x7d8] ss:$40 sps:$4 sm:$0xff]  }
 0x5d0   :  { %15834 = vmatpush1.bf16.msra.mxu0 %v22595_v15  ;;  %v22653_v15 = vld [vmem:[#allocation12 + $0x1950] ss:$40 sps:$4 sm:$0xff]  }
 0x5d1   :  { %15654 = vmatpush1.bf16.msra.mxu1 %v22592_v17  ;;  %15844 = vmatprep.subr.bf16.mxu0 %v22603_v16  ;;  %v22664_v17 = vld [vmem:[#allocation12 + $0x82c] ss:$40 sps:$4 sm:$0xff]   ;;  %v22659_v16 = vld [vmem:[#allocation12 + $0x19a0] ss:$40 sps:$4 sm:$0xff]  }
 0x5d2   :  { %15655 = vmatprep.subr.bf16.mxu1 %v22600_v18  ;;  %v22670_v18 = vld [vmem:[#allocation12 + $0x87c] ss:$40 sps:$4 sm:$0xff]  }
 0x5d3   :  { %15836 = vmatmul.mubr.bf16.vlgmr.msra.gmra.mrb[32].mxu0 %v24759_v20 }
 0x5d4   :  { %15845 = vmatpush1.bf16.msra.mxu0 %v22601_v19  ;;  %15876 = vmatprep.mubr.bf16.mxu0 %v24763_v42  ;;  %v22667_v19 = vld [vmem:[#allocation12 + $0x19f4] ss:$40 sps:$4 sm:$0xff]  }
 0x5d5   :  { %15656 = vmatpush1.bf16.msra.mxu1 %v22598_v14  ;;  %15846 = vmatprep.subr.bf16.mxu0 %v22609_v21  ;;  %v22668_v14 = vld [vmem:[#allocation12 + $0x878] ss:$40 sps:$4 sm:$0xff]  }
 0x5d6   :  { %15657 = vmatprep.subr.bf16.mxu1 %v22606_v23  ;;  %v22665_v21 = vld [vmem:[#allocation12 + $0x19f0] ss:$40 sps:$4 sm:$0xff]   ;;  %v22676_v23 = vld [vmem:[#allocation12 + $0x8cc] ss:$40 sps:$4 sm:$0xff]  }
 0x5d8   :  { %15847 = vmatpush1.bf16.msra.mxu0 %v22607_v26  ;;  %v22673_v26 = vld [vmem:[#allocation12 + $0x1a44] ss:$40 sps:$4 sm:$0xff]  }
 0x5d9   :  { %15658 = vmatpush1.bf16.msra.mxu1 %v22604_v27  ;;  %15848 = vmatprep.subr.bf16.mxu0 %v22615_v25  ;;  %v22674_v27 = vld [vmem:[#allocation12 + $0x8c8] ss:$40 sps:$4 sm:$0xff]  }
 0x5da   :  { %15659 = vmatprep.subr.bf16.mxu1 %v22612_v52  ;;  %v22671_v25 = vld [vmem:[#allocation12 + $0x1a40] ss:$40 sps:$4 sm:$0xff]   ;;  %v22682_v52 = vld [vmem:[#allocation12 + $0x91c] ss:$40 sps:$4 sm:$0xff]  }
 0x5dc   :  { %15849 = vmatpush1.bf16.msra.mxu0 %v22613_v61  ;;  %v22679_v61 = vld [vmem:[#allocation12 + $0x1a94] ss:$40 sps:$4 sm:$0xff]  }
 0x5dd   :  { %15660 = vmatpush1.bf16.msra.mxu1 %v22610_v49  ;;  %15850 = vmatprep.subr.bf16.mxu0 %v22621_v59  ;;  %v22680_v49 = vld [vmem:[#allocation12 + $0x918] ss:$40 sps:$4 sm:$0xff]  }
 0x5de   :  { %15661 = vmatprep.subr.bf16.mxu1 %v22618_v31  ;;  %v22677_v59 = vld [vmem:[#allocation12 + $0x1a90] ss:$40 sps:$4 sm:$0xff]   ;;  %v22688_v31 = vld [vmem:[#allocation12 + $0x96c] ss:$40 sps:$4 sm:$0xff]  }
 0x5e0   :  { %15851 = vmatpush1.bf16.msra.mxu0 %v22619_v30  ;;  %v22685_v30 = vld [vmem:[#allocation12 + $0x1ae4] ss:$40 sps:$4 sm:$0xff]  }
 0x5e1   :  { %15662 = vmatpush1.bf16.msra.mxu1 %v22616_v11  ;;  %15852 = vmatprep.subr.bf16.mxu0 %v22627_v32  ;;  %v22686_v11 = vld [vmem:[#allocation12 + $0x968] ss:$40 sps:$4 sm:$0xff]  }
 0x5e2   :  { %15663 = vmatprep.subr.bf16.mxu1 %v22624_v38  ;;  %v22683_v32 = vld [vmem:[#allocation12 + $0x1ae0] ss:$40 sps:$4 sm:$0xff]   ;;  %v22694_v38 = vld [vmem:[#allocation12 + $0x9bc] ss:$40 sps:$4 sm:$0xff]  }
 0x5e4   :  { %15853 = vmatpush1.bf16.msra.mxu0 %v22625_v45  ;;  %v22691_v45 = vld [vmem:[#allocation12 + $0x1b34] ss:$40 sps:$4 sm:$0xff]  }
 0x5e5   :  { %15664 = vmatpush1.bf16.msra.mxu1 %v22622_v46  ;;  %15854 = vmatprep.subr.bf16.mxu0 %v22633_v24  ;;  %v22692_v46 = vld [vmem:[#allocation12 + $0x9b8] ss:$40 sps:$4 sm:$0xff]  }
 0x5e6   :  { %15665 = vmatprep.subr.bf16.mxu1 %v22630_v53  ;;  %v22689_v24 = vld [vmem:[#allocation12 + $0x1b30] ss:$40 sps:$4 sm:$0xff]   ;;  %v22700_v53 = vld [vmem:[#allocation12 + $0xa0c] ss:$40 sps:$4 sm:$0xff]  }
 0x5e8   :  { %15855 = vmatpush1.bf16.msra.mxu0 %v22631_v57  ;;  %v22697_v57 = vld [vmem:[#allocation12 + $0x1b84] ss:$40 sps:$4 sm:$0xff]  }
 0x5e9   :  { %15666 = vmatpush1.bf16.msra.mxu1 %v22628_v50  ;;  %15856 = vmatprep.subr.bf16.mxu0 %v22639_v29  ;;  %v22698_v50 = vld [vmem:[#allocation12 + $0xa08] ss:$40 sps:$4 sm:$0xff]  }
 0x5ea   :  { %15667 = vmatprep.subr.bf16.mxu1 %v22636_v44  ;;  %v22695_v29 = vld [vmem:[#allocation12 + $0x1b80] ss:$40 sps:$4 sm:$0xff]   ;;  %v22706_v44 = vld [vmem:[#allocation12 + $0xa5c] ss:$40 sps:$4 sm:$0xff]  }
 0x5ec   :  { %15857 = vmatpush1.bf16.msra.mxu0 %v22637_v47  ;;  %v22703_v47 = vld [vmem:[#allocation12 + $0x1bd4] ss:$40 sps:$4 sm:$0xff]  }
 0x5ed   :  { %15668 = vmatpush1.bf16.msra.mxu1 %v22634_v51  ;;  %15858 = vmatprep.subr.bf16.mxu0 %v22645_v54  ;;  %v22704_v51 = vld [vmem:[#allocation12 + $0xa58] ss:$40 sps:$4 sm:$0xff]  }
 0x5ee   :  { %15669 = vmatprep.subr.bf16.mxu1 %v22642_v9  ;;  %v22701_v54 = vld [vmem:[#allocation12 + $0x1bd0] ss:$40 sps:$4 sm:$0xff]   ;;  %v22712_v9 = vld [vmem:[#allocation12 + $0xaac] ss:$40 sps:$4 sm:$0xff]  }
 0x5f0   :  { %15859 = vmatpush1.bf16.msra.mxu0 %v22643_v48  ;;  %v22709_v48 = vld [vmem:[#allocation12 + $0x1c24] ss:$40 sps:$4 sm:$0xff]  }
 0x5f1   :  { %15670 = vmatpush1.bf16.msra.mxu1 %v22640_v58  ;;  %15860 = vmatprep.subr.bf16.mxu0 %v22651_v63  ;;  %v22710_v58 = vld [vmem:[#allocation12 + $0xaa8] ss:$40 sps:$4 sm:$0xff]  }
 0x5f2   :  { %15680 = vmatprep.subr.bf16.mxu1 %v22648_v1  ;;  %v22707_v63 = vld [vmem:[#allocation12 + $0x1c20] ss:$40 sps:$4 sm:$0xff]   ;;  %v22718_v1 = vld [vmem:[#allocation12 + $0xafc] ss:$40 sps:$4 sm:$0xff]  }
 0x5f4   :  { %15672 = vmatmul.mubr.bf16.vlgmr.msra.gmra.mrb[32].mxu1 %v24842_v7  ;;  %15861 = vmatpush1.bf16.msra.mxu0 %v22649_v5  ;;  %v22715_v5 = vld [vmem:[#allocation12 + $0x1c74] ss:$40 sps:$4 sm:$0xff]  }
 0x5f5   :  { %15681 = vmatpush1.bf16.msra.mxu1 %v22646_v6  ;;  %15712 = vmatprep.mubr.bf16.mxu1 %v24846_v43  ;;  %v22716_v6 = vld [vmem:[#allocation12 + $0xaf8] ss:$40 sps:$4 sm:$0xff]  }
 0x5f6   :  { %15682 = vmatprep.subr.bf16.mxu1 %v22655_v41  ;;  %15862 = vmatprep.subr.bf16.mxu0 %v22658_v33  ;;  %v22713_v41 = vld [vmem:[#allocation12 + $0x1c70] ss:$40 sps:$4 sm:$0xff]   ;;  %v22724_v33 = vld [vmem:[#allocation12 + $0xb4c] ss:$40 sps:$4 sm:$0xff]  }
 0x5f8   :  { %15863 = vmatpush1.bf16.msra.mxu0 %v22656_v8  ;;  %v22721_v8 = vld [vmem:[#allocation12 + $0x1cc4] ss:$40 sps:$4 sm:$0xff]  }
 0x5f9   :  { %15683 = vmatpush1.bf16.msra.mxu1 %v22653_v15  ;;  %15864 = vmatprep.subr.bf16.mxu0 %v22664_v17  ;;  %v22722_v15 = vld [vmem:[#allocation12 + $0xb48] ss:$40 sps:$4 sm:$0xff]  }
 0x5fa   :  { %15684 = vmatprep.subr.bf16.mxu1 %v22661_v28  ;;  %v22719_v17 = vld [vmem:[#allocation12 + $0x1cc0] ss:$40 sps:$4 sm:$0xff]   ;;  %v22730_v28 = vld [vmem:[#allocation12 + $0xb9c] ss:$40 sps:$4 sm:$0xff]  }
 0x5fc   :  { %15865 = vmatpush1.bf16.msra.mxu0 %v22662_v35  ;;  %v22727_v35 = vld [vmem:[#allocation12 + $0x1d14] ss:$40 sps:$4 sm:$0xff]  }
 0x5fd   :  { %15685 = vmatpush1.bf16.msra.mxu1 %v22659_v16  ;;  %15866 = vmatprep.subr.bf16.mxu0 %v22670_v18  ;;  %v22728_v16 = vld [vmem:[#allocation12 + $0xb98] ss:$40 sps:$4 sm:$0xff]  }
 0x5fe   :  { %15686 = vmatprep.subr.bf16.mxu1 %v22667_v19  ;;  %v22725_v18 = vld [vmem:[#allocation12 + $0x1d10] ss:$40 sps:$4 sm:$0xff]   ;;  %v22736_v19 = vld [vmem:[#allocation12 + $0xbec] ss:$40 sps:$4 sm:$0xff]  }
 0x600   :  { %15867 = vmatpush1.bf16.msra.mxu0 %v22668_v14  ;;  %v22733_v14 = vld [vmem:[#allocation12 + $0x1d64] ss:$40 sps:$4 sm:$0xff]  }
 0x601   :  { %15687 = vmatpush1.bf16.msra.mxu1 %v22665_v21  ;;  %15868 = vmatprep.subr.bf16.mxu0 %v22676_v23  ;;  %v22734_v21 = vld [vmem:[#allocation12 + $0xbe8] ss:$40 sps:$4 sm:$0xff]  }
 0x602   :  { %15688 = vmatprep.subr.bf16.mxu1 %v22673_v26  ;;  %v22731_v23 = vld [vmem:[#allocation12 + $0x1d60] ss:$40 sps:$4 sm:$0xff]   ;;  %v22742_v26 = vld [vmem:[#allocation12 + $0xc3c] ss:$40 sps:$4 sm:$0xff]  }
 0x604   :  { %15869 = vmatpush1.bf16.msra.mxu0 %v22674_v27  ;;  %v22739_v27 = vld [vmem:[#allocation12 + $0x1db4] ss:$40 sps:$4 sm:$0xff]  }
 0x605   :  { %15689 = vmatpush1.bf16.msra.mxu1 %v22671_v25  ;;  %15870 = vmatprep.subr.bf16.mxu0 %v22682_v52  ;;  %v22740_v25 = vld [vmem:[#allocation12 + $0xc38] ss:$40 sps:$4 sm:$0xff]  }
 0x606   :  { %15690 = vmatprep.subr.bf16.mxu1 %v22679_v61  ;;  %v22737_v52 = vld [vmem:[#allocation12 + $0x1db0] ss:$40 sps:$4 sm:$0xff]   ;;  %v22746_v61 = vld [vmem:[#allocation12 + $0xc8c] ss:$40 sps:$4 sm:$0xff]  }
 0x608   :  { %15871 = vmatpush1.bf16.msra.mxu0 %v22680_v49  ;;  %v22752_v49 = vld [vmem:[#allocation12 + $0x1e04] ss:$40 sps:$4 sm:$0xff]  }
 0x609   :  { %15691 = vmatpush1.bf16.msra.mxu1 %v22677_v59  ;;  %15872 = vmatprep.subr.bf16.mxu0 %v22688_v31  ;;  %v22744_v59 = vld [vmem:[#allocation12 + $0xc88] ss:$40 sps:$4 sm:$0xff]   ;;  %v22749_v31 = vld [vmem:[#allocation12 + $0xcdc] ss:$40 sps:$4 sm:$0xff]  }
 0x60a   :  { %15692 = vmatprep.subr.bf16.mxu1 %v22685_v30  ;;  %v22750_v30 = vld [vmem:[#allocation12 + $0x1e00] ss:$40 sps:$4 sm:$0xff]  }
 0x60c   :  { %15873 = vmatpush1.bf16.msra.mxu0 %v22686_v11  ;;  %v24854_v11 = vcombine.low %v24837_v60, %v24837_v60  ;;  %v22770_v60 = vld [vmem:[#allocation12 + $0x1ef4] ss:$40 sps:$4 sm:$0xff]  }
 0x60d   :  { %15693 = vmatpush1.bf16.msra.mxu1 %v22683_v32  ;;  %15874 = vmatprep.subr.bf16.mxu0 %v22694_v38  ;;  %v22758_v32 = vld [vmem:[#allocation12 + $0x1e54] ss:$40 sps:$4 sm:$0xff]   ;;  %v22747_v38 = vld [vmem:[#allocation12 + $0xcd8] ss:$40 sps:$4 sm:$0xff]  }
 0x60e   :  { %15694 = vmatprep.subr.bf16.mxu1 %v22691_v45  ;;  %v22755_v45 = vld [vmem:[#allocation12 + $0xd2c] ss:$40 sps:$4 sm:$0xff]  }
 0x610   :  { %15875 = vmatpush1.bf16.msra.mxu0 %v22692_v46  ;;  %v22756_v46 = vld [vmem:[#allocation12 + $0x1e50] ss:$40 sps:$4 sm:$0xff]  }
 0x611   :  { %15695 = vmatpush1.bf16.msra.mxu1 %v22689_v24  ;;  %15885 = vmatprep.subr.bf16.mxu0 %v22700_v53  ;;  %v22764_v24 = vld [vmem:[#allocation12 + $0x1ea4] ss:$40 sps:$4 sm:$0xff]   ;;  %v22753_v53 = vld [vmem:[#allocation12 + $0xd28] ss:$40 sps:$4 sm:$0xff]  }
 0x612   :  { %15696 = vmatprep.subr.bf16.mxu1 %v22697_v57  ;;  %v22761_v57 = vld [vmem:[#allocation12 + $0xd7c] ss:$40 sps:$4 sm:$0xff]  }
 0x613   :  { %15877 = vmatmul.mubr.bf16.vlgmr.msra.gmra.mrb[32].mxu0 %v24781_v2 }
 0x614   :  { %15886 = vmatpush1.bf16.msra.mxu0 %v22698_v50  ;;  %15917 = vmatprep.mubr.bf16.mxu0 %v24785_v3  ;;  %v22762_v50 = vld [vmem:[#allocation12 + $0x1ea0] ss:$40 sps:$4 sm:$0xff]  }
 0x615   :  { %15697 = vmatpush1.bf16.msra.mxu1 %v22695_v29  ;;  %15887 = vmatprep.subr.bf16.mxu0 %v22706_v44  ;;  %v22759_v29 = vld [vmem:[#allocation12 + $0xd78] ss:$40 sps:$4 sm:$0xff]   ;;  %v22767_v44 = vld [vmem:[#allocation12 + $0xdcc] ss:$40 sps:$4 sm:$0xff]  }
 0x616   :  { %15698 = vmatprep.subr.bf16.mxu1 %v22703_v47  ;;  %v22768_v47 = vld [vmem:[#allocation12 + $0x1ef0] ss:$40 sps:$4 sm:$0xff]  }
 0x618   :  { %15888 = vmatpush1.bf16.msra.mxu0 %v22704_v51  ;;  %v22776_v51 = vld [vmem:[#allocation12 + $0x1f44] ss:$40 sps:$4 sm:$0xff]  }
 0x619   :  { %15699 = vmatpush1.bf16.msra.mxu1 %v22701_v54  ;;  %15889 = vmatprep.subr.bf16.mxu0 %v22712_v9  ;;  %v22765_v54 = vld [vmem:[#allocation12 + $0xdc8] ss:$40 sps:$4 sm:$0xff]   ;;  %v22773_v9 = vld [vmem:[#allocation12 + $0xe1c] ss:$40 sps:$4 sm:$0xff]  }
 0x61a   :  { %15700 = vmatprep.subr.bf16.mxu1 %v22709_v48  ;;  %v22774_v48 = vld [vmem:[#allocation12 + $0x1f40] ss:$40 sps:$4 sm:$0xff]  }
 0x61c   :  { %15890 = vmatpush1.bf16.msra.mxu0 %v22710_v58  ;;  %v22782_v58 = vld [vmem:[#allocation12 + $0x1f94] ss:$40 sps:$4 sm:$0xff]  }
 0x61d   :  { %15701 = vmatpush1.bf16.msra.mxu1 %v22707_v63  ;;  %15891 = vmatprep.subr.bf16.mxu0 %v22718_v1  ;;  %v22771_v63 = vld [vmem:[#allocation12 + $0xe18] ss:$40 sps:$4 sm:$0xff]   ;;  %v22779_v1 = vld [vmem:[#allocation12 + $0xe6c] ss:$40 sps:$4 sm:$0xff]  }
 0x61e   :  { %15702 = vmatprep.subr.bf16.mxu1 %v22715_v5  ;;  %v22780_v5 = vld [vmem:[#allocation12 + $0x1f90] ss:$40 sps:$4 sm:$0xff]  }
 0x620   :  { %15892 = vmatpush1.bf16.msra.mxu0 %v22716_v6  ;;  %v22788_v6 = vld [vmem:[#allocation12 + $0x1fe4] ss:$40 sps:$4 sm:$0xff]  }
 0x621   :  { %15703 = vmatpush1.bf16.msra.mxu1 %v22713_v41  ;;  %15893 = vmatprep.subr.bf16.mxu0 %v22724_v33  ;;  %v22777_v41 = vld [vmem:[#allocation12 + $0xe68] ss:$40 sps:$4 sm:$0xff]   ;;  %v22785_v33 = vld [vmem:[#allocation12 + $0xebc] ss:$40 sps:$4 sm:$0xff]  }
 0x622   :  { %15704 = vmatprep.subr.bf16.mxu1 %v22721_v8  ;;  %v22786_v8 = vld [vmem:[#allocation12 + $0x1fe0] ss:$40 sps:$4 sm:$0xff]  }
 0x624   :  { %15894 = vmatpush1.bf16.msra.mxu0 %v22722_v15  ;;  %v22794_v15 = vld [vmem:[#allocation12 + $0x2034] ss:$40 sps:$4 sm:$0xff]  }
 0x625   :  { %15705 = vmatpush1.bf16.msra.mxu1 %v22719_v17  ;;  %15895 = vmatprep.subr.bf16.mxu0 %v22730_v28  ;;  %v22783_v17 = vld [vmem:[#allocation12 + $0xeb8] ss:$40 sps:$4 sm:$0xff]   ;;  %v22791_v28 = vld [vmem:[#allocation12 + $0xf0c] ss:$40 sps:$4 sm:$0xff]  }
 0x626   :  { %15706 = vmatprep.subr.bf16.mxu1 %v22727_v35  ;;  %v22792_v35 = vld [vmem:[#allocation12 + $0x2030] ss:$40 sps:$4 sm:$0xff]  }
 0x628   :  { %15896 = vmatpush1.bf16.msra.mxu0 %v22728_v16  ;;  %v22800_v16 = vld [vmem:[#allocation12 + $0x2084] ss:$40 sps:$4 sm:$0xff]  }
 0x629   :  { %15707 = vmatpush1.bf16.msra.mxu1 %v22725_v18  ;;  %15897 = vmatprep.subr.bf16.mxu0 %v22736_v19  ;;  %v22789_v18 = vld [vmem:[#allocation12 + $0xf08] ss:$40 sps:$4 sm:$0xff]   ;;  %v22797_v19 = vld [vmem:[#allocation12 + $0xf5c] ss:$40 sps:$4 sm:$0xff]  }
 0x62a   :  { %15708 = vmatprep.subr.bf16.mxu1 %v22733_v14  ;;  %v22798_v14 = vld [vmem:[#allocation12 + $0x2080] ss:$40 sps:$4 sm:$0xff]  }
 0x62c   :  { %15898 = vmatpush1.bf16.msra.mxu0 %v22734_v21  ;;  %v22806_v21 = vld [vmem:[#allocation12 + $0x20d4] ss:$40 sps:$4 sm:$0xff]  }
 0x62d   :  { %15709 = vmatpush1.bf16.msra.mxu1 %v22731_v23  ;;  %15899 = vmatprep.subr.bf16.mxu0 %v22742_v26  ;;  %v22795_v23 = vld [vmem:[#allocation12 + $0xf58] ss:$40 sps:$4 sm:$0xff]   ;;  %v22803_v26 = vld [vmem:[#allocation12 + $0xfac] ss:$40 sps:$4 sm:$0xff]  }
 0x62e   :  { %15710 = vmatprep.subr.bf16.mxu1 %v22739_v27  ;;  %v22804_v27 = vld [vmem:[#allocation12 + $0x20d0] ss:$40 sps:$4 sm:$0xff]  }
 0x630   :  { %15900 = vmatpush1.bf16.msra.mxu0 %v22740_v25  ;;  %v22812_v25 = vld [vmem:[#allocation12 + $0x2124] ss:$40 sps:$4 sm:$0xff]  }
 0x631   :  { %15711 = vmatpush1.bf16.msra.mxu1 %v22737_v52  ;;  %15901 = vmatprep.subr.bf16.mxu0 %v22746_v61  ;;  %v22801_v52 = vld [vmem:[#allocation12 + $0xfa8] ss:$40 sps:$4 sm:$0xff]   ;;  %v22809_v61 = vld [vmem:[#allocation12 + $0xffc] ss:$40 sps:$4 sm:$0xff]  }
 0x632   :  { %15721 = vmatprep.subr.bf16.mxu1 %v22752_v49  ;;  %v22810_v49 = vld [vmem:[#allocation12 + $0x2120] ss:$40 sps:$4 sm:$0xff]  }
 0x634   :  { %15713 = vmatmul.mubr.bf16.vlgmr.msra.gmra.mrb[32].mxu1 %v24854_v11  ;;  %15902 = vmatpush1.bf16.msra.mxu0 %v22744_v59  ;;  %v22818_v59 = vld [vmem:[#allocation12 + $0x2174] ss:$40 sps:$4 sm:$0xff]  }
 0x635   :  { %15903 = vmatprep.subr.bf16.mxu0 %v22749_v31  ;;  %15722 = vmatpush1.bf16.msra.mxu1 %v22750_v30  ;;  %v22807_v31 = vld [vmem:[#allocation12 + $0xff8] ss:$40 sps:$4 sm:$0xff]   ;;  %v22815_v30 = vld [vmem:[#allocation12 + $0x104c] ss:$40 sps:$4 sm:$0xff]  }
 0x636   :  { %15723 = vmatprep.subr.bf16.mxu1 %v22758_v32  ;;  %v22816_v32 = vld [vmem:[#allocation12 + $0x2170] ss:$40 sps:$4 sm:$0xff]  }
 0x638   :  { %15904 = vmatpush1.bf16.msra.mxu0 %v22747_v38  ;;  %v22824_v38 = vld [vmem:[#allocation12 + $0x21c4] ss:$40 sps:$4 sm:$0xff]  }
 0x639   :  { %15905 = vmatprep.subr.bf16.mxu0 %v22755_v45  ;;  %15724 = vmatpush1.bf16.msra.mxu1 %v22756_v46  ;;  %v22813_v45 = vld [vmem:[#allocation12 + $0x1048] ss:$40 sps:$4 sm:$0xff]   ;;  %v22821_v46 = vld [vmem:[#allocation12 + $0x109c] ss:$40 sps:$4 sm:$0xff]  }
 0x63a   :  { %15725 = vmatprep.subr.bf16.mxu1 %v22764_v24  ;;  %v22822_v24 = vld [vmem:[#allocation12 + $0x21c0] ss:$40 sps:$4 sm:$0xff]  }
 0x63c   :  { %15906 = vmatpush1.bf16.msra.mxu0 %v22753_v53  ;;  %v22830_v53 = vld [vmem:[#allocation12 + $0x2214] ss:$40 sps:$4 sm:$0xff]  }
 0x63d   :  { %15907 = vmatprep.subr.bf16.mxu0 %v22761_v57  ;;  %15726 = vmatpush1.bf16.msra.mxu1 %v22762_v50  ;;  %v24219_v57 = vld [vmem:[#allocation10 + $0x8] sm:$0xff] }
 0x63e   :  { %15727 = vmatprep.subr.bf16.mxu1 %v22770_v60  ;;  %v1852_v50 = vrot.slane %v24219_v57, %v24649_v4  ;;  %v1856_v60 = vrot.slane %v24219_v57, %v24637_v22  ;;  %v22870_v57 = vld [vmem:[#allocation12 + $0x2440] ss:$40 sps:$4 sm:$0xff]  }
 0x640   :  { %15908 = vmatpush1.bf16.msra.mxu0 %v22759_v29  ;;  %v22819_v29 = vld [vmem:[#allocation12 + $0x1098] ss:$40 sps:$4 sm:$0xff]  }
 0x641   :  { %15909 = vmatprep.subr.bf16.mxu0 %v22767_v44  ;;  %15728 = vmatpush1.bf16.msra.mxu1 %v22768_v47  ;;  %v22827_v44 = vld [vmem:[#allocation12 + $0x10ec] ss:$40 sps:$4 sm:$0xff]   ;;  %v22828_v47 = vld [vmem:[#allocation12 + $0x2210] ss:$40 sps:$4 sm:$0xff]  }
 0x642   :  { %15729 = vmatprep.subr.bf16.mxu1 %v22776_v51 }
 0x644   :  { %15910 = vmatpush1.bf16.msra.mxu0 %v22765_v54  ;;  %v22836_v54 = vld [vmem:[#allocation12 + $0x2264] ss:$40 sps:$4 sm:$0xff]  }
 0x645   :  { %15911 = vmatprep.subr.bf16.mxu0 %v22773_v9  ;;  %15730 = vmatpush1.bf16.msra.mxu1 %v22774_v48 }
 0x646   :  { %15731 = vmatprep.subr.bf16.mxu1 %v22782_v58 }
 0x648   :  { %15912 = vmatpush1.bf16.msra.mxu0 %v22771_v63 }
 0x649   :  { %15913 = vmatprep.subr.bf16.mxu0 %v22779_v1  ;;  %15732 = vmatpush1.bf16.msra.mxu1 %v22780_v5  ;;  %v22825_v1 = vld [vmem:[#allocation12 + $0x10e8] ss:$40 sps:$4 sm:$0xff]  }
 0x64a   :  { %15733 = vmatprep.subr.bf16.mxu1 %v22788_v6 }
 0x64c   :  { %15914 = vmatpush1.bf16.msra.mxu0 %v22777_v41  ;;  %v22833_v41 = vld [vmem:[#allocation12 + $0x113c] ss:$40 sps:$4 sm:$0xff]  }
 0x64d   :  { %15915 = vmatprep.subr.bf16.mxu0 %v22785_v33  ;;  %15734 = vmatpush1.bf16.msra.mxu1 %v22786_v8  ;;  %v22834_v33 = vld [vmem:[#allocation12 + $0x2260] ss:$40 sps:$4 sm:$0xff]  }
 0x64e   :  { %15735 = vmatprep.subr.bf16.mxu1 %v22794_v15  ;;  %v22842_v15 = vld [vmem:[#allocation12 + $0x22b4] ss:$40 sps:$4 sm:$0xff]  }
 0x650   :  { %15916 = vmatpush1.bf16.msra.mxu0 %v22783_v17  ;;  %v22831_v17 = vld [vmem:[#allocation12 + $0x1138] ss:$40 sps:$4 sm:$0xff]  }
 0x651   :  { %15926 = vmatprep.subr.bf16.mxu0 %v22791_v28  ;;  %15736 = vmatpush1.bf16.msra.mxu1 %v22792_v35  ;;  %v22839_v28 = vld [vmem:[#allocation12 + $0x118c] ss:$40 sps:$4 sm:$0xff]   ;;  %v22840_v35 = vld [vmem:[#allocation12 + $0x22b0] ss:$40 sps:$4 sm:$0xff]  }
 0x652   :  { %15737 = vmatprep.subr.bf16.mxu1 %v22800_v16 }
 0x653   :  { %15918 = vmatmul.mubr.bf16.vlgmr.msra.gmra.mrb[32].mxu0 %v24813_v55 }
 0x654   :  { %15927 = vmatpush1.bf16.msra.mxu0 %v22789_v18  ;;  %15958 = vmatprep.mubr.bf16.mxu0 %v24817_v62  ;;  %v22848_v18 = vld [vmem:[#allocation12 + $0x2304] ss:$40 sps:$4 sm:$0xff]  }
 0x655   :  { %15928 = vmatprep.subr.bf16.mxu0 %v22797_v19  ;;  %15738 = vmatpush1.bf16.msra.mxu1 %v22798_v14  ;;  %v22837_v19 = vld [vmem:[#allocation12 + $0x1188] ss:$40 sps:$4 sm:$0xff]   ;;  %v22845_v14 = vld [vmem:[#allocation12 + $0x11dc] ss:$40 sps:$4 sm:$0xff]  }
 0x656   :  { %15739 = vmatprep.subr.bf16.mxu1 %v22806_v21  ;;  %v22846_v21 = vld [vmem:[#allocation12 + $0x2300] ss:$40 sps:$4 sm:$0xff]  }
 0x658   :  { %15929 = vmatpush1.bf16.msra.mxu0 %v22795_v23 }
 0x659   :  { %15930 = vmatprep.subr.bf16.mxu0 %v22803_v26  ;;  %15740 = vmatpush1.bf16.msra.mxu1 %v22804_v27  ;;  %v22854_v26 = vld [vmem:[#allocation12 + $0x2354] ss:$40 sps:$4 sm:$0xff]   ;;  %v22843_v27 = vld [vmem:[#allocation12 + $0x11d8] ss:$40 sps:$4 sm:$0xff]  }
 0x65a   :  { %15741 = vmatprep.subr.bf16.mxu1 %v22812_v25  ;;  %v22851_v25 = vld [vmem:[#allocation12 + $0x122c] ss:$40 sps:$4 sm:$0xff]  }
 0x65c   :  { %15931 = vmatpush1.bf16.msra.mxu0 %v22801_v52  ;;  %v22852_v52 = vld [vmem:[#allocation12 + $0x2350] ss:$40 sps:$4 sm:$0xff]  }
 0x65d   :  { %15932 = vmatprep.subr.bf16.mxu0 %v22809_v61  ;;  %15742 = vmatpush1.bf16.msra.mxu1 %v22810_v49  ;;  %v22860_v61 = vld [vmem:[#allocation12 + $0x23a4] ss:$40 sps:$4 sm:$0xff]   ;;  %v22849_v49 = vld [vmem:[#allocation12 + $0x1228] ss:$40 sps:$4 sm:$0xff]  }
 0x65e   :  { %15743 = vmatprep.subr.bf16.mxu1 %v22818_v59  ;;  %v22857_v59 = vld [vmem:[#allocation12 + $0x127c] ss:$40 sps:$4 sm:$0xff]  }
 0x660   :  { %15933 = vmatpush1.bf16.msra.mxu0 %v22807_v31  ;;  %v22858_v31 = vld [vmem:[#allocation12 + $0x23a0] ss:$40 sps:$4 sm:$0xff]  }
 0x661   :  { %15934 = vmatprep.subr.bf16.mxu0 %v22815_v30  ;;  %15744 = vmatpush1.bf16.msra.mxu1 %v22816_v32  ;;  %v22866_v30 = vld [vmem:[#allocation12 + $0x23f4] ss:$40 sps:$4 sm:$0xff]   ;;  %v22855_v32 = vld [vmem:[#allocation12 + $0x1278] ss:$40 sps:$4 sm:$0xff]  }
 0x662   :  { %15745 = vmatprep.subr.bf16.mxu1 %v22824_v38  ;;  %v22863_v38 = vld [vmem:[#allocation12 + $0x12cc] ss:$40 sps:$4 sm:$0xff]  }
 0x664   :  { %15935 = vmatpush1.bf16.msra.mxu0 %v22813_v45  ;;  %v22864_v45 = vld [vmem:[#allocation12 + $0x23f0] ss:$40 sps:$4 sm:$0xff]  }
 0x665   :  { %15936 = vmatprep.subr.bf16.mxu0 %v22821_v46  ;;  %15746 = vmatpush1.bf16.msra.mxu1 %v22822_v24  ;;  %v22872_v46 = vld [vmem:[#allocation12 + $0x2444] ss:$40 sps:$4 sm:$0xff]   ;;  %v22861_v24 = vld [vmem:[#allocation12 + $0x12c8] ss:$40 sps:$4 sm:$0xff]  }
 0x666   :  { %v7909_v51 = vpop.f32.mrb[28].mxu0  ;;  %15747 = vmatprep.subr.bf16.mxu1 %v22830_v53  ;;  %v22869_v53 = vld [vmem:[#allocation12 + $0x131c] ss:$40 sps:$4 sm:$0xff]  }
 0x667   :  { %v20669_v9 = vadd.f32 %v7909_v51, %v1852_v50  ;;  %v7911_v48 = vpop.f32.mrb[29].mxu0  ;;  %v22878_v50 = vld [vmem:[#allocation12 + $0x2494] ss:$40 sps:$4 sm:$0xff]   ;;  %v22873_v51 = vld [vmem:[#allocation12 + $0x1368] ss:$40 sps:$4 sm:$0xff]  }
 0x668   :  { %v20670_v58 = vadd.f32 %v7911_v48, %v1856_v60  ;;  %v7913_v63 = vpop.f32.mrb[30].mxu0  ;;  %15937 = vmatpush1.bf16.msra.mxu0 %v22819_v29  ;;  %v22867_v60 = vld [vmem:[#allocation12 + $0x1318] ss:$40 sps:$4 sm:$0xff]   ;;  %v22875_v29 = vld [vmem:[#allocation12 + $0x136c] ss:$40 sps:$4 sm:$0xff]  }
 0x669   :  { %v8088_v5 = vmax.f32 %v20669_v9, 0.0  ;;  %v7914_v6 = vpop.f32.mrb[31].mxu0  ;;  %15938 = vmatprep.subr.bf16.mxu0 %v22827_v44  ;;  %15748 = vmatpush1.bf16.msra.mxu1 %v22828_v47  ;;  %v22876_v44 = vld [vmem:[#allocation12 + $0x2490] ss:$40 sps:$4 sm:$0xff]   ;;  %v22884_v47 = vld [vmem:[#allocation12 + $0x24e4] ss:$40 sps:$4 sm:$0xff]  }
 0x66a   :  { %v8089_v8 = vmax.f32 %v20670_v58, 0.0  ;;  %15749 = vmatprep.subr.bf16.mxu1 %v22836_v54  ;;  %v22881_v54 = vld [vmem:[#allocation12 + $0x13bc] ss:$40 sps:$4 sm:$0xff]   ;;  %v22882_v9 = vld [vmem:[#allocation12 + $0x24e0] ss:$40 sps:$4 sm:$0xff]  }
 0x66b   :  { %v24864_v23 = vpack.c.bf16 %v8088_v5, %v8088_v5  ;;  %v22890_v48 = vld [vmem:[#allocation12 + $0x2534] ss:$40 sps:$4 sm:$0xff]   ;;  %v22879_v58 = vld [vmem:[#allocation12 + $0x13b8] ss:$40 sps:$4 sm:$0xff]   ;;  %v22885_v6 = vld [vmem:[#allocation12 + $0x1408] ss:$40 sps:$4 sm:$0xff]  }
 0x66c   :  { %15939 = vmatpush1.bf16.msra.mxu0 %v22825_v1  ;;  %v24861_v16 = vpack.c.bf16 %v8089_v8, %v8089_v8  ;;  %v22887_v63 = vld [vmem:[#allocation12 + $0x140c] ss:$40 sps:$4 sm:$0xff]   ;;  %v22888_v1 = vld [vmem:[#allocation12 + $0x2530] ss:$40 sps:$4 sm:$0xff]   ;;  %v24869_v8 = vld [vmem:[#allocation3 + $0x38] ss:$0 sps:$4 sm:$0xff]  }
 0x66d   :  { %15940 = vmatprep.subr.bf16.mxu0 %v22833_v41  ;;  %15750 = vmatpush1.bf16.msra.mxu1 %v22834_v33  ;;  %v22897_v5 = vld [vmem:[#allocation12 + $0x14] ss:$40 sps:$4 sm:$0xff]   ;;  %v22895_v33 = vld [vmem:[#allocation12 + $0x10] ss:$40 sps:$4 sm:$0xff]  }
 0x66e   :  { %15751 = vmatprep.subr.bf16.mxu1 %v22842_v15  ;;  %15753 = vmatprep.mubr.bf16.mxu1 %v24861_v16  ;;  %v22893_v41 = vld [vmem:[#allocation12 + $0x145c] ss:$40 sps:$4 sm:$0xff]  }
 0x66f   :  { %v22903_v15 = vld [vmem:[#allocation12 + $0x64] ss:$40 sps:$4 sm:$0xff]  }
 0x670   :  { %15941 = vmatpush1.bf16.msra.mxu0 %v22831_v17  ;;  %v22891_v17 = vld [vmem:[#allocation12 + $0x1458] ss:$40 sps:$4 sm:$0xff]  }
 0x671   :  { %15942 = vmatprep.subr.bf16.mxu0 %v22839_v28  ;;  %15752 = vmatpush1.bf16.msra.mxu1 %v22840_v35  ;;  %v22900_v28 = vld [vmem:[#allocation12 + $0x14ac] ss:$40 sps:$4 sm:$0xff]   ;;  %v22901_v35 = vld [vmem:[#allocation12 + $0x60] ss:$40 sps:$4 sm:$0xff]  }
 0x672   :  { %15762 = vmatprep.subr.bf16.mxu1 %v22848_v18  ;;  %v22909_v18 = vld [vmem:[#allocation12 + $0xb4] ss:$40 sps:$4 sm:$0xff]  }
 0x674   :  { %15943 = vmatpush1.bf16.msra.mxu0 %v22837_v19  ;;  %15754 = vmatmul.mubr.bf16.vlgmr.msra.gmra.mrb[32].mxu1 %v24864_v23  ;;  %v22898_v19 = vld [vmem:[#allocation12 + $0x14a8] ss:$40 sps:$4 sm:$0xff]  }
 0x675   :  { %15944 = vmatprep.subr.bf16.mxu0 %v22845_v14  ;;  %15763 = vmatpush1.bf16.msra.mxu1 %v22846_v21  ;;  %v22906_v14 = vld [vmem:[#allocation12 + $0x14fc] ss:$40 sps:$4 sm:$0xff]   ;;  %v22907_v21 = vld [vmem:[#allocation12 + $0xb0] ss:$40 sps:$4 sm:$0xff]  }
 0x676   :  { %15764 = vmatprep.subr.bf16.mxu1 %v22854_v26  ;;  %15794 = vmatprep.mubr.bf16.mxu1 %v24428_v0  ;;  %v22915_v26 = vld [vmem:[#allocation12 + $0x104] ss:$40 sps:$4 sm:$0xff]  }
 0x678   :  { %15945 = vmatpush1.bf16.msra.mxu0 %v22843_v27  ;;  %v22904_v27 = vld [vmem:[#allocation12 + $0x14f8] ss:$40 sps:$4 sm:$0xff]  }
 0x679   :  { %15946 = vmatprep.subr.bf16.mxu0 %v22851_v25  ;;  %15765 = vmatpush1.bf16.msra.mxu1 %v22852_v52  ;;  %v22912_v25 = vld [vmem:[#allocation12 + $0x154c] ss:$40 sps:$4 sm:$0xff]   ;;  %v22913_v52 = vld [vmem:[#allocation12 + $0x100] ss:$40 sps:$4 sm:$0xff]  }
 0x67a   :  { %15766 = vmatprep.subr.bf16.mxu1 %v22860_v61  ;;  %v22921_v61 = vld [vmem:[#allocation12 + $0x154] ss:$40 sps:$4 sm:$0xff]  }
 0x67c   :  { %15947 = vmatpush1.bf16.msra.mxu0 %v22849_v49  ;;  %v22910_v49 = vld [vmem:[#allocation12 + $0x1548] ss:$40 sps:$4 sm:$0xff]  }
 0x67d   :  { %15948 = vmatprep.subr.bf16.mxu0 %v22857_v59  ;;  %15767 = vmatpush1.bf16.msra.mxu1 %v22858_v31  ;;  %v22918_v59 = vld [vmem:[#allocation12 + $0x159c] ss:$40 sps:$4 sm:$0xff]   ;;  %v22919_v31 = vld [vmem:[#allocation12 + $0x150] ss:$40 sps:$4 sm:$0xff]  }
 0x67e   :  { %15768 = vmatprep.subr.bf16.mxu1 %v22866_v30  ;;  %v22927_v30 = vld [vmem:[#allocation12 + $0x1a4] ss:$40 sps:$4 sm:$0xff]  }
 0x680   :  { %15949 = vmatpush1.bf16.msra.mxu0 %v22855_v32  ;;  %v22916_v32 = vld [vmem:[#allocation12 + $0x1598] ss:$40 sps:$4 sm:$0xff]  }
 0x681   :  { %15950 = vmatprep.subr.bf16.mxu0 %v22863_v38  ;;  %15769 = vmatpush1.bf16.msra.mxu1 %v22864_v45  ;;  %v22924_v38 = vld [vmem:[#allocation12 + $0x15ec] ss:$40 sps:$4 sm:$0xff]   ;;  %v22925_v45 = vld [vmem:[#allocation12 + $0x1a0] ss:$40 sps:$4 sm:$0xff]  }
 0x682   :  { %15770 = vmatprep.subr.bf16.mxu1 %v22872_v46  ;;  %v22933_v46 = vld [vmem:[#allocation12 + $0x1f4] ss:$40 sps:$4 sm:$0xff]  }
 0x684   :  { %15951 = vmatpush1.bf16.msra.mxu0 %v22861_v24  ;;  %v22922_v24 = vld [vmem:[#allocation12 + $0x15e8] ss:$40 sps:$4 sm:$0xff]  }
 0x685   :  { %15952 = vmatprep.subr.bf16.mxu0 %v22869_v53  ;;  %15771 = vmatpush1.bf16.msra.mxu1 %v22870_v57  ;;  %v22930_v53 = vld [vmem:[#allocation12 + $0x163c] ss:$40 sps:$4 sm:$0xff]   ;;  %v22931_v57 = vld [vmem:[#allocation12 + $0x1f0] ss:$40 sps:$4 sm:$0xff]  }
 0x686   :  { %15772 = vmatprep.subr.bf16.mxu1 %v22878_v50  ;;  %v22939_v50 = vld [vmem:[#allocation12 + $0x244] ss:$40 sps:$4 sm:$0xff]  }
 0x688   :  { %15953 = vmatpush1.bf16.msra.mxu0 %v22867_v60  ;;  %v22928_v60 = vld [vmem:[#allocation12 + $0x1638] ss:$40 sps:$4 sm:$0xff]  }
 0x689   :  { %15954 = vmatprep.subr.bf16.mxu0 %v22875_v29  ;;  %15773 = vmatpush1.bf16.msra.mxu1 %v22876_v44  ;;  %v22936_v29 = vld [vmem:[#allocation12 + $0x168c] ss:$40 sps:$4 sm:$0xff]   ;;  %v22937_v44 = vld [vmem:[#allocation12 + $0x240] ss:$40 sps:$4 sm:$0xff]  }
 0x68a   :  { %15774 = vmatprep.subr.bf16.mxu1 %v22884_v47  ;;  %v22945_v47 = vld [vmem:[#allocation12 + $0x294] ss:$40 sps:$4 sm:$0xff]  }
 0x68c   :  { %15955 = vmatpush1.bf16.msra.mxu0 %v22873_v51  ;;  %v22934_v51 = vld [vmem:[#allocation12 + $0x1688] ss:$40 sps:$4 sm:$0xff]  }
 0x68d   :  { %15956 = vmatprep.subr.bf16.mxu0 %v22881_v54  ;;  %15775 = vmatpush1.bf16.msra.mxu1 %v22882_v9  ;;  %v22942_v54 = vld [vmem:[#allocation12 + $0x16dc] ss:$40 sps:$4 sm:$0xff]   ;;  %v22943_v9 = vld [vmem:[#allocation12 + $0x290] ss:$40 sps:$4 sm:$0xff]  }
 0x68e   :  { %15776 = vmatprep.subr.bf16.mxu1 %v22890_v48  ;;  %v22951_v48 = vld [vmem:[#allocation12 + $0x2e4] ss:$40 sps:$4 sm:$0xff]  }
 0x690   :  { %15957 = vmatpush1.bf16.msra.mxu0 %v22879_v58  ;;  %v22940_v58 = vld [vmem:[#allocation12 + $0x16d8] ss:$40 sps:$4 sm:$0xff]  }
 0x691   :  { %15967 = vmatprep.subr.bf16.mxu0 %v22887_v63  ;;  %15777 = vmatpush1.bf16.msra.mxu1 %v22888_v1  ;;  %v22948_v63 = vld [vmem:[#allocation12 + $0x172c] ss:$40 sps:$4 sm:$0xff]   ;;  %v22949_v1 = vld [vmem:[#allocation12 + $0x2e0] ss:$40 sps:$4 sm:$0xff]  }
 0x692   :  { %16131 = vmatprep.subr.bf16.mxu1 %v22897_v5  ;;  %v22957_v5 = vld [vmem:[#allocation12 + $0x334] ss:$40 sps:$4 sm:$0xff]  }
 0x693   :  { %15959 = vmatmul.mubr.bf16.vlgmr.msra.gmra.mrb[32].mxu0 %v24826_v39 }
 0x694   :  { %15968 = vmatpush1.bf16.msra.mxu0 %v22885_v6  ;;  %15999 = vmatprep.mubr.bf16.mxu0 %v24831_v40  ;;  %v22946_v6 = vld [vmem:[#allocation12 + $0x1728] ss:$40 sps:$4 sm:$0xff]  }
 0x695   :  { %15969 = vmatprep.subr.bf16.mxu0 %v22893_v41  ;;  %15795 = vmatmul.mubr.bf16.vlgmr.msra.gmra.mrb[32].mxu1 %v24869_v8  ;;  %v22954_v41 = vld [vmem:[#allocation12 + $0x177c] ss:$40 sps:$4 sm:$0xff]  }
 0x696   :  { %16132 = vmatpush1.bf16.msra.mxu1 %v22895_v33  ;;  %16163 = vmatprep.mubr.bf16.mxu1 %v24749_v56  ;;  %v22955_v33 = vld [vmem:[#allocation12 + $0x330] ss:$40 sps:$4 sm:$0xff]  }
 0x697   :  { %16133 = vmatprep.subr.bf16.mxu1 %v22903_v15  ;;  %v22963_v15 = vld [vmem:[#allocation12 + $0x384] ss:$40 sps:$4 sm:$0xff]  }
 0x698   :  { %15970 = vmatpush1.bf16.msra.mxu0 %v22891_v17  ;;  %v22952_v17 = vld [vmem:[#allocation12 + $0x1778] ss:$40 sps:$4 sm:$0xff]  }
 0x699   :  { %15971 = vmatprep.subr.bf16.mxu0 %v22900_v28  ;;  %v22960_v28 = vld [vmem:[#allocation12 + $0x17cc] ss:$40 sps:$4 sm:$0xff]  }
 0x69a   :  { %16134 = vmatpush1.bf16.msra.mxu1 %v22901_v35  ;;  %v22961_v35 = vld [vmem:[#allocation12 + $0x380] ss:$40 sps:$4 sm:$0xff]  }
 0x69b   :  { %16135 = vmatprep.subr.bf16.mxu1 %v22909_v18  ;;  %v22969_v18 = vld [vmem:[#allocation12 + $0x3d4] ss:$40 sps:$4 sm:$0xff]  }
 0x69c   :  { %15972 = vmatpush1.bf16.msra.mxu0 %v22898_v19  ;;  %v22958_v19 = vld [vmem:[#allocation12 + $0x17c8] ss:$40 sps:$4 sm:$0xff]  }
 0x69d   :  { %15973 = vmatprep.subr.bf16.mxu0 %v22906_v14  ;;  %v22966_v14 = vld [vmem:[#allocation12 + $0x181c] ss:$40 sps:$4 sm:$0xff]  }
 0x69e   :  { %16136 = vmatpush1.bf16.msra.mxu1 %v22907_v21  ;;  %v22967_v21 = vld [vmem:[#allocation12 + $0x3d0] ss:$40 sps:$4 sm:$0xff]  }
 0x69f   :  { %16137 = vmatprep.subr.bf16.mxu1 %v22915_v26  ;;  %v22975_v26 = vld [vmem:[#allocation12 + $0x424] ss:$40 sps:$4 sm:$0xff]  }
 0x6a0   :  { %15974 = vmatpush1.bf16.msra.mxu0 %v22904_v27  ;;  %v22964_v27 = vld [vmem:[#allocation12 + $0x1818] ss:$40 sps:$4 sm:$0xff]  }
 0x6a1   :  { %15975 = vmatprep.subr.bf16.mxu0 %v22912_v25  ;;  %v22972_v25 = vld [vmem:[#allocation12 + $0x186c] ss:$40 sps:$4 sm:$0xff]  }
 0x6a2   :  { %16138 = vmatpush1.bf16.msra.mxu1 %v22913_v52  ;;  %v22973_v52 = vld [vmem:[#allocation12 + $0x420] ss:$40 sps:$4 sm:$0xff]  }
 0x6a3   :  { %16139 = vmatprep.subr.bf16.mxu1 %v22921_v61  ;;  %v22981_v61 = vld [vmem:[#allocation12 + $0x474] ss:$40 sps:$4 sm:$0xff]  }
 0x6a4   :  { %15976 = vmatpush1.bf16.msra.mxu0 %v22910_v49  ;;  %v22970_v49 = vld [vmem:[#allocation12 + $0x1868] ss:$40 sps:$4 sm:$0xff]  }
 0x6a5   :  { %15977 = vmatprep.subr.bf16.mxu0 %v22918_v59  ;;  %v22978_v59 = vld [vmem:[#allocation12 + $0x18bc] ss:$40 sps:$4 sm:$0xff]  }
 0x6a6   :  { %16140 = vmatpush1.bf16.msra.mxu1 %v22919_v31  ;;  %v22979_v31 = vld [vmem:[#allocation12 + $0x470] ss:$40 sps:$4 sm:$0xff]  }
 0x6a7   :  { %16141 = vmatprep.subr.bf16.mxu1 %v22927_v30  ;;  %v22987_v30 = vld [vmem:[#allocation12 + $0x4c4] ss:$40 sps:$4 sm:$0xff]  }
 0x6a8   :  { %15978 = vmatpush1.bf16.msra.mxu0 %v22916_v32  ;;  %v22976_v32 = vld [vmem:[#allocation12 + $0x18b8] ss:$40 sps:$4 sm:$0xff]  }
 0x6a9   :  { %15979 = vmatprep.subr.bf16.mxu0 %v22924_v38  ;;  %v22984_v38 = vld [vmem:[#allocation12 + $0x190c] ss:$40 sps:$4 sm:$0xff]  }
 0x6aa   :  { %16142 = vmatpush1.bf16.msra.mxu1 %v22925_v45  ;;  %v22985_v45 = vld [vmem:[#allocation12 + $0x4c0] ss:$40 sps:$4 sm:$0xff]  }
 0x6ab   :  { %16143 = vmatprep.subr.bf16.mxu1 %v22933_v46  ;;  %v22993_v46 = vld [vmem:[#allocation12 + $0x514] ss:$40 sps:$4 sm:$0xff]  }
 0x6ac   :  { %15980 = vmatpush1.bf16.msra.mxu0 %v22922_v24  ;;  %v22982_v24 = vld [vmem:[#allocation12 + $0x1908] ss:$40 sps:$4 sm:$0xff]  }
 0x6ad   :  { %15981 = vmatprep.subr.bf16.mxu0 %v22930_v53  ;;  %v22990_v53 = vld [vmem:[#allocation12 + $0x195c] ss:$40 sps:$4 sm:$0xff]  }
 0x6ae   :  { %16144 = vmatpush1.bf16.msra.mxu1 %v22931_v57  ;;  %v22991_v57 = vld [vmem:[#allocation12 + $0x510] ss:$40 sps:$4 sm:$0xff]  }
 0x6af   :  { %16145 = vmatprep.subr.bf16.mxu1 %v22939_v50  ;;  %v22999_v50 = vld [vmem:[#allocation12 + $0x564] ss:$40 sps:$4 sm:$0xff]  }
 0x6b0   :  { %15982 = vmatpush1.bf16.msra.mxu0 %v22928_v60  ;;  %v22988_v60 = vld [vmem:[#allocation12 + $0x1958] ss:$40 sps:$4 sm:$0xff]  }
 0x6b1   :  { %15983 = vmatprep.subr.bf16.mxu0 %v22936_v29  ;;  %v22996_v29 = vld [vmem:[#allocation12 + $0x19ac] ss:$40 sps:$4 sm:$0xff]  }
 0x6b2   :  { %16146 = vmatpush1.bf16.msra.mxu1 %v22937_v44  ;;  %v22997_v44 = vld [vmem:[#allocation12 + $0x560] ss:$40 sps:$4 sm:$0xff]  }
 0x6b3   :  { %16147 = vmatprep.subr.bf16.mxu1 %v22945_v47  ;;  %v23005_v47 = vld [vmem:[#allocation12 + $0x5b4] ss:$40 sps:$4 sm:$0xff]  }
 0x6b4   :  { %15984 = vmatpush1.bf16.msra.mxu0 %v22934_v51  ;;  %v22994_v51 = vld [vmem:[#allocation12 + $0x19a8] ss:$40 sps:$4 sm:$0xff]  }
 0x6b5   :  { %15985 = vmatprep.subr.bf16.mxu0 %v22942_v54  ;;  %v23002_v54 = vld [vmem:[#allocation12 + $0x19fc] ss:$40 sps:$4 sm:$0xff]  }
 0x6b6   :  { %16148 = vmatpush1.bf16.msra.mxu1 %v22943_v9  ;;  %v23003_v9 = vld [vmem:[#allocation12 + $0x5b0] ss:$40 sps:$4 sm:$0xff]  }
 0x6b7   :  { %16149 = vmatprep.subr.bf16.mxu1 %v22951_v48  ;;  %v23011_v48 = vld [vmem:[#allocation12 + $0x604] ss:$40 sps:$4 sm:$0xff]  }
 0x6b8   :  { %15986 = vmatpush1.bf16.msra.mxu0 %v22940_v58  ;;  %v23000_v58 = vld [vmem:[#allocation12 + $0x19f8] ss:$40 sps:$4 sm:$0xff]  }
 0x6b9   :  { %15987 = vmatprep.subr.bf16.mxu0 %v22948_v63  ;;  %v23008_v63 = vld [vmem:[#allocation12 + $0x1a4c] ss:$40 sps:$4 sm:$0xff]  }
 0x6ba   :  { %16150 = vmatpush1.bf16.msra.mxu1 %v22949_v1  ;;  %v23009_v1 = vld [vmem:[#allocation12 + $0x600] ss:$40 sps:$4 sm:$0xff]  }
 0x6bb   :  { %16151 = vmatprep.subr.bf16.mxu1 %v22957_v5  ;;  %v23017_v5 = vld [vmem:[#allocation12 + $0x654] ss:$40 sps:$4 sm:$0xff]  }
 0x6bc   :  { %15988 = vmatpush1.bf16.msra.mxu0 %v22946_v6  ;;  %v23006_v6 = vld [vmem:[#allocation12 + $0x1a48] ss:$40 sps:$4 sm:$0xff]  }
 0x6bd   :  { %15989 = vmatprep.subr.bf16.mxu0 %v22954_v41  ;;  %v23014_v41 = vld [vmem:[#allocation12 + $0x1a9c] ss:$40 sps:$4 sm:$0xff]  }
 0x6be   :  { %16152 = vmatpush1.bf16.msra.mxu1 %v22955_v33  ;;  %v23015_v33 = vld [vmem:[#allocation12 + $0x650] ss:$40 sps:$4 sm:$0xff]  }
 0x6bf   :  { %16153 = vmatprep.subr.bf16.mxu1 %v22963_v15  ;;  %v23023_v15 = vld [vmem:[#allocation12 + $0x6a4] ss:$40 sps:$4 sm:$0xff]  }
 0x6c0   :  { %15990 = vmatpush1.bf16.msra.mxu0 %v22952_v17  ;;  %v23012_v17 = vld [vmem:[#allocation12 + $0x1a98] ss:$40 sps:$4 sm:$0xff]  }
 0x6c1   :  { %15991 = vmatprep.subr.bf16.mxu0 %v22960_v28  ;;  %v23020_v28 = vld [vmem:[#allocation12 + $0x1aec] ss:$40 sps:$4 sm:$0xff]  }
 0x6c2   :  { %16154 = vmatpush1.bf16.msra.mxu1 %v22961_v35  ;;  %v23021_v35 = vld [vmem:[#allocation12 + $0x6a0] ss:$40 sps:$4 sm:$0xff]  }
 0x6c3   :  { %16155 = vmatprep.subr.bf16.mxu1 %v22969_v18  ;;  %v23029_v18 = vld [vmem:[#allocation12 + $0x6f4] ss:$40 sps:$4 sm:$0xff]  }
 0x6c4   :  { %15992 = vmatpush1.bf16.msra.mxu0 %v22958_v19  ;;  %v23018_v19 = vld [vmem:[#allocation12 + $0x1ae8] ss:$40 sps:$4 sm:$0xff]  }
 0x6c5   :  { %15993 = vmatprep.subr.bf16.mxu0 %v22966_v14  ;;  %v23026_v14 = vld [vmem:[#allocation12 + $0x1b3c] ss:$40 sps:$4 sm:$0xff]  }
 0x6c6   :  { %16156 = vmatpush1.bf16.msra.mxu1 %v22967_v21  ;;  %v23027_v21 = vld [vmem:[#allocation12 + $0x6f0] ss:$40 sps:$4 sm:$0xff]  }
 0x6c7   :  { %16157 = vmatprep.subr.bf16.mxu1 %v22975_v26  ;;  %v23035_v26 = vld [vmem:[#allocation12 + $0x744] ss:$40 sps:$4 sm:$0xff]  }
 0x6c8   :  { %15994 = vmatpush1.bf16.msra.mxu0 %v22964_v27  ;;  %v23024_v27 = vld [vmem:[#allocation12 + $0x1b38] ss:$40 sps:$4 sm:$0xff]  }
 0x6c9   :  { %15995 = vmatprep.subr.bf16.mxu0 %v22972_v25  ;;  %v23032_v25 = vld [vmem:[#allocation12 + $0x1b8c] ss:$40 sps:$4 sm:$0xff]  }
 0x6ca   :  { %16158 = vmatpush1.bf16.msra.mxu1 %v22973_v52  ;;  %v23033_v52 = vld [vmem:[#allocation12 + $0x740] ss:$40 sps:$4 sm:$0xff]  }
 0x6cb   :  { %16159 = vmatprep.subr.bf16.mxu1 %v22981_v61  ;;  %v23041_v61 = vld [vmem:[#allocation12 + $0x794] ss:$40 sps:$4 sm:$0xff]  }
 0x6cc   :  { %15996 = vmatpush1.bf16.msra.mxu0 %v22970_v49  ;;  %v23030_v49 = vld [vmem:[#allocation12 + $0x1b88] ss:$40 sps:$4 sm:$0xff]  }
 0x6cd   :  { %15997 = vmatprep.subr.bf16.mxu0 %v22978_v59  ;;  %v23038_v59 = vld [vmem:[#allocation12 + $0x1bdc] ss:$40 sps:$4 sm:$0xff]  }
 0x6ce   :  { %16160 = vmatpush1.bf16.msra.mxu1 %v22979_v31  ;;  %v23039_v31 = vld [vmem:[#allocation12 + $0x790] ss:$40 sps:$4 sm:$0xff]  }
 0x6cf   :  { %16161 = vmatprep.subr.bf16.mxu1 %v22987_v30  ;;  %v23047_v30 = vld [vmem:[#allocation12 + $0x7e4] ss:$40 sps:$4 sm:$0xff]  }
 0x6d0   :  { %15998 = vmatpush1.bf16.msra.mxu0 %v22976_v32  ;;  %v23036_v32 = vld [vmem:[#allocation12 + $0x1bd8] ss:$40 sps:$4 sm:$0xff]  }
 0x6d1   :  { %16008 = vmatprep.subr.bf16.mxu0 %v22984_v38  ;;  %v23044_v38 = vld [vmem:[#allocation12 + $0x1c2c] ss:$40 sps:$4 sm:$0xff]  }
 0x6d2   :  { %16162 = vmatpush1.bf16.msra.mxu1 %v22985_v45  ;;  %v23045_v45 = vld [vmem:[#allocation12 + $0x7e0] ss:$40 sps:$4 sm:$0xff]  }
 0x6d3   :  { %16000 = vmatmul.mubr.bf16.vlgmr.msra.gmra.mrb[32].mxu0 %v24842_v7  ;;  %16172 = vmatprep.subr.bf16.mxu1 %v22993_v46  ;;  %v23053_v46 = vld [vmem:[#allocation12 + $0x834] ss:$40 sps:$4 sm:$0xff]  }
 0x6d4   :  { %16009 = vmatpush1.bf16.msra.mxu0 %v22982_v24  ;;  %16040 = vmatprep.mubr.bf16.mxu0 %v24846_v43  ;;  %v23042_v24 = vld [vmem:[#allocation12 + $0x1c28] ss:$40 sps:$4 sm:$0xff]  }
 0x6d5   :  { %16010 = vmatprep.subr.bf16.mxu0 %v22990_v53  ;;  %16164 = vmatmul.mubr.bf16.vlgmr.msra.gmra.mrb[36].mxu1 %v24759_v20  ;;  %v23050_v53 = vld [vmem:[#allocation12 + $0x1c7c] ss:$40 sps:$4 sm:$0xff]  }
 0x6d6   :  { %16173 = vmatpush1.bf16.msra.mxu1 %v22991_v57  ;;  %16204 = vmatprep.mubr.bf16.mxu1 %v24763_v42  ;;  %v23051_v57 = vld [vmem:[#allocation12 + $0x830] ss:$40 sps:$4 sm:$0xff]  }
 0x6d7   :  { %16174 = vmatprep.subr.bf16.mxu1 %v22999_v50  ;;  %v23059_v50 = vld [vmem:[#allocation12 + $0x884] ss:$40 sps:$4 sm:$0xff]  }
 0x6d8   :  { %16011 = vmatpush1.bf16.msra.mxu0 %v22988_v60  ;;  %v23048_v60 = vld [vmem:[#allocation12 + $0x1c78] ss:$40 sps:$4 sm:$0xff]  }
 0x6d9   :  { %16012 = vmatprep.subr.bf16.mxu0 %v22996_v29  ;;  %v23056_v29 = vld [vmem:[#allocation12 + $0x1ccc] ss:$40 sps:$4 sm:$0xff]  }
 0x6da   :  { %16175 = vmatpush1.bf16.msra.mxu1 %v22997_v44  ;;  %v23057_v44 = vld [vmem:[#allocation12 + $0x880] ss:$40 sps:$4 sm:$0xff]  }
 0x6db   :  { %16176 = vmatprep.subr.bf16.mxu1 %v23005_v47  ;;  %v23065_v47 = vld [vmem:[#allocation12 + $0x8d4] ss:$40 sps:$4 sm:$0xff]  }
 0x6dc   :  { %16013 = vmatpush1.bf16.msra.mxu0 %v22994_v51  ;;  %v23054_v51 = vld [vmem:[#allocation12 + $0x1cc8] ss:$40 sps:$4 sm:$0xff]  }
 0x6dd   :  { %16014 = vmatprep.subr.bf16.mxu0 %v23002_v54  ;;  %v23062_v54 = vld [vmem:[#allocation12 + $0x1d1c] ss:$40 sps:$4 sm:$0xff]  }
 0x6de   :  { %16177 = vmatpush1.bf16.msra.mxu1 %v23003_v9  ;;  %v23063_v9 = vld [vmem:[#allocation12 + $0x8d0] ss:$40 sps:$4 sm:$0xff]  }
 0x6df   :  { %16178 = vmatprep.subr.bf16.mxu1 %v23011_v48  ;;  %v23071_v48 = vld [vmem:[#allocation12 + $0x924] ss:$40 sps:$4 sm:$0xff]  }
 0x6e0   :  { %16015 = vmatpush1.bf16.msra.mxu0 %v23000_v58  ;;  %v23060_v58 = vld [vmem:[#allocation12 + $0x1d18] ss:$40 sps:$4 sm:$0xff]  }
 0x6e1   :  { %16016 = vmatprep.subr.bf16.mxu0 %v23008_v63  ;;  %v23068_v63 = vld [vmem:[#allocation12 + $0x1d6c] ss:$40 sps:$4 sm:$0xff]  }
 0x6e2   :  { %16179 = vmatpush1.bf16.msra.mxu1 %v23009_v1  ;;  %v23069_v1 = vld [vmem:[#allocation12 + $0x920] ss:$40 sps:$4 sm:$0xff]  }
 0x6e3   :  { %16180 = vmatprep.subr.bf16.mxu1 %v23017_v5  ;;  %v23077_v5 = vld [vmem:[#allocation12 + $0x974] ss:$40 sps:$4 sm:$0xff]  }
 0x6e4   :  { %16017 = vmatpush1.bf16.msra.mxu0 %v23006_v6  ;;  %v23066_v6 = vld [vmem:[#allocation12 + $0x1d68] ss:$40 sps:$4 sm:$0xff]  }
 0x6e5   :  { %16018 = vmatprep.subr.bf16.mxu0 %v23014_v41  ;;  %v23074_v41 = vld [vmem:[#allocation12 + $0x1dbc] ss:$40 sps:$4 sm:$0xff]  }
 0x6e6   :  { %16181 = vmatpush1.bf16.msra.mxu1 %v23015_v33  ;;  %v23075_v33 = vld [vmem:[#allocation12 + $0x970] ss:$40 sps:$4 sm:$0xff]  }
 0x6e7   :  { %16182 = vmatprep.subr.bf16.mxu1 %v23023_v15  ;;  %v23083_v15 = vld [vmem:[#allocation12 + $0x9c4] ss:$40 sps:$4 sm:$0xff]  }
 0x6e8   :  { %16019 = vmatpush1.bf16.msra.mxu0 %v23012_v17  ;;  %v23072_v17 = vld [vmem:[#allocation12 + $0x1db8] ss:$40 sps:$4 sm:$0xff]  }
 0x6e9   :  { %16020 = vmatprep.subr.bf16.mxu0 %v23020_v28  ;;  %v23080_v28 = vld [vmem:[#allocation12 + $0x1e0c] ss:$40 sps:$4 sm:$0xff]  }
 0x6ea   :  { %16183 = vmatpush1.bf16.msra.mxu1 %v23021_v35  ;;  %v23081_v35 = vld [vmem:[#allocation12 + $0x9c0] ss:$40 sps:$4 sm:$0xff]  }
 0x6eb   :  { %16184 = vmatprep.subr.bf16.mxu1 %v23029_v18  ;;  %v23089_v18 = vld [vmem:[#allocation12 + $0xa14] ss:$40 sps:$4 sm:$0xff]  }
 0x6ec   :  { %16021 = vmatpush1.bf16.msra.mxu0 %v23018_v19  ;;  %v23078_v19 = vld [vmem:[#allocation12 + $0x1e08] ss:$40 sps:$4 sm:$0xff]  }
 0x6ed   :  { %16022 = vmatprep.subr.bf16.mxu0 %v23026_v14  ;;  %v23086_v14 = vld [vmem:[#allocation12 + $0x1e5c] ss:$40 sps:$4 sm:$0xff]  }
 0x6ee   :  { %16185 = vmatpush1.bf16.msra.mxu1 %v23027_v21  ;;  %v23087_v21 = vld [vmem:[#allocation12 + $0xa10] ss:$40 sps:$4 sm:$0xff]  }
 0x6ef   :  { %16186 = vmatprep.subr.bf16.mxu1 %v23035_v26  ;;  %v23095_v26 = vld [vmem:[#allocation12 + $0xa64] ss:$40 sps:$4 sm:$0xff]  }
 0x6f0   :  { %16023 = vmatpush1.bf16.msra.mxu0 %v23024_v27  ;;  %v23084_v27 = vld [vmem:[#allocation12 + $0x1e58] ss:$40 sps:$4 sm:$0xff]  }
 0x6f1   :  { %16024 = vmatprep.subr.bf16.mxu0 %v23032_v25  ;;  %v23092_v25 = vld [vmem:[#allocation12 + $0x1eac] ss:$40 sps:$4 sm:$0xff]  }
 0x6f2   :  { %16187 = vmatpush1.bf16.msra.mxu1 %v23033_v52  ;;  %v23093_v52 = vld [vmem:[#allocation12 + $0xa60] ss:$40 sps:$4 sm:$0xff]  }
 0x6f3   :  { %16188 = vmatprep.subr.bf16.mxu1 %v23041_v61  ;;  %v23101_v61 = vld [vmem:[#allocation12 + $0xab4] ss:$40 sps:$4 sm:$0xff]  }
 0x6f4   :  { %16025 = vmatpush1.bf16.msra.mxu0 %v23030_v49  ;;  %v23090_v49 = vld [vmem:[#allocation12 + $0x1ea8] ss:$40 sps:$4 sm:$0xff]  }
 0x6f5   :  { %16026 = vmatprep.subr.bf16.mxu0 %v23038_v59  ;;  %v23098_v59 = vld [vmem:[#allocation12 + $0x1efc] ss:$40 sps:$4 sm:$0xff]  }
 0x6f6   :  { %16189 = vmatpush1.bf16.msra.mxu1 %v23039_v31  ;;  %v23099_v31 = vld [vmem:[#allocation12 + $0xab0] ss:$40 sps:$4 sm:$0xff]  }
 0x6f7   :  { %16190 = vmatprep.subr.bf16.mxu1 %v23047_v30  ;;  %v23107_v30 = vld [vmem:[#allocation12 + $0xb04] ss:$40 sps:$4 sm:$0xff]  }
 0x6f8   :  { %16027 = vmatpush1.bf16.msra.mxu0 %v23036_v32  ;;  %v23096_v32 = vld [vmem:[#allocation12 + $0x1ef8] ss:$40 sps:$4 sm:$0xff]  }
 0x6f9   :  { %16028 = vmatprep.subr.bf16.mxu0 %v23044_v38  ;;  %v23104_v38 = vld [vmem:[#allocation12 + $0x1f4c] ss:$40 sps:$4 sm:$0xff]  }
 0x6fa   :  { %16191 = vmatpush1.bf16.msra.mxu1 %v23045_v45  ;;  %v23105_v45 = vld [vmem:[#allocation12 + $0xb00] ss:$40 sps:$4 sm:$0xff]  }
 0x6fb   :  { %16192 = vmatprep.subr.bf16.mxu1 %v23053_v46  ;;  %v23113_v46 = vld [vmem:[#allocation12 + $0xb54] ss:$40 sps:$4 sm:$0xff]  }
 0x6fc   :  { %16029 = vmatpush1.bf16.msra.mxu0 %v23042_v24  ;;  %v23102_v24 = vld [vmem:[#allocation12 + $0x1f48] ss:$40 sps:$4 sm:$0xff]  }
 0x6fd   :  { %16030 = vmatprep.subr.bf16.mxu0 %v23050_v53  ;;  %v23110_v53 = vld [vmem:[#allocation12 + $0x1f9c] ss:$40 sps:$4 sm:$0xff]  }
 0x6fe   :  { %16193 = vmatpush1.bf16.msra.mxu1 %v23051_v57  ;;  %v23111_v57 = vld [vmem:[#allocation12 + $0xb50] ss:$40 sps:$4 sm:$0xff]  }
 0x6ff   :  { %16194 = vmatprep.subr.bf16.mxu1 %v23059_v50  ;;  %v23119_v50 = vld [vmem:[#allocation12 + $0xba4] ss:$40 sps:$4 sm:$0xff]  }
 0x700   :  { %16031 = vmatpush1.bf16.msra.mxu0 %v23048_v60  ;;  %v23108_v60 = vld [vmem:[#allocation12 + $0x1f98] ss:$40 sps:$4 sm:$0xff]  }
 0x701   :  { %16032 = vmatprep.subr.bf16.mxu0 %v23056_v29  ;;  %v23116_v29 = vld [vmem:[#allocation12 + $0x1fec] ss:$40 sps:$4 sm:$0xff]  }
 0x702   :  { %16195 = vmatpush1.bf16.msra.mxu1 %v23057_v44  ;;  %v23117_v44 = vld [vmem:[#allocation12 + $0xba0] ss:$40 sps:$4 sm:$0xff]  }
 0x703   :  { %16196 = vmatprep.subr.bf16.mxu1 %v23065_v47  ;;  %v23125_v47 = vld [vmem:[#allocation12 + $0xbf4] ss:$40 sps:$4 sm:$0xff]  }
 0x704   :  { %16033 = vmatpush1.bf16.msra.mxu0 %v23054_v51  ;;  %v23114_v51 = vld [vmem:[#allocation12 + $0x1fe8] ss:$40 sps:$4 sm:$0xff]  }
 0x705   :  { %16034 = vmatprep.subr.bf16.mxu0 %v23062_v54  ;;  %v23122_v54 = vld [vmem:[#allocation12 + $0x203c] ss:$40 sps:$4 sm:$0xff]  }
 0x706   :  { %16197 = vmatpush1.bf16.msra.mxu1 %v23063_v9  ;;  %v23123_v9 = vld [vmem:[#allocation12 + $0xbf0] ss:$40 sps:$4 sm:$0xff]  }
 0x707   :  { %16198 = vmatprep.subr.bf16.mxu1 %v23071_v48  ;;  %v23131_v48 = vld [vmem:[#allocation12 + $0xc44] ss:$40 sps:$4 sm:$0xff]  }
 0x708   :  { %16035 = vmatpush1.bf16.msra.mxu0 %v23060_v58  ;;  %v23120_v58 = vld [vmem:[#allocation12 + $0x2038] ss:$40 sps:$4 sm:$0xff]  }
 0x709   :  { %16036 = vmatprep.subr.bf16.mxu0 %v23068_v63  ;;  %v23128_v63 = vld [vmem:[#allocation12 + $0x208c] ss:$40 sps:$4 sm:$0xff]  }
 0x70a   :  { %16199 = vmatpush1.bf16.msra.mxu1 %v23069_v1  ;;  %v23129_v1 = vld [vmem:[#allocation12 + $0xc40] ss:$40 sps:$4 sm:$0xff]  }
 0x70b   :  { %16200 = vmatprep.subr.bf16.mxu1 %v23077_v5  ;;  %v23137_v5 = vld [vmem:[#allocation12 + $0xc94] ss:$40 sps:$4 sm:$0xff]  }
 0x70c   :  { %16037 = vmatpush1.bf16.msra.mxu0 %v23066_v6  ;;  %v23126_v6 = vld [vmem:[#allocation12 + $0x2088] ss:$40 sps:$4 sm:$0xff]  }
 0x70d   :  { %16038 = vmatprep.subr.bf16.mxu0 %v23074_v41  ;;  %v23134_v41 = vld [vmem:[#allocation12 + $0x20dc] ss:$40 sps:$4 sm:$0xff]  }
 0x70e   :  { %16201 = vmatpush1.bf16.msra.mxu1 %v23075_v33  ;;  %v23135_v33 = vld [vmem:[#allocation12 + $0xc90] ss:$40 sps:$4 sm:$0xff]  }
 0x70f   :  { %16202 = vmatprep.subr.bf16.mxu1 %v23083_v15  ;;  %v23143_v15 = vld [vmem:[#allocation12 + $0xce4] ss:$40 sps:$4 sm:$0xff]  }
 0x710   :  { %16039 = vmatpush1.bf16.msra.mxu0 %v23072_v17  ;;  %v23132_v17 = vld [vmem:[#allocation12 + $0x20d8] ss:$40 sps:$4 sm:$0xff]  }
 0x711   :  { %16049 = vmatprep.subr.bf16.mxu0 %v23080_v28  ;;  %v23140_v28 = vld [vmem:[#allocation12 + $0x212c] ss:$40 sps:$4 sm:$0xff]  }
 0x712   :  { %16203 = vmatpush1.bf16.msra.mxu1 %v23081_v35  ;;  %v23141_v35 = vld [vmem:[#allocation12 + $0xce0] ss:$40 sps:$4 sm:$0xff]  }
 0x713   :  { %16041 = vmatmul.mubr.bf16.vlgmr.msra.gmra.mrb[32].mxu0 %v24854_v11  ;;  %16213 = vmatprep.subr.bf16.mxu1 %v23089_v18  ;;  %v23149_v18 = vld [vmem:[#allocation12 + $0xd34] ss:$40 sps:$4 sm:$0xff]  }
 0x714   :  { %16050 = vmatpush1.bf16.msra.mxu0 %v23078_v19  ;;  %16081 = vmatprep.mubr.bf16.mxu0 %v24861_v16  ;;  %v23138_v19 = vld [vmem:[#allocation12 + $0x2128] ss:$40 sps:$4 sm:$0xff]  }
 0x715   :  { %16051 = vmatprep.subr.bf16.mxu0 %v23086_v14  ;;  %16205 = vmatmul.mubr.bf16.vlgmr.msra.gmra.mrb[36].mxu1 %v24781_v2  ;;  %v23146_v14 = vld [vmem:[#allocation12 + $0x217c] ss:$40 sps:$4 sm:$0xff]  }
 0x716   :  { %16214 = vmatpush1.bf16.msra.mxu1 %v23087_v21  ;;  %16245 = vmatprep.mubr.bf16.mxu1 %v24785_v3  ;;  %v23147_v21 = vld [vmem:[#allocation12 + $0xd30] ss:$40 sps:$4 sm:$0xff]  }
 0x717   :  { %16215 = vmatprep.subr.bf16.mxu1 %v23095_v26  ;;  %v23155_v26 = vld [vmem:[#allocation12 + $0xd84] ss:$40 sps:$4 sm:$0xff]  }
 0x718   :  { %16052 = vmatpush1.bf16.msra.mxu0 %v23084_v27  ;;  %v23144_v27 = vld [vmem:[#allocation12 + $0x2178] ss:$40 sps:$4 sm:$0xff]  }
 0x719   :  { %16053 = vmatprep.subr.bf16.mxu0 %v23092_v25  ;;  %v23152_v25 = vld [vmem:[#allocation12 + $0x21cc] ss:$40 sps:$4 sm:$0xff]  }
 0x71a   :  { %16216 = vmatpush1.bf16.msra.mxu1 %v23093_v52  ;;  %v23153_v52 = vld [vmem:[#allocation12 + $0xd80] ss:$40 sps:$4 sm:$0xff]  }
 0x71b   :  { %16217 = vmatprep.subr.bf16.mxu1 %v23101_v61  ;;  %v23161_v61 = vld [vmem:[#allocation12 + $0xdd4] ss:$40 sps:$4 sm:$0xff]  }
 0x71c   :  { %16054 = vmatpush1.bf16.msra.mxu0 %v23090_v49  ;;  %v23150_v49 = vld [vmem:[#allocation12 + $0x21c8] ss:$40 sps:$4 sm:$0xff]  }
 0x71d   :  { %16055 = vmatprep.subr.bf16.mxu0 %v23098_v59  ;;  %v23158_v59 = vld [vmem:[#allocation12 + $0x221c] ss:$40 sps:$4 sm:$0xff]  }
 0x71e   :  { %16218 = vmatpush1.bf16.msra.mxu1 %v23099_v31  ;;  %v23159_v31 = vld [vmem:[#allocation12 + $0xdd0] ss:$40 sps:$4 sm:$0xff]  }
 0x71f   :  { %16219 = vmatprep.subr.bf16.mxu1 %v23107_v30  ;;  %v23167_v30 = vld [vmem:[#allocation12 + $0xe24] ss:$40 sps:$4 sm:$0xff]  }
 0x720   :  { %16056 = vmatpush1.bf16.msra.mxu0 %v23096_v32  ;;  %v23156_v32 = vld [vmem:[#allocation12 + $0x2218] ss:$40 sps:$4 sm:$0xff]  }
 0x721   :  { %16057 = vmatprep.subr.bf16.mxu0 %v23104_v38  ;;  %v23164_v38 = vld [vmem:[#allocation12 + $0x226c] ss:$40 sps:$4 sm:$0xff]  }
 0x722   :  { %16220 = vmatpush1.bf16.msra.mxu1 %v23105_v45  ;;  %v23165_v45 = vld [vmem:[#allocation12 + $0xe20] ss:$40 sps:$4 sm:$0xff]  }
 0x723   :  { %16221 = vmatprep.subr.bf16.mxu1 %v23113_v46  ;;  %v23173_v46 = vld [vmem:[#allocation12 + $0xe74] ss:$40 sps:$4 sm:$0xff]  }
 0x724   :  { %16058 = vmatpush1.bf16.msra.mxu0 %v23102_v24  ;;  %v23162_v24 = vld [vmem:[#allocation12 + $0x2268] ss:$40 sps:$4 sm:$0xff]  }
 0x725   :  { %16059 = vmatprep.subr.bf16.mxu0 %v23110_v53  ;;  %v23170_v53 = vld [vmem:[#allocation12 + $0x22bc] ss:$40 sps:$4 sm:$0xff]  }
 0x726   :  { %16222 = vmatpush1.bf16.msra.mxu1 %v23111_v57  ;;  %v23171_v57 = vld [vmem:[#allocation12 + $0xe70] ss:$40 sps:$4 sm:$0xff]  }
 0x727   :  { %16223 = vmatprep.subr.bf16.mxu1 %v23119_v50  ;;  %v23179_v50 = vld [vmem:[#allocation12 + $0xec4] ss:$40 sps:$4 sm:$0xff]  }
 0x728   :  { %16060 = vmatpush1.bf16.msra.mxu0 %v23108_v60  ;;  %v23168_v60 = vld [vmem:[#allocation12 + $0x22b8] ss:$40 sps:$4 sm:$0xff]  }
 0x729   :  { %16061 = vmatprep.subr.bf16.mxu0 %v23116_v29  ;;  %v23176_v29 = vld [vmem:[#allocation12 + $0x230c] ss:$40 sps:$4 sm:$0xff]  }
 0x72a   :  { %16224 = vmatpush1.bf16.msra.mxu1 %v23117_v44  ;;  %v23177_v44 = vld [vmem:[#allocation12 + $0xec0] ss:$40 sps:$4 sm:$0xff]  }
 0x72b   :  { %16225 = vmatprep.subr.bf16.mxu1 %v23125_v47  ;;  %v23185_v47 = vld [vmem:[#allocation12 + $0xf14] ss:$40 sps:$4 sm:$0xff]  }
 0x72c   :  { %16062 = vmatpush1.bf16.msra.mxu0 %v23114_v51  ;;  %v23174_v51 = vld [vmem:[#allocation12 + $0x2308] ss:$40 sps:$4 sm:$0xff]  }
 0x72d   :  { %16063 = vmatprep.subr.bf16.mxu0 %v23122_v54  ;;  %v23182_v54 = vld [vmem:[#allocation12 + $0x235c] ss:$40 sps:$4 sm:$0xff]  }
 0x72e   :  { %16226 = vmatpush1.bf16.msra.mxu1 %v23123_v9  ;;  %v23183_v9 = vld [vmem:[#allocation12 + $0xf10] ss:$40 sps:$4 sm:$0xff]  }
 0x72f   :  { %16227 = vmatprep.subr.bf16.mxu1 %v23131_v48  ;;  %v23191_v48 = vld [vmem:[#allocation12 + $0xf64] ss:$40 sps:$4 sm:$0xff]  }
 0x730   :  { %16064 = vmatpush1.bf16.msra.mxu0 %v23120_v58  ;;  %v23180_v58 = vld [vmem:[#allocation12 + $0x2358] ss:$40 sps:$4 sm:$0xff]  }
 0x731   :  { %16065 = vmatprep.subr.bf16.mxu0 %v23128_v63  ;;  %v23188_v63 = vld [vmem:[#allocation12 + $0x23ac] ss:$40 sps:$4 sm:$0xff]  }
 0x732   :  { %16228 = vmatpush1.bf16.msra.mxu1 %v23129_v1  ;;  %v23189_v1 = vld [vmem:[#allocation12 + $0xf60] ss:$40 sps:$4 sm:$0xff]  }
 0x733   :  { %16229 = vmatprep.subr.bf16.mxu1 %v23137_v5  ;;  %v23197_v5 = vld [vmem:[#allocation12 + $0xfb4] ss:$40 sps:$4 sm:$0xff]  }
 0x734   :  { %16066 = vmatpush1.bf16.msra.mxu0 %v23126_v6  ;;  %v23186_v6 = vld [vmem:[#allocation12 + $0x23a8] ss:$40 sps:$4 sm:$0xff]  }
 0x735   :  { %16067 = vmatprep.subr.bf16.mxu0 %v23134_v41  ;;  %v23194_v41 = vld [vmem:[#allocation12 + $0x23fc] ss:$40 sps:$4 sm:$0xff]  }
 0x736   :  { %16230 = vmatpush1.bf16.msra.mxu1 %v23135_v33  ;;  %v23195_v33 = vld [vmem:[#allocation12 + $0xfb0] ss:$40 sps:$4 sm:$0xff]  }
 0x737   :  { %16231 = vmatprep.subr.bf16.mxu1 %v23143_v15  ;;  %v23203_v15 = vld [vmem:[#allocation12 + $0x1004] ss:$40 sps:$4 sm:$0xff]  }
 0x738   :  { %16068 = vmatpush1.bf16.msra.mxu0 %v23132_v17  ;;  %v23192_v17 = vld [vmem:[#allocation12 + $0x23f8] ss:$40 sps:$4 sm:$0xff]  }
 0x739   :  { %16069 = vmatprep.subr.bf16.mxu0 %v23140_v28  ;;  %v23200_v28 = vld [vmem:[#allocation12 + $0x244c] ss:$40 sps:$4 sm:$0xff]  }
 0x73a   :  { %16232 = vmatpush1.bf16.msra.mxu1 %v23141_v35  ;;  %v23201_v35 = vld [vmem:[#allocation12 + $0x1000] ss:$40 sps:$4 sm:$0xff]  }
 0x73b   :  { %16233 = vmatprep.subr.bf16.mxu1 %v23149_v18  ;;  %v23209_v18 = vld [vmem:[#allocation12 + $0x1054] ss:$40 sps:$4 sm:$0xff]  }
 0x73c   :  { %16070 = vmatpush1.bf16.msra.mxu0 %v23138_v19  ;;  %v23198_v19 = vld [vmem:[#allocation12 + $0x2448] ss:$40 sps:$4 sm:$0xff]  }
 0x73d   :  { %16071 = vmatprep.subr.bf16.mxu0 %v23146_v14  ;;  %v23206_v14 = vld [vmem:[#allocation12 + $0x249c] ss:$40 sps:$4 sm:$0xff]  }
 0x73e   :  { %16234 = vmatpush1.bf16.msra.mxu1 %v23147_v21  ;;  %v23207_v21 = vld [vmem:[#allocation12 + $0x1050] ss:$40 sps:$4 sm:$0xff]  }
 0x73f   :  { %16235 = vmatprep.subr.bf16.mxu1 %v23155_v26  ;;  %v23215_v26 = vld [vmem:[#allocation12 + $0x10a4] ss:$40 sps:$4 sm:$0xff]  }
 0x740   :  { %16072 = vmatpush1.bf16.msra.mxu0 %v23144_v27  ;;  %v23204_v27 = vld [vmem:[#allocation12 + $0x2498] ss:$40 sps:$4 sm:$0xff]  }
 0x741   :  { %16073 = vmatprep.subr.bf16.mxu0 %v23152_v25  ;;  %v23212_v25 = vld [vmem:[#allocation12 + $0x24ec] ss:$40 sps:$4 sm:$0xff]  }
 0x742   :  { %16236 = vmatpush1.bf16.msra.mxu1 %v23153_v52  ;;  %v23213_v52 = vld [vmem:[#allocation12 + $0x10a0] ss:$40 sps:$4 sm:$0xff]  }
 0x743   :  { %16237 = vmatprep.subr.bf16.mxu1 %v23161_v61  ;;  %v23221_v61 = vld [vmem:[#allocation12 + $0x10f4] ss:$40 sps:$4 sm:$0xff]  }
 0x744   :  { %16074 = vmatpush1.bf16.msra.mxu0 %v23150_v49 }
 0x745   :  { %16075 = vmatprep.subr.bf16.mxu0 %v23158_v59  ;;  %v23210_v59 = vld [vmem:[#allocation12 + $0x24e8] ss:$40 sps:$4 sm:$0xff]  }
 0x746   :  { %16238 = vmatpush1.bf16.msra.mxu1 %v23159_v31 }
 0x747   :  { %16239 = vmatprep.subr.bf16.mxu1 %v23167_v30  ;;  %v23218_v30 = vld [vmem:[#allocation12 + $0x253c] ss:$40 sps:$4 sm:$0xff]  }
 0x748   :  { %16076 = vmatpush1.bf16.msra.mxu0 %v23156_v32 }
 0x749   :  { %16077 = vmatprep.subr.bf16.mxu0 %v23164_v38  ;;  %v23219_v38 = vld [vmem:[#allocation12 + $0x10f0] ss:$40 sps:$4 sm:$0xff]  }
 0x74a   :  { %16240 = vmatpush1.bf16.msra.mxu1 %v23165_v45 }
 0x74b   :  { %16241 = vmatprep.subr.bf16.mxu1 %v23173_v46  ;;  %v23227_v46 = vld [vmem:[#allocation12 + $0x1144] ss:$40 sps:$4 sm:$0xff]  }
 0x74c   :  { %16078 = vmatpush1.bf16.msra.mxu0 %v23162_v24  ;;  %v23216_v24 = vld [vmem:[#allocation12 + $0x2538] ss:$40 sps:$4 sm:$0xff]  }
 0x74d   :  { %16079 = vmatprep.subr.bf16.mxu0 %v23170_v53  ;;  %v23224_v53 = vld [vmem:[#allocation12 + $0x1c] ss:$40 sps:$4 sm:$0xff]  }
 0x74e   :  { %16242 = vmatpush1.bf16.msra.mxu1 %v23171_v57  ;;  %v23225_v57 = vld [vmem:[#allocation12 + $0x1140] ss:$40 sps:$4 sm:$0xff]  }
 0x74f   :  { %16243 = vmatprep.subr.bf16.mxu1 %v23179_v50  ;;  %v23233_v50 = vld [vmem:[#allocation12 + $0x1194] ss:$40 sps:$4 sm:$0xff]  }
 0x750   :  { %16080 = vmatpush1.bf16.msra.mxu0 %v23168_v60  ;;  %v23222_v60 = vld [vmem:[#allocation12 + $0x18] ss:$40 sps:$4 sm:$0xff]  }
 0x751   :  { %16090 = vmatprep.subr.bf16.mxu0 %v23176_v29  ;;  %v23230_v29 = vld [vmem:[#allocation12 + $0x6c] ss:$40 sps:$4 sm:$0xff]  }
 0x752   :  { %16244 = vmatpush1.bf16.msra.mxu1 %v23177_v44  ;;  %v23231_v44 = vld [vmem:[#allocation12 + $0x1190] ss:$40 sps:$4 sm:$0xff]  }
 0x753   :  { %16082 = vmatmul.mubr.bf16.vlgmr.msra.gmra.mrb[32].mxu0 %v24864_v23  ;;  %16254 = vmatprep.subr.bf16.mxu1 %v23185_v47  ;;  %v23239_v47 = vld [vmem:[#allocation12 + $0x11e4] ss:$40 sps:$4 sm:$0xff]  }
 0x754   :  { %16091 = vmatpush1.bf16.msra.mxu0 %v23174_v51  ;;  %16122 = vmatprep.mubr.bf16.mxu0 %v24428_v0  ;;  %v23228_v51 = vld [vmem:[#allocation12 + $0x68] ss:$40 sps:$4 sm:$0xff]  }
 0x755   :  { %16092 = vmatprep.subr.bf16.mxu0 %v23182_v54  ;;  %16246 = vmatmul.mubr.bf16.vlgmr.msra.gmra.mrb[36].mxu1 %v24813_v55  ;;  %v23236_v54 = vld [vmem:[#allocation12 + $0xbc] ss:$40 sps:$4 sm:$0xff]  }
 0x756   :  { %16255 = vmatpush1.bf16.msra.mxu1 %v23183_v9  ;;  %16286 = vmatprep.mubr.bf16.mxu1 %v24817_v62  ;;  %v23237_v9 = vld [vmem:[#allocation12 + $0x11e0] ss:$40 sps:$4 sm:$0xff]  }
 0x757   :  { %16256 = vmatprep.subr.bf16.mxu1 %v23191_v48  ;;  %v23245_v48 = vld [vmem:[#allocation12 + $0x1234] ss:$40 sps:$4 sm:$0xff]  }
 0x758   :  { %16093 = vmatpush1.bf16.msra.mxu0 %v23180_v58  ;;  %v23234_v58 = vld [vmem:[#allocation12 + $0xb8] ss:$40 sps:$4 sm:$0xff]  }
 0x759   :  { %16094 = vmatprep.subr.bf16.mxu0 %v23188_v63  ;;  %v23242_v63 = vld [vmem:[#allocation12 + $0x10c] ss:$40 sps:$4 sm:$0xff]  }
 0x75a   :  { %16257 = vmatpush1.bf16.msra.mxu1 %v23189_v1  ;;  %v23243_v1 = vld [vmem:[#allocation12 + $0x1230] ss:$40 sps:$4 sm:$0xff]  }
 0x75b   :  { %16258 = vmatprep.subr.bf16.mxu1 %v23197_v5  ;;  %v23240_v5 = vld [vmem:[#allocation12 + $0x108] ss:$40 sps:$4 sm:$0xff]  }
 0x75c   :  { %16095 = vmatpush1.bf16.msra.mxu0 %v23186_v6  ;;  %v23248_v6 = vld [vmem:[#allocation12 + $0x15c] ss:$40 sps:$4 sm:$0xff]  }
 0x75d   :  { %16096 = vmatprep.subr.bf16.mxu0 %v23194_v41  ;;  %v23249_v41 = vld [vmem:[#allocation12 + $0x1280] ss:$40 sps:$4 sm:$0xff]  }
 0x75e   :  { %16259 = vmatpush1.bf16.msra.mxu1 %v23195_v33  ;;  %v23257_v33 = vld [vmem:[#allocation12 + $0x12d4] ss:$40 sps:$4 sm:$0xff]  }
 0x75f   :  { %16260 = vmatprep.subr.bf16.mxu1 %v23203_v15  ;;  %v23246_v15 = vld [vmem:[#allocation12 + $0x158] ss:$40 sps:$4 sm:$0xff]  }
 0x760   :  { %16097 = vmatpush1.bf16.msra.mxu0 %v23192_v17  ;;  %v23254_v17 = vld [vmem:[#allocation12 + $0x1ac] ss:$40 sps:$4 sm:$0xff]  }
 0x761   :  { %16098 = vmatprep.subr.bf16.mxu0 %v23200_v28  ;;  %v23255_v28 = vld [vmem:[#allocation12 + $0x12d0] ss:$40 sps:$4 sm:$0xff]  }
 0x762   :  { %16261 = vmatpush1.bf16.msra.mxu1 %v23201_v35  ;;  %v23263_v35 = vld [vmem:[#allocation12 + $0x1324] ss:$40 sps:$4 sm:$0xff]  }
 0x763   :  { %16262 = vmatprep.subr.bf16.mxu1 %v23209_v18  ;;  %v23252_v18 = vld [vmem:[#allocation12 + $0x1a8] ss:$40 sps:$4 sm:$0xff]  }
 0x764   :  { %16099 = vmatpush1.bf16.msra.mxu0 %v23198_v19  ;;  %v23260_v19 = vld [vmem:[#allocation12 + $0x1fc] ss:$40 sps:$4 sm:$0xff]  }
 0x765   :  { %16100 = vmatprep.subr.bf16.mxu0 %v23206_v14  ;;  %v23261_v14 = vld [vmem:[#allocation12 + $0x1320] ss:$40 sps:$4 sm:$0xff]  }
 0x766   :  { %16263 = vmatpush1.bf16.msra.mxu1 %v23207_v21  ;;  %v23269_v21 = vld [vmem:[#allocation12 + $0x1374] ss:$40 sps:$4 sm:$0xff]  }
 0x767   :  { %16264 = vmatprep.subr.bf16.mxu1 %v23215_v26  ;;  %v23258_v26 = vld [vmem:[#allocation12 + $0x1f8] ss:$40 sps:$4 sm:$0xff]  }
 0x768   :  { %16101 = vmatpush1.bf16.msra.mxu0 %v23204_v27  ;;  %v24886_v49 = vpop.f32.mrb[32].mxu1  ;;  %v23266_v27 = vld [vmem:[#allocation12 + $0x24c] ss:$40 sps:$4 sm:$0xff]  }
 0x769   :  { %16102 = vmatprep.subr.bf16.mxu0 %v23212_v25  ;;  %v24888_v31 = vpop.f32.mrb[33].mxu1  ;;  %v23267_v25 = vld [vmem:[#allocation12 + $0x1370] ss:$40 sps:$4 sm:$0xff]  }
 0x76a   :  { %v15800_v32 = vpop.f32.mrb[34].mxu1  ;;  %16265 = vmatpush1.bf16.msra.mxu1 %v23213_v52  ;;  %v23275_v52 = vld [vmem:[#allocation12 + $0x13c4] ss:$40 sps:$4 sm:$0xff]  }
 0x76b   :  { %v15801_v45 = vpop.f32.mrb[35].mxu1  ;;  %16266 = vmatprep.subr.bf16.mxu1 %v23221_v61  ;;  %v23264_v61 = vld [vmem:[#allocation12 + $0x248] ss:$40 sps:$4 sm:$0xff]   ;;  %v23281_v32 = vld [vmem:[#allocation12 + $0x1414] ss:$40 sps:$4 sm:$0xff]  }
 0x76c   :  { %16103 = vmatpush1.bf16.msra.mxu0 %v23210_v59  ;;  %v23272_v59 = vld [vmem:[#allocation12 + $0x29c] ss:$40 sps:$4 sm:$0xff]   ;;  %v23278_v45 = vld [vmem:[#allocation12 + $0x2ec] ss:$40 sps:$4 sm:$0xff]  }
 0x76d   :  { %16104 = vmatprep.subr.bf16.mxu0 %v23218_v30  ;;  %v23273_v30 = vld [vmem:[#allocation12 + $0x13c0] ss:$40 sps:$4 sm:$0xff]  }
 0x76e   :  { %16267 = vmatpush1.bf16.msra.mxu1 %v23219_v38  ;;  %v23270_v38 = vld [vmem:[#allocation12 + $0x298] ss:$40 sps:$4 sm:$0xff]  }
 0x76f   :  { %16268 = vmatprep.subr.bf16.mxu1 %v23227_v46  ;;  %v23279_v46 = vld [vmem:[#allocation12 + $0x1410] ss:$40 sps:$4 sm:$0xff]  }
 0x770   :  { %16105 = vmatpush1.bf16.msra.mxu0 %v23216_v24  ;;  %v23287_v24 = vld [vmem:[#allocation12 + $0x1464] ss:$40 sps:$4 sm:$0xff]  }
 0x771   :  { %16459 = vmatprep.subr.bf16.mxu0 %v23224_v53  ;;  %v23276_v53 = vld [vmem:[#allocation12 + $0x2e8] ss:$40 sps:$4 sm:$0xff]  }
 0x772   :  { %16269 = vmatpush1.bf16.msra.mxu1 %v23225_v57  ;;  %v23284_v57 = vld [vmem:[#allocation12 + $0x33c] ss:$40 sps:$4 sm:$0xff]  }
 0x773   :  { %16123 = vmatmul.mubr.bf16.vlgmr.msra.gmra.mrb[32].mxu0 %v24869_v8  ;;  %16270 = vmatprep.subr.bf16.mxu1 %v23233_v50  ;;  %v23251_v8 = vld [vmem:[#allocation12 + $0x1284] ss:$40 sps:$4 sm:$0xff]   ;;  %v23285_v50 = vld [vmem:[#allocation12 + $0x1460] ss:$40 sps:$4 sm:$0xff]  }
 0x774   :  { %16460 = vmatpush1.bf16.msra.mxu0 %v23222_v60  ;;  %16491 = vmatprep.mubr.bf16.mxu0 %v24749_v56  ;;  %v23293_v60 = vld [vmem:[#allocation12 + $0x14b4] ss:$40 sps:$4 sm:$0xff]  }
 0x775   :  { %16461 = vmatprep.subr.bf16.mxu0 %v23230_v29  ;;  %v23282_v29 = vld [vmem:[#allocation12 + $0x338] ss:$40 sps:$4 sm:$0xff]  }
 0x776   :  { %16271 = vmatpush1.bf16.msra.mxu1 %v23231_v44  ;;  %v23290_v44 = vld [vmem:[#allocation12 + $0x38c] ss:$40 sps:$4 sm:$0xff]  }
 0x777   :  { %16272 = vmatprep.subr.bf16.mxu1 %v23239_v47  ;;  %v23291_v47 = vld [vmem:[#allocation12 + $0x14b0] ss:$40 sps:$4 sm:$0xff]  }
 0x778   :  { %16462 = vmatpush1.bf16.msra.mxu0 %v23228_v51  ;;  %v23299_v51 = vld [vmem:[#allocation12 + $0x1504] ss:$40 sps:$4 sm:$0xff]  }
 0x779   :  { %16463 = vmatprep.subr.bf16.mxu0 %v23236_v54  ;;  %v23288_v54 = vld [vmem:[#allocation12 + $0x388] ss:$40 sps:$4 sm:$0xff]  }
 0x77a   :  { %16273 = vmatpush1.bf16.msra.mxu1 %v23237_v9  ;;  %v23296_v9 = vld [vmem:[#allocation12 + $0x3dc] ss:$40 sps:$4 sm:$0xff]  }
 0x77b   :  { %16274 = vmatprep.subr.bf16.mxu1 %v23245_v48  ;;  %v23297_v48 = vld [vmem:[#allocation12 + $0x1500] ss:$40 sps:$4 sm:$0xff]  }
 0x77c   :  { %16464 = vmatpush1.bf16.msra.mxu0 %v23234_v58  ;;  %v23305_v58 = vld [vmem:[#allocation12 + $0x1554] ss:$40 sps:$4 sm:$0xff]  }
 0x77d   :  { %16465 = vmatprep.subr.bf16.mxu0 %v23242_v63  ;;  %v23294_v63 = vld [vmem:[#allocation12 + $0x3d8] ss:$40 sps:$4 sm:$0xff]  }
 0x77e   :  { %16275 = vmatpush1.bf16.msra.mxu1 %v23243_v1  ;;  %v23302_v1 = vld [vmem:[#allocation12 + $0x42c] ss:$40 sps:$4 sm:$0xff]  }
 0x77f   :  { %16276 = vmatprep.subr.bf16.mxu1 %v23251_v8  ;;  %v23303_v8 = vld [vmem:[#allocation12 + $0x1550] ss:$40 sps:$4 sm:$0xff]  }
 0x780   :  { %16466 = vmatpush1.bf16.msra.mxu0 %v23240_v5  ;;  %v23311_v5 = vld [vmem:[#allocation12 + $0x15a4] ss:$40 sps:$4 sm:$0xff]  }
 0x781   :  { %16467 = vmatprep.subr.bf16.mxu0 %v23248_v6  ;;  %v23300_v6 = vld [vmem:[#allocation12 + $0x428] ss:$40 sps:$4 sm:$0xff]  }
 0x782   :  { %16277 = vmatpush1.bf16.msra.mxu1 %v23249_v41  ;;  %v23308_v41 = vld [vmem:[#allocation12 + $0x47c] ss:$40 sps:$4 sm:$0xff]  }
 0x783   :  { %16278 = vmatprep.subr.bf16.mxu1 %v23257_v33  ;;  %v23309_v33 = vld [vmem:[#allocation12 + $0x15a0] ss:$40 sps:$4 sm:$0xff]  }
 0x784   :  { %16468 = vmatpush1.bf16.msra.mxu0 %v23246_v15  ;;  %v23317_v15 = vld [vmem:[#allocation12 + $0x15f4] ss:$40 sps:$4 sm:$0xff]  }
 0x785   :  { %16469 = vmatprep.subr.bf16.mxu0 %v23254_v17  ;;  %v23306_v17 = vld [vmem:[#allocation12 + $0x478] ss:$40 sps:$4 sm:$0xff]  }
 0x786   :  { %16279 = vmatpush1.bf16.msra.mxu1 %v23255_v28  ;;  %v23314_v28 = vld [vmem:[#allocation12 + $0x4cc] ss:$40 sps:$4 sm:$0xff]  }
 0x787   :  { %16280 = vmatprep.subr.bf16.mxu1 %v23263_v35  ;;  %v23315_v35 = vld [vmem:[#allocation12 + $0x15f0] ss:$40 sps:$4 sm:$0xff]  }
 0x788   :  { %16470 = vmatpush1.bf16.msra.mxu0 %v23252_v18  ;;  %v23323_v18 = vld [vmem:[#allocation12 + $0x1644] ss:$40 sps:$4 sm:$0xff]  }
 0x789   :  { %16471 = vmatprep.subr.bf16.mxu0 %v23260_v19  ;;  %v23312_v19 = vld [vmem:[#allocation12 + $0x4c8] ss:$40 sps:$4 sm:$0xff]  }
 0x78a   :  { %16281 = vmatpush1.bf16.msra.mxu1 %v23261_v14  ;;  %v23320_v14 = vld [vmem:[#allocation12 + $0x51c] ss:$40 sps:$4 sm:$0xff]  }
 0x78b   :  { %16282 = vmatprep.subr.bf16.mxu1 %v23269_v21  ;;  %v23321_v21 = vld [vmem:[#allocation12 + $0x1640] ss:$40 sps:$4 sm:$0xff]  }
 0x78c   :  { %16472 = vmatpush1.bf16.msra.mxu0 %v23258_v26  ;;  %v23329_v26 = vld [vmem:[#allocation12 + $0x1694] ss:$40 sps:$4 sm:$0xff]  }
 0x78d   :  { %16473 = vmatprep.subr.bf16.mxu0 %v23266_v27  ;;  %v23318_v27 = vld [vmem:[#allocation12 + $0x518] ss:$40 sps:$4 sm:$0xff]  }
 0x78e   :  { %16283 = vmatpush1.bf16.msra.mxu1 %v23267_v25  ;;  %v23326_v25 = vld [vmem:[#allocation12 + $0x56c] ss:$40 sps:$4 sm:$0xff]  }
 0x78f   :  { %16284 = vmatprep.subr.bf16.mxu1 %v23275_v52  ;;  %v23327_v52 = vld [vmem:[#allocation12 + $0x1690] ss:$40 sps:$4 sm:$0xff]  }
 0x790   :  { %16474 = vmatpush1.bf16.msra.mxu0 %v23264_v61  ;;  %v23335_v61 = vld [vmem:[#allocation12 + $0x16e4] ss:$40 sps:$4 sm:$0xff]  }
 0x791   :  { %16475 = vmatprep.subr.bf16.mxu0 %v23272_v59  ;;  %v23324_v59 = vld [vmem:[#allocation12 + $0x568] ss:$40 sps:$4 sm:$0xff]  }
 0x792   :  { %16285 = vmatpush1.bf16.msra.mxu1 %v23273_v30  ;;  %v23332_v30 = vld [vmem:[#allocation12 + $0x5bc] ss:$40 sps:$4 sm:$0xff]  }
 0x793   :  { %16295 = vmatprep.subr.bf16.mxu1 %v23281_v32  ;;  %v23333_v32 = vld [vmem:[#allocation12 + $0x16e0] ss:$40 sps:$4 sm:$0xff]  }
 0x794   :  { %16476 = vmatpush1.bf16.msra.mxu0 %v23270_v38  ;;  %v23341_v38 = vld [vmem:[#allocation12 + $0x1734] ss:$40 sps:$4 sm:$0xff]  }
 0x795   :  { %16477 = vmatprep.subr.bf16.mxu0 %v23278_v45  ;;  %16287 = vmatmul.mubr.bf16.vlgmr.msra.gmra.mrb[36].mxu1 %v24826_v39  ;;  %v23330_v45 = vld [vmem:[#allocation12 + $0x5b8] ss:$40 sps:$4 sm:$0xff]  }
 0x796   :  { %16296 = vmatpush1.bf16.msra.mxu1 %v23279_v46  ;;  %16327 = vmatprep.mubr.bf16.mxu1 %v24831_v40  ;;  %v23338_v46 = vld [vmem:[#allocation12 + $0x60c] ss:$40 sps:$4 sm:$0xff]  }
 0x797   :  { %16297 = vmatprep.subr.bf16.mxu1 %v23287_v24  ;;  %v23339_v24 = vld [vmem:[#allocation12 + $0x1730] ss:$40 sps:$4 sm:$0xff]  }
 0x798   :  { %16478 = vmatpush1.bf16.msra.mxu0 %v23276_v53  ;;  %v23347_v53 = vld [vmem:[#allocation12 + $0x1784] ss:$40 sps:$4 sm:$0xff]  }
 0x799   :  { %16479 = vmatprep.subr.bf16.mxu0 %v23284_v57  ;;  %v23336_v57 = vld [vmem:[#allocation12 + $0x608] ss:$40 sps:$4 sm:$0xff]  }
 0x79a   :  { %16298 = vmatpush1.bf16.msra.mxu1 %v23285_v50  ;;  %v23344_v50 = vld [vmem:[#allocation12 + $0x65c] ss:$40 sps:$4 sm:$0xff]  }
 0x79b   :  { %16299 = vmatprep.subr.bf16.mxu1 %v23293_v60  ;;  %v23345_v60 = vld [vmem:[#allocation12 + $0x1780] ss:$40 sps:$4 sm:$0xff]  }
 0x79c   :  { %16480 = vmatpush1.bf16.msra.mxu0 %v23282_v29  ;;  %v23353_v29 = vld [vmem:[#allocation12 + $0x17d4] ss:$40 sps:$4 sm:$0xff]  }
 0x79d   :  { %16481 = vmatprep.subr.bf16.mxu0 %v23290_v44  ;;  %v23342_v44 = vld [vmem:[#allocation12 + $0x658] ss:$40 sps:$4 sm:$0xff]  }
 0x79e   :  { %16300 = vmatpush1.bf16.msra.mxu1 %v23291_v47  ;;  %v23350_v47 = vld [vmem:[#allocation12 + $0x6ac] ss:$40 sps:$4 sm:$0xff]  }
 0x79f   :  { %16301 = vmatprep.subr.bf16.mxu1 %v23299_v51  ;;  %v23351_v51 = vld [vmem:[#allocation12 + $0x17d0] ss:$40 sps:$4 sm:$0xff]  }
 0x7a0   :  { %16482 = vmatpush1.bf16.msra.mxu0 %v23288_v54  ;;  %v23359_v54 = vld [vmem:[#allocation12 + $0x1824] ss:$40 sps:$4 sm:$0xff]  }
 0x7a1   :  { %16483 = vmatprep.subr.bf16.mxu0 %v23296_v9  ;;  %v23348_v9 = vld [vmem:[#allocation12 + $0x6a8] ss:$40 sps:$4 sm:$0xff]  }
 0x7a2   :  { %16302 = vmatpush1.bf16.msra.mxu1 %v23297_v48  ;;  %v23356_v48 = vld [vmem:[#allocation12 + $0x6fc] ss:$40 sps:$4 sm:$0xff]  }
 0x7a3   :  { %16303 = vmatprep.subr.bf16.mxu1 %v23305_v58  ;;  %v23357_v58 = vld [vmem:[#allocation12 + $0x1820] ss:$40 sps:$4 sm:$0xff]  }
 0x7a4   :  { %16484 = vmatpush1.bf16.msra.mxu0 %v23294_v63  ;;  %v23365_v63 = vld [vmem:[#allocation12 + $0x1874] ss:$40 sps:$4 sm:$0xff]  }
 0x7a5   :  { %16485 = vmatprep.subr.bf16.mxu0 %v23302_v1  ;;  %v23354_v1 = vld [vmem:[#allocation12 + $0x6f8] ss:$40 sps:$4 sm:$0xff]  }
 0x7a6   :  { %16304 = vmatpush1.bf16.msra.mxu1 %v23303_v8  ;;  %v23362_v8 = vld [vmem:[#allocation12 + $0x74c] ss:$40 sps:$4 sm:$0xff]  }
 0x7a7   :  { %16305 = vmatprep.subr.bf16.mxu1 %v23311_v5  ;;  %v23363_v5 = vld [vmem:[#allocation12 + $0x1870] ss:$40 sps:$4 sm:$0xff]  }
 0x7a8   :  { %16486 = vmatpush1.bf16.msra.mxu0 %v23300_v6  ;;  %v23371_v6 = vld [vmem:[#allocation12 + $0x18c4] ss:$40 sps:$4 sm:$0xff]  }
 0x7a9   :  { %16487 = vmatprep.subr.bf16.mxu0 %v23308_v41  ;;  %v23360_v41 = vld [vmem:[#allocation12 + $0x748] ss:$40 sps:$4 sm:$0xff]  }
 0x7aa   :  { %16306 = vmatpush1.bf16.msra.mxu1 %v23309_v33  ;;  %v23368_v33 = vld [vmem:[#allocation12 + $0x79c] ss:$40 sps:$4 sm:$0xff]  }
 0x7ab   :  { %16307 = vmatprep.subr.bf16.mxu1 %v23317_v15  ;;  %v23369_v15 = vld [vmem:[#allocation12 + $0x18c0] ss:$40 sps:$4 sm:$0xff]  }
 0x7ac   :  { %16488 = vmatpush1.bf16.msra.mxu0 %v23306_v17  ;;  %v23377_v17 = vld [vmem:[#allocation12 + $0x1914] ss:$40 sps:$4 sm:$0xff]  }
 0x7ad   :  { %16489 = vmatprep.subr.bf16.mxu0 %v23314_v28  ;;  %v23366_v28 = vld [vmem:[#allocation12 + $0x798] ss:$40 sps:$4 sm:$0xff]  }
 0x7ae   :  { %16308 = vmatpush1.bf16.msra.mxu1 %v23315_v35  ;;  %v23374_v35 = vld [vmem:[#allocation12 + $0x7ec] ss:$40 sps:$4 sm:$0xff]  }
 0x7af   :  { %16309 = vmatprep.subr.bf16.mxu1 %v23323_v18  ;;  %v23375_v18 = vld [vmem:[#allocation12 + $0x1910] ss:$40 sps:$4 sm:$0xff]  }
 0x7b0   :  { %16490 = vmatpush1.bf16.msra.mxu0 %v23312_v19  ;;  %v23383_v19 = vld [vmem:[#allocation12 + $0x1964] ss:$40 sps:$4 sm:$0xff]  }
 0x7b1   :  { %16500 = vmatprep.subr.bf16.mxu0 %v23320_v14  ;;  %v23372_v14 = vld [vmem:[#allocation12 + $0x7e8] ss:$40 sps:$4 sm:$0xff]  }
 0x7b2   :  { %16310 = vmatpush1.bf16.msra.mxu1 %v23321_v21  ;;  %v23380_v21 = vld [vmem:[#allocation12 + $0x83c] ss:$40 sps:$4 sm:$0xff]  }
 0x7b3   :  { %16492 = vmatmul.mubr.bf16.vlgmr.msra.gmra.mrb[36].mxu0 %v24759_v20  ;;  %16311 = vmatprep.subr.bf16.mxu1 %v23329_v26  ;;  %v23381_v26 = vld [vmem:[#allocation12 + $0x1960] ss:$40 sps:$4 sm:$0xff]  }
 0x7b4   :  { %16501 = vmatpush1.bf16.msra.mxu0 %v23318_v27  ;;  %16532 = vmatprep.mubr.bf16.mxu0 %v24763_v42  ;;  %v23389_v27 = vld [vmem:[#allocation12 + $0x19b4] ss:$40 sps:$4 sm:$0xff]  }
 0x7b5   :  { %16502 = vmatprep.subr.bf16.mxu0 %v23326_v25  ;;  %v23378_v25 = vld [vmem:[#allocation12 + $0x838] ss:$40 sps:$4 sm:$0xff]  }
 0x7b6   :  { %16312 = vmatpush1.bf16.msra.mxu1 %v23327_v52  ;;  %v23386_v52 = vld [vmem:[#allocation12 + $0x88c] ss:$40 sps:$4 sm:$0xff]  }
 0x7b7   :  { %16313 = vmatprep.subr.bf16.mxu1 %v23335_v61  ;;  %v23387_v61 = vld [vmem:[#allocation12 + $0x19b0] ss:$40 sps:$4 sm:$0xff]  }
 0x7b8   :  { %16503 = vmatpush1.bf16.msra.mxu0 %v23324_v59  ;;  %v23395_v59 = vld [vmem:[#allocation12 + $0x1a04] ss:$40 sps:$4 sm:$0xff]  }
 0x7b9   :  { %16504 = vmatprep.subr.bf16.mxu0 %v23332_v30  ;;  %v23384_v30 = vld [vmem:[#allocation12 + $0x888] ss:$40 sps:$4 sm:$0xff]  }
 0x7ba   :  { %16314 = vmatpush1.bf16.msra.mxu1 %v23333_v32  ;;  %v23392_v32 = vld [vmem:[#allocation12 + $0x8dc] ss:$40 sps:$4 sm:$0xff]  }
 0x7bb   :  { %16315 = vmatprep.subr.bf16.mxu1 %v23341_v38  ;;  %v23393_v38 = vld [vmem:[#allocation12 + $0x1a00] ss:$40 sps:$4 sm:$0xff]  }
 0x7bc   :  { %16505 = vmatpush1.bf16.msra.mxu0 %v23330_v45  ;;  %v23401_v45 = vld [vmem:[#allocation12 + $0x1a54] ss:$40 sps:$4 sm:$0xff]  }
 0x7bd   :  { %16506 = vmatprep.subr.bf16.mxu0 %v23338_v46  ;;  %v23390_v46 = vld [vmem:[#allocation12 + $0x8d8] ss:$40 sps:$4 sm:$0xff]  }
 0x7be   :  { %16316 = vmatpush1.bf16.msra.mxu1 %v23339_v24  ;;  %v23398_v24 = vld [vmem:[#allocation12 + $0x92c] ss:$40 sps:$4 sm:$0xff]  }
 0x7bf   :  { %16317 = vmatprep.subr.bf16.mxu1 %v23347_v53  ;;  %v23399_v53 = vld [vmem:[#allocation12 + $0x1a50] ss:$40 sps:$4 sm:$0xff]  }
 0x7c0   :  { %16507 = vmatpush1.bf16.msra.mxu0 %v23336_v57  ;;  %v23407_v57 = vld [vmem:[#allocation12 + $0x1aa4] ss:$40 sps:$4 sm:$0xff]  }
 0x7c1   :  { %16508 = vmatprep.subr.bf16.mxu0 %v23344_v50  ;;  %v23396_v50 = vld [vmem:[#allocation12 + $0x928] ss:$40 sps:$4 sm:$0xff]  }
 0x7c2   :  { %16318 = vmatpush1.bf16.msra.mxu1 %v23345_v60  ;;  %v23404_v60 = vld [vmem:[#allocation12 + $0x97c] ss:$40 sps:$4 sm:$0xff]  }
 0x7c3   :  { %16319 = vmatprep.subr.bf16.mxu1 %v23353_v29  ;;  %v23405_v29 = vld [vmem:[#allocation12 + $0x1aa0] ss:$40 sps:$4 sm:$0xff]  }
 0x7c4   :  { %16509 = vmatpush1.bf16.msra.mxu0 %v23342_v44  ;;  %v23413_v44 = vld [vmem:[#allocation12 + $0x1af4] ss:$40 sps:$4 sm:$0xff]  }
 0x7c5   :  { %16510 = vmatprep.subr.bf16.mxu0 %v23350_v47  ;;  %v23402_v47 = vld [vmem:[#allocation12 + $0x978] ss:$40 sps:$4 sm:$0xff]  }
 0x7c6   :  { %16320 = vmatpush1.bf16.msra.mxu1 %v23351_v51  ;;  %v23410_v51 = vld [vmem:[#allocation12 + $0x9cc] ss:$40 sps:$4 sm:$0xff]  }
 0x7c7   :  { %16321 = vmatprep.subr.bf16.mxu1 %v23359_v54  ;;  %v23411_v54 = vld [vmem:[#allocation12 + $0x1af0] ss:$40 sps:$4 sm:$0xff]  }
 0x7c8   :  { %16511 = vmatpush1.bf16.msra.mxu0 %v23348_v9  ;;  %v23419_v9 = vld [vmem:[#allocation12 + $0x1b44] ss:$40 sps:$4 sm:$0xff]  }
 0x7c9   :  { %16512 = vmatprep.subr.bf16.mxu0 %v23356_v48  ;;  %v23408_v48 = vld [vmem:[#allocation12 + $0x9c8] ss:$40 sps:$4 sm:$0xff]  }
 0x7ca   :  { %16322 = vmatpush1.bf16.msra.mxu1 %v23357_v58  ;;  %v23416_v58 = vld [vmem:[#allocation12 + $0xa1c] ss:$40 sps:$4 sm:$0xff]  }
 0x7cb   :  { %16323 = vmatprep.subr.bf16.mxu1 %v23365_v63  ;;  %v23417_v63 = vld [vmem:[#allocation12 + $0x1b40] ss:$40 sps:$4 sm:$0xff]  }
 0x7cc   :  { %16513 = vmatpush1.bf16.msra.mxu0 %v23354_v1  ;;  %v23425_v1 = vld [vmem:[#allocation12 + $0x1b94] ss:$40 sps:$4 sm:$0xff]  }
 0x7cd   :  { %16514 = vmatprep.subr.bf16.mxu0 %v23362_v8  ;;  %v23414_v8 = vld [vmem:[#allocation12 + $0xa18] ss:$40 sps:$4 sm:$0xff]  }
 0x7ce   :  { %16324 = vmatpush1.bf16.msra.mxu1 %v23363_v5  ;;  %v23422_v5 = vld [vmem:[#allocation12 + $0xa6c] ss:$40 sps:$4 sm:$0xff]  }
 0x7cf   :  { %16325 = vmatprep.subr.bf16.mxu1 %v23371_v6  ;;  %v23423_v6 = vld [vmem:[#allocation12 + $0x1b90] ss:$40 sps:$4 sm:$0xff]  }
 0x7d0   :  { %16515 = vmatpush1.bf16.msra.mxu0 %v23360_v41  ;;  %v23431_v41 = vld [vmem:[#allocation12 + $0x1be4] ss:$40 sps:$4 sm:$0xff]  }
 0x7d1   :  { %16516 = vmatprep.subr.bf16.mxu0 %v23368_v33  ;;  %v23420_v33 = vld [vmem:[#allocation12 + $0xa68] ss:$40 sps:$4 sm:$0xff]  }
 0x7d2   :  { %16326 = vmatpush1.bf16.msra.mxu1 %v23369_v15  ;;  %v23428_v15 = vld [vmem:[#allocation12 + $0xabc] ss:$40 sps:$4 sm:$0xff]  }
 0x7d3   :  { %16336 = vmatprep.subr.bf16.mxu1 %v23377_v17  ;;  %v23429_v17 = vld [vmem:[#allocation12 + $0x1be0] ss:$40 sps:$4 sm:$0xff]  }
 0x7d4   :  { %16517 = vmatpush1.bf16.msra.mxu0 %v23366_v28  ;;  %v23437_v28 = vld [vmem:[#allocation12 + $0x1c34] ss:$40 sps:$4 sm:$0xff]  }
 0x7d5   :  { %16518 = vmatprep.subr.bf16.mxu0 %v23374_v35  ;;  %16328 = vmatmul.mubr.bf16.vlgmr.msra.gmra.mrb[36].mxu1 %v24842_v7  ;;  %v23426_v35 = vld [vmem:[#allocation12 + $0xab8] ss:$40 sps:$4 sm:$0xff]  }
 0x7d6   :  { %16337 = vmatpush1.bf16.msra.mxu1 %v23375_v18  ;;  %16368 = vmatprep.mubr.bf16.mxu1 %v24846_v43  ;;  %v23434_v18 = vld [vmem:[#allocation12 + $0xb0c] ss:$40 sps:$4 sm:$0xff]  }
 0x7d7   :  { %16338 = vmatprep.subr.bf16.mxu1 %v23383_v19  ;;  %v23435_v19 = vld [vmem:[#allocation12 + $0x1c30] ss:$40 sps:$4 sm:$0xff]  }
 0x7d8   :  { %16519 = vmatpush1.bf16.msra.mxu0 %v23372_v14  ;;  %v23443_v14 = vld [vmem:[#allocation12 + $0x1c84] ss:$40 sps:$4 sm:$0xff]  }
 0x7d9   :  { %16520 = vmatprep.subr.bf16.mxu0 %v23380_v21  ;;  %v23432_v21 = vld [vmem:[#allocation12 + $0xb08] ss:$40 sps:$4 sm:$0xff]  }
 0x7da   :  { %16339 = vmatpush1.bf16.msra.mxu1 %v23381_v26  ;;  %v23440_v26 = vld [vmem:[#allocation12 + $0xb5c] ss:$40 sps:$4 sm:$0xff]  }
 0x7db   :  { %16340 = vmatprep.subr.bf16.mxu1 %v23389_v27  ;;  %v23441_v27 = vld [vmem:[#allocation12 + $0x1c80] ss:$40 sps:$4 sm:$0xff]  }
 0x7dc   :  { %16521 = vmatpush1.bf16.msra.mxu0 %v23378_v25  ;;  %v23449_v25 = vld [vmem:[#allocation12 + $0x1cd4] ss:$40 sps:$4 sm:$0xff]  }
 0x7dd   :  { %16522 = vmatprep.subr.bf16.mxu0 %v23386_v52  ;;  %v23438_v52 = vld [vmem:[#allocation12 + $0xb58] ss:$40 sps:$4 sm:$0xff]  }
 0x7de   :  { %16341 = vmatpush1.bf16.msra.mxu1 %v23387_v61  ;;  %v23446_v61 = vld [vmem:[#allocation12 + $0xbac] ss:$40 sps:$4 sm:$0xff]  }
 0x7df   :  { %16342 = vmatprep.subr.bf16.mxu1 %v23395_v59  ;;  %v23447_v59 = vld [vmem:[#allocation12 + $0x1cd0] ss:$40 sps:$4 sm:$0xff]  }
 0x7e0   :  { %16523 = vmatpush1.bf16.msra.mxu0 %v23384_v30  ;;  %v23455_v30 = vld [vmem:[#allocation12 + $0x1d24] ss:$40 sps:$4 sm:$0xff]  }
 0x7e1   :  { %16524 = vmatprep.subr.bf16.mxu0 %v23392_v32  ;;  %v23444_v32 = vld [vmem:[#allocation12 + $0xba8] ss:$40 sps:$4 sm:$0xff]  }
 0x7e2   :  { %16343 = vmatpush1.bf16.msra.mxu1 %v23393_v38  ;;  %v23452_v38 = vld [vmem:[#allocation12 + $0xbfc] ss:$40 sps:$4 sm:$0xff]  }
 0x7e3   :  { %16344 = vmatprep.subr.bf16.mxu1 %v23401_v45  ;;  %v23453_v45 = vld [vmem:[#allocation12 + $0x1d20] ss:$40 sps:$4 sm:$0xff]  }
 0x7e4   :  { %16525 = vmatpush1.bf16.msra.mxu0 %v23390_v46  ;;  %v23461_v46 = vld [vmem:[#allocation12 + $0x1d74] ss:$40 sps:$4 sm:$0xff]  }
 0x7e5   :  { %16526 = vmatprep.subr.bf16.mxu0 %v23398_v24  ;;  %v23450_v24 = vld [vmem:[#allocation12 + $0xbf8] ss:$40 sps:$4 sm:$0xff]  }
 0x7e6   :  { %16345 = vmatpush1.bf16.msra.mxu1 %v23399_v53  ;;  %v23458_v53 = vld [vmem:[#allocation12 + $0xc4c] ss:$40 sps:$4 sm:$0xff]  }
 0x7e7   :  { %16346 = vmatprep.subr.bf16.mxu1 %v23407_v57  ;;  %v23459_v57 = vld [vmem:[#allocation12 + $0x1d70] ss:$40 sps:$4 sm:$0xff]  }
 0x7e8   :  { %16527 = vmatpush1.bf16.msra.mxu0 %v23396_v50  ;;  %v23467_v50 = vld [vmem:[#allocation12 + $0x1dc4] ss:$40 sps:$4 sm:$0xff]  }
 0x7e9   :  { %16528 = vmatprep.subr.bf16.mxu0 %v23404_v60  ;;  %v23456_v60 = vld [vmem:[#allocation12 + $0xc48] ss:$40 sps:$4 sm:$0xff]  }
 0x7ea   :  { %16347 = vmatpush1.bf16.msra.mxu1 %v23405_v29  ;;  %v23464_v29 = vld [vmem:[#allocation12 + $0xc9c] ss:$40 sps:$4 sm:$0xff]  }
 0x7eb   :  { %16348 = vmatprep.subr.bf16.mxu1 %v23413_v44  ;;  %v23465_v44 = vld [vmem:[#allocation12 + $0x1dc0] ss:$40 sps:$4 sm:$0xff]  }
 0x7ec   :  { %16529 = vmatpush1.bf16.msra.mxu0 %v23402_v47  ;;  %v23473_v47 = vld [vmem:[#allocation12 + $0x1e14] ss:$40 sps:$4 sm:$0xff]  }
 0x7ed   :  { %16530 = vmatprep.subr.bf16.mxu0 %v23410_v51  ;;  %v23462_v51 = vld [vmem:[#allocation12 + $0xc98] ss:$40 sps:$4 sm:$0xff]  }
 0x7ee   :  { %16349 = vmatpush1.bf16.msra.mxu1 %v23411_v54  ;;  %v23470_v54 = vld [vmem:[#allocation12 + $0xcec] ss:$40 sps:$4 sm:$0xff]  }
 0x7ef   :  { %16350 = vmatprep.subr.bf16.mxu1 %v23419_v9  ;;  %v23471_v9 = vld [vmem:[#allocation12 + $0x1e10] ss:$40 sps:$4 sm:$0xff]  }
 0x7f0   :  { %16531 = vmatpush1.bf16.msra.mxu0 %v23408_v48  ;;  %v23479_v48 = vld [vmem:[#allocation12 + $0x1e64] ss:$40 sps:$4 sm:$0xff]  }
 0x7f1   :  { %16541 = vmatprep.subr.bf16.mxu0 %v23416_v58  ;;  %v23468_v58 = vld [vmem:[#allocation12 + $0xce8] ss:$40 sps:$4 sm:$0xff]  }
 0x7f2   :  { %16351 = vmatpush1.bf16.msra.mxu1 %v23417_v63  ;;  %v23476_v63 = vld [vmem:[#allocation12 + $0xd3c] ss:$40 sps:$4 sm:$0xff]  }
 0x7f3   :  { %16533 = vmatmul.mubr.bf16.vlgmr.msra.gmra.mrb[36].mxu0 %v24781_v2  ;;  %16352 = vmatprep.subr.bf16.mxu1 %v23425_v1  ;;  %v23477_v1 = vld [vmem:[#allocation12 + $0x1e60] ss:$40 sps:$4 sm:$0xff]  }
 0x7f4   :  { %16542 = vmatpush1.bf16.msra.mxu0 %v23414_v8  ;;  %16573 = vmatprep.mubr.bf16.mxu0 %v24785_v3  ;;  %v23485_v8 = vld [vmem:[#allocation12 + $0x1eb4] ss:$40 sps:$4 sm:$0xff]  }
 0x7f5   :  { %16543 = vmatprep.subr.bf16.mxu0 %v23422_v5  ;;  %v23474_v5 = vld [vmem:[#allocation12 + $0xd38] ss:$40 sps:$4 sm:$0xff]  }
 0x7f6   :  { %16353 = vmatpush1.bf16.msra.mxu1 %v23423_v6  ;;  %v23482_v6 = vld [vmem:[#allocation12 + $0xd8c] ss:$40 sps:$4 sm:$0xff]  }
 0x7f7   :  { %16354 = vmatprep.subr.bf16.mxu1 %v23431_v41  ;;  %v23483_v41 = vld [vmem:[#allocation12 + $0x1eb0] ss:$40 sps:$4 sm:$0xff]  }
 0x7f8   :  { %16544 = vmatpush1.bf16.msra.mxu0 %v23420_v33  ;;  %v23491_v33 = vld [vmem:[#allocation12 + $0x1f04] ss:$40 sps:$4 sm:$0xff]  }
 0x7f9   :  { %16545 = vmatprep.subr.bf16.mxu0 %v23428_v15  ;;  %v23480_v15 = vld [vmem:[#allocation12 + $0xd88] ss:$40 sps:$4 sm:$0xff]  }
 0x7fa   :  { %16355 = vmatpush1.bf16.msra.mxu1 %v23429_v17  ;;  %v23488_v17 = vld [vmem:[#allocation12 + $0xddc] ss:$40 sps:$4 sm:$0xff]  }
 0x7fb   :  { %16356 = vmatprep.subr.bf16.mxu1 %v23437_v28  ;;  %v23489_v28 = vld [vmem:[#allocation12 + $0x1f00] ss:$40 sps:$4 sm:$0xff]  }
 0x7fc   :  { %16546 = vmatpush1.bf16.msra.mxu0 %v23426_v35  ;;  %v23497_v35 = vld [vmem:[#allocation12 + $0x1f54] ss:$40 sps:$4 sm:$0xff]  }
 0x7fd   :  { %16547 = vmatprep.subr.bf16.mxu0 %v23434_v18  ;;  %v23486_v18 = vld [vmem:[#allocation12 + $0xdd8] ss:$40 sps:$4 sm:$0xff]  }
 0x7fe   :  { %16357 = vmatpush1.bf16.msra.mxu1 %v23435_v19  ;;  %v23494_v19 = vld [vmem:[#allocation12 + $0xe2c] ss:$40 sps:$4 sm:$0xff]  }
 0x7ff   :  { %16358 = vmatprep.subr.bf16.mxu1 %v23443_v14  ;;  %v23495_v14 = vld [vmem:[#allocation12 + $0x1f50] ss:$40 sps:$4 sm:$0xff]  }
 0x800   :  { %16548 = vmatpush1.bf16.msra.mxu0 %v23432_v21  ;;  %v23503_v21 = vld [vmem:[#allocation12 + $0x1fa4] ss:$40 sps:$4 sm:$0xff]  }
 0x801   :  { %16549 = vmatprep.subr.bf16.mxu0 %v23440_v26  ;;  %v23492_v26 = vld [vmem:[#allocation12 + $0xe28] ss:$40 sps:$4 sm:$0xff]  }
 0x802   :  { %16359 = vmatpush1.bf16.msra.mxu1 %v23441_v27  ;;  %v23500_v27 = vld [vmem:[#allocation12 + $0xe7c] ss:$40 sps:$4 sm:$0xff]  }
 0x803   :  { %16360 = vmatprep.subr.bf16.mxu1 %v23449_v25  ;;  %v23501_v25 = vld [vmem:[#allocation12 + $0x1fa0] ss:$40 sps:$4 sm:$0xff]  }
 0x804   :  { %16550 = vmatpush1.bf16.msra.mxu0 %v23438_v52  ;;  %v23509_v52 = vld [vmem:[#allocation12 + $0x1ff4] ss:$40 sps:$4 sm:$0xff]  }
 0x805   :  { %16551 = vmatprep.subr.bf16.mxu0 %v23446_v61  ;;  %v23498_v61 = vld [vmem:[#allocation12 + $0xe78] ss:$40 sps:$4 sm:$0xff]  }
 0x806   :  { %16361 = vmatpush1.bf16.msra.mxu1 %v23447_v59  ;;  %v23506_v59 = vld [vmem:[#allocation12 + $0xecc] ss:$40 sps:$4 sm:$0xff]  }
 0x807   :  { %16362 = vmatprep.subr.bf16.mxu1 %v23455_v30  ;;  %v23507_v30 = vld [vmem:[#allocation12 + $0x1ff0] ss:$40 sps:$4 sm:$0xff]  }
 0x808   :  { %16552 = vmatpush1.bf16.msra.mxu0 %v23444_v32  ;;  %v23515_v32 = vld [vmem:[#allocation12 + $0x2044] ss:$40 sps:$4 sm:$0xff]  }
 0x809   :  { %16553 = vmatprep.subr.bf16.mxu0 %v23452_v38  ;;  %v23504_v38 = vld [vmem:[#allocation12 + $0xec8] ss:$40 sps:$4 sm:$0xff]  }
 0x80a   :  { %16363 = vmatpush1.bf16.msra.mxu1 %v23453_v45  ;;  %v23512_v45 = vld [vmem:[#allocation12 + $0xf1c] ss:$40 sps:$4 sm:$0xff]  }
 0x80b   :  { %16364 = vmatprep.subr.bf16.mxu1 %v23461_v46  ;;  %v23513_v46 = vld [vmem:[#allocation12 + $0x2040] ss:$40 sps:$4 sm:$0xff]  }
 0x80c   :  { %16554 = vmatpush1.bf16.msra.mxu0 %v23450_v24  ;;  %v23521_v24 = vld [vmem:[#allocation12 + $0x2094] ss:$40 sps:$4 sm:$0xff]  }
 0x80d   :  { %16555 = vmatprep.subr.bf16.mxu0 %v23458_v53  ;;  %v23510_v53 = vld [vmem:[#allocation12 + $0xf18] ss:$40 sps:$4 sm:$0xff]  }
 0x80e   :  { %16365 = vmatpush1.bf16.msra.mxu1 %v23459_v57  ;;  %v23518_v57 = vld [vmem:[#allocation12 + $0xf6c] ss:$40 sps:$4 sm:$0xff]  }
 0x80f   :  { %16366 = vmatprep.subr.bf16.mxu1 %v23467_v50  ;;  %v23519_v50 = vld [vmem:[#allocation12 + $0x2090] ss:$40 sps:$4 sm:$0xff]  }
 0x810   :  { %16556 = vmatpush1.bf16.msra.mxu0 %v23456_v60  ;;  %v23527_v60 = vld [vmem:[#allocation12 + $0x20e4] ss:$40 sps:$4 sm:$0xff]  }
 0x811   :  { %16557 = vmatprep.subr.bf16.mxu0 %v23464_v29  ;;  %v23516_v29 = vld [vmem:[#allocation12 + $0xf68] ss:$40 sps:$4 sm:$0xff]  }
 0x812   :  { %16367 = vmatpush1.bf16.msra.mxu1 %v23465_v44  ;;  %v23524_v44 = vld [vmem:[#allocation12 + $0xfbc] ss:$40 sps:$4 sm:$0xff]  }
 0x813   :  { %16377 = vmatprep.subr.bf16.mxu1 %v23473_v47  ;;  %v23525_v47 = vld [vmem:[#allocation12 + $0x20e0] ss:$40 sps:$4 sm:$0xff]  }
 0x814   :  { %16558 = vmatpush1.bf16.msra.mxu0 %v23462_v51  ;;  %v23533_v51 = vld [vmem:[#allocation12 + $0x2134] ss:$40 sps:$4 sm:$0xff]  }
 0x815   :  { %16559 = vmatprep.subr.bf16.mxu0 %v23470_v54  ;;  %16369 = vmatmul.mubr.bf16.vlgmr.msra.gmra.mrb[36].mxu1 %v24854_v11  ;;  %v23522_v54 = vld [vmem:[#allocation12 + $0xfb8] ss:$40 sps:$4 sm:$0xff]  }
 0x816   :  { %16378 = vmatpush1.bf16.msra.mxu1 %v23471_v9  ;;  %16409 = vmatprep.mubr.bf16.mxu1 %v24861_v16  ;;  %v23530_v9 = vld [vmem:[#allocation12 + $0x100c] ss:$40 sps:$4 sm:$0xff]  }
 0x817   :  { %16379 = vmatprep.subr.bf16.mxu1 %v23479_v48  ;;  %v23531_v48 = vld [vmem:[#allocation12 + $0x2130] ss:$40 sps:$4 sm:$0xff]  }
 0x818   :  { %16560 = vmatpush1.bf16.msra.mxu0 %v23468_v58  ;;  %v23539_v58 = vld [vmem:[#allocation12 + $0x2184] ss:$40 sps:$4 sm:$0xff]  }
 0x819   :  { %16561 = vmatprep.subr.bf16.mxu0 %v23476_v63  ;;  %v23528_v63 = vld [vmem:[#allocation12 + $0x1008] ss:$40 sps:$4 sm:$0xff]  }
 0x81a   :  { %16380 = vmatpush1.bf16.msra.mxu1 %v23477_v1  ;;  %v23536_v1 = vld [vmem:[#allocation12 + $0x105c] ss:$40 sps:$4 sm:$0xff]  }
 0x81b   :  { %16381 = vmatprep.subr.bf16.mxu1 %v23485_v8  ;;  %v23537_v8 = vld [vmem:[#allocation12 + $0x2180] ss:$40 sps:$4 sm:$0xff]  }
 0x81c   :  { %16562 = vmatpush1.bf16.msra.mxu0 %v23474_v5  ;;  %v23545_v5 = vld [vmem:[#allocation12 + $0x21d4] ss:$40 sps:$4 sm:$0xff]  }
 0x81d   :  { %16563 = vmatprep.subr.bf16.mxu0 %v23482_v6  ;;  %v23534_v6 = vld [vmem:[#allocation12 + $0x1058] ss:$40 sps:$4 sm:$0xff]  }
 0x81e   :  { %16382 = vmatpush1.bf16.msra.mxu1 %v23483_v41  ;;  %v23542_v41 = vld [vmem:[#allocation12 + $0x10ac] ss:$40 sps:$4 sm:$0xff]  }
 0x81f   :  { %16383 = vmatprep.subr.bf16.mxu1 %v23491_v33  ;;  %v23543_v33 = vld [vmem:[#allocation12 + $0x21d0] ss:$40 sps:$4 sm:$0xff]  }
 0x820   :  { %16564 = vmatpush1.bf16.msra.mxu0 %v23480_v15  ;;  %v23551_v15 = vld [vmem:[#allocation12 + $0x2224] ss:$40 sps:$4 sm:$0xff]  }
 0x821   :  { %16565 = vmatprep.subr.bf16.mxu0 %v23488_v17  ;;  %v23540_v17 = vld [vmem:[#allocation12 + $0x10a8] ss:$40 sps:$4 sm:$0xff]  }
 0x822   :  { %16384 = vmatpush1.bf16.msra.mxu1 %v23489_v28  ;;  %v23548_v28 = vld [vmem:[#allocation12 + $0x10fc] ss:$40 sps:$4 sm:$0xff]  }
 0x823   :  { %16385 = vmatprep.subr.bf16.mxu1 %v23497_v35 }
 0x824   :  { %16566 = vmatpush1.bf16.msra.mxu0 %v23486_v18  ;;  %v23549_v18 = vld [vmem:[#allocation12 + $0x2220] ss:$40 sps:$4 sm:$0xff]  }
 0x825   :  { %16567 = vmatprep.subr.bf16.mxu0 %v23494_v19 }
 0x826   :  { %16386 = vmatpush1.bf16.msra.mxu1 %v23495_v14  ;;  %v23557_v14 = vld [vmem:[#allocation12 + $0x2274] ss:$40 sps:$4 sm:$0xff]  }
 0x827   :  { %16387 = vmatprep.subr.bf16.mxu1 %v23503_v21 }
 0x828   :  { %16568 = vmatpush1.bf16.msra.mxu0 %v23492_v26  ;;  %v23546_v26 = vld [vmem:[#allocation12 + $0x10f8] ss:$40 sps:$4 sm:$0xff]  }
 0x829   :  { %16569 = vmatprep.subr.bf16.mxu0 %v23500_v27 }
 0x82a   :  { %16388 = vmatpush1.bf16.msra.mxu1 %v23501_v25  ;;  %v23554_v25 = vld [vmem:[#allocation12 + $0x114c] ss:$40 sps:$4 sm:$0xff]  }
 0x82b   :  { %16389 = vmatprep.subr.bf16.mxu1 %v23509_v52  ;;  %v23555_v52 = vld [vmem:[#allocation12 + $0x2270] ss:$40 sps:$4 sm:$0xff]  }
 0x82c   :  { %16570 = vmatpush1.bf16.msra.mxu0 %v23498_v61  ;;  %v23563_v61 = vld [vmem:[#allocation12 + $0x22c4] ss:$40 sps:$4 sm:$0xff]  }
 0x82d   :  { %16571 = vmatprep.subr.bf16.mxu0 %v23506_v59  ;;  %v23552_v59 = vld [vmem:[#allocation12 + $0x1148] ss:$40 sps:$4 sm:$0xff]  }
 0x82e   :  { %16390 = vmatpush1.bf16.msra.mxu1 %v23507_v30  ;;  %v23560_v30 = vld [vmem:[#allocation12 + $0x119c] ss:$40 sps:$4 sm:$0xff]  }
 0x82f   :  { %16391 = vmatprep.subr.bf16.mxu1 %v23515_v32  ;;  %v23561_v32 = vld [vmem:[#allocation12 + $0x22c0] ss:$40 sps:$4 sm:$0xff]  }
 0x830   :  { %16572 = vmatpush1.bf16.msra.mxu0 %v23504_v38  ;;  %v23569_v38 = vld [vmem:[#allocation12 + $0x2314] ss:$40 sps:$4 sm:$0xff]  }
 0x831   :  { %16582 = vmatprep.subr.bf16.mxu0 %v23512_v45  ;;  %v23558_v45 = vld [vmem:[#allocation12 + $0x1198] ss:$40 sps:$4 sm:$0xff]  }
 0x832   :  { %16392 = vmatpush1.bf16.msra.mxu1 %v23513_v46  ;;  %v23566_v46 = vld [vmem:[#allocation12 + $0x11ec] ss:$40 sps:$4 sm:$0xff]  }
 0x833   :  { %16574 = vmatmul.mubr.bf16.vlgmr.msra.gmra.mrb[36].mxu0 %v24813_v55  ;;  %16393 = vmatprep.subr.bf16.mxu1 %v23521_v24  ;;  %v23567_v24 = vld [vmem:[#allocation12 + $0x2310] ss:$40 sps:$4 sm:$0xff]  }
 0x834   :  { %16583 = vmatpush1.bf16.msra.mxu0 %v23510_v53  ;;  %16614 = vmatprep.mubr.bf16.mxu0 %v24817_v62  ;;  %v23575_v53 = vld [vmem:[#allocation12 + $0x2364] ss:$40 sps:$4 sm:$0xff]  }
 0x835   :  { %16584 = vmatprep.subr.bf16.mxu0 %v23518_v57  ;;  %v23564_v57 = vld [vmem:[#allocation12 + $0x11e8] ss:$40 sps:$4 sm:$0xff]  }
 0x836   :  { %16394 = vmatpush1.bf16.msra.mxu1 %v23519_v50  ;;  %v23572_v50 = vld [vmem:[#allocation12 + $0x123c] ss:$40 sps:$4 sm:$0xff]  }
 0x837   :  { %16395 = vmatprep.subr.bf16.mxu1 %v23527_v60  ;;  %v23573_v60 = vld [vmem:[#allocation12 + $0x2360] ss:$40 sps:$4 sm:$0xff]  }
 0x838   :  { %16585 = vmatpush1.bf16.msra.mxu0 %v23516_v29  ;;  %v23581_v29 = vld [vmem:[#allocation12 + $0x23b4] ss:$40 sps:$4 sm:$0xff]  }
 0x839   :  { %16586 = vmatprep.subr.bf16.mxu0 %v23524_v44  ;;  %v23570_v44 = vld [vmem:[#allocation12 + $0x1238] ss:$40 sps:$4 sm:$0xff]  }
 0x83a   :  { %16396 = vmatpush1.bf16.msra.mxu1 %v23525_v47  ;;  %v23578_v47 = vld [vmem:[#allocation12 + $0x128c] ss:$40 sps:$4 sm:$0xff]  }
 0x83b   :  { %16397 = vmatprep.subr.bf16.mxu1 %v23533_v51  ;;  %v23579_v51 = vld [vmem:[#allocation12 + $0x23b0] ss:$40 sps:$4 sm:$0xff]  }
 0x83c   :  { %16587 = vmatpush1.bf16.msra.mxu0 %v23522_v54  ;;  %v23587_v54 = vld [vmem:[#allocation12 + $0x2404] ss:$40 sps:$4 sm:$0xff]  }
 0x83d   :  { %16588 = vmatprep.subr.bf16.mxu0 %v23530_v9  ;;  %v23576_v9 = vld [vmem:[#allocation12 + $0x1288] ss:$40 sps:$4 sm:$0xff]  }
 0x83e   :  { %16398 = vmatpush1.bf16.msra.mxu1 %v23531_v48  ;;  %v23584_v48 = vld [vmem:[#allocation12 + $0x12dc] ss:$40 sps:$4 sm:$0xff]  }
 0x83f   :  { %16399 = vmatprep.subr.bf16.mxu1 %v23539_v58  ;;  %v23585_v58 = vld [vmem:[#allocation12 + $0x2400] ss:$40 sps:$4 sm:$0xff]  }
 0x840   :  { %16589 = vmatpush1.bf16.msra.mxu0 %v23528_v63  ;;  %v23593_v63 = vld [vmem:[#allocation12 + $0x2454] ss:$40 sps:$4 sm:$0xff]  }
 0x841   :  { %16590 = vmatprep.subr.bf16.mxu0 %v23536_v1  ;;  %v23582_v1 = vld [vmem:[#allocation12 + $0x12d8] ss:$40 sps:$4 sm:$0xff]  }
 0x842   :  { %16400 = vmatpush1.bf16.msra.mxu1 %v23537_v8  ;;  %v23590_v8 = vld [vmem:[#allocation12 + $0x132c] ss:$40 sps:$4 sm:$0xff]  }
 0x843   :  { %16401 = vmatprep.subr.bf16.mxu1 %v23545_v5  ;;  %v23591_v5 = vld [vmem:[#allocation12 + $0x2450] ss:$40 sps:$4 sm:$0xff]  }
 0x844   :  { %16591 = vmatpush1.bf16.msra.mxu0 %v23534_v6  ;;  %v23599_v6 = vld [vmem:[#allocation12 + $0x24a4] ss:$40 sps:$4 sm:$0xff]  }
 0x845   :  { %16592 = vmatprep.subr.bf16.mxu0 %v23542_v41  ;;  %v23588_v41 = vld [vmem:[#allocation12 + $0x1328] ss:$40 sps:$4 sm:$0xff]  }
 0x846   :  { %v24904_v35 = vpop.f32.mrb[32].mxu0  ;;  %16402 = vmatpush1.bf16.msra.mxu1 %v23543_v33  ;;  %v23596_v33 = vld [vmem:[#allocation12 + $0x137c] ss:$40 sps:$4 sm:$0xff]  }
 0x847   :  { %v24906_v19 = vpop.f32.mrb[33].mxu0  ;;  %16403 = vmatprep.subr.bf16.mxu1 %v23551_v15  ;;  %v23597_v15 = vld [vmem:[#allocation12 + $0x24a0] ss:$40 sps:$4 sm:$0xff]  }
 0x848   :  { %v16128_v21 = vpop.f32.mrb[34].mxu0  ;;  %16593 = vmatpush1.bf16.msra.mxu0 %v23540_v17  ;;  %v23605_v17 = vld [vmem:[#allocation12 + $0x24f4] ss:$40 sps:$4 sm:$0xff]  }
 0x849   :  { %v16129_v27 = vpop.f32.mrb[35].mxu0  ;;  %16594 = vmatprep.subr.bf16.mxu0 %v23548_v28  ;;  %v23594_v28 = vld [vmem:[#allocation12 + $0x1378] ss:$40 sps:$4 sm:$0xff]   ;;  %v23611_v21 = vld [vmem:[#allocation12 + $0x2544] ss:$40 sps:$4 sm:$0xff]  }
 0x84a   :  { %16404 = vmatpush1.bf16.msra.mxu1 %v23549_v18  ;;  %v23602_v18 = vld [vmem:[#allocation12 + $0x13cc] ss:$40 sps:$4 sm:$0xff]   ;;  %v23608_v27 = vld [vmem:[#allocation12 + $0x141c] ss:$40 sps:$4 sm:$0xff]  }
 0x84b   :  { %16405 = vmatprep.subr.bf16.mxu1 %v23557_v14  ;;  %v23603_v14 = vld [vmem:[#allocation12 + $0x24f0] ss:$40 sps:$4 sm:$0xff]  }
 0x84c   :  { %16595 = vmatpush1.bf16.msra.mxu0 %v23546_v26  ;;  %v23600_v26 = vld [vmem:[#allocation12 + $0x13c8] ss:$40 sps:$4 sm:$0xff]  }
 0x84d   :  { %16596 = vmatprep.subr.bf16.mxu0 %v23554_v25  ;;  %v23609_v25 = vld [vmem:[#allocation12 + $0x2540] ss:$40 sps:$4 sm:$0xff]  }
 0x84e   :  { %16406 = vmatpush1.bf16.msra.mxu1 %v23555_v52  ;;  %v23617_v52 = vld [vmem:[#allocation12 + $0x24] ss:$40 sps:$4 sm:$0xff]  }
 0x84f   :  { %16407 = vmatprep.subr.bf16.mxu1 %v23563_v61  ;;  %v23606_v61 = vld [vmem:[#allocation12 + $0x1418] ss:$40 sps:$4 sm:$0xff]  }
 0x850   :  { %16597 = vmatpush1.bf16.msra.mxu0 %v23552_v59  ;;  %v23614_v59 = vld [vmem:[#allocation12 + $0x146c] ss:$40 sps:$4 sm:$0xff]  }
 0x851   :  { %16598 = vmatprep.subr.bf16.mxu0 %v23560_v30  ;;  %v23615_v30 = vld [vmem:[#allocation12 + $0x20] ss:$40 sps:$4 sm:$0xff]  }
 0x852   :  { %16408 = vmatpush1.bf16.msra.mxu1 %v23561_v32  ;;  %v23623_v32 = vld [vmem:[#allocation12 + $0x74] ss:$40 sps:$4 sm:$0xff]  }
 0x853   :  { %16418 = vmatprep.subr.bf16.mxu1 %v23569_v38  ;;  %v23612_v38 = vld [vmem:[#allocation12 + $0x1468] ss:$40 sps:$4 sm:$0xff]  }
 0x854   :  { %16599 = vmatpush1.bf16.msra.mxu0 %v23558_v45  ;;  %v24912_v45 = vld [vmem:[#allocation3 + $0x38] ss:$0 sps:$4 sm:$0xff]  }
 0x855   :  { %16600 = vmatprep.subr.bf16.mxu0 %v23566_v46  ;;  %16410 = vmatmul.mubr.bf16.vlgmr.msra.gmra.mrb[36].mxu1 %v24864_v23  ;;  %v23620_v46 = vld [vmem:[#allocation12 + $0x14bc] ss:$40 sps:$4 sm:$0xff]  }
 0x856   :  { %16419 = vmatpush1.bf16.msra.mxu1 %v23567_v24  ;;  %16450 = vmatprep.mubr.bf16.mxu1 %v24428_v0  ;;  %v23621_v24 = vld [vmem:[#allocation12 + $0x70] ss:$40 sps:$4 sm:$0xff]  }
 0x857   :  { %16420 = vmatprep.subr.bf16.mxu1 %v23575_v53  ;;  %v23629_v53 = vld [vmem:[#allocation12 + $0xc4] ss:$40 sps:$4 sm:$0xff]  }
 0x858   :  { %16601 = vmatpush1.bf16.msra.mxu0 %v23564_v57  ;;  %v23618_v57 = vld [vmem:[#allocation12 + $0x14b8] ss:$40 sps:$4 sm:$0xff]  }
 0x859   :  { %16602 = vmatprep.subr.bf16.mxu0 %v23572_v50  ;;  %v23626_v50 = vld [vmem:[#allocation12 + $0x150c] ss:$40 sps:$4 sm:$0xff]  }
 0x85a   :  { %16421 = vmatpush1.bf16.msra.mxu1 %v23573_v60  ;;  %v23627_v60 = vld [vmem:[#allocation12 + $0xc0] ss:$40 sps:$4 sm:$0xff]  }
 0x85b   :  { %16422 = vmatprep.subr.bf16.mxu1 %v23581_v29  ;;  %v23635_v29 = vld [vmem:[#allocation12 + $0x114] ss:$40 sps:$4 sm:$0xff]  }
 0x85c   :  { %16603 = vmatpush1.bf16.msra.mxu0 %v23570_v44  ;;  %v23624_v44 = vld [vmem:[#allocation12 + $0x1508] ss:$40 sps:$4 sm:$0xff]  }
 0x85d   :  { %16604 = vmatprep.subr.bf16.mxu0 %v23578_v47  ;;  %v23632_v47 = vld [vmem:[#allocation12 + $0x155c] ss:$40 sps:$4 sm:$0xff]  }
 0x85e   :  { %16423 = vmatpush1.bf16.msra.mxu1 %v23579_v51  ;;  %v23633_v51 = vld [vmem:[#allocation12 + $0x110] ss:$40 sps:$4 sm:$0xff]  }
 0x85f   :  { %16424 = vmatprep.subr.bf16.mxu1 %v23587_v54  ;;  %v23641_v54 = vld [vmem:[#allocation12 + $0x164] ss:$40 sps:$4 sm:$0xff]  }
 0x860   :  { %16605 = vmatpush1.bf16.msra.mxu0 %v23576_v9  ;;  %v23638_v9 = vld [vmem:[#allocation12 + $0x15ac] ss:$40 sps:$4 sm:$0xff]  }
 0x861   :  { %16606 = vmatprep.subr.bf16.mxu0 %v23584_v48  ;;  %v23639_v48 = vld [vmem:[#allocation12 + $0x160] ss:$40 sps:$4 sm:$0xff]  }
 0x862   :  { %16425 = vmatpush1.bf16.msra.mxu1 %v23585_v58  ;;  %v23647_v58 = vld [vmem:[#allocation12 + $0x1b4] ss:$40 sps:$4 sm:$0xff]  }
 0x863   :  { %16426 = vmatprep.subr.bf16.mxu1 %v23593_v63  ;;  %v23636_v63 = vld [vmem:[#allocation12 + $0x15a8] ss:$40 sps:$4 sm:$0xff]  }
 0x864   :  { %16607 = vmatpush1.bf16.msra.mxu0 %v23582_v1  ;;  %v23644_v1 = vld [vmem:[#allocation12 + $0x15fc] ss:$40 sps:$4 sm:$0xff]  }
 0x865   :  { %16608 = vmatprep.subr.bf16.mxu0 %v23590_v8  ;;  %v23645_v8 = vld [vmem:[#allocation12 + $0x1b0] ss:$40 sps:$4 sm:$0xff]  }
 0x866   :  { %16427 = vmatpush1.bf16.msra.mxu1 %v23591_v5  ;;  %v23653_v5 = vld [vmem:[#allocation12 + $0x204] ss:$40 sps:$4 sm:$0xff]  }
 0x867   :  { %16428 = vmatprep.subr.bf16.mxu1 %v23599_v6  ;;  %v23642_v6 = vld [vmem:[#allocation12 + $0x15f8] ss:$40 sps:$4 sm:$0xff]  }
 0x868   :  { %16609 = vmatpush1.bf16.msra.mxu0 %v23588_v41  ;;  %v23650_v41 = vld [vmem:[#allocation12 + $0x164c] ss:$40 sps:$4 sm:$0xff]  }
 0x869   :  { %16610 = vmatprep.subr.bf16.mxu0 %v23596_v33  ;;  %v23651_v33 = vld [vmem:[#allocation12 + $0x200] ss:$40 sps:$4 sm:$0xff]  }
 0x86a   :  { %16429 = vmatpush1.bf16.msra.mxu1 %v23597_v15  ;;  %v23659_v15 = vld [vmem:[#allocation12 + $0x254] ss:$40 sps:$4 sm:$0xff]  }
 0x86b   :  { %16430 = vmatprep.subr.bf16.mxu1 %v23605_v17  ;;  %v23648_v17 = vld [vmem:[#allocation12 + $0x1648] ss:$40 sps:$4 sm:$0xff]  }
 0x86c   :  { %16611 = vmatpush1.bf16.msra.mxu0 %v23594_v28  ;;  %v23656_v28 = vld [vmem:[#allocation12 + $0x169c] ss:$40 sps:$4 sm:$0xff]  }
 0x86d   :  { %16612 = vmatprep.subr.bf16.mxu0 %v23602_v18  ;;  %v23657_v18 = vld [vmem:[#allocation12 + $0x250] ss:$40 sps:$4 sm:$0xff]  }
 0x86e   :  { %16431 = vmatpush1.bf16.msra.mxu1 %v23603_v14  ;;  %v23665_v14 = vld [vmem:[#allocation12 + $0x2a4] ss:$40 sps:$4 sm:$0xff]  }
 0x86f   :  { %16432 = vmatprep.subr.bf16.mxu1 %v23611_v21  ;;  %v23654_v21 = vld [vmem:[#allocation12 + $0x1698] ss:$40 sps:$4 sm:$0xff]  }
 0x870   :  { %16613 = vmatpush1.bf16.msra.mxu0 %v23600_v26  ;;  %v23662_v26 = vld [vmem:[#allocation12 + $0x16ec] ss:$40 sps:$4 sm:$0xff]  }
 0x871   :  { %16623 = vmatprep.subr.bf16.mxu0 %v23608_v27  ;;  %v23663_v27 = vld [vmem:[#allocation12 + $0x2a0] ss:$40 sps:$4 sm:$0xff]  }
 0x872   :  { %16433 = vmatpush1.bf16.msra.mxu1 %v23609_v25  ;;  %v23671_v25 = vld [vmem:[#allocation12 + $0x2f4] ss:$40 sps:$4 sm:$0xff]  }
 0x873   :  { %16615 = vmatmul.mubr.bf16.vlgmr.msra.gmra.mrb[36].mxu0 %v24826_v39  ;;  %16787 = vmatprep.subr.bf16.mxu1 %v23617_v52  ;;  %v23660_v52 = vld [vmem:[#allocation12 + $0x16e8] ss:$40 sps:$4 sm:$0xff]  }
 0x874   :  { %16624 = vmatpush1.bf16.msra.mxu0 %v23606_v61  ;;  %16655 = vmatprep.mubr.bf16.mxu0 %v24831_v40  ;;  %v23668_v61 = vld [vmem:[#allocation12 + $0x173c] ss:$40 sps:$4 sm:$0xff]  }
 0x875   :  { %16625 = vmatprep.subr.bf16.mxu0 %v23614_v59  ;;  %16451 = vmatmul.mubr.bf16.vlgmr.msra.gmra.mrb[36].mxu1 %v24912_v45  ;;  %v23669_v59 = vld [vmem:[#allocation12 + $0x2f0] ss:$40 sps:$4 sm:$0xff]  }
 0x876   :  { %16788 = vmatpush1.bf16.msra.mxu1 %v23615_v30  ;;  %16819 = vmatprep.mubr.bf16.mxu1 %v24749_v56  ;;  %v23630_v56 = vld [vmem:[#allocation12 + $0x1558] ss:$40 sps:$4 sm:$0xff]   ;;  %v23677_v30 = vld [vmem:[#allocation12 + $0x344] ss:$40 sps:$4 sm:$0xff]  }
 0x877   :  { %16789 = vmatprep.subr.bf16.mxu1 %v23623_v32  ;;  %v23666_v32 = vld [vmem:[#allocation12 + $0x1738] ss:$40 sps:$4 sm:$0xff]  }
 0x878   :  { %16626 = vmatpush1.bf16.msra.mxu0 %v23612_v38  ;;  %v23674_v38 = vld [vmem:[#allocation12 + $0x178c] ss:$40 sps:$4 sm:$0xff]  }
 0x879   :  { %16627 = vmatprep.subr.bf16.mxu0 %v23620_v46  ;;  %v23675_v46 = vld [vmem:[#allocation12 + $0x340] ss:$40 sps:$4 sm:$0xff]  }
 0x87a   :  { %16790 = vmatpush1.bf16.msra.mxu1 %v23621_v24  ;;  %v23683_v24 = vld [vmem:[#allocation12 + $0x394] ss:$40 sps:$4 sm:$0xff]  }
 0x87b   :  { %16791 = vmatprep.subr.bf16.mxu1 %v23629_v53  ;;  %v23672_v53 = vld [vmem:[#allocation12 + $0x1788] ss:$40 sps:$4 sm:$0xff]  }
 0x87c   :  { %16628 = vmatpush1.bf16.msra.mxu0 %v23618_v57  ;;  %v23680_v57 = vld [vmem:[#allocation12 + $0x17dc] ss:$40 sps:$4 sm:$0xff]  }
 0x87d   :  { %16629 = vmatprep.subr.bf16.mxu0 %v23626_v50  ;;  %v23681_v50 = vld [vmem:[#allocation12 + $0x390] ss:$40 sps:$4 sm:$0xff]  }
 0x87e   :  { %16792 = vmatpush1.bf16.msra.mxu1 %v23627_v60  ;;  %v23689_v60 = vld [vmem:[#allocation12 + $0x3e4] ss:$40 sps:$4 sm:$0xff]  }
 0x87f   :  { %16793 = vmatprep.subr.bf16.mxu1 %v23635_v29  ;;  %v23678_v29 = vld [vmem:[#allocation12 + $0x17d8] ss:$40 sps:$4 sm:$0xff]  }
 0x880   :  { %16630 = vmatpush1.bf16.msra.mxu0 %v23624_v44  ;;  %v23686_v44 = vld [vmem:[#allocation12 + $0x182c] ss:$40 sps:$4 sm:$0xff]  }
 0x881   :  { %16631 = vmatprep.subr.bf16.mxu0 %v23632_v47  ;;  %v23687_v47 = vld [vmem:[#allocation12 + $0x3e0] ss:$40 sps:$4 sm:$0xff]  }
 0x882   :  { %16794 = vmatpush1.bf16.msra.mxu1 %v23633_v51  ;;  %v23695_v51 = vld [vmem:[#allocation12 + $0x434] ss:$40 sps:$4 sm:$0xff]  }
 0x883   :  { %16795 = vmatprep.subr.bf16.mxu1 %v23641_v54  ;;  %v23684_v54 = vld [vmem:[#allocation12 + $0x1828] ss:$40 sps:$4 sm:$0xff]  }
 0x884   :  { %16632 = vmatpush1.bf16.msra.mxu0 %v23630_v56  ;;  %v23692_v56 = vld [vmem:[#allocation12 + $0x187c] ss:$40 sps:$4 sm:$0xff]  }
 0x885   :  { %16633 = vmatprep.subr.bf16.mxu0 %v23638_v9  ;;  %v23693_v9 = vld [vmem:[#allocation12 + $0x430] ss:$40 sps:$4 sm:$0xff]  }
 0x886   :  { %16796 = vmatpush1.bf16.msra.mxu1 %v23639_v48  ;;  %v23701_v48 = vld [vmem:[#allocation12 + $0x484] ss:$40 sps:$4 sm:$0xff]  }
 0x887   :  { %16797 = vmatprep.subr.bf16.mxu1 %v23647_v58  ;;  %v23690_v58 = vld [vmem:[#allocation12 + $0x1878] ss:$40 sps:$4 sm:$0xff]  }
 0x888   :  { %16634 = vmatpush1.bf16.msra.mxu0 %v23636_v63  ;;  %v23698_v63 = vld [vmem:[#allocation12 + $0x18cc] ss:$40 sps:$4 sm:$0xff]  }
 0x889   :  { %16635 = vmatprep.subr.bf16.mxu0 %v23644_v1  ;;  %v23699_v1 = vld [vmem:[#allocation12 + $0x480] ss:$40 sps:$4 sm:$0xff]  }
 0x88a   :  { %16798 = vmatpush1.bf16.msra.mxu1 %v23645_v8  ;;  %v23707_v8 = vld [vmem:[#allocation12 + $0x4d4] ss:$40 sps:$4 sm:$0xff]  }
 0x88b   :  { %16799 = vmatprep.subr.bf16.mxu1 %v23653_v5  ;;  %v23696_v5 = vld [vmem:[#allocation12 + $0x18c8] ss:$40 sps:$4 sm:$0xff]  }
 0x88c   :  { %16636 = vmatpush1.bf16.msra.mxu0 %v23642_v6  ;;  %v23704_v6 = vld [vmem:[#allocation12 + $0x191c] ss:$40 sps:$4 sm:$0xff]  }
 0x88d   :  { %16637 = vmatprep.subr.bf16.mxu0 %v23650_v41  ;;  %v23705_v41 = vld [vmem:[#allocation12 + $0x4d0] ss:$40 sps:$4 sm:$0xff]  }
 0x88e   :  { %16800 = vmatpush1.bf16.msra.mxu1 %v23651_v33  ;;  %v23713_v33 = vld [vmem:[#allocation12 + $0x524] ss:$40 sps:$4 sm:$0xff]  }
 0x88f   :  { %16801 = vmatprep.subr.bf16.mxu1 %v23659_v15  ;;  %v23702_v15 = vld [vmem:[#allocation12 + $0x1918] ss:$40 sps:$4 sm:$0xff]  }
 0x890   :  { %16638 = vmatpush1.bf16.msra.mxu0 %v23648_v17  ;;  %v23710_v17 = vld [vmem:[#allocation12 + $0x196c] ss:$40 sps:$4 sm:$0xff]  }
 0x891   :  { %16639 = vmatprep.subr.bf16.mxu0 %v23656_v28  ;;  %v23711_v28 = vld [vmem:[#allocation12 + $0x520] ss:$40 sps:$4 sm:$0xff]  }
 0x892   :  { %16802 = vmatpush1.bf16.msra.mxu1 %v23657_v18  ;;  %v23719_v18 = vld [vmem:[#allocation12 + $0x574] ss:$40 sps:$4 sm:$0xff]  }
 0x893   :  { %16803 = vmatprep.subr.bf16.mxu1 %v23665_v14  ;;  %v23708_v14 = vld [vmem:[#allocation12 + $0x1968] ss:$40 sps:$4 sm:$0xff]  }
 0x894   :  { %16640 = vmatpush1.bf16.msra.mxu0 %v23654_v21  ;;  %v23716_v21 = vld [vmem:[#allocation12 + $0x19bc] ss:$40 sps:$4 sm:$0xff]  }
 0x895   :  { %16641 = vmatprep.subr.bf16.mxu0 %v23662_v26  ;;  %v23717_v26 = vld [vmem:[#allocation12 + $0x570] ss:$40 sps:$4 sm:$0xff]  }
 0x896   :  { %16804 = vmatpush1.bf16.msra.mxu1 %v23663_v27  ;;  %v23725_v27 = vld [vmem:[#allocation12 + $0x5c4] ss:$40 sps:$4 sm:$0xff]  }
 0x897   :  { %16805 = vmatprep.subr.bf16.mxu1 %v23671_v25  ;;  %v23714_v25 = vld [vmem:[#allocation12 + $0x19b8] ss:$40 sps:$4 sm:$0xff]  }
 0x898   :  { %16642 = vmatpush1.bf16.msra.mxu0 %v23660_v52  ;;  %v23722_v52 = vld [vmem:[#allocation12 + $0x1a0c] ss:$40 sps:$4 sm:$0xff]  }
 0x899   :  { %16643 = vmatprep.subr.bf16.mxu0 %v23668_v61  ;;  %v23723_v61 = vld [vmem:[#allocation12 + $0x5c0] ss:$40 sps:$4 sm:$0xff]  }
 0x89a   :  { %16806 = vmatpush1.bf16.msra.mxu1 %v23669_v59  ;;  %v23731_v59 = vld [vmem:[#allocation12 + $0x614] ss:$40 sps:$4 sm:$0xff]  }
 0x89b   :  { %16807 = vmatprep.subr.bf16.mxu1 %v23677_v30  ;;  %v23720_v30 = vld [vmem:[#allocation12 + $0x1a08] ss:$40 sps:$4 sm:$0xff]  }
 0x89c   :  { %16644 = vmatpush1.bf16.msra.mxu0 %v23666_v32  ;;  %v23728_v32 = vld [vmem:[#allocation12 + $0x1a5c] ss:$40 sps:$4 sm:$0xff]  }
 0x89d   :  { %16645 = vmatprep.subr.bf16.mxu0 %v23674_v38  ;;  %v23737_v38 = vld [vmem:[#allocation12 + $0x664] ss:$40 sps:$4 sm:$0xff]  }
 0x89e   :  { %16808 = vmatpush1.bf16.msra.mxu1 %v23675_v46  ;;  %v23734_v46 = vld [vmem:[#allocation12 + $0x1aac] ss:$40 sps:$4 sm:$0xff]  }
 0x89f   :  { %16809 = vmatprep.subr.bf16.mxu1 %v23683_v24  ;;  %v23735_v24 = vld [vmem:[#allocation12 + $0x660] ss:$40 sps:$4 sm:$0xff]  }
 0x8a0   :  { %16646 = vmatpush1.bf16.msra.mxu0 %v23672_v53  ;;  %v23743_v53 = vld [vmem:[#allocation12 + $0x6b4] ss:$40 sps:$4 sm:$0xff]  }
 0x8a1   :  { %16647 = vmatprep.subr.bf16.mxu0 %v23680_v57  ;;  %v23732_v57 = vld [vmem:[#allocation12 + $0x1aa8] ss:$40 sps:$4 sm:$0xff]  }
 0x8a2   :  { %16810 = vmatpush1.bf16.msra.mxu1 %v23681_v50  ;;  %v23740_v50 = vld [vmem:[#allocation12 + $0x1afc] ss:$40 sps:$4 sm:$0xff]  }
 0x8a3   :  { %16811 = vmatprep.subr.bf16.mxu1 %v23689_v60  ;;  %v23741_v60 = vld [vmem:[#allocation12 + $0x6b0] ss:$40 sps:$4 sm:$0xff]  }
 0x8a4   :  { %16648 = vmatpush1.bf16.msra.mxu0 %v23678_v29  ;;  %v23749_v29 = vld [vmem:[#allocation12 + $0x704] ss:$40 sps:$4 sm:$0xff]  }
 0x8a5   :  { %16649 = vmatprep.subr.bf16.mxu0 %v23686_v44  ;;  %v23738_v44 = vld [vmem:[#allocation12 + $0x1af8] ss:$40 sps:$4 sm:$0xff]  }
 0x8a6   :  { %16812 = vmatpush1.bf16.msra.mxu1 %v23687_v47  ;;  %v23746_v47 = vld [vmem:[#allocation12 + $0x1b4c] ss:$40 sps:$4 sm:$0xff]  }
 0x8a7   :  { %16813 = vmatprep.subr.bf16.mxu1 %v23695_v51  ;;  %v23747_v51 = vld [vmem:[#allocation12 + $0x700] ss:$40 sps:$4 sm:$0xff]  }
 0x8a8   :  { %16650 = vmatpush1.bf16.msra.mxu0 %v23684_v54  ;;  %v23755_v54 = vld [vmem:[#allocation12 + $0x754] ss:$40 sps:$4 sm:$0xff]  }
 0x8a9   :  { %16651 = vmatprep.subr.bf16.mxu0 %v23692_v56  ;;  %v23744_v56 = vld [vmem:[#allocation12 + $0x1b48] ss:$40 sps:$4 sm:$0xff]  }
 0x8aa   :  { %16814 = vmatpush1.bf16.msra.mxu1 %v23693_v9  ;;  %v23752_v9 = vld [vmem:[#allocation12 + $0x1b9c] ss:$40 sps:$4 sm:$0xff]  }
 0x8ab   :  { %16815 = vmatprep.subr.bf16.mxu1 %v23701_v48  ;;  %v23753_v48 = vld [vmem:[#allocation12 + $0x750] ss:$40 sps:$4 sm:$0xff]  }
 0x8ac   :  { %16652 = vmatpush1.bf16.msra.mxu0 %v23690_v58  ;;  %v23761_v58 = vld [vmem:[#allocation12 + $0x7a4] ss:$40 sps:$4 sm:$0xff]  }
 0x8ad   :  { %16653 = vmatprep.subr.bf16.mxu0 %v23698_v63  ;;  %v23750_v63 = vld [vmem:[#allocation12 + $0x1b98] ss:$40 sps:$4 sm:$0xff]  }
 0x8ae   :  { %16816 = vmatpush1.bf16.msra.mxu1 %v23699_v1  ;;  %v23758_v1 = vld [vmem:[#allocation12 + $0x1bec] ss:$40 sps:$4 sm:$0xff]  }
 0x8af   :  { %16817 = vmatprep.subr.bf16.mxu1 %v23707_v8  ;;  %v23759_v8 = vld [vmem:[#allocation12 + $0x7a0] ss:$40 sps:$4 sm:$0xff]  }
 0x8b0   :  { %16654 = vmatpush1.bf16.msra.mxu0 %v23696_v5  ;;  %v23767_v5 = vld [vmem:[#allocation12 + $0x7f4] ss:$40 sps:$4 sm:$0xff]  }
 0x8b1   :  { %16664 = vmatprep.subr.bf16.mxu0 %v23704_v6  ;;  %v23756_v6 = vld [vmem:[#allocation12 + $0x1be8] ss:$40 sps:$4 sm:$0xff]  }
 0x8b2   :  { %16818 = vmatpush1.bf16.msra.mxu1 %v23705_v41  ;;  %v23764_v41 = vld [vmem:[#allocation12 + $0x1c3c] ss:$40 sps:$4 sm:$0xff]  }
 0x8b3   :  { %16656 = vmatmul.mubr.bf16.vlgmr.msra.gmra.mrb[36].mxu0 %v24842_v7  ;;  %16828 = vmatprep.subr.bf16.mxu1 %v23713_v33  ;;  %v23765_v33 = vld [vmem:[#allocation12 + $0x7f0] ss:$40 sps:$4 sm:$0xff]  }
 0x8b4   :  { %16665 = vmatpush1.bf16.msra.mxu0 %v23702_v15  ;;  %16696 = vmatprep.mubr.bf16.mxu0 %v24846_v43  ;;  %v23773_v15 = vld [vmem:[#allocation12 + $0x844] ss:$40 sps:$4 sm:$0xff]  }
 0x8b5   :  { %16666 = vmatprep.subr.bf16.mxu0 %v23710_v17  ;;  %16820 = vmatmul.mubr.bf16.vlgmr.msra.gmra.mrb[40].mxu1 %v24759_v20  ;;  %v23729_v20 = vld [vmem:[#allocation12 + $0x610] ss:$40 sps:$4 sm:$0xff]  }
 0x8b6   :  { %16829 = vmatpush1.bf16.msra.mxu1 %v23711_v28  ;;  %16860 = vmatprep.mubr.bf16.mxu1 %v24763_v42  ;;  %v23726_v42 = vld [vmem:[#allocation12 + $0x1a58] ss:$40 sps:$4 sm:$0xff]   ;;  %v23770_v28 = vld [vmem:[#allocation12 + $0x1c8c] ss:$40 sps:$4 sm:$0xff]  }
 0x8b7   :  { %16830 = vmatprep.subr.bf16.mxu1 %v23719_v18  ;;  %v23762_v17 = vld [vmem:[#allocation12 + $0x1c38] ss:$40 sps:$4 sm:$0xff]  }
 0x8b8   :  { %16667 = vmatpush1.bf16.msra.mxu0 %v23708_v14  ;;  %v23771_v18 = vld [vmem:[#allocation12 + $0x840] ss:$40 sps:$4 sm:$0xff]   ;;  %v23779_v14 = vld [vmem:[#allocation12 + $0x894] ss:$40 sps:$4 sm:$0xff]  }
 0x8b9   :  { %16668 = vmatprep.subr.bf16.mxu0 %v23716_v21  ;;  %v23768_v21 = vld [vmem:[#allocation12 + $0x1c88] ss:$40 sps:$4 sm:$0xff]  }
 0x8ba   :  { %16831 = vmatpush1.bf16.msra.mxu1 %v23717_v26  ;;  %v23776_v26 = vld [vmem:[#allocation12 + $0x1cdc] ss:$40 sps:$4 sm:$0xff]  }
 0x8bb   :  { %16832 = vmatprep.subr.bf16.mxu1 %v23725_v27  ;;  %v23777_v27 = vld [vmem:[#allocation12 + $0x890] ss:$40 sps:$4 sm:$0xff]  }
 0x8bc   :  { %16669 = vmatpush1.bf16.msra.mxu0 %v23714_v25  ;;  %v23785_v25 = vld [vmem:[#allocation12 + $0x8e4] ss:$40 sps:$4 sm:$0xff]  }
 0x8bd   :  { %16670 = vmatprep.subr.bf16.mxu0 %v23722_v52  ;;  %v23774_v52 = vld [vmem:[#allocation12 + $0x1cd8] ss:$40 sps:$4 sm:$0xff]  }
 0x8be   :  { %16833 = vmatpush1.bf16.msra.mxu1 %v23723_v61  ;;  %v23782_v61 = vld [vmem:[#allocation12 + $0x1d2c] ss:$40 sps:$4 sm:$0xff]  }
 0x8bf   :  { %16834 = vmatprep.subr.bf16.mxu1 %v23731_v59  ;;  %v23783_v59 = vld [vmem:[#allocation12 + $0x8e0] ss:$40 sps:$4 sm:$0xff]  }
 0x8c0   :  { %16671 = vmatpush1.bf16.msra.mxu0 %v23720_v30  ;;  %v23791_v30 = vld [vmem:[#allocation12 + $0x934] ss:$40 sps:$4 sm:$0xff]  }
 0x8c1   :  { %16672 = vmatprep.subr.bf16.mxu0 %v23728_v32  ;;  %v23780_v32 = vld [vmem:[#allocation12 + $0x1d28] ss:$40 sps:$4 sm:$0xff]  }
 0x8c2   :  { %16835 = vmatpush1.bf16.msra.mxu1 %v23729_v20  ;;  %v23788_v20 = vld [vmem:[#allocation12 + $0x1d7c] ss:$40 sps:$4 sm:$0xff]  }
 0x8c3   :  { %16836 = vmatprep.subr.bf16.mxu1 %v23737_v38  ;;  %v23789_v38 = vld [vmem:[#allocation12 + $0x930] ss:$40 sps:$4 sm:$0xff]  }
 0x8c4   :  { %16673 = vmatpush1.bf16.msra.mxu0 %v23726_v42  ;;  %v23797_v42 = vld [vmem:[#allocation12 + $0x984] ss:$40 sps:$4 sm:$0xff]  }
 0x8c5   :  { %16674 = vmatprep.subr.bf16.mxu0 %v23734_v46  ;;  %v23786_v46 = vld [vmem:[#allocation12 + $0x1d78] ss:$40 sps:$4 sm:$0xff]  }
 0x8c6   :  { %16837 = vmatpush1.bf16.msra.mxu1 %v23735_v24  ;;  %v23794_v24 = vld [vmem:[#allocation12 + $0x1dcc] ss:$40 sps:$4 sm:$0xff]  }
 0x8c7   :  { %16838 = vmatprep.subr.bf16.mxu1 %v23743_v53  ;;  %v23795_v53 = vld [vmem:[#allocation12 + $0x980] ss:$40 sps:$4 sm:$0xff]  }
 0x8c8   :  { %16675 = vmatpush1.bf16.msra.mxu0 %v23732_v57  ;;  %v23803_v57 = vld [vmem:[#allocation12 + $0x9d4] ss:$40 sps:$4 sm:$0xff]  }
 0x8c9   :  { %16676 = vmatprep.subr.bf16.mxu0 %v23740_v50  ;;  %v23792_v50 = vld [vmem:[#allocation12 + $0x1dc8] ss:$40 sps:$4 sm:$0xff]  }
 0x8ca   :  { %16839 = vmatpush1.bf16.msra.mxu1 %v23741_v60  ;;  %v23800_v60 = vld [vmem:[#allocation12 + $0x1e1c] ss:$40 sps:$4 sm:$0xff]  }
 0x8cb   :  { %16840 = vmatprep.subr.bf16.mxu1 %v23749_v29  ;;  %v23801_v29 = vld [vmem:[#allocation12 + $0x9d0] ss:$40 sps:$4 sm:$0xff]  }
 0x8cc   :  { %16677 = vmatpush1.bf16.msra.mxu0 %v23738_v44  ;;  %v23809_v44 = vld [vmem:[#allocation12 + $0xa24] ss:$40 sps:$4 sm:$0xff]  }
 0x8cd   :  { %16678 = vmatprep.subr.bf16.mxu0 %v23746_v47  ;;  %v23798_v47 = vld [vmem:[#allocation12 + $0x1e18] ss:$40 sps:$4 sm:$0xff]  }
 0x8ce   :  { %16841 = vmatpush1.bf16.msra.mxu1 %v23747_v51  ;;  %v23806_v51 = vld [vmem:[#allocation12 + $0x1e6c] ss:$40 sps:$4 sm:$0xff]  }
 0x8cf   :  { %16842 = vmatprep.subr.bf16.mxu1 %v23755_v54  ;;  %v23807_v54 = vld [vmem:[#allocation12 + $0xa20] ss:$40 sps:$4 sm:$0xff]  }
 0x8d0   :  { %16679 = vmatpush1.bf16.msra.mxu0 %v23744_v56  ;;  %v23815_v56 = vld [vmem:[#allocation12 + $0xa74] ss:$40 sps:$4 sm:$0xff]  }
 0x8d1   :  { %16680 = vmatprep.subr.bf16.mxu0 %v23752_v9  ;;  %v23804_v9 = vld [vmem:[#allocation12 + $0x1e68] ss:$40 sps:$4 sm:$0xff]  }
 0x8d2   :  { %16843 = vmatpush1.bf16.msra.mxu1 %v23753_v48  ;;  %v23812_v48 = vld [vmem:[#allocation12 + $0x1ebc] ss:$40 sps:$4 sm:$0xff]  }
 0x8d3   :  { %16844 = vmatprep.subr.bf16.mxu1 %v23761_v58  ;;  %v23813_v58 = vld [vmem:[#allocation12 + $0xa70] ss:$40 sps:$4 sm:$0xff]  }
 0x8d4   :  { %16681 = vmatpush1.bf16.msra.mxu0 %v23750_v63  ;;  %v23821_v63 = vld [vmem:[#allocation12 + $0xac4] ss:$40 sps:$4 sm:$0xff]  }
 0x8d5   :  { %16682 = vmatprep.subr.bf16.mxu0 %v23758_v1  ;;  %v23810_v1 = vld [vmem:[#allocation12 + $0x1eb8] ss:$40 sps:$4 sm:$0xff]  }
 0x8d6   :  { %16845 = vmatpush1.bf16.msra.mxu1 %v23759_v8  ;;  %v23818_v8 = vld [vmem:[#allocation12 + $0x1f0c] ss:$40 sps:$4 sm:$0xff]  }
 0x8d7   :  { %16846 = vmatprep.subr.bf16.mxu1 %v23767_v5  ;;  %v23819_v5 = vld [vmem:[#allocation12 + $0xac0] ss:$40 sps:$4 sm:$0xff]  }
 0x8d8   :  { %16683 = vmatpush1.bf16.msra.mxu0 %v23756_v6  ;;  %v23827_v6 = vld [vmem:[#allocation12 + $0xb14] ss:$40 sps:$4 sm:$0xff]  }
 0x8d9   :  { %16684 = vmatprep.subr.bf16.mxu0 %v23764_v41  ;;  %v23816_v41 = vld [vmem:[#allocation12 + $0x1f08] ss:$40 sps:$4 sm:$0xff]  }
 0x8da   :  { %16847 = vmatpush1.bf16.msra.mxu1 %v23765_v33  ;;  %v23824_v33 = vld [vmem:[#allocation12 + $0x1f5c] ss:$40 sps:$4 sm:$0xff]  }
 0x8db   :  { %16848 = vmatprep.subr.bf16.mxu1 %v23773_v15  ;;  %v23833_v15 = vld [vmem:[#allocation12 + $0xb64] ss:$40 sps:$4 sm:$0xff]  }
 0x8dc   :  { %16685 = vmatpush1.bf16.msra.mxu0 %v23762_v17  ;;  %v23830_v17 = vld [vmem:[#allocation12 + $0x1fac] ss:$40 sps:$4 sm:$0xff]  }
 0x8dd   :  { %16686 = vmatprep.subr.bf16.mxu0 %v23770_v28  ;;  %v23831_v28 = vld [vmem:[#allocation12 + $0xb60] ss:$40 sps:$4 sm:$0xff]  }
 0x8de   :  { %16849 = vmatpush1.bf16.msra.mxu1 %v23771_v18  ;;  %v23839_v18 = vld [vmem:[#allocation12 + $0xbb4] ss:$40 sps:$4 sm:$0xff]  }
 0x8df   :  { %16850 = vmatprep.subr.bf16.mxu1 %v23779_v14  ;;  %v23828_v14 = vld [vmem:[#allocation12 + $0x1fa8] ss:$40 sps:$4 sm:$0xff]  }
 0x8e0   :  { %16687 = vmatpush1.bf16.msra.mxu0 %v23768_v21  ;;  %v23836_v21 = vld [vmem:[#allocation12 + $0x1ffc] ss:$40 sps:$4 sm:$0xff]  }
 0x8e1   :  { %16688 = vmatprep.subr.bf16.mxu0 %v23776_v26  ;;  %v23837_v26 = vld [vmem:[#allocation12 + $0xbb0] ss:$40 sps:$4 sm:$0xff]  }
 0x8e2   :  { %16851 = vmatpush1.bf16.msra.mxu1 %v23777_v27  ;;  %v23845_v27 = vld [vmem:[#allocation12 + $0xc04] ss:$40 sps:$4 sm:$0xff]  }
 0x8e3   :  { %16852 = vmatprep.subr.bf16.mxu1 %v23785_v25  ;;  %v23834_v25 = vld [vmem:[#allocation12 + $0x1ff8] ss:$40 sps:$4 sm:$0xff]  }
 0x8e4   :  { %16689 = vmatpush1.bf16.msra.mxu0 %v23774_v52  ;;  %v23842_v52 = vld [vmem:[#allocation12 + $0x204c] ss:$40 sps:$4 sm:$0xff]  }
 0x8e5   :  { %16690 = vmatprep.subr.bf16.mxu0 %v23782_v61  ;;  %v23843_v61 = vld [vmem:[#allocation12 + $0xc00] ss:$40 sps:$4 sm:$0xff]  }
 0x8e6   :  { %16853 = vmatpush1.bf16.msra.mxu1 %v23783_v59  ;;  %v23851_v59 = vld [vmem:[#allocation12 + $0xc54] ss:$40 sps:$4 sm:$0xff]  }
 0x8e7   :  { %16854 = vmatprep.subr.bf16.mxu1 %v23791_v30  ;;  %v23840_v30 = vld [vmem:[#allocation12 + $0x2048] ss:$40 sps:$4 sm:$0xff]  }
 0x8e8   :  { %16691 = vmatpush1.bf16.msra.mxu0 %v23780_v32  ;;  %v23848_v32 = vld [vmem:[#allocation12 + $0x209c] ss:$40 sps:$4 sm:$0xff]  }
 0x8e9   :  { %16692 = vmatprep.subr.bf16.mxu0 %v23788_v20  ;;  %v23849_v20 = vld [vmem:[#allocation12 + $0xc50] ss:$40 sps:$4 sm:$0xff]  }
 0x8ea   :  { %16855 = vmatpush1.bf16.msra.mxu1 %v23789_v38  ;;  %v23857_v38 = vld [vmem:[#allocation12 + $0xca4] ss:$40 sps:$4 sm:$0xff]  }
 0x8eb   :  { %16856 = vmatprep.subr.bf16.mxu1 %v23797_v42  ;;  %v23846_v42 = vld [vmem:[#allocation12 + $0x2098] ss:$40 sps:$4 sm:$0xff]  }
 0x8ec   :  { %16693 = vmatpush1.bf16.msra.mxu0 %v23786_v46  ;;  %v23854_v46 = vld [vmem:[#allocation12 + $0x20ec] ss:$40 sps:$4 sm:$0xff]  }
 0x8ed   :  { %16694 = vmatprep.subr.bf16.mxu0 %v23794_v24  ;;  %v23855_v24 = vld [vmem:[#allocation12 + $0xca0] ss:$40 sps:$4 sm:$0xff]  }
 0x8ee   :  { %16857 = vmatpush1.bf16.msra.mxu1 %v23795_v53  ;;  %v23863_v53 = vld [vmem:[#allocation12 + $0xcf4] ss:$40 sps:$4 sm:$0xff]  }
 0x8ef   :  { %16858 = vmatprep.subr.bf16.mxu1 %v23803_v57  ;;  %v23852_v57 = vld [vmem:[#allocation12 + $0x20e8] ss:$40 sps:$4 sm:$0xff]  }
 0x8f0   :  { %16695 = vmatpush1.bf16.msra.mxu0 %v23792_v50  ;;  %v23860_v50 = vld [vmem:[#allocation12 + $0x213c] ss:$40 sps:$4 sm:$0xff]  }
 0x8f1   :  { %16705 = vmatprep.subr.bf16.mxu0 %v23800_v60  ;;  %v23861_v60 = vld [vmem:[#allocation12 + $0xcf0] ss:$40 sps:$4 sm:$0xff]  }
 0x8f2   :  { %16859 = vmatpush1.bf16.msra.mxu1 %v23801_v29  ;;  %v23869_v29 = vld [vmem:[#allocation12 + $0xd44] ss:$40 sps:$4 sm:$0xff]  }
 0x8f3   :  { %16697 = vmatmul.mubr.bf16.vlgmr.msra.gmra.mrb[36].mxu0 %v24854_v11  ;;  %16869 = vmatprep.subr.bf16.mxu1 %v23809_v44  ;;  %v23858_v44 = vld [vmem:[#allocation12 + $0x2138] ss:$40 sps:$4 sm:$0xff]  }
 0x8f4   :  { %16706 = vmatpush1.bf16.msra.mxu0 %v23798_v47  ;;  %16737 = vmatprep.mubr.bf16.mxu0 %v24861_v16  ;;  %v23866_v47 = vld [vmem:[#allocation12 + $0x218c] ss:$40 sps:$4 sm:$0xff]  }
 0x8f5   :  { %16707 = vmatprep.subr.bf16.mxu0 %v23806_v51  ;;  %16861 = vmatmul.mubr.bf16.vlgmr.msra.gmra.mrb[40].mxu1 %v24781_v2  ;;  %v23825_v2 = vld [vmem:[#allocation12 + $0xb10] ss:$40 sps:$4 sm:$0xff]   ;;  %v23867_v51 = vld [vmem:[#allocation12 + $0xd40] ss:$40 sps:$4 sm:$0xff]  }
 0x8f6   :  { %16870 = vmatpush1.bf16.msra.mxu1 %v23807_v54  ;;  %16901 = vmatprep.mubr.bf16.mxu1 %v24785_v3  ;;  %v23822_v3 = vld [vmem:[#allocation12 + $0x1f58] ss:$40 sps:$4 sm:$0xff]   ;;  %v23875_v54 = vld [vmem:[#allocation12 + $0xd94] ss:$40 sps:$4 sm:$0xff]  }
 0x8f7   :  { %16871 = vmatprep.subr.bf16.mxu1 %v23815_v56  ;;  %v23864_v56 = vld [vmem:[#allocation12 + $0x2188] ss:$40 sps:$4 sm:$0xff]  }
 0x8f8   :  { %16708 = vmatpush1.bf16.msra.mxu0 %v23804_v9  ;;  %v23872_v9 = vld [vmem:[#allocation12 + $0x21dc] ss:$40 sps:$4 sm:$0xff]  }
 0x8f9   :  { %16709 = vmatprep.subr.bf16.mxu0 %v23812_v48  ;;  %v23873_v48 = vld [vmem:[#allocation12 + $0xd90] ss:$40 sps:$4 sm:$0xff]  }
 0x8fa   :  { %16872 = vmatpush1.bf16.msra.mxu1 %v23813_v58  ;;  %v23881_v58 = vld [vmem:[#allocation12 + $0xde4] ss:$40 sps:$4 sm:$0xff]  }
 0x8fb   :  { %16873 = vmatprep.subr.bf16.mxu1 %v23821_v63  ;;  %v23870_v63 = vld [vmem:[#allocation12 + $0x21d8] ss:$40 sps:$4 sm:$0xff]  }
 0x8fc   :  { %16710 = vmatpush1.bf16.msra.mxu0 %v23810_v1  ;;  %v23878_v1 = vld [vmem:[#allocation12 + $0x222c] ss:$40 sps:$4 sm:$0xff]  }
 0x8fd   :  { %16711 = vmatprep.subr.bf16.mxu0 %v23818_v8  ;;  %v23879_v8 = vld [vmem:[#allocation12 + $0xde0] ss:$40 sps:$4 sm:$0xff]  }
 0x8fe   :  { %16874 = vmatpush1.bf16.msra.mxu1 %v23819_v5  ;;  %v23887_v5 = vld [vmem:[#allocation12 + $0xe34] ss:$40 sps:$4 sm:$0xff]  }
 0x8ff   :  { %16875 = vmatprep.subr.bf16.mxu1 %v23827_v6  ;;  %v23876_v6 = vld [vmem:[#allocation12 + $0x2228] ss:$40 sps:$4 sm:$0xff]  }
 0x900   :  { %16712 = vmatpush1.bf16.msra.mxu0 %v23816_v41  ;;  %v23884_v41 = vld [vmem:[#allocation12 + $0x227c] ss:$40 sps:$4 sm:$0xff]  }
 0x901   :  { %16713 = vmatprep.subr.bf16.mxu0 %v23824_v33  ;;  %v23885_v33 = vld [vmem:[#allocation12 + $0xe30] ss:$40 sps:$4 sm:$0xff]  }
 0x902   :  { %16876 = vmatpush1.bf16.msra.mxu1 %v23825_v2  ;;  %v23893_v2 = vld [vmem:[#allocation12 + $0xe84] ss:$40 sps:$4 sm:$0xff]  }
 0x903   :  { %16877 = vmatprep.subr.bf16.mxu1 %v23833_v15  ;;  %v23882_v15 = vld [vmem:[#allocation12 + $0x2278] ss:$40 sps:$4 sm:$0xff]  }
 0x904   :  { %16714 = vmatpush1.bf16.msra.mxu0 %v23822_v3  ;;  %v23890_v3 = vld [vmem:[#allocation12 + $0x22cc] ss:$40 sps:$4 sm:$0xff]  }
 0x905   :  { %16715 = vmatprep.subr.bf16.mxu0 %v23830_v17  ;;  %v23891_v17 = vld [vmem:[#allocation12 + $0xe80] ss:$40 sps:$4 sm:$0xff]  }
 0x906   :  { %16878 = vmatpush1.bf16.msra.mxu1 %v23831_v28  ;;  %v23899_v28 = vld [vmem:[#allocation12 + $0xed4] ss:$40 sps:$4 sm:$0xff]  }
 0x907   :  { %16879 = vmatprep.subr.bf16.mxu1 %v23839_v18  ;;  %v23888_v18 = vld [vmem:[#allocation12 + $0x22c8] ss:$40 sps:$4 sm:$0xff]  }
 0x908   :  { %16716 = vmatpush1.bf16.msra.mxu0 %v23828_v14  ;;  %v23896_v14 = vld [vmem:[#allocation12 + $0x231c] ss:$40 sps:$4 sm:$0xff]  }
 0x909   :  { %16717 = vmatprep.subr.bf16.mxu0 %v23836_v21  ;;  %v23897_v21 = vld [vmem:[#allocation12 + $0xed0] ss:$40 sps:$4 sm:$0xff]  }
 0x90a   :  { %16880 = vmatpush1.bf16.msra.mxu1 %v23837_v26  ;;  %v23905_v26 = vld [vmem:[#allocation12 + $0xf24] ss:$40 sps:$4 sm:$0xff]  }
 0x90b   :  { %16881 = vmatprep.subr.bf16.mxu1 %v23845_v27  ;;  %v23894_v27 = vld [vmem:[#allocation12 + $0x2318] ss:$40 sps:$4 sm:$0xff]  }
 0x90c   :  { %16718 = vmatpush1.bf16.msra.mxu0 %v23834_v25  ;;  %v23902_v25 = vld [vmem:[#allocation12 + $0x236c] ss:$40 sps:$4 sm:$0xff]  }
 0x90d   :  { %16719 = vmatprep.subr.bf16.mxu0 %v23842_v52  ;;  %v23903_v52 = vld [vmem:[#allocation12 + $0xf20] ss:$40 sps:$4 sm:$0xff]  }
 0x90e   :  { %16882 = vmatpush1.bf16.msra.mxu1 %v23843_v61  ;;  %v23911_v61 = vld [vmem:[#allocation12 + $0xf74] ss:$40 sps:$4 sm:$0xff]  }
 0x90f   :  { %16883 = vmatprep.subr.bf16.mxu1 %v23851_v59  ;;  %v23900_v59 = vld [vmem:[#allocation12 + $0x2368] ss:$40 sps:$4 sm:$0xff]  }
 0x910   :  { %16720 = vmatpush1.bf16.msra.mxu0 %v23840_v30  ;;  %v23908_v30 = vld [vmem:[#allocation12 + $0x23bc] ss:$40 sps:$4 sm:$0xff]  }
 0x911   :  { %16721 = vmatprep.subr.bf16.mxu0 %v23848_v32  ;;  %v23909_v32 = vld [vmem:[#allocation12 + $0xf70] ss:$40 sps:$4 sm:$0xff]  }
 0x912   :  { %16884 = vmatpush1.bf16.msra.mxu1 %v23849_v20  ;;  %v23917_v20 = vld [vmem:[#allocation12 + $0xfc4] ss:$40 sps:$4 sm:$0xff]  }
 0x913   :  { %16885 = vmatprep.subr.bf16.mxu1 %v23857_v38  ;;  %v23906_v38 = vld [vmem:[#allocation12 + $0x23b8] ss:$40 sps:$4 sm:$0xff]  }
 0x914   :  { %16722 = vmatpush1.bf16.msra.mxu0 %v23846_v42  ;;  %v23914_v42 = vld [vmem:[#allocation12 + $0x240c] ss:$40 sps:$4 sm:$0xff]  }
 0x915   :  { %16723 = vmatprep.subr.bf16.mxu0 %v23854_v46  ;;  %v23915_v46 = vld [vmem:[#allocation12 + $0xfc0] ss:$40 sps:$4 sm:$0xff]  }
 0x916   :  { %16886 = vmatpush1.bf16.msra.mxu1 %v23855_v24  ;;  %v23923_v24 = vld [vmem:[#allocation12 + $0x1014] ss:$40 sps:$4 sm:$0xff]  }
 0x917   :  { %16887 = vmatprep.subr.bf16.mxu1 %v23863_v53  ;;  %v23912_v53 = vld [vmem:[#allocation12 + $0x2408] ss:$40 sps:$4 sm:$0xff]  }
 0x918   :  { %16724 = vmatpush1.bf16.msra.mxu0 %v23852_v57  ;;  %v23920_v57 = vld [vmem:[#allocation12 + $0x245c] ss:$40 sps:$4 sm:$0xff]  }
 0x919   :  { %16725 = vmatprep.subr.bf16.mxu0 %v23860_v50  ;;  %v23929_v50 = vld [vmem:[#allocation12 + $0x1064] ss:$40 sps:$4 sm:$0xff]  }
 0x91a   :  { %16888 = vmatpush1.bf16.msra.mxu1 %v23861_v60  ;;  %v23926_v60 = vld [vmem:[#allocation12 + $0x24ac] ss:$40 sps:$4 sm:$0xff]  }
 0x91b   :  { %16889 = vmatprep.subr.bf16.mxu1 %v23869_v29  ;;  %v23927_v29 = vld [vmem:[#allocation12 + $0x1060] ss:$40 sps:$4 sm:$0xff]  }
 0x91c   :  { %16726 = vmatpush1.bf16.msra.mxu0 %v23858_v44  ;;  %v24928_v44 = vld [vmem:[#allocation13] sm:$0xff] }
 0x91d   :  { %16727 = vmatprep.subr.bf16.mxu0 %v23866_v47  ;;  %v23935_v47 = vld [vmem:[#allocation12 + $0x10b4] ss:$40 sps:$4 sm:$0xff]  }
 0x91e   :  { %16890 = vmatpush1.bf16.msra.mxu1 %v23867_v51  ;;  %v23924_v51 = vld [vmem:[#allocation12 + $0x24a8] ss:$40 sps:$4 sm:$0xff]  }
 0x91f   :  { %16891 = vmatprep.subr.bf16.mxu1 %v23875_v54  ;;  %v23932_v54 = vld [vmem:[#allocation12 + $0x24fc] ss:$40 sps:$4 sm:$0xff]  }
 0x920   :  { %16728 = vmatpush1.bf16.msra.mxu0 %v23864_v56  ;;  %v9379_v56 = vrot.slane %v24928_v44, %v24603_v12 }
 0x921   :  { %16729 = vmatprep.subr.bf16.mxu0 %v23872_v9  ;;  %v23933_v9 = vld [vmem:[#allocation12 + $0x10b0] ss:$40 sps:$4 sm:$0xff]  }
 0x922   :  { %16892 = vmatpush1.bf16.msra.mxu1 %v23873_v48  ;;  %v23941_v48 = vld [vmem:[#allocation12 + $0x1104] ss:$40 sps:$4 sm:$0xff]  }
 0x923   :  { %16893 = vmatprep.subr.bf16.mxu1 %v23881_v58 }
 0x924   :  { %16730 = vmatpush1.bf16.msra.mxu0 %v23870_v63  ;;  %v23930_v63 = vld [vmem:[#allocation12 + $0x24f8] ss:$40 sps:$4 sm:$0xff]  }
 0x925   :  { %16731 = vmatprep.subr.bf16.mxu0 %v23878_v1 }
 0x926   :  { %16894 = vmatpush1.bf16.msra.mxu1 %v23879_v8  ;;  %v23938_v8 = vld [vmem:[#allocation12 + $0x254c] ss:$40 sps:$4 sm:$0xff]  }
 0x927   :  { %16895 = vmatprep.subr.bf16.mxu1 %v23887_v5  ;;  %v20672_v5 = vadd.f32 %v24888_v31, %v9379_v56  ;;  %v23976_v56 = vld [vmem:[#allocation15 + $0x30] sm:$0xff]  }
 0x928   :  { %16732 = vmatpush1.bf16.msra.mxu0 %v23876_v6 }
 0x929   :  { %16733 = vmatprep.subr.bf16.mxu0 %v23884_v41  ;;  %v23939_v41 = vld [vmem:[#allocation12 + $0x1100] ss:$40 sps:$4 sm:$0xff]  }
 0x92a   :  { %16896 = vmatpush1.bf16.msra.mxu1 %v23885_v33 }
 0x92b   :  { %16897 = vmatprep.subr.bf16.mxu1 %v23893_v2  ;;  %v23945_v2 = vld [vmem:[#allocation12 + $0x1154] ss:$40 sps:$4 sm:$0xff]  }
 0x92c   :  { %16734 = vmatpush1.bf16.msra.mxu0 %v23882_v15  ;;  %v23936_v15 = vld [vmem:[#allocation12 + $0x2548] ss:$40 sps:$4 sm:$0xff]  }
 0x92d   :  { %16735 = vmatprep.subr.bf16.mxu0 %v23890_v3  ;;  %v23942_v3 = vld [vmem:[#allocation15 + $0x40] sm:$0xff]  }
 0x92e   :  { %16898 = vmatpush1.bf16.msra.mxu1 %v23891_v17  ;;  %v17116_v17 = vmax.f32 %v20672_v5, 0.0  ;;  %v23985_v5 = vld [vmem:[#allocation12 + $0x13d4] ss:$40 sps:$4 sm:$0xff]  }
 0x92f   :  { %16899 = vmatprep.subr.bf16.mxu1 %v23899_v28  ;;  %v23943_v28 = vld [vmem:[#allocation12 + $0x1150] ss:$40 sps:$4 sm:$0xff]  }
 0x930   :  { %16736 = vmatpush1.bf16.msra.mxu0 %v23888_v18  ;;  %v23950_v18 = vld [vmem:[#allocation12 + $0x11a4] ss:$40 sps:$4 sm:$0xff]   ;;  %v20448_v31 = vpack.c.bf16 %v17116_v17, %v17116_v17  ;;  %v23987_v17 = vld [vmem:[#allocation15 + $0xc8] sm:$0xff]  }
 0x931   :  { %16746 = vmatprep.subr.bf16.mxu0 %v23896_v14  ;;  %v23946_v14 = vld [vmem:[#allocation15] sm:$0xff]  }
 0x932   :  { %16900 = vmatpush1.bf16.msra.mxu1 %v23897_v21  ;;  %v23947_v21 = vld [vmem:[#allocation15 + $0x48] sm:$0xff]  }
 0x933   :  { %16738 = vmatmul.mubr.bf16.vlgmr.msra.gmra.mrb[36].mxu0 %v24864_v23  ;;  %16910 = vmatprep.subr.bf16.mxu1 %v23905_v26  ;;  %v23948_v26 = vld [vmem:[#allocation12 + $0x11a0] ss:$40 sps:$4 sm:$0xff]  }
 0x934   :  { %16747 = vmatpush1.bf16.msra.mxu0 %v23894_v27  ;;  %16778 = vmatprep.mubr.bf16.mxu0 %v24428_v0  ;;  %v23955_v27 = vld [vmem:[#allocation12 + $0x11f4] ss:$40 sps:$4 sm:$0xff]  }
 0x935   :  { %16748 = vmatprep.subr.bf16.mxu0 %v23902_v25  ;;  %16902 = vmatmul.mubr.bf16.vlgmr.msra.gmra.mrb[40].mxu1 %v24813_v55  ;;  %v23921_v55 = vld [vmem:[#allocation12 + $0x1010] ss:$40 sps:$4 sm:$0xff]  }
 0x936   :  { %16911 = vmatpush1.bf16.msra.mxu1 %v23903_v52  ;;  %16942 = vmatprep.mubr.bf16.mxu1 %v24817_v62  ;;  %v23918_v62 = vld [vmem:[#allocation12 + $0x2458] ss:$40 sps:$4 sm:$0xff]  }
 0x937   :  { %16912 = vmatprep.subr.bf16.mxu1 %v23911_v61  ;;  %v23951_v25 = vld [vmem:[#allocation15 + $0x8] sm:$0xff]   ;;  %v23952_v52 = vld [vmem:[#allocation15 + $0x50] sm:$0xff]  }
 0x938   :  { %16749 = vmatpush1.bf16.msra.mxu0 %v23900_v59  ;;  %v23953_v61 = vld [vmem:[#allocation12 + $0x11f0] ss:$40 sps:$4 sm:$0xff]   ;;  %v23960_v59 = vld [vmem:[#allocation12 + $0x1244] ss:$40 sps:$4 sm:$0xff]  }
 0x939   :  { %16750 = vmatprep.subr.bf16.mxu0 %v23908_v30  ;;  %v23956_v30 = vld [vmem:[#allocation15 + $0x10] sm:$0xff]  }
 0x93a   :  { %16913 = vmatpush1.bf16.msra.mxu1 %v23909_v32  ;;  %v23957_v32 = vld [vmem:[#allocation15 + $0x58] sm:$0xff]  }
 0x93b   :  { %16914 = vmatprep.subr.bf16.mxu1 %v23917_v20  ;;  %v23958_v20 = vld [vmem:[#allocation12 + $0x1240] ss:$40 sps:$4 sm:$0xff]  }
 0x93c   :  { %16751 = vmatpush1.bf16.msra.mxu0 %v23906_v38  ;;  %v23965_v38 = vld [vmem:[#allocation12 + $0x1294] ss:$40 sps:$4 sm:$0xff]  }
 0x93d   :  { %16752 = vmatprep.subr.bf16.mxu0 %v23914_v42  ;;  %v23962_v42 = vld [vmem:[#allocation15 + $0x60] sm:$0xff]  }
 0x93e   :  { %16915 = vmatpush1.bf16.msra.mxu1 %v23915_v46  ;;  %v23963_v46 = vld [vmem:[#allocation12 + $0x1290] ss:$40 sps:$4 sm:$0xff]  }
 0x93f   :  { %16916 = vmatprep.subr.bf16.mxu1 %v23923_v24  ;;  %v23970_v24 = vld [vmem:[#allocation12 + $0x12e4] ss:$40 sps:$4 sm:$0xff]  }
 0x940   :  { %16753 = vmatpush1.bf16.msra.mxu0 %v23912_v53  ;;  %v23966_v53 = vld [vmem:[#allocation15 + $0x20] sm:$0xff]  }
 0x941   :  { %16754 = vmatprep.subr.bf16.mxu0 %v23920_v57  ;;  %v23967_v57 = vld [vmem:[#allocation15 + $0x68] sm:$0xff]  }
 0x942   :  { %16917 = vmatpush1.bf16.msra.mxu1 %v23921_v55  ;;  %v23968_v55 = vld [vmem:[#allocation12 + $0x12e0] ss:$40 sps:$4 sm:$0xff]  }
 0x943   :  { %16918 = vmatprep.subr.bf16.mxu1 %v23929_v50  ;;  %v23975_v50 = vld [vmem:[#allocation12 + $0x1334] ss:$40 sps:$4 sm:$0xff]  }
 0x944   :  { %16755 = vmatpush1.bf16.msra.mxu0 %v23918_v62  ;;  %v23971_v62 = vld [vmem:[#allocation15 + $0x28] sm:$0xff]  }
 0x945   :  { %16756 = vmatprep.subr.bf16.mxu0 %v23926_v60  ;;  %v9375_v60 = vrot.slane %v24928_v44, %v24598_v10 }
 0x946   :  { %16919 = vmatpush1.bf16.msra.mxu1 %v23927_v29  ;;  %v23972_v29 = vld [vmem:[#allocation15 + $0x70] sm:$0xff]  }
 0x947   :  { %16920 = vmatprep.subr.bf16.mxu1 %v23935_v47  ;;  %v9387_v47 = vrot.slane %v24928_v44, %v24619_v36  ;;  %v23982_v36 = vld [vmem:[#allocation15 + $0xc0] sm:$0xff]  }
 0x948   :  { %16757 = vmatpush1.bf16.msra.mxu0 %v23924_v51  ;;  %v24932_v58 = vpop.f32.mrb[36].mxu1  ;;  %v23973_v51 = vld [vmem:[#allocation12 + $0x1330] ss:$40 sps:$4 sm:$0xff]  }
 0x949   :  { %16758 = vmatprep.subr.bf16.mxu0 %v23932_v54  ;;  %v24934_v1 = vpop.f32.mrb[37].mxu1  ;;  %v23980_v54 = vld [vmem:[#allocation12 + $0x1384] ss:$40 sps:$4 sm:$0xff]  }
 0x94a   :  { %v16456_v6 = vpop.f32.mrb[38].mxu1  ;;  %16921 = vmatpush1.bf16.msra.mxu1 %v23933_v9  ;;  %v20671_v9 = vadd.f32 %v24886_v49, %v9375_v60  ;;  %v23986_v49 = vld [vmem:[#allocation15 + $0x80] sm:$0xff]   ;;  %v24017_v60 = vld [vmem:[#allocation15 + $0xf8] sm:$0xff]  }
 0x94b   :  { %v16457_v33 = vpop.f32.mrb[39].mxu1  ;;  %16922 = vmatprep.subr.bf16.mxu1 %v23941_v48  ;;  %v23977_v48 = vld [vmem:[#allocation15 + $0x78] sm:$0xff]  }
 0x94c   :  { %16759 = vmatpush1.bf16.msra.mxu0 %v23930_v63  ;;  %v20674_v63 = vadd.f32 %v24906_v19, %v9387_v47  ;;  %v23981_v6 = vld [vmem:[#allocation15 + $0x38] sm:$0xff]  }
 0x94d   :  { %16760 = vmatprep.subr.bf16.mxu0 %v23938_v8  ;;  %v23978_v8 = vld [vmem:[#allocation12 + $0x1380] ss:$40 sps:$4 sm:$0xff]  }
 0x94e   :  { %16923 = vmatpush1.bf16.msra.mxu1 %v23939_v41  ;;  %v17115_v41 = vmax.f32 %v20671_v9, 0.0  ;;  %v17118_v33 = vmax.f32 %v20674_v63, 0.0  ;;  %v24018_v47 = vld [vmem:[#allocation12 + $0x1600] ss:$40 sps:$4 sm:$0xff]   ;;  %v24023_v9 = vld [vmem:[#allocation12 + $0x1650] ss:$40 sps:$4 sm:$0xff]  }
 0x94f   :  { %16924 = vmatprep.subr.bf16.mxu1 %v23945_v2  ;;  %v23983_v2 = vld [vmem:[#allocation12 + $0x13d0] ss:$40 sps:$4 sm:$0xff]  }
 0x950   :  { %16761 = vmatpush1.bf16.msra.mxu0 %v23936_v15  ;;  %v23990_v15 = vld [vmem:[#allocation12 + $0x1424] ss:$40 sps:$4 sm:$0xff]   ;;  %v20450_v19 = vpack.c.bf16 %v17118_v33, %v17118_v33  ;;  %v24033_v33 = vld [vmem:[#allocation12 + $0x16f0] ss:$40 sps:$4 sm:$0xff]  }
 0x951   :  { %20545 = vmatprep.subr.bf16.mxu0 %v23942_v3  ;;  %v20447_v3 = vpack.c.bf16 %v17115_v41, %v17115_v41  ;;  %v24031_v41 = vld [vmem:[#allocation15 + $0x108] sm:$0xff]  }
 0x952   :  { %16925 = vmatpush1.bf16.msra.mxu1 %v23943_v28  ;;  %v23988_v28 = vld [vmem:[#allocation12 + $0x1420] ss:$40 sps:$4 sm:$0xff]  }
 0x953   :  { %16779 = vmatmul.mubr.bf16.vlgmr.msra.gmra.mrb[36].mxu0 %v24912_v45  ;;  %16926 = vmatprep.subr.bf16.mxu1 %v23950_v18  ;;  %v23961_v45 = vld [vmem:[#allocation15 + $0x18] sm:$0xff]   ;;  %v23995_v18 = vld [vmem:[#allocation12 + $0x1474] ss:$40 sps:$4 sm:$0xff]  }
 0x954   :  { %20546 = vmatpush3.bf16.msra.mxu0 %v23946_v14  ;;  %17889 = vmatprep.mubr.bf16.mxu0 %v20448_v31  ;;  %v23991_v14 = vld [vmem:[#allocation15 + $0x88] sm:$0xff]  }
 0x955   :  { %20547 = vmatprep.subr.bf16.mxu0 %v23947_v21  ;;  %v23992_v21 = vld [vmem:[#allocation15 + $0xd0] sm:$0xff]  }
 0x956   :  { %16927 = vmatpush1.bf16.msra.mxu1 %v23948_v26  ;;  %v23993_v31 = vld [vmem:[#allocation12 + $0x1470] ss:$40 sps:$4 sm:$0xff]   ;;  %v24000_v26 = vld [vmem:[#allocation12 + $0x14c4] ss:$40 sps:$4 sm:$0xff]  }
 0x957   :  { %16928 = vmatprep.subr.bf16.mxu1 %v23955_v27  ;;  %v23996_v27 = vld [vmem:[#allocation15 + $0x90] sm:$0xff]  }
 0x958   :  { %20548 = vmatpush3.bf16.msra.mxu0 %v23951_v25  ;;  %v23997_v25 = vld [vmem:[#allocation15 + $0xd8] sm:$0xff]  }
 0x959   :  { %20549 = vmatprep.subr.bf16.mxu0 %v23952_v52  ;;  %v23998_v52 = vld [vmem:[#allocation12 + $0x14c0] ss:$40 sps:$4 sm:$0xff]  }
 0x95a   :  { %16929 = vmatpush1.bf16.msra.mxu1 %v23953_v61  ;;  %v24005_v61 = vld [vmem:[#allocation12 + $0x1514] ss:$40 sps:$4 sm:$0xff]  }
 0x95b   :  { %16930 = vmatprep.subr.bf16.mxu1 %v23960_v59  ;;  %v24001_v59 = vld [vmem:[#allocation15 + $0x98] sm:$0xff]  }
 0x95c   :  { %20550 = vmatpush3.bf16.msra.mxu0 %v23956_v30  ;;  %v24002_v30 = vld [vmem:[#allocation15 + $0xe0] sm:$0xff]  }
 0x95d   :  { %20551 = vmatprep.subr.bf16.mxu0 %v23957_v32  ;;  %v24010_v32 = vld [vmem:[#allocation12 + $0x1564] ss:$40 sps:$4 sm:$0xff]  }
 0x95e   :  { %16931 = vmatpush1.bf16.msra.mxu1 %v23958_v20  ;;  %v24007_v20 = vld [vmem:[#allocation15 + $0xe8] sm:$0xff]  }
 0x95f   :  { %16932 = vmatprep.subr.bf16.mxu1 %v23965_v38  ;;  %v24008_v38 = vld [vmem:[#allocation12 + $0x1560] ss:$40 sps:$4 sm:$0xff]  }
 0x960   :  { %20552 = vmatpush3.bf16.msra.mxu0 %v23961_v45  ;;  %v24015_v45 = vld [vmem:[#allocation12 + $0x15b4] ss:$40 sps:$4 sm:$0xff]  }
 0x961   :  { %20553 = vmatprep.subr.bf16.mxu0 %v23962_v42  ;;  %v24011_v42 = vld [vmem:[#allocation15 + $0xa8] sm:$0xff]  }
 0x962   :  { %16933 = vmatpush1.bf16.msra.mxu1 %v23963_v46  ;;  %v9383_v46 = vrot.slane %v24928_v44, %v24616_v34  ;;  %v24025_v34 = vld [vmem:[#allocation12 + $0x1654] ss:$40 sps:$4 sm:$0xff]  }
 0x963   :  { %16934 = vmatprep.subr.bf16.mxu1 %v23970_v24  ;;  %v24012_v24 = vld [vmem:[#allocation15 + $0xf0] sm:$0xff]  }
 0x964   :  { %20554 = vmatpush3.bf16.msra.mxu0 %v23966_v53  ;;  %v9395_v53 = vrot.slane %v24928_v44, %v24637_v22  ;;  %v24022_v22 = vld [vmem:[#allocation15 + $0x140] sm:$0xff]  }
 0x965   :  { %20555 = vmatprep.subr.bf16.mxu0 %v23967_v57  ;;  %v24013_v57 = vld [vmem:[#allocation12 + $0x15b0] ss:$40 sps:$4 sm:$0xff]  }
 0x966   :  { %16935 = vmatpush1.bf16.msra.mxu1 %v23968_v55  ;;  %v24020_v55 = vld [vmem:[#allocation12 + $0x1604] ss:$40 sps:$4 sm:$0xff]  }
 0x967   :  { %16936 = vmatprep.subr.bf16.mxu1 %v23975_v50  ;;  %v24016_v50 = vld [vmem:[#allocation15 + $0xb0] sm:$0xff]  }
 0x968   :  { %20556 = vmatpush3.bf16.msra.mxu0 %v23971_v62  ;;  %v20673_v62 = vadd.f32 %v24904_v35, %v9383_v46  ;;  %v24026_v35 = vld [vmem:[#allocation15 + $0x100] sm:$0xff]  }
 0x969   :  { %20557 = vmatprep.subr.bf16.mxu0 %v23972_v29  ;;  %v20676_v29 = vadd.f32 %v24934_v1, %v9395_v53  ;;  %v24062_v46 = vld [vmem:[#allocation12 + $0x18d0] ss:$40 sps:$4 sm:$0xff]  }
 0x96a   :  { %16937 = vmatpush1.bf16.msra.mxu1 %v23973_v51  ;;  %v24021_v51 = vld [vmem:[#allocation15 + $0xb8] sm:$0xff]   ;;  %v24135_v53 = vld [vmem:[#allocation15 + $0x180] sm:$0xff]  }
 0x96b   :  { %16938 = vmatprep.subr.bf16.mxu1 %v23980_v54  ;;  %v17117_v54 = vmax.f32 %v20673_v62, 0.0  ;;  %v24140_v62 = vld [vmem:[#allocation15 + $0x188] sm:$0xff]  }
 0x96c   :  { %20558 = vmatpush3.bf16.msra.mxu0 %v23976_v56  ;;  %v17120_v56 = vmax.f32 %v20676_v29, 0.0  ;;  %v24068_v29 = vld [vmem:[#allocation12 + $0x1970] ss:$40 sps:$4 sm:$0xff]  }
 0x96d   :  { %20559 = vmatprep.subr.bf16.mxu0 %v23977_v48  ;;  %v24030_v48 = vld [vmem:[#allocation12 + $0x16a4] ss:$40 sps:$4 sm:$0xff]   ;;  %v20449_v63 = vpack.c.bf16 %v17117_v54, %v17117_v54  ;;  %v24071_v54 = vld [vmem:[#allocation12 + $0x19c0] ss:$40 sps:$4 sm:$0xff]  }
 0x96e   :  { %16939 = vmatpush1.bf16.msra.mxu1 %v23978_v8  ;;  %v24027_v8 = vld [vmem:[#allocation15 + $0x148] sm:$0xff]   ;;  %v20452_v1 = vpack.c.bf16 %v17120_v56, %v17120_v56  ;;  %v24150_v56 = vld [vmem:[#allocation15 + $0x198] sm:$0xff]  }
 0x96f   :  { %16940 = vmatprep.subr.bf16.mxu1 %v23985_v5  ;;  %v24028_v5 = vld [vmem:[#allocation12 + $0x16a0] ss:$40 sps:$4 sm:$0xff]  }
 0x970   :  { %20560 = vmatpush3.bf16.msra.mxu0 %v23981_v6  ;;  %v24035_v6 = vld [vmem:[#allocation12 + $0x16f4] ss:$40 sps:$4 sm:$0xff]  }
 0x971   :  { %20567 = vmatprep.subr.bf16.mxu0 %v23982_v36  ;;  %v24032_v36 = vld [vmem:[#allocation15 + $0x150] sm:$0xff]  }
 0x972   :  { %16941 = vmatpush1.bf16.msra.mxu1 %v23983_v2  ;;  %v24040_v2 = vld [vmem:[#allocation12 + $0x1744] ss:$40 sps:$4 sm:$0xff]  }
 0x973   :  { %17890 = vmatmul.mubr.bf16.vlgmr.msra.gmra.mrb[40].mxu0 %v20447_v3  ;;  %16951 = vmatprep.subr.bf16.mxu1 %v23990_v15  ;;  %v24036_v15 = vld [vmem:[#allocation15 + $0x110] sm:$0xff]  }
 0x974   :  { %20568 = vmatpush3.bf16.msra.mxu0 %v23986_v49  ;;  %17929 = vmatprep.mubr.bf16.mxu0 %v20450_v19  ;;  %v24037_v49 = vld [vmem:[#allocation15 + $0x158] sm:$0xff]  }
 0x975   :  { %20569 = vmatprep.subr.bf16.mxu0 %v23987_v17  ;;  %16943 = vmatmul.mubr.bf16.vlgmr.msra.gmra.mrb[40].mxu1 %v24826_v39  ;;  %v24003_v39 = vld [vmem:[#allocation12 + $0x1510] ss:$40 sps:$4 sm:$0xff]   ;;  %v24038_v3 = vld [vmem:[#allocation12 + $0x1740] ss:$40 sps:$4 sm:$0xff]   ;;  %v24045_v17 = vld [vmem:[#allocation12 + $0x1794] ss:$40 sps:$4 sm:$0xff]  }
 0x976   :  { %16952 = vmatpush1.bf16.msra.mxu1 %v23988_v28  ;;  %16983 = vmatprep.mubr.bf16.mxu1 %v24831_v40  ;;  %v24006_v40 = vld [vmem:[#allocation15 + $0xa0] sm:$0xff]   ;;  %v24041_v19 = vld [vmem:[#allocation15 + $0x118] sm:$0xff]  }
 0x977   :  { %16953 = vmatprep.subr.bf16.mxu1 %v23995_v18  ;;  %v24042_v28 = vld [vmem:[#allocation15 + $0x160] sm:$0xff]  }
 0x978   :  { %20570 = vmatpush3.bf16.msra.mxu0 %v23991_v14  ;;  %v24043_v18 = vld [vmem:[#allocation12 + $0x1790] ss:$40 sps:$4 sm:$0xff]   ;;  %v24050_v14 = vld [vmem:[#allocation12 + $0x17e4] ss:$40 sps:$4 sm:$0xff]  }
 0x979   :  { %20571 = vmatprep.subr.bf16.mxu0 %v23992_v21  ;;  %v24046_v21 = vld [vmem:[#allocation15 + $0x120] sm:$0xff]  }
 0x97a   :  { %16954 = vmatpush1.bf16.msra.mxu1 %v23993_v31  ;;  %v24047_v31 = vld [vmem:[#allocation15 + $0x168] sm:$0xff]  }
 0x97b   :  { %16955 = vmatprep.subr.bf16.mxu1 %v24000_v26  ;;  %v24048_v26 = vld [vmem:[#allocation12 + $0x17e0] ss:$40 sps:$4 sm:$0xff]  }
 0x97c   :  { %20572 = vmatpush3.bf16.msra.mxu0 %v23996_v27  ;;  %v24055_v27 = vld [vmem:[#allocation12 + $0x1834] ss:$40 sps:$4 sm:$0xff]  }
 0x97d   :  { %20573 = vmatprep.subr.bf16.mxu0 %v23997_v25  ;;  %v24051_v25 = vld [vmem:[#allocation15 + $0x128] sm:$0xff]  }
 0x97e   :  { %16956 = vmatpush1.bf16.msra.mxu1 %v23998_v52  ;;  %v9391_v52 = vrot.slane %v24928_v44, %v24649_v4  ;;  %v24131_v4 = vld [vmem:[#allocation15 + $0x1c0] sm:$0xff]  }
 0x97f   :  { %16957 = vmatprep.subr.bf16.mxu1 %v24005_v61  ;;  %v24052_v61 = vld [vmem:[#allocation15 + $0x170] sm:$0xff]  }
 0x980   :  { %20574 = vmatpush3.bf16.msra.mxu0 %v24001_v59  ;;  %v24053_v59 = vld [vmem:[#allocation12 + $0x1830] ss:$40 sps:$4 sm:$0xff]  }
 0x981   :  { %20575 = vmatprep.subr.bf16.mxu0 %v24002_v30  ;;  %v24060_v30 = vld [vmem:[#allocation12 + $0x1884] ss:$40 sps:$4 sm:$0xff]  }
 0x982   :  { %16958 = vmatpush1.bf16.msra.mxu1 %v24003_v39  ;;  %v24056_v39 = vld [vmem:[#allocation15 + $0x130] sm:$0xff]  }
 0x983   :  { %16959 = vmatprep.subr.bf16.mxu1 %v24010_v32  ;;  %v20675_v32 = vadd.f32 %v24932_v58, %v9391_v52  ;;  %v24136_v58 = vld [vmem:[#allocation15 + $0x1c8] sm:$0xff]  }
 0x984   :  { %20576 = vmatpush3.bf16.msra.mxu0 %v24006_v40  ;;  %v24057_v40 = vld [vmem:[#allocation15 + $0x178] sm:$0xff]   ;;  %v24106_v52 = vld [vmem:[#allocation12 + $0x1d34] ss:$40 sps:$4 sm:$0xff]  }
 0x985   :  { %20577 = vmatprep.subr.bf16.mxu0 %v24007_v20  ;;  %v24058_v20 = vld [vmem:[#allocation12 + $0x1880] ss:$40 sps:$4 sm:$0xff]  }
 0x986   :  { %16960 = vmatpush1.bf16.msra.mxu1 %v24008_v38  ;;  %v24064_v38 = vld [vmem:[#allocation12 + $0x18d4] ss:$40 sps:$4 sm:$0xff]  }
 0x987   :  { %16961 = vmatprep.subr.bf16.mxu1 %v24015_v45  ;;  %v24061_v45 = vld [vmem:[#allocation15 + $0x138] sm:$0xff]  }
 0x988   :  { %20578 = vmatpush3.bf16.msra.mxu0 %v24011_v42  ;;  %v17119_v42 = vmax.f32 %v20675_v32, 0.0  ;;  %v24110_v32 = vld [vmem:[#allocation12 + $0x1dd0] ss:$40 sps:$4 sm:$0xff]  }
 0x989   :  { %20579 = vmatprep.subr.bf16.mxu0 %v24012_v24  ;;  %v24067_v24 = vld [vmem:[#allocation12 + $0x1924] ss:$40 sps:$4 sm:$0xff]  }
 0x98a   :  { %16962 = vmatpush1.bf16.msra.mxu1 %v24013_v57  ;;  %v20451_v57 = vpack.c.bf16 %v17119_v42, %v17119_v42  ;;  %v24121_v42 = vld [vmem:[#allocation12 + $0x1ec4] ss:$40 sps:$4 sm:$0xff]  }
 0x98b   :  { %16963 = vmatprep.subr.bf16.mxu1 %v24020_v55  ;;  %v24065_v55 = vld [vmem:[#allocation12 + $0x1920] ss:$40 sps:$4 sm:$0xff]  }
 0x98c   :  { %20580 = vmatpush3.bf16.msra.mxu0 %v24016_v50  ;;  %v24070_v50 = vld [vmem:[#allocation12 + $0x1974] ss:$40 sps:$4 sm:$0xff]  }
 0x98d   :  { %20581 = vmatprep.subr.bf16.mxu0 %v24017_v60  ;;  %v24141_v60 = vld [vmem:[#allocation15 + $0x1d0] sm:$0xff]  }
 0x98e   :  { %16964 = vmatpush1.bf16.msra.mxu1 %v24018_v47  ;;  %v24073_v47 = vld [vmem:[#allocation12 + $0x19c4] ss:$40 sps:$4 sm:$0xff]  }
 0x98f   :  { %16965 = vmatprep.subr.bf16.mxu1 %v24025_v34  ;;  %v24145_v34 = vld [vmem:[#allocation15 + $0x190] sm:$0xff]  }
 0x990   :  { %20582 = vmatpush3.bf16.msra.mxu0 %v24021_v51  ;;  %v24146_v51 = vld [vmem:[#allocation15 + $0x1d8] sm:$0xff]  }
 0x991   :  { %20589 = vmatprep.subr.bf16.mxu0 %v24022_v22  ;;  %v24076_v22 = vld [vmem:[#allocation12 + $0x1a14] ss:$40 sps:$4 sm:$0xff]  }
 0x992   :  { %16966 = vmatpush1.bf16.msra.mxu1 %v24023_v9  ;;  %v24074_v9 = vld [vmem:[#allocation12 + $0x1a10] ss:$40 sps:$4 sm:$0xff]  }
 0x993   :  { %17930 = vmatmul.mubr.bf16.vlgmr.msra.gmra.mrb[44].mxu0 %v20449_v63  ;;  %16967 = vmatprep.subr.bf16.mxu1 %v24030_v48  ;;  %v24079_v48 = vld [vmem:[#allocation12 + $0x1a64] ss:$40 sps:$4 sm:$0xff]   ;;  %v24077_v63 = vld [vmem:[#allocation12 + $0x1a60] ss:$40 sps:$4 sm:$0xff]  }
 0x994   :  { %20590 = vmatpush3.bf16.msra.mxu0 %v24026_v35  ;;  %17969 = vmatprep.mubr.bf16.mxu0 %v20452_v1  ;;  %v24156_v35 = vld [vmem:[#allocation15 + $0x1e8] sm:$0xff]  }
 0x995   :  { %20591 = vmatprep.subr.bf16.mxu0 %v24027_v8  ;;  %v24082_v8 = vld [vmem:[#allocation12 + $0x1ab4] ss:$40 sps:$4 sm:$0xff]  }
 0x996   :  { %16968 = vmatpush1.bf16.msra.mxu1 %v24028_v5  ;;  %v24160_v1 = vld [vmem:[#allocation15 + $0x1a8] sm:$0xff]   ;;  %v24161_v5 = vld [vmem:[#allocation15 + $0x1f0] sm:$0xff]  }
 0x997   :  { %16969 = vmatprep.subr.bf16.mxu1 %v24035_v6  ;;  %v24080_v6 = vld [vmem:[#allocation12 + $0x1ab0] ss:$40 sps:$4 sm:$0xff]  }
 0x998   :  { %20592 = vmatpush3.bf16.msra.mxu0 %v24031_v41  ;;  %v24085_v41 = vld [vmem:[#allocation12 + $0x1b04] ss:$40 sps:$4 sm:$0xff]  }
 0x999   :  { %20593 = vmatprep.subr.bf16.mxu0 %v24032_v36  ;;  %v24165_v36 = vld [vmem:[#allocation15 + $0x1b0] sm:$0xff]  }
 0x99a   :  { %16970 = vmatpush1.bf16.msra.mxu1 %v24033_v33  ;;  %v24166_v33 = vld [vmem:[#allocation15 + $0x1f8] sm:$0xff]  }
 0x99b   :  { %16971 = vmatprep.subr.bf16.mxu1 %v24040_v2  ;;  %v24083_v2 = vld [vmem:[#allocation12 + $0x1b00] ss:$40 sps:$4 sm:$0xff]  }
 0x99c   :  { %20594 = vmatpush3.bf16.msra.mxu0 %v24036_v15  ;;  %v24088_v15 = vld [vmem:[#allocation12 + $0x1b54] ss:$40 sps:$4 sm:$0xff]  }
 0x99d   :  { %20595 = vmatprep.subr.bf16.mxu0 %v24037_v49  ;;  %v24170_v49 = vld [vmem:[#allocation15 + $0x1b8] sm:$0xff]  }
 0x99e   :  { %16972 = vmatpush1.bf16.msra.mxu1 %v24038_v3  ;;  %v24086_v3 = vld [vmem:[#allocation12 + $0x1b50] ss:$40 sps:$4 sm:$0xff]  }
 0x99f   :  { %16973 = vmatprep.subr.bf16.mxu1 %v24045_v17  ;;  %v24091_v17 = vld [vmem:[#allocation12 + $0x1ba4] ss:$40 sps:$4 sm:$0xff]  }
 0x9a0   :  { %20596 = vmatpush3.bf16.msra.mxu0 %v24041_v19  ;;  %v24089_v19 = vld [vmem:[#allocation12 + $0x1ba0] ss:$40 sps:$4 sm:$0xff]  }
 0x9a1   :  { %20597 = vmatprep.subr.bf16.mxu0 %v24042_v28  ;;  %v24094_v28 = vld [vmem:[#allocation12 + $0x1bf4] ss:$40 sps:$4 sm:$0xff]  }
 0x9a2   :  { %16974 = vmatpush1.bf16.msra.mxu1 %v24043_v18  ;;  %v24092_v18 = vld [vmem:[#allocation12 + $0x1bf0] ss:$40 sps:$4 sm:$0xff]  }
 0x9a3   :  { %16975 = vmatprep.subr.bf16.mxu1 %v24050_v14  ;;  %v24097_v14 = vld [vmem:[#allocation12 + $0x1c44] ss:$40 sps:$4 sm:$0xff]  }
 0x9a4   :  { %20598 = vmatpush3.bf16.msra.mxu0 %v24046_v21  ;;  %v24095_v21 = vld [vmem:[#allocation12 + $0x1c40] ss:$40 sps:$4 sm:$0xff]  }
 0x9a5   :  { %20599 = vmatprep.subr.bf16.mxu0 %v24047_v31  ;;  %v24100_v31 = vld [vmem:[#allocation12 + $0x1c94] ss:$40 sps:$4 sm:$0xff]  }
 0x9a6   :  { %16976 = vmatpush1.bf16.msra.mxu1 %v24048_v26  ;;  %v24098_v26 = vld [vmem:[#allocation12 + $0x1c90] ss:$40 sps:$4 sm:$0xff]  }
 0x9a7   :  { %16977 = vmatprep.subr.bf16.mxu1 %v24055_v27  ;;  %v24103_v27 = vld [vmem:[#allocation12 + $0x1ce4] ss:$40 sps:$4 sm:$0xff]  }
 0x9a8   :  { %20600 = vmatpush3.bf16.msra.mxu0 %v24051_v25  ;;  %v24101_v25 = vld [vmem:[#allocation12 + $0x1ce0] ss:$40 sps:$4 sm:$0xff]  }
 0x9a9   :  { %20601 = vmatprep.subr.bf16.mxu0 %v24052_v61  ;;  %v24104_v61 = vld [vmem:[#allocation12 + $0x1d30] ss:$40 sps:$4 sm:$0xff]  }
 0x9aa   :  { %16978 = vmatpush1.bf16.msra.mxu1 %v24053_v59  ;;  %v24109_v59 = vld [vmem:[#allocation12 + $0x1d84] ss:$40 sps:$4 sm:$0xff]  }
 0x9ab   :  { %16979 = vmatprep.subr.bf16.mxu1 %v24060_v30  ;;  %v24107_v30 = vld [vmem:[#allocation12 + $0x1d80] ss:$40 sps:$4 sm:$0xff]  }
 0x9ac   :  { %20602 = vmatpush3.bf16.msra.mxu0 %v24056_v39  ;;  %v24112_v39 = vld [vmem:[#allocation12 + $0x1dd4] ss:$40 sps:$4 sm:$0xff]  }
 0x9ad   :  { %20603 = vmatprep.subr.bf16.mxu0 %v24057_v40  ;;  %v24115_v40 = vld [vmem:[#allocation12 + $0x1e24] ss:$40 sps:$4 sm:$0xff]  }
 0x9ae   :  { %16980 = vmatpush1.bf16.msra.mxu1 %v24058_v20  ;;  %v24113_v20 = vld [vmem:[#allocation12 + $0x1e20] ss:$40 sps:$4 sm:$0xff]  }
 0x9af   :  { %16981 = vmatprep.subr.bf16.mxu1 %v24064_v38  ;;  %v24118_v38 = vld [vmem:[#allocation12 + $0x1e74] ss:$40 sps:$4 sm:$0xff]  }
 0x9b0   :  { %20604 = vmatpush3.bf16.msra.mxu0 %v24061_v45  ;;  %v24116_v45 = vld [vmem:[#allocation12 + $0x1e70] ss:$40 sps:$4 sm:$0xff]  }
 0x9b1   :  { %20611 = vmatprep.subr.bf16.mxu0 %v24131_v4  ;;  %v24119_v4 = vld [vmem:[#allocation12 + $0x1ec0] ss:$40 sps:$4 sm:$0xff]  }
 0x9b2   :  { %16982 = vmatpush1.bf16.msra.mxu1 %v24062_v46  ;;  %v24124_v46 = vld [vmem:[#allocation12 + $0x1f14] ss:$40 sps:$4 sm:$0xff]  }
 0x9b3   :  { %17970 = vmatmul.mubr.bf16.vlgmr.msra.gmra.mrb[48].mxu0 %v20451_v57  ;;  %16992 = vmatprep.subr.bf16.mxu1 %v24067_v24  ;;  %v24122_v24 = vld [vmem:[#allocation12 + $0x1f10] ss:$40 sps:$4 sm:$0xff]   ;;  %v24125_v57 = vld [vmem:[#allocation12 + $0x1f60] ss:$40 sps:$4 sm:$0xff]  }
 0x9b4   :  { %20612 = vmatpush3.bf16.msra.mxu0 %v24135_v53  ;;  %v24127_v53 = vld [vmem:[#allocation12 + $0x1f64] ss:$40 sps:$4 sm:$0xff]  }
 0x9b5   :  { %16984 = vmatmul.mubr.bf16.vlgmr.msra.gmra.mrb[40].mxu1 %v24842_v7  ;;  %20613 = vmatprep.subr.bf16.mxu0 %v24136_v58  ;;  %v24151_v7 = vld [vmem:[#allocation15 + $0x1e0] sm:$0xff]   ;;  %v24130_v58 = vld [vmem:[#allocation12 + $0x1fb4] ss:$40 sps:$4 sm:$0xff]  }
 0x9b6   :  { %16993 = vmatpush1.bf16.msra.mxu1 %v24065_v55  ;;  %17024 = vmatprep.mubr.bf16.mxu1 %v24846_v43  ;;  %v24155_v43 = vld [vmem:[#allocation15 + $0x1a0] sm:$0xff]  }
 0x9b7   :  { %16994 = vmatprep.subr.bf16.mxu1 %v24070_v50  ;;  %v24134_v55 = vld [vmem:[#allocation12 + $0x2004] ss:$40 sps:$4 sm:$0xff]   ;;  %v24139_v50 = vld [vmem:[#allocation12 + $0x2054] ss:$40 sps:$4 sm:$0xff]  }
 0x9b8   :  { %20614 = vmatpush3.bf16.msra.mxu0 %v24140_v62  ;;  %v24137_v62 = vld [vmem:[#allocation12 + $0x2050] ss:$40 sps:$4 sm:$0xff]  }
 0x9b9   :  { %20615 = vmatprep.subr.bf16.mxu0 %v24141_v60  ;;  %v24144_v60 = vld [vmem:[#allocation12 + $0x20a4] ss:$40 sps:$4 sm:$0xff]  }
 0x9ba   :  { %16995 = vmatpush1.bf16.msra.mxu1 %v24068_v29  ;;  %v24142_v29 = vld [vmem:[#allocation12 + $0x20a0] ss:$40 sps:$4 sm:$0xff]  }
 0x9bb   :  { %16996 = vmatprep.subr.bf16.mxu1 %v24073_v47  ;;  %v24149_v47 = vld [vmem:[#allocation12 + $0x20f4] ss:$40 sps:$4 sm:$0xff]  }
 0x9bc   :  { %20616 = vmatpush3.bf16.msra.mxu0 %v24145_v34  ;;  %v24147_v34 = vld [vmem:[#allocation12 + $0x20f0] ss:$40 sps:$4 sm:$0xff]  }
 0x9bd   :  { %20617 = vmatprep.subr.bf16.mxu0 %v24146_v51  ;;  %v24154_v51 = vld [vmem:[#allocation12 + $0x2144] ss:$40 sps:$4 sm:$0xff]  }
 0x9be   :  { %16997 = vmatpush1.bf16.msra.mxu1 %v24071_v54  ;;  %v24152_v54 = vld [vmem:[#allocation12 + $0x2140] ss:$40 sps:$4 sm:$0xff]  }
 0x9bf   :  { %16998 = vmatprep.subr.bf16.mxu1 %v24076_v22  ;;  %v24159_v22 = vld [vmem:[#allocation12 + $0x2194] ss:$40 sps:$4 sm:$0xff]  }
 0x9c0   :  { %20618 = vmatpush3.bf16.msra.mxu0 %v24150_v56  ;;  %v24157_v56 = vld [vmem:[#allocation12 + $0x2190] ss:$40 sps:$4 sm:$0xff]  }
 0x9c1   :  { %20619 = vmatprep.subr.bf16.mxu0 %v24151_v7  ;;  %v24164_v7 = vld [vmem:[#allocation12 + $0x21e4] ss:$40 sps:$4 sm:$0xff]  }
 0x9c2   :  { %16999 = vmatpush1.bf16.msra.mxu1 %v24074_v9  ;;  %v24162_v9 = vld [vmem:[#allocation12 + $0x21e0] ss:$40 sps:$4 sm:$0xff]  }
 0x9c3   :  { %17000 = vmatprep.subr.bf16.mxu1 %v24079_v48  ;;  %v9399_v48 = vrot.slane %v24928_v44, %v24669_v37  ;;  %v24176_v37 = vld [vmem:[#allocation12 + $0x22d4] ss:$40 sps:$4 sm:$0xff]  }
 0x9c4   :  { %20620 = vmatpush3.bf16.msra.mxu0 %v24155_v43  ;;  %v24169_v43 = vld [vmem:[#allocation12 + $0x2234] ss:$40 sps:$4 sm:$0xff]  }
 0x9c5   :  { %20621 = vmatprep.subr.bf16.mxu0 %v24156_v35  ;;  %v9403_v35 = vrot.slane %v24928_v44, %v24652_v13  ;;  %v24174_v13 = vld [vmem:[#allocation12 + $0x22d0] ss:$40 sps:$4 sm:$0xff]   ;;  %v24179_v44 = vld [vmem:[#allocation12 + $0x2324] ss:$40 sps:$4 sm:$0xff]  }
 0x9c6   :  { %17001 = vmatpush1.bf16.msra.mxu1 %v24077_v63 }
 0x9c7   :  { %17002 = vmatprep.subr.bf16.mxu1 %v24082_v8  ;;  %v24167_v8 = vld [vmem:[#allocation12 + $0x2230] ss:$40 sps:$4 sm:$0xff]  }
 0x9c8   :  { %20622 = vmatpush3.bf16.msra.mxu0 %v24160_v1 }
 0x9c9   :  { %20623 = vmatprep.subr.bf16.mxu0 %v24161_v5 }
 0x9ca   :  { %17003 = vmatpush1.bf16.msra.mxu1 %v24080_v6  ;;  %v24173_v6 = vld [vmem:[#allocation12 + $0x2284] ss:$40 sps:$4 sm:$0xff]  }
 0x9cb   :  { %17004 = vmatprep.subr.bf16.mxu1 %v24085_v41 }
 0x9cc   :  { %20624 = vmatpush3.bf16.msra.mxu0 %v24165_v36 }
 0x9cd   :  { %20625 = vmatprep.subr.bf16.mxu0 %v24166_v33 }
 0x9ce   :  { %17005 = vmatpush1.bf16.msra.mxu1 %v24083_v2 }
 0x9cf   :  { %17006 = vmatprep.subr.bf16.mxu1 %v24088_v15 }
 0x9d0   :  { %20626 = vmatpush3.bf16.msra.mxu0 %v24170_v49  ;;  %v24171_v49 = vld [vmem:[#allocation12 + $0x2280] ss:$40 sps:$4 sm:$0xff]  }
 0x9d2   :  { %17007 = vmatpush1.bf16.msra.mxu1 %v24086_v3 }
 0x9d3   :  { %17008 = vmatprep.subr.bf16.mxu1 %v24091_v17 }
 0x9d6   :  { %17009 = vmatpush1.bf16.msra.mxu1 %v24089_v19  ;;  %v24177_v19 = vld [vmem:[#allocation12 + $0x2320] ss:$40 sps:$4 sm:$0xff]  }
 0x9d7   :  { %17010 = vmatprep.subr.bf16.mxu1 %v24094_v28  ;;  %v24182_v28 = vld [vmem:[#allocation12 + $0x2374] ss:$40 sps:$4 sm:$0xff]  }
 0x9da   :  { %17011 = vmatpush1.bf16.msra.mxu1 %v24092_v18  ;;  %v24180_v18 = vld [vmem:[#allocation12 + $0x2370] ss:$40 sps:$4 sm:$0xff]  }
 0x9db   :  { %17012 = vmatprep.subr.bf16.mxu1 %v24097_v14  ;;  %v24185_v14 = vld [vmem:[#allocation12 + $0x23c4] ss:$40 sps:$4 sm:$0xff]  }
 0x9de   :  { %17013 = vmatpush1.bf16.msra.mxu1 %v24095_v21  ;;  %v24183_v21 = vld [vmem:[#allocation12 + $0x23c0] ss:$40 sps:$4 sm:$0xff]  }
 0x9df   :  { %17014 = vmatprep.subr.bf16.mxu1 %v24100_v31  ;;  %v24188_v31 = vld [vmem:[#allocation12 + $0x2414] ss:$40 sps:$4 sm:$0xff]  }
 0x9e2   :  { %17015 = vmatpush1.bf16.msra.mxu1 %v24098_v26  ;;  %v24186_v26 = vld [vmem:[#allocation12 + $0x2410] ss:$40 sps:$4 sm:$0xff]  }
 0x9e3   :  { %17016 = vmatprep.subr.bf16.mxu1 %v24103_v27  ;;  %v24191_v27 = vld [vmem:[#allocation12 + $0x2464] ss:$40 sps:$4 sm:$0xff]  }
 0x9e6   :  { %17017 = vmatpush1.bf16.msra.mxu1 %v24101_v25  ;;  %v24189_v25 = vld [vmem:[#allocation12 + $0x2460] ss:$40 sps:$4 sm:$0xff]  }
 0x9e7   :  { %17018 = vmatprep.subr.bf16.mxu1 %v24106_v52  ;;  %v24194_v52 = vld [vmem:[#allocation12 + $0x24b4] ss:$40 sps:$4 sm:$0xff]  }
 0x9ea   :  { %17019 = vmatpush1.bf16.msra.mxu1 %v24104_v61 }
 0x9eb   :  { %17020 = vmatprep.subr.bf16.mxu1 %v24109_v59 }
 0x9ee   :  { %17021 = vmatpush1.bf16.msra.mxu1 %v24107_v30 }
 0x9ef   :  { %17022 = vmatprep.subr.bf16.mxu1 %v24112_v39 }
 0x9f2   :  { %17023 = vmatpush1.bf16.msra.mxu1 %v24110_v32 }
 0x9f3   :  { %17033 = vmatprep.subr.bf16.mxu1 %v24115_v40  ;;  %v24195_v40 = vld [vmem:[#allocation12 + $0x2500] ss:$40 sps:$4 sm:$0xff]  }
 0x9f5   :  { %17025 = vmatmul.mubr.bf16.vlgmr.msra.gmra.mrb[40].mxu1 %v24854_v11  ;;  %v24128_v11 = vld [vmem:[#allocation12 + $0x1fb0] ss:$40 sps:$4 sm:$0xff]  }
 0x9f6   :  { %17034 = vmatpush1.bf16.msra.mxu1 %v24113_v20  ;;  %17065 = vmatprep.mubr.bf16.mxu1 %v24861_v16  ;;  %v24132_v16 = vld [vmem:[#allocation12 + $0x2000] ss:$40 sps:$4 sm:$0xff]   ;;  %v24200_v20 = vld [vmem:[#allocation12 + $0x2554] ss:$40 sps:$4 sm:$0xff]  }
 0x9f7   :  { %17035 = vmatprep.subr.bf16.mxu1 %v24118_v38  ;;  %v24198_v38 = vld [vmem:[#allocation12 + $0x2550] ss:$40 sps:$4 sm:$0xff]  }
 0x9fa   :  { %17036 = vmatpush1.bf16.msra.mxu1 %v24116_v45  ;;  %v24221_v45 = vld [vmem:[#allocation3 + $0x38] ss:$0 sps:$4 sm:$0xff]  }
 0x9fb   :  { %17037 = vmatprep.subr.bf16.mxu1 %v24121_v42  ;;  %v20331_v42 = vld [vmem:[#allocation16] ss:$0 sm:$0xff] }
 0x9fe   :  { %17038 = vmatpush1.bf16.msra.mxu1 %v24119_v4 }
 0x9ff   :  { %17039 = vmatprep.subr.bf16.mxu1 %v24124_v46 }
 0xa02   :  { %17040 = vmatpush1.bf16.msra.mxu1 %v24122_v24 }
 0xa03   :  { %17041 = vmatprep.subr.bf16.mxu1 %v24127_v53 }
 0xa06   :  { %17042 = vmatpush1.bf16.msra.mxu1 %v24125_v57 }
 0xa07   :  { %17043 = vmatprep.subr.bf16.mxu1 %v24130_v58 }
 0xa0a   :  { %17044 = vmatpush1.bf16.msra.mxu1 %v24128_v11 }
 0xa0b   :  { %17045 = vmatprep.subr.bf16.mxu1 %v24134_v55 }
 0xa0e   :  { %17046 = vmatpush1.bf16.msra.mxu1 %v24132_v16  ;;  %v24201_v16 = vld [vmem:[#allocation15 + $0x240] sm:$0xff]  }
 0xa0f   :  { %17047 = vmatprep.subr.bf16.mxu1 %v24139_v50  ;;  %v24202_v50 = vld [vmem:[#allocation15 + $0x200] sm:$0xff]   ;;  %20633 = vmatprep.subr.bf16.mxu0 %v24201_v16 }
 0xa12   :  { %17048 = vmatpush1.bf16.msra.mxu1 %v24137_v62  ;;  %v24203_v62 = vld [vmem:[#allocation15 + $0x248] sm:$0xff]  }
 0xa13   :  { %17049 = vmatprep.subr.bf16.mxu1 %v24144_v60 }
 0xa16   :  { %17050 = vmatpush1.bf16.msra.mxu1 %v24142_v29 }
 0xa17   :  { %17051 = vmatprep.subr.bf16.mxu1 %v24149_v47 }
 0xa1a   :  { %17052 = vmatpush1.bf16.msra.mxu1 %v24147_v34 }
 0xa1b   :  { %17053 = vmatprep.subr.bf16.mxu1 %v24154_v51  ;;  %v24204_v51 = vld [vmem:[#allocation15 + $0x208] sm:$0xff]  }
 0xa1e   :  { %17054 = vmatpush1.bf16.msra.mxu1 %v24152_v54 }
 0xa1f   :  { %17055 = vmatprep.subr.bf16.mxu1 %v24159_v22  ;;  %v24205_v22 = vld [vmem:[#allocation15 + $0x250] sm:$0xff]  }
 0xa22   :  { %17056 = vmatpush1.bf16.msra.mxu1 %v24157_v56  ;;  %v24206_v56 = vld [vmem:[#allocation15 + $0x210] sm:$0xff]  }
 0xa23   :  { %17057 = vmatprep.subr.bf16.mxu1 %v24164_v7  ;;  %v24207_v7 = vld [vmem:[#allocation15 + $0x258] sm:$0xff]  }
 0xa26   :  { %v16780_v63 = vpop.f32.mrb[36].mxu0  ;;  %17058 = vmatpush1.bf16.msra.mxu1 %v24162_v9  ;;  %v24208_v9 = vld [vmem:[#allocation15 + $0x218] sm:$0xff]  }
 0xa27   :  { %v20677_v1 = vadd.f32 %v16780_v63, %v9399_v48  ;;  %v16782_v5 = vpop.f32.mrb[37].mxu0  ;;  %17059 = vmatprep.subr.bf16.mxu1 %v24169_v43  ;;  %v24209_v48 = vld [vmem:[#allocation15 + $0x260] sm:$0xff]   ;;  %v24212_v63 = vld [vmem:[#allocation15 + $0x228] sm:$0xff]  }
 0xa28   :  { %v20678_v41 = vadd.f32 %v16782_v5, %v9403_v35  ;;  %v16784_v36 = vpop.f32.mrb[38].mxu0  ;;  %v24210_v43 = vld [vmem:[#allocation15 + $0x220] sm:$0xff]   ;;  %v24211_v35 = vld [vmem:[#allocation15 + $0x268] sm:$0xff]   ;;  %v24215_v5 = vld [vmem:[#allocation15 + $0x278] sm:$0xff]  }
 0xa29   :  { %v17121_v33 = vmax.f32 %v20677_v1, 0.0  ;;  %v16785_v2 = vpop.f32.mrb[39].mxu0  ;;  %v24214_v1 = vld [vmem:[#allocation15 + $0x230] sm:$0xff]  }
 0xa2a   :  { %v17122_v15 = vmax.f32 %v20678_v41, 0.0  ;;  %17060 = vmatpush1.bf16.msra.mxu1 %v24167_v8  ;;  %v24213_v8 = vld [vmem:[#allocation15 + $0x270] sm:$0xff]  }
 0xa2b   :  { %17061 = vmatprep.subr.bf16.mxu1 %v24173_v6  ;;  %v20453_v17 = vpack.c.bf16 %v17121_v33, %v17121_v33  ;;  %v24216_v6 = vld [vmem:[#allocation15 + $0x238] sm:$0xff]  }
 0xa2c   :  { %v20454_v3 = vpack.c.bf16 %v17122_v15, %v17122_v15 }
 0xa2e   :  { %18009 = vmatprep.mubr.bf16.mxu0 %v20454_v3  ;;  %17062 = vmatpush1.bf16.msra.mxu1 %v24171_v49 }
 0xa2f   :  { %18010 = vmatmul.mubr.bf16.vlgmr.msra.gmra.mrb[52].mxu0 %v20453_v17  ;;  %17063 = vmatprep.subr.bf16.mxu1 %v24176_v37  ;;  %v9369_v37 = vld [vmem:[#allocation13 + $0x8] sm:$0x3] }
 0xa30   :  { %20634 = vmatpush3.bf16.msra.mxu0 %v24202_v50  ;;  %v9407_v3 = vrot.slane %v9369_v37, %v24598_v10  ;;  %v9411_v17 = vrot.slane %v9369_v37, %v24603_v12 }
 0xa31   :  { %20635 = vmatprep.subr.bf16.mxu0 %v24203_v62 }
 0xa32   :  { %17064 = vmatpush1.bf16.msra.mxu1 %v24174_v13 }
 0xa33   :  { %17074 = vmatprep.subr.bf16.mxu1 %v24179_v44 }
 0xa34   :  { %20636 = vmatpush3.bf16.msra.mxu0 %v24204_v51 }
 0xa35   :  { %17066 = vmatmul.mubr.bf16.vlgmr.msra.gmra.mrb[40].mxu1 %v24864_v23  ;;  %v24192_v23 = vld [vmem:[#allocation12 + $0x24b0] ss:$40 sps:$4 sm:$0xff]   ;;  %20637 = vmatprep.subr.bf16.mxu0 %v24205_v22 }
 0xa36   :  { %17075 = vmatpush1.bf16.msra.mxu1 %v24177_v19  ;;  %17106 = vmatprep.mubr.bf16.mxu1 %v24428_v0  ;;  %v24197_v0 = vld [vmem:[#allocation12 + $0x2504] ss:$40 sps:$4 sm:$0xff]  }
 0xa37   :  { %17076 = vmatprep.subr.bf16.mxu1 %v24182_v28 }
 0xa38   :  { %20638 = vmatpush3.bf16.msra.mxu0 %v24206_v56 }
 0xa39   :  { %20639 = vmatprep.subr.bf16.mxu0 %v24207_v7 }
 0xa3a   :  { %17077 = vmatpush1.bf16.msra.mxu1 %v24180_v18 }
 0xa3b   :  { %17078 = vmatprep.subr.bf16.mxu1 %v24185_v14 }
 0xa3c   :  { %20640 = vmatpush3.bf16.msra.mxu0 %v24208_v9 }
 0xa3d   :  { %20641 = vmatprep.subr.bf16.mxu0 %v24209_v48 }
 0xa3e   :  { %17079 = vmatpush1.bf16.msra.mxu1 %v24183_v21 }
 0xa3f   :  { %17080 = vmatprep.subr.bf16.mxu1 %v24188_v31 }
 0xa40   :  { %20642 = vmatpush3.bf16.msra.mxu0 %v24210_v43 }
 0xa41   :  { %20643 = vmatprep.subr.bf16.mxu0 %v24211_v35 }
 0xa42   :  { %17081 = vmatpush1.bf16.msra.mxu1 %v24186_v26 }
 0xa43   :  { %17082 = vmatprep.subr.bf16.mxu1 %v24191_v27 }
 0xa44   :  { %20644 = vmatpush3.bf16.msra.mxu0 %v24212_v63 }
 0xa45   :  { %20645 = vmatprep.subr.bf16.mxu0 %v24213_v8 }
 0xa46   :  { %v20561_v61 = vpop.f32.mrb[40].mxu0  ;;  %17083 = vmatpush1.bf16.msra.mxu1 %v24189_v25 }
 0xa47   :  { %v20562_v59 = vpop.f32.mrb[41].mxu0  ;;  %17084 = vmatprep.subr.bf16.mxu1 %v24194_v52 }
 0xa48   :  { %v20563_v30 = vadd.f32 %v20562_v59, %v20561_v61  ;;  %v20564_v39 = vpop.f32.mrb[42].mxu0  ;;  %20646 = vmatpush3.bf16.msra.mxu0 %v24214_v1 }
 0xa49   :  { %v20565_v32 = vpop.f32.mrb[43].mxu0  ;;  %20647 = vmatprep.subr.bf16.mxu0 %v24215_v5 }
 0xa4a   :  { %17085 = vmatpush1.bf16.msra.mxu1 %v24192_v23  ;;  %v17892_v24 = vadd.f32 %v20563_v30, %v20331_v42 }
 0xa4b   :  { %17086 = vmatprep.subr.bf16.mxu1 %v24197_v0 }
 0xa4c   :  { %20648 = vmatpush3.bf16.msra.mxu0 %v24216_v6 }
 0xa4e   :  { %17087 = vmatpush1.bf16.msra.mxu1 %v24195_v40 }
 0xa4f   :  { %17088 = vmatprep.subr.bf16.mxu1 %v24200_v20 }
 0xa52   :  { %17089 = vmatpush1.bf16.msra.mxu1 %v24198_v38 }
 0xa55   :  { %17107 = vmatmul.mubr.bf16.vlgmr.msra.gmra.mrb[40].mxu1 %v24221_v45 }
 0xa66   :  { %v20583_v4 = vpop.f32.mrb[44].mxu0 }
 0xa67   :  { %v20584_v46 = vpop.f32.mrb[45].mxu0 }
 0xa68   :  { %v20585_v53 = vadd.f32 %v20584_v46, %v20583_v4  ;;  %v20586_v57 = vpop.f32.mrb[46].mxu0 }
 0xa69   :  { %v20587_v58 = vpop.f32.mrb[47].mxu0 }
 0xa6a   :  { %v17932_v11 = vadd.f32 %v20585_v53, %v17892_v24 }
 0xa86   :  { %v20605_v55 = vpop.f32.mrb[48].mxu0 }
 0xa87   :  { %v20606_v60 = vpop.f32.mrb[49].mxu0 }
 0xa88   :  { %v20607_v29 = vadd.f32 %v20606_v60, %v20605_v55  ;;  %v20608_v47 = vpop.f32.mrb[50].mxu0 }
 0xa89   :  { %v20609_v34 = vpop.f32.mrb[51].mxu0 }
 0xa8a   :  { %v17972_v54 = vadd.f32 %v20607_v29, %v17932_v11 }
 0xb02   :  { %v20627_v41 = vpop.f32.mrb[52].mxu0 }
 0xb03   :  { %v20628_v36 = vpop.f32.mrb[53].mxu0 }
 0xb04   :  { %v20629_v33 = vadd.f32 %v20628_v36, %v20627_v41  ;;  %v20630_v2 = vpop.f32.mrb[54].mxu0 }
 0xb05   :  { %v20631_v15 = vpop.f32.mrb[55].mxu0 }
 0xb06   :  { %v18012_v49 = vadd.f32 %v20629_v33, %v17972_v54 }
 0xb28   :  { %v17108_v13 = vpop.f32.mrb[40].mxu1 }
 0xb29   :  { %v20679_v44 = vadd.f32 %v17108_v13, %v9407_v3  ;;  %v17110_v19 = vpop.f32.mrb[41].mxu1 }
 0xb2a   :  { %v20680_v28 = vadd.f32 %v17110_v19, %v9411_v17  ;;  %v17112_v18 = vpop.f32.mrb[42].mxu1 }
 0xb2b   :  { %v17123_v14 = vmax.f32 %v20679_v44, 0.0  ;;  %v17113_v21 = vpop.f32.mrb[43].mxu1 }
 0xb2c   :  { %v17124_v31 = vmax.f32 %v20680_v28, 0.0 }
 0xb2d   :  { %v20455_v27 = vpack.c.bf16 %v17123_v14, %v17123_v14 }
 0xb2e   :  { %v20456_v26 = vpack.c.bf16 %v17124_v31, %v17124_v31 }
 0xb30   :  { %18049 = vmatprep.mubr.bf16.mxu0 %v20456_v26 }
 0xb31   :  { %18050 = vmatmul.mubr.bf16.vlgmr.msra.gmra.mrb[56].mxu0 %v20455_v27 }
 0xc04   :  { %v20649_v25 = vpop.f32.mrb[56].mxu0 }
 0xc05   :  { %v20650_v52 = vpop.f32.mrb[57].mxu0 }
 0xc06   :  { %v20651_v61 = vadd.f32 %v20650_v52, %v20649_v25  ;;  %v20652_v23 = vpop.f32.mrb[58].mxu0 }
 0xc07   :  { %v20653_v59 = vpop.f32.mrb[59].mxu0 }
 0xc08   :  { %v18052_v10 = vadd.f32 %v20651_v61, %v18012_v49 }
 0xc0a   :  { %18057 = vst [vmem:[%s24979_s9] sm:$0xff] %v18052_v10 }
 0xc0b   :  { %18062 = vsyncpa [#allocation6], 1 }
 0xc0c   :  { %18063 = vsyncpa [#allocation8], 1 }
 0xc0d   :  { %18064 = vsyncpa [#allocation11], 1 }
 0xc0e   :  { %18065 = vsyncpa [#allocation14], 1 }
 0xc0f   :  { %18066 = vsyncpa [#allocation17], 1 }

</bundles_post_ra>
